<compile_context>
chip_gen: v7x
topology: tpu7x:2x2x1
jax: 0.10.0
libtpu: 0.0.40
codegen_flags: <defaults>
</compile_context>

<pallas_src>
import functools

import jax
import jax.numpy as jnp
import numpy as np
from jax.experimental import pallas as pl
from jax.experimental.pallas import tpu as pltpu


def _stn_kernel(x_ref,
                w1_ref, b1_ref,
                w2_ref, b2_ref,
                w3_ref, b3_ref,
                w4_ref, b4_ref,
                w5_ref, b5_ref,
                w6_ref, b6_ref,
                out_ref,
                acc_ref,
                *, num_valid, c3_chunk):
    """One grid step: Bt batch elements x Nt points.

    x_ref    : (Bt, Nt, Cin)
    w*_ref   : full (Cin, Cout) weights (BN folded), b*_ref: (1, Cout) f32 biases.
    out_ref  : (Bt, k*k)  -- written only at the last point-tile.
    acc_ref  : (Bt, 1024) -- running max-pool accumulator (f32 VMEM scratch).
    num_valid: true number of points (int) if padded point rows exist, else None.
    c3_chunk : column-chunk size used for conv3 (bounds the live f32 intermediate).
    """
    ni = pl.program_id(1)
    bt, nt, cin = x_ref.shape
    c3 = acc_ref.shape[1]

    @pl.when(ni == 0)
    def _init():
        acc_ref[...] = jnp.full(acc_ref.shape, -jnp.inf, dtype=acc_ref.dtype)

    # Fold the batch tile into the matmul M dimension (layout-preserving merge;
    # nt is always a multiple of 8).
    x = x_ref[...].reshape(bt * nt, cin)

    # conv1 + bn1 + relu  (BN folded into w/b; f32 accumulate on the MXU)
    h = jnp.dot(x, w1_ref[...], preferred_element_type=jnp.float32) + b1_ref[...]
    h = jnp.maximum(h, 0.0).astype(w2_ref.dtype)               # (Bt*Nt, 64)

    # conv2 + bn2 + relu
    h = jnp.dot(h, w2_ref[...], preferred_element_type=jnp.float32) + b2_ref[...]
    h = jnp.maximum(h, 0.0).astype(w3_ref.dtype)               # (Bt*Nt, 128)

    # Mask for padded point rows (only emitted when padding exists).
    if num_valid is not None:
        row = jax.lax.broadcasted_iota(jnp.int32, (1, nt, 1), 1)
        valid = (ni * nt + row) < num_valid                    # (1, Nt, 1) bool
    else:
        valid = None

    # conv3 + bn3 + relu + per-batch max, chunked over the 1024 output columns so
    # the live f32 intermediate is only (Bt*Nt, c3_chunk).
    for lo in range(0, c3, c3_chunk):
        hi = lo + c3_chunk
        hc = jnp.dot(h, w3_ref[:, lo:hi],
                     preferred_element_type=jnp.float32) + b3_ref[:, lo:hi]
        hc = jnp.maximum(hc, 0.0)                              # (Bt*Nt, chunk) f32
        hc = hc.reshape(bt, nt, c3_chunk)
        if valid is not None:
            hc = jnp.where(valid, hc, -jnp.inf)                # mask padded rows
        chunk_max = jnp.max(hc, axis=1)                        # (Bt, chunk)
        acc_ref[:, lo:hi] = jnp.maximum(acc_ref[:, lo:hi], chunk_max)

    # FC head on the pooled features, once per batch tile (M = Bt).
    @pl.when(ni == pl.num_programs(1) - 1)
    def _fc_head():
        g = acc_ref[...].astype(w4_ref.dtype)                  # (Bt, 1024)

        f = jnp.dot(g, w4_ref[...], preferred_element_type=jnp.float32) + b4_ref[...]
        f = jnp.maximum(f, 0.0).astype(w5_ref.dtype)           # (Bt, 512)

        f = jnp.dot(f, w5_ref[...], preferred_element_type=jnp.float32) + b5_ref[...]
        f = jnp.maximum(f, 0.0).astype(w6_ref.dtype)           # (Bt, 256)

        # fc3 (identity matrix already folded into b6 in glue code)
        f = jnp.dot(f, w6_ref[...], preferred_element_type=jnp.float32) + b6_ref[...]
        out_ref[...] = f.astype(out_ref.dtype)                 # (Bt, k*k)


def _round_up(x, m):
    return ((x + m - 1) // m) * m


def _choose_batch_tile(B, preferred):
    """Divisor of B, legal as an output sublane block (bt%8==0 or bt==B),
    preferring >=2 grid steps so v7x's two TensorCores both get work."""
    cands = [bt for bt in range(1, B + 1)
             if B % bt == 0 and (bt % 8 == 0 or bt == B)]
    good = [bt for bt in cands if bt <= preferred and B // bt >= 2]
    if good:
        return max(good)
    small = [bt for bt in cands if bt <= preferred]
    if small:
        return max(small)
    return B


def _choose_point_tiling(N, preferred):
    """Pick (nt, n_pad): nt is a multiple of 8, n_pad = nt * n_tiles >= N, with
    minimal padding (never falls back to nt=N for large N)."""
    n_tiles = max(1, -(-N // preferred))          # cdiv
    nt = _round_up(-(-N // n_tiles), 8)
    return nt, nt * n_tiles


def stnkd_forward(x_ncw, params, *, k, point_tile=512, batch_tile=16, c3_chunk=256):
    """x_ncw: (B, k, N) float32 (PyTorch NCW layout).  Returns (B, k, k) float32."""
    B, cin, N = x_ncw.shape
    assert cin == k
    (w1, b1), (w2, b2), (w3, b3), (w4, b4), (w5, b5), (w6, b6) = params
    compute_dtype = w1.dtype
    c3 = w3.shape[1]                                           # 1024
    if c3 % c3_chunk != 0:
        c3_chunk = c3

    # Glue: points-major layout; compute-dtype (bf16) cast fused into the same
    # pass so the extra HBM traffic is halved.
    x = jnp.transpose(x_ncw, (0, 2, 1)).astype(compute_dtype)  # (B, N, k)

    bt = _choose_batch_tile(B, batch_tile)
    nt, n_pad = _choose_point_tiling(N, point_tile)
    if n_pad != N:
        # Zero-pad the point axis; padded rows are masked to -inf in-kernel
        # before the max (zero-padding alone is not max-safe).
        x = jnp.pad(x, ((0, 0), (0, n_pad - N), (0, 0)))
        num_valid = N
    else:
        num_valid = None

    # Fold the flattened identity into the fc3 bias (constant, trace-time, free).
    b6 = b6.astype(jnp.float32) + jnp.eye(k, dtype=jnp.float32).reshape(1, k * k)

    full = lambda a: pl.BlockSpec(a.shape, lambda bi, ni: (0,) * a.ndim)

    kernel = functools.partial(_stn_kernel, num_valid=num_valid, c3_chunk=c3_chunk)

    out_flat = pl.pallas_call(
        kernel,
        out_shape=jax.ShapeDtypeStruct((B, k * k), jnp.float32),
        grid_spec=pltpu.PrefetchScalarGridSpec(
            num_scalar_prefetch=0,
            grid=(B // bt, n_pad // nt),
            in_specs=[
                pl.BlockSpec((bt, nt, k), lambda bi, ni: (bi, ni, 0)),
                full(w1), full(b1),
                full(w2), full(b2),
                full(w3), full(b3),
                full(w4), full(b4),
                full(w5), full(b5),
                full(w6), full(b6),
            ],
            out_specs=pl.BlockSpec((bt, k * k), lambda bi, ni: (bi, 0)),
            scratch_shapes=[pltpu.VMEM((bt, c3), jnp.float32)],
        ),
        compiler_params=pltpu.CompilerParams(
            dimension_semantics=("parallel", "arbitrary"),
            vmem_limit_bytes=48 * 1024 * 1024,   # headroom on v7x's 64 MiB/TC VMEM
        ),
    )(x, w1, b1, w2, b2, w3, b3, w4, b4, w5, b5, w6, b6)

    return out_flat.reshape(B, k, k)


def _fold_bn(w, b, gamma, beta, mean, var, eps=1e-5):
    """Fold inference-mode BatchNorm into a (Cin, Cout) weight + (1, Cout) bias."""
    s = gamma / jnp.sqrt(var + eps)
    w_f = w * s[None, :]
    b_f = (b - mean) * s + beta
    return w_f, b_f[None, :]


def make_params(key, k, dtype=jnp.bfloat16):
    """Deterministic synthetic parameters matching STNkd's layer shapes.
    Weights in `dtype` (bf16 default: MXU-native), biases kept in f32."""
    dims = [(k, 64), (64, 128), (128, 1024), (1024, 512), (512, 256), (256, k * k)]
    keys = jax.random.split(key, 36)
    params = []
    ki = 0
    for li, (cin, cout) in enumerate(dims):
        w = jax.random.normal(keys[ki], (cin, cout), jnp.float32) * 0.05; ki += 1
        b = jax.random.normal(keys[ki], (cout,), jnp.float32) * 0.05;     ki += 1
        if li < 5:  # conv1..conv3, fc1, fc2 are followed by BatchNorm
            gamma = 1.0 + 0.1 * jax.random.normal(keys[ki], (cout,), jnp.float32); ki += 1
            beta = 0.1 * jax.random.normal(keys[ki], (cout,), jnp.float32);        ki += 1
            mean = 0.1 * jax.random.normal(keys[ki], (cout,), jnp.float32);        ki += 1
            var = jnp.abs(jax.random.normal(keys[ki], (cout,), jnp.float32)) + 0.5; ki += 1
            w, b = _fold_bn(w, b, gamma, beta, mean, var)
        else:       # fc3 has no BN
            b = b[None, :]
            ki += 4
        params.append((w.astype(dtype), b.astype(jnp.float32)))
    return params


def _reference(x_ncw, params, k):
    """Pure-JAX f32 reference of the same (BN-folded) forward pass."""
    x = jnp.transpose(x_ncw, (0, 2, 1)).astype(jnp.float32)    # (B, N, k)
    (w1, b1), (w2, b2), (w3, b3), (w4, b4), (w5, b5), (w6, b6) = [
        (w.astype(jnp.float32), b.astype(jnp.float32)) for (w, b) in params]
    h = jnp.maximum(x @ w1 + b1, 0.0)
    h = jnp.maximum(h @ w2 + b2, 0.0)
    h = jnp.maximum(h @ w3 + b3, 0.0)
    g = jnp.max(h, axis=1)                                     # (B, 1024)
    f = jnp.maximum(g @ w4 + b4, 0.0)
    f = jnp.maximum(f @ w5 + b5, 0.0)
    f = f @ w6 + b6
    f = f + jnp.eye(k, dtype=jnp.float32).reshape(1, k * k)
    return f.reshape(-1, k, k)


if __name__ == "__main__":
    K = 16  # feature-transform size (module default is 64; small here)

    key = jax.random.PRNGKey(0)
    k_x1, k_x2, k_p = jax.random.split(key, 3)

    # ---- Test 1: bf16 compute path (default), multi-tile point axis, no padding.
    B1, N1 = 2, 1024
    x1 = jax.random.normal(k_x1, (B1, K, N1), jnp.float32)      # PyTorch NCW layout
    params_bf16 = make_params(k_p, K, dtype=jnp.bfloat16)
    ref1 = _reference(x1, params_bf16, K)
    out1 = jax.block_until_ready(stnkd_forward(x1, params_bf16, k=K))
    assert out1.shape == (B1, K, K)
    np.testing.assert_allclose(np.asarray(out1), np.asarray(ref1), rtol=5e-2, atol=1e-1)

    # ---- Test 2: f32 path, ragged N (padding + -inf masking) and multiple
    #      batch/point grid steps.
    B2, N2 = 16, 200
    x2 = jax.random.normal(k_x2, (B2, K, N2), jnp.float32)
    params_f32 = [(w.astype(jnp.float32), b) for (w, b) in params_bf16]
    ref2 = _reference(x2, params_f32, K)
    out2 = jax.block_until_ready(
        stnkd_forward(x2, params_f32, k=K, point_tile=64, batch_tile=8))
    assert out2.shape == (B2, K, K)
    np.testing.assert_allclose(np.asarray(out2), np.asarray(ref2), rtol=1e-3, atol=1e-3)

    print("KERNEL_OK")
</pallas_src>

<mosaic_0001>
module attributes {stable_mosaic.version = 11 : i64} {
  func.func @_stn_kernel(%arg0: i32, %arg1: i32, %arg2: memref<2x512x16xbf16, #tpu.memory_space<vmem>>, %arg3: memref<16x64xbf16, #tpu.memory_space<vmem>>, %arg4: memref<1x64xf32, #tpu.memory_space<vmem>>, %arg5: memref<64x128xbf16, #tpu.memory_space<vmem>>, %arg6: memref<1x128xf32, #tpu.memory_space<vmem>>, %arg7: memref<128x1024xbf16, #tpu.memory_space<vmem>>, %arg8: memref<1x1024xf32, #tpu.memory_space<vmem>>, %arg9: memref<1024x512xbf16, #tpu.memory_space<vmem>>, %arg10: memref<1x512xf32, #tpu.memory_space<vmem>>, %arg11: memref<512x256xbf16, #tpu.memory_space<vmem>>, %arg12: memref<1x256xf32, #tpu.memory_space<vmem>>, %arg13: memref<256x256xbf16, #tpu.memory_space<vmem>>, %arg14: memref<1x256xf32, #tpu.memory_space<vmem>>, %arg15: memref<2x256xf32, #tpu.memory_space<vmem>>, %arg16: memref<2x1024xf32, #tpu.memory_space<vmem>>) attributes {dimension_semantics = [#tpu.dimension_semantics<parallel>, #tpu.dimension_semantics<arbitrary>], iteration_bounds = array<i64: 1, 2>, scalar_prefetch = 0 : i64, scratch_operands = 1 : i64, tpu.core_type = #tpu.core_type<tc>, window_params = [{transform_indices = @transform_0, window_bounds = array<i64: 2, 512, 16>}, {pipeline_mode = #tpu.pipeline_mode<synchronous>, transform_indices = @transform_1, window_bounds = array<i64: 16, 64>}, {pipeline_mode = #tpu.pipeline_mode<synchronous>, transform_indices = @transform_2, window_bounds = array<i64: 1, 64>}, {pipeline_mode = #tpu.pipeline_mode<synchronous>, transform_indices = @transform_3, window_bounds = array<i64: 64, 128>}, {pipeline_mode = #tpu.pipeline_mode<synchronous>, transform_indices = @transform_4, window_bounds = array<i64: 1, 128>}, {pipeline_mode = #tpu.pipeline_mode<synchronous>, transform_indices = @transform_5, window_bounds = array<i64: 128, 1024>}, {pipeline_mode = #tpu.pipeline_mode<synchronous>, transform_indices = @transform_6, window_bounds = array<i64: 1, 1024>}, {pipeline_mode = #tpu.pipeline_mode<synchronous>, transform_indices = @transform_7, window_bounds = array<i64: 1024, 512>}, {pipeline_mode = #tpu.pipeline_mode<synchronous>, transform_indices = @transform_8, window_bounds = array<i64: 1, 512>}, {pipeline_mode = #tpu.pipeline_mode<synchronous>, transform_indices = @transform_9, window_bounds = array<i64: 512, 256>}, {pipeline_mode = #tpu.pipeline_mode<synchronous>, transform_indices = @transform_10, window_bounds = array<i64: 1, 256>}, {pipeline_mode = #tpu.pipeline_mode<synchronous>, transform_indices = @transform_11, window_bounds = array<i64: 256, 256>}, {pipeline_mode = #tpu.pipeline_mode<synchronous>, transform_indices = @transform_12, window_bounds = array<i64: 1, 256>}, {transform_indices = @transform_13, window_bounds = array<i64: 2, 256>}]} {
    %c0_i32 = arith.constant 0 : i32
    %0 = arith.cmpi eq, %arg1, %c0_i32 : i32
    %1 = arith.extui %0 : i1 to i32
    %c0_i32_0 = arith.constant 0 : i32
    %2 = arith.cmpi ne, %1, %c0_i32_0 : i32
    scf.if %2 {
      %cst_56 = arith.constant 0xFF800000 : f32
      %72 = vector.broadcast %cst_56 : f32 to vector<2x1024xf32>
      %c0_57 = arith.constant 0 : index
      %c0_58 = arith.constant 0 : index
      %73 = vector.load %arg16[%c0_57, %c0_58] : memref<2x1024xf32, #tpu.memory_space<vmem>>, vector<2x1024xf32>
      tpu.vector_store %arg16[%c0_57, %c0_58], %72 {strides = array<i32>} : memref<2x1024xf32, #tpu.memory_space<vmem>>, vector<2x1024xf32>,
    } else {
    }
    %c0 = arith.constant 0 : index
    %c0_1 = arith.constant 0 : index
    %c0_2 = arith.constant 0 : index
    %3 = vector.load %arg2[%c0, %c0_1, %c0_2] : memref<2x512x16xbf16, #tpu.memory_space<vmem>>, vector<2x512x16xbf16>
    %4 = vector.shape_cast %3 : vector<2x512x16xbf16> to vector<1024x16xbf16>
    %c0_3 = arith.constant 0 : index
    %c0_4 = arith.constant 0 : index
    %5 = vector.load %arg3[%c0_3, %c0_4] : memref<16x64xbf16, #tpu.memory_space<vmem>>, vector<16x64xbf16>
    %cst = arith.constant dense<0.000000e+00> : vector<1024x64xf32>
    %6 = tpu.matmul %4, %5, %cst {dimension_numbers = #tpu.dot_dimension_numbers<[1], [0], [0], [1], [0, 0, 1, 1], [], []>} : vector<1024x16xbf16>, vector<16x64xbf16>, vector<1024x64xf32> -> vector<1024x64xf32>
    %c0_5 = arith.constant 0 : index
    %c0_6 = arith.constant 0 : index
    %7 = vector.load %arg4[%c0_5, %c0_6] : memref<1x64xf32, #tpu.memory_space<vmem>>, vector<1x64xf32>
    %8 = vector.broadcast %7 : vector<1x64xf32> to vector<1024x64xf32>
    %9 = arith.addf %6, %8 : vector<1024x64xf32>
    %cst_7 = arith.constant 0.000000e+00 : f32
    %10 = vector.broadcast %cst_7 : f32 to vector<1024x64xf32>
    %11 = arith.maximumf %9, %10 : vector<1024x64xf32>
    %12 = arith.truncf %11 : vector<1024x64xf32> to vector<1024x64xbf16>
    %c0_8 = arith.constant 0 : index
    %c0_9 = arith.constant 0 : index
    %13 = vector.load %arg5[%c0_8, %c0_9] : memref<64x128xbf16, #tpu.memory_space<vmem>>, vector<64x128xbf16>
    %cst_10 = arith.constant dense<0.000000e+00> : vector<1024x128xf32>
    %14 = tpu.matmul %12, %13, %cst_10 {dimension_numbers = #tpu.dot_dimension_numbers<[1], [0], [0], [1], [0, 0, 1, 1], [], []>} : vector<1024x64xbf16>, vector<64x128xbf16>, vector<1024x128xf32> -> vector<1024x128xf32>
    %c0_11 = arith.constant 0 : index
    %c0_12 = arith.constant 0 : index
    %15 = vector.load %arg6[%c0_11, %c0_12] : memref<1x128xf32, #tpu.memory_space<vmem>>, vector<1x128xf32>
    %16 = vector.broadcast %15 : vector<1x128xf32> to vector<1024x128xf32>
    %17 = arith.addf %14, %16 : vector<1024x128xf32>
    %cst_13 = arith.constant 0.000000e+00 : f32
    %18 = vector.broadcast %cst_13 : f32 to vector<1024x128xf32>
    %19 = arith.maximumf %17, %18 : vector<1024x128xf32>
    %20 = arith.truncf %19 : vector<1024x128xf32> to vector<1024x128xbf16>
    %c0_14 = arith.constant 0 : index
    %c0_15 = arith.constant 0 : index
    %21 = vector.load %arg7[%c0_14, %c0_15] : memref<128x1024xbf16, #tpu.memory_space<vmem>>, vector<128x256xbf16>
    %cst_16 = arith.constant dense<0.000000e+00> : vector<1024x256xf32>
    %22 = tpu.matmul %20, %21, %cst_16 {dimension_numbers = #tpu.dot_dimension_numbers<[1], [0], [0], [1], [0, 0, 1, 1], [], []>} : vector<1024x128xbf16>, vector<128x256xbf16>, vector<1024x256xf32> -> vector<1024x256xf32>
    %c0_17 = arith.constant 0 : index
    %c0_18 = arith.constant 0 : index
    %23 = vector.load %arg8[%c0_17, %c0_18] : memref<1x1024xf32, #tpu.memory_space<vmem>>, vector<1x256xf32>
    %24 = vector.broadcast %23 : vector<1x256xf32> to vector<1024x256xf32>
    %25 = arith.addf %22, %24 : vector<1024x256xf32>
    %cst_19 = arith.constant 0.000000e+00 : f32
    %26 = vector.broadcast %cst_19 : f32 to vector<1024x256xf32>
    %27 = arith.maximumf %25, %26 : vector<1024x256xf32>
    %28 = vector.shape_cast %27 : vector<1024x256xf32> to vector<2x512x256xf32>
    %cst_20 = arith.constant dense<0xFF800000> : vector<2x256xf32>
    %29 = vector.multi_reduction <maximumf>, %28, %cst_20 [1] : vector<2x512x256xf32> to vector<2x256xf32>
    %c0_21 = arith.constant 0 : index
    %c0_22 = arith.constant 0 : index
    %30 = vector.load %arg16[%c0_21, %c0_22] : memref<2x1024xf32, #tpu.memory_space<vmem>>, vector<2x256xf32>
    %31 = arith.maximumf %30, %29 : vector<2x256xf32>
    %c0_23 = arith.constant 0 : index
    %c0_24 = arith.constant 0 : index
    %32 = vector.load %arg16[%c0_23, %c0_24] : memref<2x1024xf32, #tpu.memory_space<vmem>>, vector<2x256xf32>
    tpu.vector_store %arg16[%c0_23, %c0_24], %31 {strides = array<i32>} : memref<2x1024xf32, #tpu.memory_space<vmem>>, vector<2x256xf32>,
    %c0_25 = arith.constant 0 : index
    %c256 = arith.constant 256 : index
    %33 = vector.load %arg7[%c0_25, %c256] : memref<128x1024xbf16, #tpu.memory_space<vmem>>, vector<128x256xbf16>
    %cst_26 = arith.constant dense<0.000000e+00> : vector<1024x256xf32>
    %34 = tpu.matmul %20, %33, %cst_26 {dimension_numbers = #tpu.dot_dimension_numbers<[1], [0], [0], [1], [0, 0, 1, 1], [], []>} : vector<1024x128xbf16>, vector<128x256xbf16>, vector<1024x256xf32> -> vector<1024x256xf32>
    %c0_27 = arith.constant 0 : index
    %c256_28 = arith.constant 256 : index
    %35 = vector.load %arg8[%c0_27, %c256_28] : memref<1x1024xf32, #tpu.memory_space<vmem>>, vector<1x256xf32>
    %36 = vector.broadcast %35 : vector<1x256xf32> to vector<1024x256xf32>
    %37 = arith.addf %34, %36 : vector<1024x256xf32>
    %cst_29 = arith.constant 0.000000e+00 : f32
    %38 = vector.broadcast %cst_29 : f32 to vector<1024x256xf32>
    %39 = arith.maximumf %37, %38 : vector<1024x256xf32>
    %40 = vector.shape_cast %39 : vector<1024x256xf32> to vector<2x512x256xf32>
    %cst_30 = arith.constant dense<0xFF800000> : vector<2x256xf32>
    %41 = vector.multi_reduction <maximumf>, %40, %cst_30 [1] : vector<2x512x256xf32> to vector<2x256xf32>
    %c0_31 = arith.constant 0 : index
    %c256_32 = arith.constant 256 : index
    %42 = vector.load %arg16[%c0_31, %c256_32] : memref<2x1024xf32, #tpu.memory_space<vmem>>, vector<2x256xf32>
    %43 = arith.maximumf %42, %41 : vector<2x256xf32>
    %c0_33 = arith.constant 0 : index
    %c256_34 = arith.constant 256 : index
    %44 = vector.load %arg16[%c0_33, %c256_34] : memref<2x1024xf32, #tpu.memory_space<vmem>>, vector<2x256xf32>
    tpu.vector_store %arg16[%c0_33, %c256_34], %43 {strides = array<i32>} : memref<2x1024xf32, #tpu.memory_space<vmem>>, vector<2x256xf32>,
    %c0_35 = arith.constant 0 : index
    %c512 = arith.constant 512 : index
    %45 = vector.load %arg7[%c0_35, %c512] : memref<128x1024xbf16, #tpu.memory_space<vmem>>, vector<128x256xbf16>
    %cst_36 = arith.constant dense<0.000000e+00> : vector<1024x256xf32>
    %46 = tpu.matmul %20, %45, %cst_36 {dimension_numbers = #tpu.dot_dimension_numbers<[1], [0], [0], [1], [0, 0, 1, 1], [], []>} : vector<1024x128xbf16>, vector<128x256xbf16>, vector<1024x256xf32> -> vector<1024x256xf32>
    %c0_37 = arith.constant 0 : index
    %c512_38 = arith.constant 512 : index
    %47 = vector.load %arg8[%c0_37, %c512_38] : memref<1x1024xf32, #tpu.memory_space<vmem>>, vector<1x256xf32>
    %48 = vector.broadcast %47 : vector<1x256xf32> to vector<1024x256xf32>
    %49 = arith.addf %46, %48 : vector<1024x256xf32>
    %cst_39 = arith.constant 0.000000e+00 : f32
    %50 = vector.broadcast %cst_39 : f32 to vector<1024x256xf32>
    %51 = arith.maximumf %49, %50 : vector<1024x256xf32>
    %52 = vector.shape_cast %51 : vector<1024x256xf32> to vector<2x512x256xf32>
    %cst_40 = arith.constant dense<0xFF800000> : vector<2x256xf32>
    %53 = vector.multi_reduction <maximumf>, %52, %cst_40 [1] : vector<2x512x256xf32> to vector<2x256xf32>
    %c0_41 = arith.constant 0 : index
    %c512_42 = arith.constant 512 : index
    %54 = vector.load %arg16[%c0_41, %c512_42] : memref<2x1024xf32, #tpu.memory_space<vmem>>, vector<2x256xf32>
    %55 = arith.maximumf %54, %53 : vector<2x256xf32>
    %c0_43 = arith.constant 0 : index
    %c512_44 = arith.constant 512 : index
    %56 = vector.load %arg16[%c0_43, %c512_44] : memref<2x1024xf32, #tpu.memory_space<vmem>>, vector<2x256xf32>
    tpu.vector_store %arg16[%c0_43, %c512_44], %55 {strides = array<i32>} : memref<2x1024xf32, #tpu.memory_space<vmem>>, vector<2x256xf32>,
    %c0_45 = arith.constant 0 : index
    %c768 = arith.constant 768 : index
    %57 = vector.load %arg7[%c0_45, %c768] : memref<128x1024xbf16, #tpu.memory_space<vmem>>, vector<128x256xbf16>
    %cst_46 = arith.constant dense<0.000000e+00> : vector<1024x256xf32>
    %58 = tpu.matmul %20, %57, %cst_46 {dimension_numbers = #tpu.dot_dimension_numbers<[1], [0], [0], [1], [0, 0, 1, 1], [], []>} : vector<1024x128xbf16>, vector<128x256xbf16>, vector<1024x256xf32> -> vector<1024x256xf32>
    %c0_47 = arith.constant 0 : index
    %c768_48 = arith.constant 768 : index
    %59 = vector.load %arg8[%c0_47, %c768_48] : memref<1x1024xf32, #tpu.memory_space<vmem>>, vector<1x256xf32>
    %60 = vector.broadcast %59 : vector<1x256xf32> to vector<1024x256xf32>
    %61 = arith.addf %58, %60 : vector<1024x256xf32>
    %cst_49 = arith.constant 0.000000e+00 : f32
    %62 = vector.broadcast %cst_49 : f32 to vector<1024x256xf32>
    %63 = arith.maximumf %61, %62 : vector<1024x256xf32>
    %64 = vector.shape_cast %63 : vector<1024x256xf32> to vector<2x512x256xf32>
    %cst_50 = arith.constant dense<0xFF800000> : vector<2x256xf32>
    %65 = vector.multi_reduction <maximumf>, %64, %cst_50 [1] : vector<2x512x256xf32> to vector<2x256xf32>
    %c0_51 = arith.constant 0 : index
    %c768_52 = arith.constant 768 : index
    %66 = vector.load %arg16[%c0_51, %c768_52] : memref<2x1024xf32, #tpu.memory_space<vmem>>, vector<2x256xf32>
    %67 = arith.maximumf %66, %65 : vector<2x256xf32>
    %c0_53 = arith.constant 0 : index
    %c768_54 = arith.constant 768 : index
    %68 = vector.load %arg16[%c0_53, %c768_54] : memref<2x1024xf32, #tpu.memory_space<vmem>>, vector<2x256xf32>
    tpu.vector_store %arg16[%c0_53, %c768_54], %67 {strides = array<i32>} : memref<2x1024xf32, #tpu.memory_space<vmem>>, vector<2x256xf32>,
    %c1_i32 = arith.constant 1 : i32
    %69 = arith.cmpi eq, %arg1, %c1_i32 : i32
    %70 = arith.extui %69 : i1 to i32
    %c0_i32_55 = arith.constant 0 : i32
    %71 = arith.cmpi ne, %70, %c0_i32_55 : i32
    scf.if %71 {
      %c0_56 = arith.constant 0 : index
      %c0_57 = arith.constant 0 : index
      %72 = vector.load %arg16[%c0_56, %c0_57] : memref<2x1024xf32, #tpu.memory_space<vmem>>, vector<2x1024xf32>
      %73 = arith.truncf %72 : vector<2x1024xf32> to vector<2x1024xbf16>
      %c0_58 = arith.constant 0 : index
      %c0_59 = arith.constant 0 : index
      %74 = vector.load %arg9[%c0_58, %c0_59] : memref<1024x512xbf16, #tpu.memory_space<vmem>>, vector<1024x512xbf16>
      %cst_60 = arith.constant dense<0.000000e+00> : vector<2x512xf32>
      %75 = tpu.matmul %73, %74, %cst_60 {dimension_numbers = #tpu.dot_dimension_numbers<[1], [0], [0], [1], [0, 0, 1, 1], [], []>} : vector<2x1024xbf16>, vector<1024x512xbf16>, vector<2x512xf32> -> vector<2x512xf32>
      %c0_61 = arith.constant 0 : index
      %c0_62 = arith.constant 0 : index
      %76 = vector.load %arg10[%c0_61, %c0_62] : memref<1x512xf32, #tpu.memory_space<vmem>>, vector<1x512xf32>
      %77 = vector.broadcast %76 : vector<1x512xf32> to vector<2x512xf32>
      %78 = arith.addf %75, %77 : vector<2x512xf32>
      %cst_63 = arith.constant 0.000000e+00 : f32
      %79 = vector.broadcast %cst_63 : f32 to vector<2x512xf32>
      %80 = arith.maximumf %78, %79 : vector<2x512xf32>
      %81 = arith.truncf %80 : vector<2x512xf32> to vector<2x512xbf16>
      %c0_64 = arith.constant 0 : index
      %c0_65 = arith.constant 0 : index
      %82 = vector.load %arg11[%c0_64, %c0_65] : memref<512x256xbf16, #tpu.memory_space<vmem>>, vector<512x256xbf16>
      %cst_66 = arith.constant dense<0.000000e+00> : vector<2x256xf32>
      %83 = tpu.matmul %81, %82, %cst_66 {dimension_numbers = #tpu.dot_dimension_numbers<[1], [0], [0], [1], [0, 0, 1, 1], [], []>} : vector<2x512xbf16>, vector<512x256xbf16>, vector<2x256xf32> -> vector<2x256xf32>
      %c0_67 = arith.constant 0 : index
      %c0_68 = arith.constant 0 : index
      %84 = vector.load %arg12[%c0_67, %c0_68] : memref<1x256xf32, #tpu.memory_space<vmem>>, vector<1x256xf32>
      %85 = vector.broadcast %84 : vector<1x256xf32> to vector<2x256xf32>
      %86 = arith.addf %83, %85 : vector<2x256xf32>
      %cst_69 = arith.constant 0.000000e+00 : f32
      %87 = vector.broadcast %cst_69 : f32 to vector<2x256xf32>
      %88 = arith.maximumf %86, %87 : vector<2x256xf32>
      %89 = arith.truncf %88 : vector<2x256xf32> to vector<2x256xbf16>
      %c0_70 = arith.constant 0 : index
      %c0_71 = arith.constant 0 : index
      %90 = vector.load %arg13[%c0_70, %c0_71] : memref<256x256xbf16, #tpu.memory_space<vmem>>, vector<256x256xbf16>
      %cst_72 = arith.constant dense<0.000000e+00> : vector<2x256xf32>
      %91 = tpu.matmul %89, %90, %cst_72 {dimension_numbers = #tpu.dot_dimension_numbers<[1], [0], [0], [1], [0, 0, 1, 1], [], []>} : vector<2x256xbf16>, vector<256x256xbf16>, vector<2x256xf32> -> vector<2x256xf32>
      %c0_73 = arith.constant 0 : index
      %c0_74 = arith.constant 0 : index
      %92 = vector.load %arg14[%c0_73, %c0_74] : memref<1x256xf32, #tpu.memory_space<vmem>>, vector<1x256xf32>
      %93 = vector.broadcast %92 : vector<1x256xf32> to vector<2x256xf32>
      %94 = arith.addf %91, %93 : vector<2x256xf32>
      %c0_75 = arith.constant 0 : index
      %c0_76 = arith.constant 0 : index
      %95 = vector.load %arg15[%c0_75, %c0_76] : memref<2x256xf32, #tpu.memory_space<vmem>>, vector<2x256xf32>
      tpu.vector_store %arg15[%c0_75, %c0_76], %94 {strides = array<i32>} : memref<2x256xf32, #tpu.memory_space<vmem>>, vector<2x256xf32>,
    } else {
    }
    return
  }
  func.func @transform_0(%arg0: i32, %arg1: i32) -> (i32, i32, i32) {
    %c0_i32 = arith.constant 0 : i32
    %c0_i32_0 = arith.constant 0 : i32
    return %arg0, %arg1, %c0_i32 : i32, i32, i32
  }
  func.func @transform_1(%arg0: i32, %arg1: i32) -> (i32, i32) {
    %c0_i32 = arith.constant 0 : i32
    %c0_i32_0 = arith.constant 0 : i32
    %c0_i32_1 = arith.constant 0 : i32
    return %c0_i32, %c0_i32_0 : i32, i32
  }
  func.func @transform_2(%arg0: i32, %arg1: i32) -> (i32, i32) {
    %c0_i32 = arith.constant 0 : i32
    %c0_i32_0 = arith.constant 0 : i32
    %c0_i32_1 = arith.constant 0 : i32
    return %c0_i32, %c0_i32_0 : i32, i32
  }
  func.func @transform_3(%arg0: i32, %arg1: i32) -> (i32, i32) {
    %c0_i32 = arith.constant 0 : i32
    %c0_i32_0 = arith.constant 0 : i32
    %c0_i32_1 = arith.constant 0 : i32
    return %c0_i32, %c0_i32_0 : i32, i32
  }
  func.func @transform_4(%arg0: i32, %arg1: i32) -> (i32, i32) {
    %c0_i32 = arith.constant 0 : i32
    %c0_i32_0 = arith.constant 0 : i32
    %c0_i32_1 = arith.constant 0 : i32
    return %c0_i32, %c0_i32_0 : i32, i32
  }
  func.func @transform_5(%arg0: i32, %arg1: i32) -> (i32, i32) {
    %c0_i32 = arith.constant 0 : i32
    %c0_i32_0 = arith.constant 0 : i32
    %c0_i32_1 = arith.constant 0 : i32
    return %c0_i32, %c0_i32_0 : i32, i32
  }
  func.func @transform_6(%arg0: i32, %arg1: i32) -> (i32, i32) {
    %c0_i32 = arith.constant 0 : i32
    %c0_i32_0 = arith.constant 0 : i32
    %c0_i32_1 = arith.constant 0 : i32
    return %c0_i32, %c0_i32_0 : i32, i32
  }
  func.func @transform_7(%arg0: i32, %arg1: i32) -> (i32, i32) {
    %c0_i32 = arith.constant 0 : i32
    %c0_i32_0 = arith.constant 0 : i32
    %c0_i32_1 = arith.constant 0 : i32
    return %c0_i32, %c0_i32_0 : i32, i32
  }
  func.func @transform_8(%arg0: i32, %arg1: i32) -> (i32, i32) {
    %c0_i32 = arith.constant 0 : i32
    %c0_i32_0 = arith.constant 0 : i32
    %c0_i32_1 = arith.constant 0 : i32
    return %c0_i32, %c0_i32_0 : i32, i32
  }
  func.func @transform_9(%arg0: i32, %arg1: i32) -> (i32, i32) {
    %c0_i32 = arith.constant 0 : i32
    %c0_i32_0 = arith.constant 0 : i32
    %c0_i32_1 = arith.constant 0 : i32
    return %c0_i32, %c0_i32_0 : i32, i32
  }
  func.func @transform_10(%arg0: i32, %arg1: i32) -> (i32, i32) {
    %c0_i32 = arith.constant 0 : i32
    %c0_i32_0 = arith.constant 0 : i32
    %c0_i32_1 = arith.constant 0 : i32
    return %c0_i32, %c0_i32_0 : i32, i32
  }
  func.func @transform_11(%arg0: i32, %arg1: i32) -> (i32, i32) {
    %c0_i32 = arith.constant 0 : i32
    %c0_i32_0 = arith.constant 0 : i32
    %c0_i32_1 = arith.constant 0 : i32
    return %c0_i32, %c0_i32_0 : i32, i32
  }
  func.func @transform_12(%arg0: i32, %arg1: i32) -> (i32, i32) {
    %c0_i32 = arith.constant 0 : i32
    %c0_i32_0 = arith.constant 0 : i32
    %c0_i32_1 = arith.constant 0 : i32
    return %c0_i32, %c0_i32_0 : i32, i32
  }
  func.func @transform_13(%arg0: i32, %arg1: i32) -> (i32, i32) {
    %c0_i32 = arith.constant 0 : i32
    %c0_i32_0 = arith.constant 0 : i32
    return %arg0, %c0_i32 : i32, i32
  }
}

</mosaic_0001>

<bundles_post_ra>
// kernel: tpu_custom_call.1
= control target key start
LH: loop header
LB: loop body
LE: loop exit
PB: predicated region body
PF: predicated region fallthrough
CT: control target
= control target key end

     0   :  { %s16548_s0 = inlined_call_operand.vmem [shape: bf16[2,1024,16], index: 0, kind: input, shape index: {}]   ;;  %s16549_s1 = inlined_call_operand.vmem [shape: bf16[16,64], index: 1, kind: input, shape index: {}]   ;;  %s16550_s2 = inlined_call_operand.vmem [shape: f32[1,64], index: 2, kind: input, shape index: {}]   ;;  %s16551_s3 = inlined_call_operand.vmem [shape: bf16[64,128], index: 3, kind: input, shape index: {}]   ;;  %s16552_s4 = inlined_call_operand.vmem [shape: f32[1,128], index: 4, kind: input, shape index: {}]   ;;  %s16553_s5 = inlined_call_operand.vmem [shape: bf16[128,1024], index: 5, kind: input, shape index: {}]   ;;  %s16554_s6 = inlined_call_operand.vmem [shape: f32[1,1024], index: 6, kind: input, shape index: {}]   ;;  %s16555_s7 = inlined_call_operand.hbm [shape: bf16[1024,512], index: 7, kind: input, shape index: {}]   ;;  %s16556_s8 = inlined_call_operand.vmem [shape: f32[1,512], index: 8, kind: input, shape index: {}]   ;;  %s16557_s9 = inlined_call_operand.vmem [shape: bf16[512,256], index: 9, kind: input, shape index: {}]   ;;  %s16558_s10 = inlined_call_operand.vmem [shape: f32[1,256], index: 10, kind: input, shape index: {}]   ;;  %s16559_s11 = inlined_call_operand.hbm [shape: bf16[256,256], index: 11, kind: input, shape index: {}]   ;;  %s16560_s12 = inlined_call_operand.vmem [shape: f32[1,256], index: 12, kind: input, shape index: {}]   ;;  %s16561_s13 = inlined_call_operand.hbm [shape: f32[2,256], index: 13, kind: output, shape index: {}]  }
   0x1   :  { %16664 = sst [smem:[#allocation61_spill]] %s16556_s8 }
   0x2   :  { %16665 = sst [smem:[#allocation62_spill]] %s16557_s9 }
   0x3   :  { %16666 = sst [smem:[#allocation63_spill]] %s16558_s10 }
   0x4   :  { %16667 = sst [smem:[#allocation64_spill]] %s16560_s12 }
   0x5   :  { %16668 = sst [smem:[#allocation65_spill]] %s16561_s13 }
   0x6   :  { %18 = vsyncpa [#allocation5], 0 }
   0x7   :  { %19 = vsyncpa [#allocation8], 0 }
   0x8   :  { %20 = vsyncpa [#allocation6], 0  ;;  %s13522_s25 = smov 0   ;;  %s13524_s26 = smov 0  }
   0x9   :  { %s13526_s27 = smov 0   ;;  %s13528_s28 = smov 0  }
   0xa   :  { %s13530_s29 = smov 0  }
   0xb LB: > { %s16562_s30 = sadd.s32 4294967295, %s13440_s29   ;;  %s35_s14 = sadd.s32 1, %s13436_s28  ;;  %s13440_s29 = sphi %s13530_s29, %s26_s29   ;;  %s13436_s28 = sphi %s13528_s28, %s16791_s28   ;;  %s13432_s27 = sphi %s13526_s27, %s16790_s27   ;;  %s13428_s26 = sphi %s13524_s26, %s16789_s26   ;;  %s13424_s25 = sphi %s13522_s25, %s16788_s25  }
   0xc   : > { %p36_p0 = scmp.ge.s32.totalorder %s35_s14, 2  ;;  %s47_s15 = sadd.s32 1, %s13428_s26 }
   0xd   : > { %p54_p1 = scmp.ne.s32.totalorder %s13428_s26, %s13424_s25  ;;  %p55_p2 = scmp.eq.s32.totalorder %s13440_s29, 0 }
   0xe   : > { %s16793_s14 = smov (%p36_p0, %s35_s14), 0  ;;  %p11565_p4 = scmp.ge.s32.totalorder %s13440_s29, 1 }
   0xf   : > { %16669 = sst [smem:[#allocation13_spill]] %s16793_s14  ;;  %p13555_p3 = por %p55_p2, %p54_p1 }
  0x10   : > { %s43_s17 = ssub.s32 %s13436_s28, %s16793_s14  ;;  %p349_p5 = scmp.lt.s32.totalorder %s13440_s29, 3 }
  0x11   : > { %s16670_s16 = scalar_select %p13555_p3, 1, 0 }
  0x12   : > { %p45_p6 = scmp.eq.s32.totalorder %s43_s17, 0  ;;  %p13563_p7 = pnand %p11565_p4, %p349_p5 }
  0x13   : > { %p13569_p8 = scmp.eq.s32.totalorder %s16562_s30, 0  ;;  %s13442_s21 = smov [#allocation4]  }
  0x14   : > { %s16671_s18 = scalar_select %p13563_p7, 1, 0 }
  0x15   : > { %s16672_s19 = scalar_select %p13569_p8, 1, 0 }
  0x16   : > { %s13574_s20 = scalar_select %p45_p6, %s13428_s26, %s47_s15  }
  0x17   : > { %p12644_p9 = pneg %p13563_p7  ;;  %s379_s22 = sshll.u32 %s13442_s21, 4  ;;  %s380_s22 = int_to_ptr.vmem [resolvable:$true] %s379_s22 }
  0x18   : > { %16673 = sst [smem:[#allocation14_spill]] %s13574_s20  ;;  %s13443_s24 = smov [#allocation7]  }
  0x19   : > { %p13580_p10 = pnand %p13569_p8, %p12644_p9  ;;  %s401_s17 = sshll.u32 %s13443_s24, 4  ;;  %s402_s17 = int_to_ptr.vmem [resolvable:$true] %s401_s17 }
  0x1a   : > { %s13308_s13 = scalar_lea.hbm %s16555_s7, 32768 }
  0x1b   : > { %p13309_p11 = scmp.ne.s32.totalorder %s16555_s7, %s13308_s13  ;;  %p13310_p12 = pneg %p13580_p10 }
  0x1c   : > { %p13315_p1 = scmp.lt.u32.totalorder %s13308_s13, %s16555_s7 }
  0x1d   : > { %p13311_p13 = pnand %p13310_p12, %p13309_p11 }
  0x1f   : > { %p13312_p0 = pneg %p13311_p13 }
  0x21   : > { %p13317_p2 = pnand %p13315_p1, %p13312_p0 }
  0x23   : > { %13320 = shalt.err (!%p13317_p2)
}
  0x24   : > { %s13321_s24 = scalar_lea.vmem %s380_s22, 32768  ;;  %p13329_p9 = scmp.lt.s32.totalorder %s380_s22, %s380_s22 }
  0x25   : > { %p13322_p4 = scmp.ne.s32.totalorder %s380_s22, %s13321_s24  ;;  %p13330_p8 = scmp.lt.s32.totalorder %s13321_s24, %s13321_s24 }
  0x27   : > { %p13324_p5 = pnand %p13322_p4, %p13310_p12  ;;  %p13331_p7 = por %p13330_p8, %p13329_p9 }
  0x29   : > { %p13325_p6 = pneg %p13324_p5 }
  0x2b   : > { %p13332_p3 = pnand %p13331_p7, %p13325_p6 }
  0x2d   : > { %13335 = shalt.err (!%p13332_p3)
}
  0x2e   : > { %s13444_s30 = smov 256   ;;  %s13445_s14 = smov 16  }
  0x2f   : > { %12647 = dma.hbm_to_vmem [thread:$0]  (!%p13580_p10), %s16555_s7, 32768, %s380_s22, [#allocation5], %s13444_s30, %s13444_s30, %s13445_s14  }
  0x30   : > { %s13336_s21 = scalar_lea.hbm %s16559_s11, 4096 }
  0x31   : > { %p13337_p8 = scmp.ne.s32.totalorder %s16559_s11, %s13336_s21  ;;  %p13343_p11 = scmp.lt.u32.totalorder %s13336_s21, %s16559_s11 }
  0x33   : > { %p13339_p3 = pnand %p13337_p8, %p13310_p12 }
  0x35   : > { %p13340_p7 = pneg %p13339_p3 }
  0x37   : > { %p13345_p13 = pnand %p13343_p11, %p13340_p7 }
  0x39   : > { %13348 = shalt.err (!%p13345_p13)
}
  0x3a   : > { %s13349_s22 = scalar_lea.vmem %s402_s17, 4096  ;;  %p13357_p4 = scmp.lt.s32.totalorder %s402_s17, %s402_s17 }
  0x3b   : > { %p13350_p0 = scmp.ne.s32.totalorder %s402_s17, %s13349_s22  ;;  %p13358_p5 = scmp.lt.s32.totalorder %s13349_s22, %s13349_s22 }
  0x3d   : > { %p13352_p1 = pnand %p13350_p0, %p13310_p12  ;;  %p13359_p6 = por %p13358_p5, %p13357_p4 }
  0x3f   : > { %p13353_p2 = pneg %p13352_p1 }
  0x41   : > { %p13360_p9 = pnand %p13359_p6, %p13353_p2 }
  0x43   : > { %13363 = shalt.err (!%p13360_p9)
}
  0x44   : > { %s13446_s8 = smov 128   ;;  %s13447_s10 = smov 8  }
  0x45   : > { %12650 = dma.hbm_to_vmem [thread:$0]  (!%p13580_p10), %s16559_s11, 4096, %s402_s17, [#allocation8], %s13446_s8, %s13446_s8, %s13447_s10  }
  0x46   : > { %p11568_p8 = scmp.ge.s32.totalorder %s13440_s29, 2 }
  0x47   : > { %p16675_p3 = scmp.ne.s32.totalorder (!%p11568_p8), %s16670_s16, 0 }
  0x48   : > { %414 = sbr.rel (%p11568_p8) target bundleno = 115 (0x73), region = 64 }
  0x4f   : > { %417 = sbr.rel (!%p16675_p3) target bundleno = 115 (0x73), region = 68  ;;  %s419_s14 = sand.u32 (%p16675_p3), 1, %s13428_s26  }
  0x50   : > { %s12198_s12 = sshll.u32 (%p16675_p3), %s13436_s28, 8  ;;  %s11569_s13 = sshll.u32 (%p16675_p3), %s419_s14, 9 }
  0x51   : > { %s13634_s21 = scalar_lea.vmem (%p16675_p3), %s16548_s0, %s12198_s12  ;;  %s13639_s16 = scalar_lea.vmem (%p16675_p3), [#allocation3], %s11569_s13 }
  0x52   : > { %v443_v0 = vld [vmem:[%s13634_s21] sm:$0xff] (%p16675_p3)   ;;  %v447_v1 = vld [vmem:[%s13634_s21 + $0x8] sm:$0xff] (%p16675_p3)   ;;  %v451_v2 = vld [vmem:[%s13634_s21 + $0x10] sm:$0xff] (%p16675_p3)  }
  0x53   : > { %444 = vst [vmem:[%s13639_s16] sm:$0xff] (%p16675_p3), %v443_v0   ;;  %448 = vst [vmem:[%s13639_s16 + $0x8] sm:$0xff] (%p16675_p3), %v447_v1   ;;  %v455_v3 = vld [vmem:[%s13634_s21 + $0x18] sm:$0xff] (%p16675_p3)   ;;  %v459_v4 = vld [vmem:[%s13634_s21 + $0x20] sm:$0xff] (%p16675_p3)  }
  0x54   : > { %452 = vst [vmem:[%s13639_s16 + $0x10] sm:$0xff] (%p16675_p3), %v451_v2   ;;  %v463_v5 = vld [vmem:[%s13634_s21 + $0x28] sm:$0xff] (%p16675_p3)   ;;  %456 = vst [vmem:[%s13639_s16 + $0x18] sm:$0xff] (%p16675_p3), %v455_v3   ;;  %v467_v6 = vld [vmem:[%s13634_s21 + $0x30] sm:$0xff] (%p16675_p3)  }
  0x55   : > { %460 = vst [vmem:[%s13639_s16 + $0x20] sm:$0xff] (%p16675_p3), %v459_v4   ;;  %464 = vst [vmem:[%s13639_s16 + $0x28] sm:$0xff] (%p16675_p3), %v463_v5   ;;  %v471_v7 = vld [vmem:[%s13634_s21 + $0x38] sm:$0xff] (%p16675_p3)   ;;  %v475_v8 = vld [vmem:[%s13634_s21 + $0x40] sm:$0xff] (%p16675_p3)  }
  0x56   : > { %468 = vst [vmem:[%s13639_s16 + $0x30] sm:$0xff] %v467_v6   ;;  %472 = vst [vmem:[%s13639_s16 + $0x38] sm:$0xff] %v471_v7   ;;  %v479_v9 = vld [vmem:[%s13634_s21 + $0x48] sm:$0xff]   ;;  %v483_v10 = vld [vmem:[%s13634_s21 + $0x50] sm:$0xff]  }
  0x57   : > { %476 = vst [vmem:[%s13639_s16 + $0x40] sm:$0xff] %v475_v8   ;;  %v487_v11 = vld [vmem:[%s13634_s21 + $0x58] sm:$0xff]   ;;  %480 = vst [vmem:[%s13639_s16 + $0x48] sm:$0xff] %v479_v9   ;;  %v491_v12 = vld [vmem:[%s13634_s21 + $0x60] sm:$0xff]  }
  0x58   : > { %484 = vst [vmem:[%s13639_s16 + $0x50] sm:$0xff] %v483_v10   ;;  %488 = vst [vmem:[%s13639_s16 + $0x58] sm:$0xff] %v487_v11   ;;  %v495_v13 = vld [vmem:[%s13634_s21 + $0x68] sm:$0xff]   ;;  %v499_v14 = vld [vmem:[%s13634_s21 + $0x70] sm:$0xff]  }
  0x59   : > { %492 = vst [vmem:[%s13639_s16 + $0x60] sm:$0xff] %v491_v12   ;;  %496 = vst [vmem:[%s13639_s16 + $0x68] sm:$0xff] %v495_v13   ;;  %v503_v15 = vld [vmem:[%s13634_s21 + $0x78] sm:$0xff]   ;;  %v507_v16 = vld [vmem:[%s13634_s21 + $0x80] sm:$0xff]  }
  0x5a   : > { %500 = vst [vmem:[%s13639_s16 + $0x70] sm:$0xff] %v499_v14   ;;  %v511_v17 = vld [vmem:[%s13634_s21 + $0x88] sm:$0xff]   ;;  %504 = vst [vmem:[%s13639_s16 + $0x78] sm:$0xff] %v503_v15   ;;  %v515_v18 = vld [vmem:[%s13634_s21 + $0x90] sm:$0xff]  }
  0x5b   : > { %508 = vst [vmem:[%s13639_s16 + $0x80] sm:$0xff] %v507_v16   ;;  %512 = vst [vmem:[%s13639_s16 + $0x88] sm:$0xff] %v511_v17   ;;  %v519_v19 = vld [vmem:[%s13634_s21 + $0x98] sm:$0xff]   ;;  %v523_v20 = vld [vmem:[%s13634_s21 + $0xa0] sm:$0xff]  }
  0x5c   : > { %516 = vst [vmem:[%s13639_s16 + $0x90] sm:$0xff] %v515_v18   ;;  %520 = vst [vmem:[%s13639_s16 + $0x98] sm:$0xff] %v519_v19   ;;  %v527_v21 = vld [vmem:[%s13634_s21 + $0xa8] sm:$0xff]   ;;  %v531_v22 = vld [vmem:[%s13634_s21 + $0xb0] sm:$0xff]  }
  0x5d   : > { %524 = vst [vmem:[%s13639_s16 + $0xa0] sm:$0xff] %v523_v20   ;;  %v535_v23 = vld [vmem:[%s13634_s21 + $0xb8] sm:$0xff]   ;;  %528 = vst [vmem:[%s13639_s16 + $0xa8] sm:$0xff] %v527_v21   ;;  %v539_v24 = vld [vmem:[%s13634_s21 + $0xc0] sm:$0xff]  }
  0x5e   : > { %532 = vst [vmem:[%s13639_s16 + $0xb0] sm:$0xff] %v531_v22   ;;  %536 = vst [vmem:[%s13639_s16 + $0xb8] sm:$0xff] %v535_v23   ;;  %v543_v25 = vld [vmem:[%s13634_s21 + $0xc8] sm:$0xff]   ;;  %v547_v26 = vld [vmem:[%s13634_s21 + $0xd0] sm:$0xff]  }
  0x5f   : > { %540 = vst [vmem:[%s13639_s16 + $0xc0] sm:$0xff] %v539_v24   ;;  %544 = vst [vmem:[%s13639_s16 + $0xc8] sm:$0xff] %v543_v25   ;;  %v551_v27 = vld [vmem:[%s13634_s21 + $0xd8] sm:$0xff]   ;;  %v555_v28 = vld [vmem:[%s13634_s21 + $0xe0] sm:$0xff]  }
  0x60   : > { %548 = vst [vmem:[%s13639_s16 + $0xd0] sm:$0xff] %v547_v26   ;;  %v559_v29 = vld [vmem:[%s13634_s21 + $0xe8] sm:$0xff]   ;;  %552 = vst [vmem:[%s13639_s16 + $0xd8] sm:$0xff] %v551_v27   ;;  %v563_v30 = vld [vmem:[%s13634_s21 + $0xf0] sm:$0xff]  }
  0x61   : > { %556 = vst [vmem:[%s13639_s16 + $0xe0] sm:$0xff] %v555_v28   ;;  %560 = vst [vmem:[%s13639_s16 + $0xe8] sm:$0xff] %v559_v29   ;;  %v567_v31 = vld [vmem:[%s13634_s21 + $0xf8] sm:$0xff]   ;;  %v571_v32 = vld [vmem:[%s13634_s21 + $0x200] sm:$0xff]  }
  0x62   : > { %564 = vst [vmem:[%s13639_s16 + $0xf0] sm:$0xff] %v563_v30   ;;  %568 = vst [vmem:[%s13639_s16 + $0xf8] sm:$0xff] %v567_v31   ;;  %v575_v33 = vld [vmem:[%s13634_s21 + $0x208] sm:$0xff]   ;;  %v579_v34 = vld [vmem:[%s13634_s21 + $0x210] sm:$0xff]  }
  0x63   : > { %572 = vst [vmem:[%s13639_s16 + $0x100] sm:$0xff] %v571_v32   ;;  %v583_v35 = vld [vmem:[%s13634_s21 + $0x218] sm:$0xff]   ;;  %576 = vst [vmem:[%s13639_s16 + $0x108] sm:$0xff] %v575_v33   ;;  %v587_v36 = vld [vmem:[%s13634_s21 + $0x220] sm:$0xff]  }
  0x64   : > { %580 = vst [vmem:[%s13639_s16 + $0x110] sm:$0xff] %v579_v34   ;;  %584 = vst [vmem:[%s13639_s16 + $0x118] sm:$0xff] %v583_v35   ;;  %v591_v37 = vld [vmem:[%s13634_s21 + $0x228] sm:$0xff]   ;;  %v595_v38 = vld [vmem:[%s13634_s21 + $0x230] sm:$0xff]  }
  0x65   : > { %588 = vst [vmem:[%s13639_s16 + $0x120] sm:$0xff] %v587_v36   ;;  %592 = vst [vmem:[%s13639_s16 + $0x128] sm:$0xff] %v591_v37   ;;  %v599_v39 = vld [vmem:[%s13634_s21 + $0x238] sm:$0xff]   ;;  %v603_v40 = vld [vmem:[%s13634_s21 + $0x240] sm:$0xff]  }
  0x66   : > { %596 = vst [vmem:[%s13639_s16 + $0x130] sm:$0xff] %v595_v38   ;;  %v607_v41 = vld [vmem:[%s13634_s21 + $0x248] sm:$0xff]   ;;  %600 = vst [vmem:[%s13639_s16 + $0x138] sm:$0xff] %v599_v39   ;;  %v611_v42 = vld [vmem:[%s13634_s21 + $0x250] sm:$0xff]  }
  0x67   : > { %604 = vst [vmem:[%s13639_s16 + $0x140] sm:$0xff] %v603_v40   ;;  %608 = vst [vmem:[%s13639_s16 + $0x148] sm:$0xff] %v607_v41   ;;  %v615_v43 = vld [vmem:[%s13634_s21 + $0x258] sm:$0xff]   ;;  %v619_v44 = vld [vmem:[%s13634_s21 + $0x260] sm:$0xff]  }
  0x68   : > { %612 = vst [vmem:[%s13639_s16 + $0x150] sm:$0xff] %v611_v42   ;;  %616 = vst [vmem:[%s13639_s16 + $0x158] sm:$0xff] %v615_v43   ;;  %v623_v45 = vld [vmem:[%s13634_s21 + $0x268] sm:$0xff]   ;;  %v627_v46 = vld [vmem:[%s13634_s21 + $0x270] sm:$0xff]  }
  0x69   : > { %620 = vst [vmem:[%s13639_s16 + $0x160] sm:$0xff] %v619_v44   ;;  %v631_v47 = vld [vmem:[%s13634_s21 + $0x278] sm:$0xff]   ;;  %624 = vst [vmem:[%s13639_s16 + $0x168] sm:$0xff] %v623_v45   ;;  %v635_v48 = vld [vmem:[%s13634_s21 + $0x280] sm:$0xff]  }
  0x6a   : > { %628 = vst [vmem:[%s13639_s16 + $0x170] sm:$0xff] %v627_v46   ;;  %632 = vst [vmem:[%s13639_s16 + $0x178] sm:$0xff] %v631_v47   ;;  %v639_v49 = vld [vmem:[%s13634_s21 + $0x288] sm:$0xff]   ;;  %v643_v50 = vld [vmem:[%s13634_s21 + $0x290] sm:$0xff]  }
  0x6b   : > { %636 = vst [vmem:[%s13639_s16 + $0x180] sm:$0xff] %v635_v48   ;;  %640 = vst [vmem:[%s13639_s16 + $0x188] sm:$0xff] %v639_v49   ;;  %v647_v51 = vld [vmem:[%s13634_s21 + $0x298] sm:$0xff]   ;;  %v651_v52 = vld [vmem:[%s13634_s21 + $0x2a0] sm:$0xff]  }
  0x6c   : > { %644 = vst [vmem:[%s13639_s16 + $0x190] sm:$0xff] %v643_v50   ;;  %v655_v53 = vld [vmem:[%s13634_s21 + $0x2a8] sm:$0xff]   ;;  %648 = vst [vmem:[%s13639_s16 + $0x198] sm:$0xff] %v647_v51   ;;  %v659_v54 = vld [vmem:[%s13634_s21 + $0x2b0] sm:$0xff]  }
  0x6d   : > { %652 = vst [vmem:[%s13639_s16 + $0x1a0] sm:$0xff] %v651_v52   ;;  %656 = vst [vmem:[%s13639_s16 + $0x1a8] sm:$0xff] %v655_v53   ;;  %v663_v55 = vld [vmem:[%s13634_s21 + $0x2b8] sm:$0xff]   ;;  %v667_v56 = vld [vmem:[%s13634_s21 + $0x2c0] sm:$0xff]  }
  0x6e   : > { %660 = vst [vmem:[%s13639_s16 + $0x1b0] sm:$0xff] %v659_v54   ;;  %664 = vst [vmem:[%s13639_s16 + $0x1b8] sm:$0xff] %v663_v55   ;;  %v671_v57 = vld [vmem:[%s13634_s21 + $0x2c8] sm:$0xff]   ;;  %v675_v58 = vld [vmem:[%s13634_s21 + $0x2d0] sm:$0xff]  }
  0x6f   : > { %668 = vst [vmem:[%s13639_s16 + $0x1c0] sm:$0xff] %v667_v56   ;;  %v679_v59 = vld [vmem:[%s13634_s21 + $0x2d8] sm:$0xff]   ;;  %672 = vst [vmem:[%s13639_s16 + $0x1c8] sm:$0xff] %v671_v57   ;;  %v683_v60 = vld [vmem:[%s13634_s21 + $0x2e0] sm:$0xff]  }
  0x70   : > { %676 = vst [vmem:[%s13639_s16 + $0x1d0] sm:$0xff] %v675_v58   ;;  %680 = vst [vmem:[%s13639_s16 + $0x1d8] sm:$0xff] %v679_v59   ;;  %v687_v61 = vld [vmem:[%s13634_s21 + $0x2e8] sm:$0xff]   ;;  %v691_v62 = vld [vmem:[%s13634_s21 + $0x2f0] sm:$0xff]  }
  0x71   : > { %684 = vst [vmem:[%s13639_s16 + $0x1e0] sm:$0xff] %v683_v60   ;;  %688 = vst [vmem:[%s13639_s16 + $0x1e8] sm:$0xff] %v687_v61   ;;  %v695_v63 = vld [vmem:[%s13634_s21 + $0x2f8] sm:$0xff]  }
  0x72   : > { %692 = vst [vmem:[%s13639_s16 + $0x1f0] sm:$0xff] %v691_v62   ;;  %696 = vst [vmem:[%s13639_s16 + $0x1f8] sm:$0xff] %v695_v63  }
  0x73 PF: > { %p16676_p10 = scmp.ne.s32.totalorder %s16671_s18, 0 }
  0x75   : > { %980 = sbr.rel (%p16676_p10) target bundleno = 2853 (0xb25), region = 109 }
  0x7c   : > { %s983_s23 = sand.u32 1, %s13424_s25   ;;  %p16677_p12 = scmp.ne.s32.totalorder %s16672_s19, 0 }
  0x7d   : > { %s11573_s17 = sshll.u32 %s983_s23, 9 }
  0x7e   : > { %s13769_s24 = scalar_lea.vmem [#allocation3], %s11573_s17 }
  0x7f   : > { %13411 = dma.done.wait (%p16677_p12), [#allocation5], 32768  }
  0x80   : > { %13413 = vsyncadd (%p16677_p12), [#allocation5], 4294934528 }
  0x81   : > { %13415 = dma.done.wait (%p16677_p12), [#allocation8], 4096  }
  0x82   : > { %13417 = vsyncadd (%p16677_p12), [#allocation8], 4294963200  ;;  %p11576_p7 = scmp.ne.s32.totalorder %s13432_s27, 0 }
  0x83   : > { %v13448_v0 = vmov (!%p11576_p7), -inf  }
  0x84   : > { %1035 = sbr.rel (%p11576_p7) target bundleno = 139 (0x8b), region = 125  ;;  %1036 = vst [vmem:[#allocation2] sm:$0xff] (!%p11576_p7), %v13448_v0  ;;  %1037 = vst [vmem:[#allocation2 + $0x8] sm:$0xff] (!%p11576_p7), %v13448_v0 }
  0x8b PF: > { %v12707_v1 = vld [vmem:[%s16549_s1] sm:$0xff]   ;;  %vm1501_vm0 = vcmask 130048   ;;  %v12708_v2 = vld [vmem:[%s13769_s24] sm:$0xff]   ;;  %v12709_v3 = vld [vmem:[%s13769_s24 + $0x8] sm:$0xff]   ;;  %vm2470_vm1 = vcmask 523264   ;;  %vm4739_vm2 = vcmask 1041409  }
  0x8c   : > { %12332 = vmatprep.subr.bf16.mxu0 %v12707_v1  ;;  %12334 = vmatprep.mubr.msk.bf16.mxu0 %vm1501_vm0, %v12708_v2  ;;  %v12710_v4 = vld [vmem:[%s13769_s24 + $0x10] sm:$0xff]   ;;  %v12711_v5 = vld [vmem:[%s13769_s24 + $0x18] sm:$0xff]   ;;  %v12712_v6 = vld [vmem:[%s13769_s24 + $0x20] sm:$0xff]   ;;  %vm4741_vm3 = vcmask 1043459   ;;  %vm4743_vm4 = vcmask 1045509   ;;  %vm4745_vm5 = vcmask 1047559  }
  0x8d   : > { %12333 = vmatpush3.bf16.msra.mxu0 %v12707_v1  ;;  %v12713_v7 = vld [vmem:[%s13769_s24 + $0x28] sm:$0xff]   ;;  %v12714_v8 = vld [vmem:[%s13769_s24 + $0x30] sm:$0xff]   ;;  %v12715_v9 = vld [vmem:[%s13769_s24 + $0x38] sm:$0xff]   ;;  %p11840_p11 = scmp.ne.s32.totalorder %s13432_s27, 1 }
  0x8e   : > { %v12716_v10 = vld [vmem:[%s13769_s24 + $0x40] sm:$0xff]   ;;  %v12717_v11 = vld [vmem:[%s13769_s24 + $0x48] sm:$0xff]   ;;  %v12718_v12 = vld [vmem:[%s13769_s24 + $0x50] sm:$0xff]   ;;  %s16776_s21 = sld [smem:[#allocation62_spill]] (!%p11840_p11)  ;;  %s16777_s14 = sld [smem:[#allocation61_spill]] (!%p11840_p11) }
  0x8f   : > { %v12719_v13 = vld [vmem:[%s13769_s24 + $0x58] sm:$0xff]   ;;  %v12720_v14 = vld [vmem:[%s13769_s24 + $0x60] sm:$0xff]   ;;  %v12721_v15 = vld [vmem:[%s13769_s24 + $0x68] sm:$0xff]   ;;  %s16780_s18 = sld [smem:[#allocation63_spill]] (!%p11840_p11)  ;;  %s16781_s8 = sld [smem:[#allocation64_spill]] (!%p11840_p11) }
  0x90   : > { %12335 = vmatmul.mubr.msk.bf16.vlgmr.msra.gmra.mrb[0].mxu0 %vm1501_vm0, %v12709_v3  ;;  %v12722_v16 = vld [vmem:[%s13769_s24 + $0x70] sm:$0xff]   ;;  %v12723_v17 = vld [vmem:[%s13769_s24 + $0x78] sm:$0xff]   ;;  %v12724_v18 = vld [vmem:[%s13769_s24 + $0x80] sm:$0xff]  }
  0x91   : > { %12338 = vmatprep.mubr.msk.bf16.mxu0 %vm1501_vm0, %v12710_v4  ;;  %v12725_v19 = vld [vmem:[%s13769_s24 + $0x88] sm:$0xff]   ;;  %v12726_v20 = vld [vmem:[%s13769_s24 + $0x90] sm:$0xff]   ;;  %v12727_v21 = vld [vmem:[%s13769_s24 + $0x98] sm:$0xff]  }
  0x92   : > { %v12728_v22 = vld [vmem:[%s13769_s24 + $0xa0] sm:$0xff]   ;;  %v12760_v23 = vld [vmem:[%s16551_s3] sm:$0xff]   ;;  %v12729_v24 = vld [vmem:[%s13769_s24 + $0xa8] sm:$0xff]  }
  0x93   : > { %12462 = vmatprep.subr.bf16.mxu1 %v12760_v23  ;;  %v12730_v25 = vld [vmem:[%s13769_s24 + $0xb0] sm:$0xff]   ;;  %v12763_v26 = vld [vmem:[%s16551_s3 + $0x8] sm:$0xff]   ;;  %v12764_v28 = vld [vmem:[%s16551_s3 + $0x10] sm:$0xff]  }
  0x94   : > { %12463 = vmatpush3.bf16.msra.mxu1 %v12760_v23  ;;  %v12731_v27 = vld [vmem:[%s13769_s24 + $0xb8] sm:$0xff]   ;;  %v12732_v29 = vld [vmem:[%s13769_s24 + $0xc0] sm:$0xff]   ;;  %v12767_v30 = vld [vmem:[%s16551_s3 + $0x18] sm:$0xff]  }
  0x95   : > { %12464 = vmatprep.subr.bf16.mxu1 %v12763_v26  ;;  %v12733_v31 = vld [vmem:[%s13769_s24 + $0xc8] sm:$0xff]   ;;  %v12734_v32 = vld [vmem:[%s13769_s24 + $0xd0] sm:$0xff]   ;;  %v13858_v35 = vld [vmem:[%s16553_s5 + $0x8] sm:$0xff] }
  0x96   : > { %v3400_v33 = vld [vmem:[%s16553_s5] sm:$0xff]  ;;  %v13863_v38 = vld [vmem:[%s16553_s5 + $0x28] sm:$0xff]  ;;  %v12736_v42 = vld [vmem:[%s13769_s24 + $0xe0] sm:$0xff]  }
  0x97   : > { %v3401_v34 = vld [vmem:[%s16553_s5 + $0x20] sm:$0xff]  ;;  %v12735_v39 = vld [vmem:[%s13769_s24 + $0xd8] sm:$0xff]   ;;  %v11792_v40 = vcombine.low %v13858_v35, %v13863_v38  ;;  %v11793_v41 = vcombine.high %v13858_v35, %v13863_v38  ;;  %v12737_v43 = vld [vmem:[%s13769_s24 + $0xe8] sm:$0xff]  }
  0x98   : > { %12339 = vmatmul.mubr.msk.bf16.gmra.mrb[4].mxu0 %vm1501_vm0, %v12711_v5  ;;  %12465 = vmatpush3.bf16.msra.mxu1 %v12763_v26  ;;  %v11776_v36 = vcombine.low %v3400_v33, %v3401_v34  ;;  %v11777_v37 = vcombine.high %v3400_v33, %v3401_v34  ;;  %v12738_v44 = vld [vmem:[%s13769_s24 + $0xf0] sm:$0xff]   ;;  %v12739_v45 = vld [vmem:[%s13769_s24 + $0xf8] sm:$0xff]   ;;  %v12740_v46 = vld [vmem:[%s13769_s24 + $0x100] sm:$0xff]  }
  0x99   : > { %12342 = vmatprep.mubr.msk.bf16.mxu0 %vm1501_vm0, %v12712_v6  ;;  %12466 = vmatprep.subr.bf16.mxu1 %v12764_v28  ;;  %v12741_v47 = vld [vmem:[%s13769_s24 + $0x108] sm:$0xff]   ;;  %v12742_v48 = vld [vmem:[%s13769_s24 + $0x110] sm:$0xff]   ;;  %v12743_v53 = vld [vmem:[%s13769_s24 + $0x118] sm:$0xff]  }
  0x9a   : > { %3508 = vmatprep.subr.bf16.mxu0 %v11777_v37  ;;  %v3402_v49 = vld [vmem:[%s16553_s5 + $0x40] sm:$0xff]  ;;  %v12744_v54 = vld [vmem:[%s13769_s24 + $0x120] sm:$0xff]   ;;  %v12745_v55 = vld [vmem:[%s13769_s24 + $0x128] sm:$0xff]  }
  0x9b   : > { %3509 = vmatpush1.bf16.msra.mxu0 %v11776_v36  ;;  %v3403_v50 = vld [vmem:[%s16553_s5 + $0x60] sm:$0xff]  ;;  %v12747_v57 = vld [vmem:[%s13769_s24 + $0x138] sm:$0xff]   ;;  %v12748_v58 = vld [vmem:[%s13769_s24 + $0x140] sm:$0xff]  }
  0x9c   : > { %12467 = vmatpush3.bf16.msra.mxu1 %v12764_v28  ;;  %v11778_v51 = vcombine.low %v3402_v49, %v3403_v50  ;;  %v11779_v52 = vcombine.high %v3402_v49, %v3403_v50  ;;  %v12746_v56 = vld [vmem:[%s13769_s24 + $0x130] sm:$0xff]   ;;  %v12749_v59 = vld [vmem:[%s13769_s24 + $0x148] sm:$0xff]   ;;  %v12751_v1 = vld [vmem:[%s13769_s24 + $0x158] sm:$0xff]  }
  0x9d   : > { %12468 = vmatprep.subr.bf16.mxu1 %v12767_v30  ;;  %v12750_v60 = vld [vmem:[%s13769_s24 + $0x150] sm:$0xff]   ;;  %v12752_v2 = vld [vmem:[%s13769_s24 + $0x160] sm:$0xff]   ;;  %v12753_v3 = vld [vmem:[%s13769_s24 + $0x168] sm:$0xff]  }
  0x9e   : > { %3510 = vmatprep.subr.bf16.mxu0 %v11779_v52  ;;  %v3404_v61 = vld [vmem:[%s16553_s5 + $0x80] sm:$0xff]  ;;  %v12755_v5 = vld [vmem:[%s13769_s24 + $0x178] sm:$0xff]   ;;  %v12756_v6 = vld [vmem:[%s13769_s24 + $0x180] sm:$0xff]  }
  0x9f   : > { %3511 = vmatpush1.bf16.msra.mxu0 %v11778_v51  ;;  %v3405_v62 = vld [vmem:[%s16553_s5 + $0xa0] sm:$0xff]  ;;  %v4753_v33 = vld [vmem:[%s16553_s5 + $0x68] sm:$0xff] }
  0xa0   : > { %12343 = vmatmul.mubr.msk.bf16.gmra.mrb[8].mxu0 %vm1501_vm0, %v12713_v7  ;;  %12469 = vmatpush3.bf16.msra.mxu1 %v12767_v30  ;;  %v11780_v63 = vcombine.low %v3404_v61, %v3405_v62  ;;  %v11781_v0 = vcombine.high %v3404_v61, %v3405_v62  ;;  %v12754_v4 = vld [vmem:[%s13769_s24 + $0x170] sm:$0xff]   ;;  %v12757_v7 = vld [vmem:[%s13769_s24 + $0x188] sm:$0xff]   ;;  %v4757_v35 = vld [vmem:[%s16553_s5 + $0xe8] sm:$0xff] }
  0xa1   : > { %12346 = vmatprep.mubr.msk.bf16.mxu0 %vm1501_vm0, %v12714_v8  ;;  %4858 = vmatprep.subr.bf16.mxu1 %v11793_v41  ;;  %v12758_v8 = vld [vmem:[%s13769_s24 + $0x190] sm:$0xff]  }
  0xa2   : > { %3512 = vmatprep.subr.bf16.mxu0 %v11781_v0 }
  0xa3   : > { %3513 = vmatpush1.bf16.msra.mxu0 %v11780_v63 }
  0xa8   : > { %12347 = vmatmul.mubr.msk.bf16.gmra.mrb[12].mxu0 %vm1501_vm0, %v12715_v9  ;;  %v3406_v9 = vld [vmem:[%s16553_s5 + $0xc0] sm:$0xff] }
  0xa9   : > { %12350 = vmatprep.mubr.msk.bf16.mxu0 %vm1501_vm0, %v12716_v10  ;;  %v3407_v10 = vld [vmem:[%s16553_s5 + $0xe0] sm:$0xff] }
  0xb0   : > { %12351 = vmatmul.mubr.msk.bf16.gmra.mrb[16].mxu0 %vm1501_vm0, %v12717_v11  ;;  %v11782_v11 = vcombine.low %v3406_v9, %v3407_v10 }
  0xb1   : > { %12354 = vmatprep.mubr.msk.bf16.mxu0 %vm1501_vm0, %v12718_v12  ;;  %v11783_v12 = vcombine.high %v3406_v9, %v3407_v10  ;;  %v4759_v9 = vld [vmem:[%s16553_s5 + $0x128] sm:$0xff] }
  0xb3   : > { %3514 = vmatprep.subr.bf16.mxu0 %v11783_v12 }
  0xb4   : > { %3515 = vmatpush1.bf16.msra.mxu0 %v11782_v11 }
  0xb8   : > { %12355 = vmatmul.mubr.msk.bf16.gmra.mrb[20].mxu0 %vm1501_vm0, %v12719_v13  ;;  %v12759_v13 = vld [vmem:[%s13769_s24 + $0x198] sm:$0xff]  }
  0xb9   : > { %12358 = vmatprep.mubr.msk.bf16.mxu0 %vm1501_vm0, %v12720_v14  ;;  %v12761_v14 = vld [vmem:[%s13769_s24 + $0x1a0] sm:$0xff]  }
  0xc0   : > { %12359 = vmatmul.mubr.msk.bf16.gmra.mrb[24].mxu0 %vm1501_vm0, %v12721_v15  ;;  %v12762_v15 = vld [vmem:[%s13769_s24 + $0x1a8] sm:$0xff]  }
  0xc1   : > { %12362 = vmatprep.mubr.msk.bf16.mxu0 %vm1501_vm0, %v12722_v16  ;;  %v12765_v16 = vld [vmem:[%s13769_s24 + $0x1b0] sm:$0xff]  }
  0xc8   : > { %12363 = vmatmul.mubr.msk.bf16.gmra.mrb[28].mxu0 %vm1501_vm0, %v12723_v17  ;;  %v13945_v17 = vld [vmem:[%s16550_s2] ss:$0 sm:$0xff] }
  0xc9   : > { %12366 = vmatprep.mubr.msk.bf16.mxu0 %vm1501_vm0, %v12724_v18 }
  0xd0   : > { %12367 = vmatmul.mubr.msk.bf16.gmra.mrb[32].mxu0 %vm1501_vm0, %v12725_v19 }
  0xd1   : > { %12370 = vmatprep.mubr.msk.bf16.mxu0 %vm1501_vm0, %v12726_v20 }
  0xd8   : > { %12371 = vmatmul.mubr.msk.bf16.gmra.mrb[36].mxu0 %vm1501_vm0, %v12727_v21  ;;  %v12766_v21 = vld [vmem:[%s13769_s24 + $0x1b8] sm:$0xff]  }
  0xd9   : > { %12374 = vmatprep.mubr.msk.bf16.mxu0 %vm1501_vm0, %v12728_v22 }
  0xe0   : > { %12375 = vmatmul.mubr.msk.bf16.gmra.mrb[40].mxu0 %vm1501_vm0, %v12729_v24  ;;  %v12768_v24 = vld [vmem:[%s13769_s24 + $0x1c0] sm:$0xff]  }
  0xe1   : > { %12378 = vmatprep.mubr.msk.bf16.mxu0 %vm1501_vm0, %v12730_v25 }
  0xe8   : > { %12379 = vmatmul.mubr.msk.bf16.gmra.mrb[44].mxu0 %vm1501_vm0, %v12731_v27 }
  0xe9   : > { %12382 = vmatprep.mubr.msk.bf16.mxu0 %vm1501_vm0, %v12732_v29 }
  0xf0   : > { %12383 = vmatmul.mubr.msk.bf16.gmra.mrb[48].mxu0 %vm1501_vm0, %v12733_v31 }
  0xf1   : > { %12386 = vmatprep.mubr.msk.bf16.mxu0 %vm1501_vm0, %v12734_v32  ;;  %v4752_v32 = vld [vmem:[%s16553_s5 + $0x48] sm:$0xff] }
  0xf2   : > { %v11794_v52 = vcombine.low %v4752_v32, %v4753_v33 }
  0xf8   : > { %12387 = vmatmul.mubr.msk.bf16.gmra.mrb[52].mxu0 %vm1501_vm0, %v12735_v39 }
  0xf9   : > { %12390 = vmatprep.mubr.msk.bf16.mxu0 %vm1501_vm0, %v12736_v42  ;;  %v12769_v42 = vld [vmem:[%s13769_s24 + $0x1c8] sm:$0xff]  }
 0x100   : > { %12391 = vmatmul.mubr.msk.bf16.gmra.mrb[56].mxu0 %vm1501_vm0, %v12737_v43  ;;  %v11795_v43 = vcombine.high %v4752_v32, %v4753_v33 }
 0x101   : > { %12394 = vmatprep.mubr.msk.bf16.mxu0 %vm1501_vm0, %v12738_v44 }
 0x108   : > { %12395 = vmatmul.mubr.msk.bf16.gmra.mrb[60].mxu0 %vm1501_vm0, %v12739_v45 }
 0x109   : > { %12398 = vmatprep.mubr.msk.bf16.mxu0 %vm1501_vm0, %v12740_v46  ;;  %v12770_v46 = vld [vmem:[%s13769_s24 + $0x1d0] sm:$0xff]  }
 0x110   : > { %12399 = vmatmul.mubr.msk.bf16.gmra.mrb[64].mxu0 %vm1501_vm0, %v12741_v47  ;;  %v4754_v47 = vld [vmem:[%s16553_s5 + $0x88] sm:$0xff] }
 0x111   : > { %12402 = vmatprep.mubr.msk.bf16.mxu0 %vm1501_vm0, %v12742_v48  ;;  %v4755_v48 = vld [vmem:[%s16553_s5 + $0xa8] sm:$0xff] }
 0x112   : > { %v11796_v62 = vcombine.low %v4754_v47, %v4755_v48 }
 0x118   : > { %12403 = vmatmul.mubr.msk.bf16.gmra.mrb[68].mxu0 %vm1501_vm0, %v12743_v53 }
 0x119   : > { %12406 = vmatprep.mubr.msk.bf16.mxu0 %vm1501_vm0, %v12744_v54 }
 0x120   : > { %12407 = vmatmul.mubr.msk.bf16.gmra.mrb[72].mxu0 %vm1501_vm0, %v12745_v55  ;;  %v11797_v55 = vcombine.high %v4754_v47, %v4755_v48 }
 0x121   : > { %12410 = vmatprep.mubr.msk.bf16.mxu0 %vm1501_vm0, %v12746_v56 }
 0x128   : > { %12411 = vmatmul.mubr.msk.bf16.gmra.mrb[76].mxu0 %vm1501_vm0, %v12747_v57 }
 0x129   : > { %12414 = vmatprep.mubr.msk.bf16.mxu0 %vm1501_vm0, %v12748_v58  ;;  %v4756_v58 = vld [vmem:[%s16553_s5 + $0xc8] sm:$0xff] }
 0x130   : > { %12415 = vmatmul.mubr.msk.bf16.gmra.mrb[80].mxu0 %vm1501_vm0, %v12749_v59  ;;  %v3409_v59 = vld [vmem:[%s16553_s5 + $0x120] sm:$0xff] }
 0x131   : > { %12418 = vmatprep.mubr.msk.bf16.mxu0 %vm1501_vm0, %v12750_v60 }
 0x138   : > { %12419 = vmatmul.mubr.msk.bf16.gmra.mrb[84].mxu0 %vm1501_vm0, %v12751_v1 }
 0x139   : > { %12422 = vmatprep.mubr.msk.bf16.mxu0 %vm1501_vm0, %v12752_v2 }
 0x140   : > { %12423 = vmatmul.mubr.msk.bf16.gmra.mrb[88].mxu0 %vm1501_vm0, %v12753_v3  ;;  %v12771_v3 = vld [vmem:[%s13769_s24 + $0x1d8] sm:$0xff]  }
 0x141   : > { %12426 = vmatprep.mubr.msk.bf16.mxu0 %vm1501_vm0, %v12754_v4  ;;  %v11799_v4 = vcombine.high %v4756_v58, %v4757_v35 }
 0x148   : > { %12427 = vmatmul.mubr.msk.bf16.gmra.mrb[92].mxu0 %vm1501_vm0, %v12755_v5 }
 0x149   : > { %12430 = vmatprep.mubr.msk.bf16.mxu0 %vm1501_vm0, %v12756_v6 }
 0x150   : > { %12431 = vmatmul.mubr.msk.bf16.gmra.mrb[96].mxu0 %vm1501_vm0, %v12757_v7  ;;  %v12772_v7 = vld [vmem:[%s13769_s24 + $0x1e0] sm:$0xff]  }
 0x151   : > { %12434 = vmatprep.mubr.msk.bf16.mxu0 %vm1501_vm0, %v12758_v8  ;;  %v4758_v8 = vld [vmem:[%s16553_s5 + $0x108] sm:$0xff] }
 0x158   : > { %12435 = vmatmul.mubr.msk.bf16.gmra.mrb[100].mxu0 %vm1501_vm0, %v12759_v13  ;;  %v11798_v13 = vcombine.low %v4756_v58, %v4757_v35 }
 0x159   : > { %12438 = vmatprep.mubr.msk.bf16.mxu0 %vm1501_vm0, %v12761_v14 }
 0x160   : > { %12439 = vmatmul.mubr.msk.bf16.gmra.mrb[104].mxu0 %vm1501_vm0, %v12762_v15 }
 0x161   : > { %12442 = vmatprep.mubr.msk.bf16.mxu0 %vm1501_vm0, %v12765_v16  ;;  %v11801_v16 = vcombine.high %v4758_v8, %v4759_v9 }
 0x163   : > { %v12336_v18 = vpop.f32.mrb[0].mxu0 }
 0x164   : > { %v1737_v19 = vadd.f32 %v12336_v18, %v13945_v17  ;;  %v1728_v20 = vpop.f32.mrb[1].mxu0 }
 0x165   : > { %v1729_v22 = vadd.f32 %v13945_v17, %v1728_v20  ;;  %v12337_v23 = vpop.f32.mrb[2].mxu0 }
 0x166   : > { %v1740_v25 = vadd.f32 %v12337_v23, %v13945_v17  ;;  %v1731_v26 = vpop.f32.mrb[3].mxu0  ;;  %v2241_v28 = vmax.f32 %v1737_v19, 0.0  ;;  %v11800_v23 = vcombine.low %v4758_v8, %v4759_v9 }
 0x167   : > { %v1732_v27 = vadd.f32 %v13945_v17, %v1731_v26  ;;  %v2239_v30 = vmax.f32 %v1729_v22, 0.0  ;;  %v12773_v26 = vld [vmem:[%s13769_s24 + $0x1e8] sm:$0xff]  }
 0x168   : > { %v2242_v29 = vmax.f32 %v1740_v25, 0.0  ;;  %12443 = vmatmul.mubr.msk.bf16.gmra.mrb[108].mxu0 %vm1501_vm0, %v12766_v21 }
 0x169   : > { %v2240_v31 = vmax.f32 %v1732_v27, 0.0  ;;  %12446 = vmatprep.mubr.msk.bf16.mxu0 %vm1501_vm0, %v12768_v24 }
 0x16a   : > { %v2368_v34 = vpack.c.bf16 %v2242_v29, %v2241_v28  ;;  %v12774_v29 = vld [vmem:[%s13769_s24 + $0x1f0] sm:$0xff]  }
 0x16b   : > { %v12340_v36 = vpop.f32.mrb[4].mxu0  ;;  %v2367_v37 = vpack.c.bf16 %v2240_v31, %v2239_v30 }
 0x16c   : > { %v1753_v39 = vadd.f32 %v12340_v36, %v13945_v17  ;;  %v1744_v41 = vpop.f32.mrb[5].mxu0 }
 0x16d   : > { %v1745_v44 = vadd.f32 %v13945_v17, %v1744_v41  ;;  %v12341_v45 = vpop.f32.mrb[6].mxu0  ;;  %12470 = vmatprep.mubr.msk.bf16.mxu1 %vm2470_vm1, %v2367_v37 }
 0x16e   : > { %v1756_v49 = vadd.f32 %v12341_v45, %v13945_v17  ;;  %v1747_v50 = vpop.f32.mrb[7].mxu0  ;;  %12471 = vmatmul.mubr.msk.bf16.vlgmr.msra.gmra.mrb[0].mxu1 %vm2470_vm1, %v2368_v34  ;;  %v2245_v53 = vmax.f32 %v1753_v39, 0.0  ;;  %v12775_v45 = vld [vmem:[%s13769_s24 + $0x1f8] sm:$0xff]  }
 0x16f   : > { %v1748_v51 = vadd.f32 %v13945_v17, %v1747_v50  ;;  %4859 = vmatpush1.bf16.msra.mxu1 %v11792_v40  ;;  %v2243_v56 = vmax.f32 %v1745_v44, 0.0  ;;  %v3408_v40 = vld [vmem:[%s16553_s5 + $0x100] sm:$0xff] }
 0x170   : > { %v2246_v54 = vmax.f32 %v1756_v49, 0.0  ;;  %12447 = vmatmul.mubr.msk.bf16.gmra.mrb[112].mxu0 %vm1501_vm0, %v12769_v42  ;;  %4860 = vmatprep.subr.bf16.mxu1 %v11795_v43  ;;  %v11784_v63 = vcombine.low %v3408_v40, %v3409_v59  ;;  %v11785_v0 = vcombine.high %v3408_v40, %v3409_v59 }
 0x171   : > { %v2244_v57 = vmax.f32 %v1748_v51, 0.0  ;;  %12450 = vmatprep.mubr.msk.bf16.mxu0 %vm1501_vm0, %v12770_v46 }
 0x172   : > { %v2370_v38 = vpack.c.bf16 %v2246_v54, %v2245_v53  ;;  %3516 = vmatprep.subr.bf16.mxu0 %v11785_v0 }
 0x173   : > { %v2369_v60 = vpack.c.bf16 %v2244_v57, %v2243_v56  ;;  %v12344_v61 = vpop.f32.mrb[8].mxu0  ;;  %4861 = vmatpush1.bf16.msra.mxu1 %v11794_v52  ;;  %3517 = vmatpush1.bf16.msra.mxu0 %v11784_v63 }
 0x174   : > { %v1769_v1 = vadd.f32 %v12344_v61, %v13945_v17  ;;  %v1760_v2 = vpop.f32.mrb[9].mxu0  ;;  %4862 = vmatprep.subr.bf16.mxu1 %v11797_v55 }
 0x175   : > { %v1761_v5 = vadd.f32 %v13945_v17, %v1760_v2  ;;  %v12345_v6 = vpop.f32.mrb[10].mxu0  ;;  %12474 = vmatprep.mubr.msk.bf16.mxu1 %vm2470_vm1, %v2369_v60 }
 0x176   : > { %v1772_v10 = vadd.f32 %v12345_v6, %v13945_v17  ;;  %v1763_v11 = vpop.f32.mrb[11].mxu0  ;;  %12475 = vmatmul.mubr.msk.bf16.gmra.mrb[4].mxu1 %vm2470_vm1, %v2370_v38  ;;  %v2249_v14 = vmax.f32 %v1769_v1, 0.0 }
 0x177   : > { %v1764_v12 = vadd.f32 %v13945_v17, %v1763_v11  ;;  %4863 = vmatpush1.bf16.msra.mxu1 %v11796_v62  ;;  %v2247_v18 = vmax.f32 %v1761_v5, 0.0  ;;  %v4760_v5 = vld [vmem:[%s16553_s5 + $0x148] sm:$0xff] }
 0x178   : > { %v2250_v15 = vmax.f32 %v1772_v10, 0.0  ;;  %12451 = vmatmul.mubr.msk.bf16.gmra.mrb[116].mxu0 %vm1501_vm0, %v12771_v3  ;;  %4864 = vmatprep.subr.bf16.mxu1 %v11799_v4  ;;  %v3410_v3 = vld [vmem:[%s16553_s5 + $0x140] sm:$0xff]  ;;  %v4761_v10 = vld [vmem:[%s16553_s5 + $0x168] sm:$0xff] }
 0x179   : > { %v2248_v19 = vmax.f32 %v1764_v12, 0.0  ;;  %12454 = vmatprep.mubr.msk.bf16.mxu0 %vm1501_vm0, %v12772_v7  ;;  %v3411_v4 = vld [vmem:[%s16553_s5 + $0x160] sm:$0xff] }
 0x17a   : > { %v2372_v20 = vpack.c.bf16 %v2250_v15, %v2249_v14  ;;  %v11786_v8 = vcombine.low %v3410_v3, %v3411_v4  ;;  %v11787_v9 = vcombine.high %v3410_v3, %v3411_v4  ;;  %v11803_v14 = vcombine.high %v4760_v5, %v4761_v10  ;;  %v3412_v4 = vld [vmem:[%s16553_s5 + $0x180] sm:$0xff] }
 0x17b   : > { %v2371_v21 = vpack.c.bf16 %v2248_v19, %v2247_v18  ;;  %v12348_v22 = vpop.f32.mrb[12].mxu0  ;;  %4865 = vmatpush1.bf16.msra.mxu1 %v11798_v13  ;;  %v11802_v13 = vcombine.low %v4760_v5, %v4761_v10  ;;  %v3413_v5 = vld [vmem:[%s16553_s5 + $0x1a0] sm:$0xff] }
 0x17c   : > { %v1785_v24 = vadd.f32 %v12348_v22, %v13945_v17  ;;  %v1776_v25 = vpop.f32.mrb[13].mxu0  ;;  %4866 = vmatprep.subr.bf16.mxu1 %v11801_v16  ;;  %3518 = vmatprep.subr.bf16.mxu0 %v11787_v9  ;;  %v11788_v9 = vcombine.low %v3412_v4, %v3413_v5  ;;  %v11789_v10 = vcombine.high %v3412_v4, %v3413_v5 }
 0x17d   : > { %v1777_v27 = vadd.f32 %v13945_v17, %v1776_v25  ;;  %v12349_v28 = vpop.f32.mrb[14].mxu0  ;;  %12478 = vmatprep.mubr.msk.bf16.mxu1 %vm2470_vm1, %v2371_v21  ;;  %3519 = vmatpush1.bf16.msra.mxu0 %v11786_v8 }
 0x17e   : > { %v1788_v30 = vadd.f32 %v12349_v28, %v13945_v17  ;;  %v1779_v31 = vpop.f32.mrb[15].mxu0  ;;  %12479 = vmatmul.mubr.msk.bf16.gmra.mrb[8].mxu1 %vm2470_vm1, %v2372_v20  ;;  %v2253_v33 = vmax.f32 %v1785_v24, 0.0  ;;  %3520 = vmatprep.subr.bf16.mxu0 %v11789_v10  ;;  %v4764_v10 = vld [vmem:[%s16553_s5 + $0x1c8] sm:$0xff] }
 0x17f   : > { %v1780_v32 = vadd.f32 %v13945_v17, %v1779_v31  ;;  %4867 = vmatpush1.bf16.msra.mxu1 %v11800_v23  ;;  %v2251_v36 = vmax.f32 %v1777_v27, 0.0 }
 0x180   : > { %v2254_v34 = vmax.f32 %v1788_v30, 0.0  ;;  %12455 = vmatmul.mubr.msk.bf16.gmra.mrb[120].mxu0 %vm1501_vm0, %v12773_v26  ;;  %4868 = vmatprep.subr.bf16.mxu1 %v11803_v14 }
 0x181   : > { %v2252_v37 = vmax.f32 %v1780_v32, 0.0  ;;  %12458 = vmatprep.mubr.msk.bf16.mxu0 %vm1501_vm0, %v12774_v29  ;;  %3521 = vmatpush1.bf16.msra.mxu0 %v11788_v9 }
 0x182   : > { %v2374_v39 = vpack.c.bf16 %v2254_v34, %v2253_v33 }
 0x183   : > { %v2373_v41 = vpack.c.bf16 %v2252_v37, %v2251_v36  ;;  %v12352_v42 = vpop.f32.mrb[16].mxu0  ;;  %4869 = vmatpush1.bf16.msra.mxu1 %v11802_v13 }
 0x184   : > { %v1801_v43 = vadd.f32 %v12352_v42, %v13945_v17  ;;  %v1792_v44 = vpop.f32.mrb[17].mxu0 }
 0x185   : > { %v1793_v46 = vadd.f32 %v13945_v17, %v1792_v44  ;;  %v12353_v47 = vpop.f32.mrb[18].mxu0  ;;  %12482 = vmatprep.mubr.msk.bf16.mxu1 %vm2470_vm1, %v2373_v41 }
 0x186   : > { %v1804_v48 = vadd.f32 %v12353_v47, %v13945_v17  ;;  %v1795_v49 = vpop.f32.mrb[19].mxu0  ;;  %12483 = vmatmul.mubr.msk.bf16.gmra.mrb[12].mxu1 %vm2470_vm1, %v2374_v39  ;;  %v2257_v51 = vmax.f32 %v1801_v43, 0.0 }
 0x187   : > { %v1796_v50 = vadd.f32 %v13945_v17, %v1795_v49  ;;  %v2255_v53 = vmax.f32 %v1793_v46, 0.0 }
 0x188   : > { %v2258_v52 = vmax.f32 %v1804_v48, 0.0  ;;  %12459 = vmatmul.mubr.msk.bf16.gmra.mrb[124].mxu0 %vm1501_vm0, %v12775_v45 }
 0x189   : > { %v2256_v54 = vmax.f32 %v1796_v50, 0.0 }
 0x18a   : > { %v2376_v55 = vpack.c.bf16 %v2258_v52, %v2257_v51 }
 0x18b   : > { %v2375_v56 = vpack.c.bf16 %v2256_v54, %v2255_v53  ;;  %v12356_v57 = vpop.f32.mrb[20].mxu0 }
 0x18c   : > { %v1817_v58 = vadd.f32 %v12356_v57, %v13945_v17  ;;  %v1808_v35 = vpop.f32.mrb[21].mxu0 }
 0x18d   : > { %v1809_v38 = vadd.f32 %v13945_v17, %v1808_v35  ;;  %v12357_v40 = vpop.f32.mrb[22].mxu0  ;;  %12486 = vmatprep.mubr.msk.bf16.mxu1 %vm2470_vm1, %v2375_v56 }
 0x18e   : > { %v1820_v59 = vadd.f32 %v12357_v40, %v13945_v17  ;;  %v1811_v60 = vpop.f32.mrb[23].mxu0  ;;  %12487 = vmatmul.mubr.msk.bf16.gmra.mrb[16].mxu1 %vm2470_vm1, %v2376_v55  ;;  %v2261_v62 = vmax.f32 %v1817_v58, 0.0 }
 0x18f   : > { %v1812_v61 = vadd.f32 %v13945_v17, %v1811_v60  ;;  %v2259_v0 = vmax.f32 %v1809_v38, 0.0 }
 0x190   : > { %v2262_v63 = vmax.f32 %v1820_v59, 0.0 }
 0x191   : > { %v2260_v1 = vmax.f32 %v1812_v61, 0.0 }
 0x192   : > { %v2378_v2 = vpack.c.bf16 %v2262_v63, %v2261_v62 }
 0x193   : > { %v2377_v6 = vpack.c.bf16 %v2260_v1, %v2259_v0  ;;  %v12360_v7 = vpop.f32.mrb[24].mxu0 }
 0x194   : > { %v1833_v11 = vadd.f32 %v12360_v7, %v13945_v17  ;;  %v1824_v12 = vpop.f32.mrb[25].mxu0 }
 0x195   : > { %v1825_v15 = vadd.f32 %v13945_v17, %v1824_v12  ;;  %v12361_v16 = vpop.f32.mrb[26].mxu0  ;;  %12490 = vmatprep.mubr.msk.bf16.mxu1 %vm2470_vm1, %v2377_v6  ;;  %v4762_v6 = vld [vmem:[%s16553_s5 + $0x188] sm:$0xff] }
 0x196   : > { %v1836_v18 = vadd.f32 %v12361_v16, %v13945_v17  ;;  %v1827_v19 = vpop.f32.mrb[27].mxu0  ;;  %12491 = vmatmul.mubr.msk.bf16.gmra.mrb[20].mxu1 %vm2470_vm1, %v2378_v2  ;;  %v2265_v21 = vmax.f32 %v1833_v11, 0.0  ;;  %v4763_v11 = vld [vmem:[%s16553_s5 + $0x1a8] sm:$0xff] }
 0x197   : > { %v1828_v20 = vadd.f32 %v13945_v17, %v1827_v19  ;;  %v2263_v23 = vmax.f32 %v1825_v15, 0.0  ;;  %v11804_v14 = vcombine.low %v4762_v6, %v4763_v11  ;;  %v11805_v15 = vcombine.high %v4762_v6, %v4763_v11  ;;  %v4765_v11 = vld [vmem:[%s16553_s5 + $0x1e8] sm:$0xff] }
 0x198   : > { %v2266_v22 = vmax.f32 %v1836_v18, 0.0 }
 0x199   : > { %v2264_v24 = vmax.f32 %v1828_v20, 0.0  ;;  %4870 = vmatprep.subr.bf16.mxu1 %v11805_v15  ;;  %v11807_v15 = vcombine.high %v4764_v10, %v4765_v11 }
 0x19a   : > { %v2380_v25 = vpack.c.bf16 %v2266_v22, %v2265_v21  ;;  %4871 = vmatpush1.bf16.msra.mxu1 %v11804_v14  ;;  %v11806_v14 = vcombine.low %v4764_v10, %v4765_v11 }
 0x19b   : > { %v2379_v26 = vpack.c.bf16 %v2264_v24, %v2263_v23  ;;  %v12364_v27 = vpop.f32.mrb[28].mxu0  ;;  %4872 = vmatprep.subr.bf16.mxu1 %v11807_v15 }
 0x19c   : > { %v1849_v28 = vadd.f32 %v12364_v27, %v13945_v17  ;;  %v1840_v29 = vpop.f32.mrb[29].mxu0 }
 0x19d   : > { %v1841_v30 = vadd.f32 %v13945_v17, %v1840_v29  ;;  %v12365_v31 = vpop.f32.mrb[30].mxu0  ;;  %12494 = vmatprep.mubr.msk.bf16.mxu1 %vm2470_vm1, %v2379_v26 }
 0x19e   : > { %v1852_v32 = vadd.f32 %v12365_v31, %v13945_v17  ;;  %v1843_v33 = vpop.f32.mrb[31].mxu0  ;;  %12495 = vmatmul.mubr.msk.bf16.gmra.mrb[24].mxu1 %vm2470_vm1, %v2380_v25  ;;  %v2269_v36 = vmax.f32 %v1849_v28, 0.0 }
 0x19f   : > { %v1844_v34 = vadd.f32 %v13945_v17, %v1843_v33  ;;  %v2267_v39 = vmax.f32 %v1841_v30, 0.0  ;;  %4873 = vmatpush1.bf16.msra.mxu1 %v11806_v14 }
 0x1a0   : > { %v2270_v37 = vmax.f32 %v1852_v32, 0.0 }
 0x1a1   : > { %v2268_v41 = vmax.f32 %v1844_v34, 0.0 }
 0x1a2   : > { %v2382_v42 = vpack.c.bf16 %v2270_v37, %v2269_v36 }
 0x1a3   : > { %v2381_v43 = vpack.c.bf16 %v2268_v41, %v2267_v39  ;;  %v12368_v44 = vpop.f32.mrb[32].mxu0 }
 0x1a4   : > { %v1865_v45 = vadd.f32 %v12368_v44, %v13945_v17  ;;  %v1856_v46 = vpop.f32.mrb[33].mxu0 }
 0x1a5   : > { %v1857_v47 = vadd.f32 %v13945_v17, %v1856_v46  ;;  %v12369_v48 = vpop.f32.mrb[34].mxu0  ;;  %12498 = vmatprep.mubr.msk.bf16.mxu1 %vm2470_vm1, %v2381_v43 }
 0x1a6   : > { %v1868_v49 = vadd.f32 %v12369_v48, %v13945_v17  ;;  %v1859_v50 = vpop.f32.mrb[35].mxu0  ;;  %12499 = vmatmul.mubr.msk.bf16.gmra.mrb[28].mxu1 %vm2470_vm1, %v2382_v42  ;;  %v2273_v52 = vmax.f32 %v1865_v45, 0.0  ;;  %v3414_v48 = vld [vmem:[%s16553_s5 + $0x1c0] sm:$0xff] }
 0x1a7   : > { %v1860_v51 = vadd.f32 %v13945_v17, %v1859_v50  ;;  %v2271_v54 = vmax.f32 %v1857_v47, 0.0 }
 0x1a8   : > { %v2274_v53 = vmax.f32 %v1868_v49, 0.0  ;;  %v3415_v49 = vld [vmem:[%s16553_s5 + $0x1e0] sm:$0xff] }
 0x1a9   : > { %v2272_v55 = vmax.f32 %v1860_v51, 0.0 }
 0x1aa   : > { %v2384_v56 = vpack.c.bf16 %v2274_v53, %v2273_v52  ;;  %v11791_v52 = vcombine.high %v3414_v48, %v3415_v49 }
 0x1ab   : > { %v2383_v57 = vpack.c.bf16 %v2272_v55, %v2271_v54  ;;  %v12372_v58 = vpop.f32.mrb[36].mxu0  ;;  %v11790_v55 = vcombine.low %v3414_v48, %v3415_v49 }
 0x1ac   : > { %v1881_v35 = vadd.f32 %v12372_v58, %v13945_v17  ;;  %v1872_v38 = vpop.f32.mrb[37].mxu0  ;;  %3522 = vmatprep.subr.bf16.mxu0 %v11791_v52 }
 0x1ad   : > { %v1873_v40 = vadd.f32 %v13945_v17, %v1872_v38  ;;  %v12373_v59 = vpop.f32.mrb[38].mxu0  ;;  %12502 = vmatprep.mubr.msk.bf16.mxu1 %vm2470_vm1, %v2383_v57  ;;  %3523 = vmatpush1.bf16.msra.mxu0 %v11790_v55 }
 0x1ae   : > { %v1884_v60 = vadd.f32 %v12373_v59, %v13945_v17  ;;  %v1875_v61 = vpop.f32.mrb[39].mxu0  ;;  %12503 = vmatmul.mubr.msk.bf16.gmra.mrb[32].mxu1 %vm2470_vm1, %v2384_v56  ;;  %v2277_v63 = vmax.f32 %v1881_v35, 0.0  ;;  %v16577_v59 = vmov 0  }
 0x1af   : > { %v1876_v62 = vadd.f32 %v13945_v17, %v1875_v61  ;;  %v2275_v1 = vmax.f32 %v1873_v40, 0.0  ;;  %3540 = vmatprep.mubr.bf16.mxu0 %v16577_v59 }
 0x1b0   : > { %v2278_v0 = vmax.f32 %v1884_v60, 0.0 }
 0x1b1   : > { %v2276_v2 = vmax.f32 %v1876_v62, 0.0 }
 0x1b2   : > { %v2386_v3 = vpack.c.bf16 %v2278_v0, %v2277_v63 }
 0x1b3   : > { %v2385_v7 = vpack.c.bf16 %v2276_v2, %v2275_v1  ;;  %v12376_v8 = vpop.f32.mrb[40].mxu0 }
 0x1b4   : > { %v1897_v12 = vadd.f32 %v12376_v8, %v13945_v17  ;;  %v1888_v13 = vpop.f32.mrb[41].mxu0 }
 0x1b5   : > { %v1889_v16 = vadd.f32 %v13945_v17, %v1888_v13  ;;  %v12377_v18 = vpop.f32.mrb[42].mxu0  ;;  %12506 = vmatprep.mubr.msk.bf16.mxu1 %vm2470_vm1, %v2385_v7 }
 0x1b6   : > { %v1900_v19 = vadd.f32 %v12377_v18, %v13945_v17  ;;  %v1891_v20 = vpop.f32.mrb[43].mxu0  ;;  %12507 = vmatmul.mubr.msk.bf16.gmra.mrb[36].mxu1 %vm2470_vm1, %v2386_v3  ;;  %v2281_v22 = vmax.f32 %v1897_v12, 0.0 }
 0x1b7   : > { %v1892_v21 = vadd.f32 %v13945_v17, %v1891_v20  ;;  %v2279_v24 = vmax.f32 %v1889_v16, 0.0 }
 0x1b8   : > { %v2282_v23 = vmax.f32 %v1900_v19, 0.0 }
 0x1b9   : > { %v2280_v25 = vmax.f32 %v1892_v21, 0.0 }
 0x1ba   : > { %v2388_v26 = vpack.c.bf16 %v2282_v23, %v2281_v22 }
 0x1bb   : > { %v2387_v27 = vpack.c.bf16 %v2280_v25, %v2279_v24  ;;  %v12380_v28 = vpop.f32.mrb[44].mxu0 }
 0x1bc   : > { %v1913_v29 = vadd.f32 %v12380_v28, %v13945_v17  ;;  %v1904_v30 = vpop.f32.mrb[45].mxu0 }
 0x1bd   : > { %v1905_v31 = vadd.f32 %v13945_v17, %v1904_v30  ;;  %v12381_v32 = vpop.f32.mrb[46].mxu0  ;;  %12510 = vmatprep.mubr.msk.bf16.mxu1 %vm2470_vm1, %v2387_v27 }
 0x1be   : > { %v1916_v33 = vadd.f32 %v12381_v32, %v13945_v17  ;;  %v1907_v34 = vpop.f32.mrb[47].mxu0  ;;  %12511 = vmatmul.mubr.msk.bf16.gmra.mrb[40].mxu1 %vm2470_vm1, %v2388_v26  ;;  %v2285_v37 = vmax.f32 %v1913_v29, 0.0 }
 0x1bf   : > { %v1908_v36 = vadd.f32 %v13945_v17, %v1907_v34  ;;  %v2283_v41 = vmax.f32 %v1905_v31, 0.0 }
 0x1c0   : > { %v2286_v39 = vmax.f32 %v1916_v33, 0.0 }
 0x1c1   : > { %v2284_v42 = vmax.f32 %v1908_v36, 0.0 }
 0x1c2   : > { %v2390_v43 = vpack.c.bf16 %v2286_v39, %v2285_v37 }
 0x1c3   : > { %v2389_v44 = vpack.c.bf16 %v2284_v42, %v2283_v41  ;;  %v12384_v45 = vpop.f32.mrb[48].mxu0 }
 0x1c4   : > { %v1929_v46 = vadd.f32 %v12384_v45, %v13945_v17  ;;  %v1920_v47 = vpop.f32.mrb[49].mxu0 }
 0x1c5   : > { %v1921_v50 = vadd.f32 %v13945_v17, %v1920_v47  ;;  %v12385_v51 = vpop.f32.mrb[50].mxu0  ;;  %12514 = vmatprep.mubr.msk.bf16.mxu1 %vm2470_vm1, %v2389_v44 }
 0x1c6   : > { %v1932_v53 = vadd.f32 %v12385_v51, %v13945_v17  ;;  %v1923_v54 = vpop.f32.mrb[51].mxu0  ;;  %12515 = vmatmul.mubr.msk.bf16.gmra.mrb[44].mxu1 %vm2470_vm1, %v2390_v43  ;;  %v2289_v57 = vmax.f32 %v1929_v46, 0.0 }
 0x1c7   : > { %v1924_v56 = vadd.f32 %v13945_v17, %v1923_v54  ;;  %v2287_v35 = vmax.f32 %v1921_v50, 0.0 }
 0x1c8   : > { %v2290_v58 = vmax.f32 %v1932_v53, 0.0 }
 0x1c9   : > { %v2288_v38 = vmax.f32 %v1924_v56, 0.0 }
 0x1ca   : > { %v2392_v40 = vpack.c.bf16 %v2290_v58, %v2289_v57 }
 0x1cb   : > { %v2391_v60 = vpack.c.bf16 %v2288_v38, %v2287_v35  ;;  %v12388_v61 = vpop.f32.mrb[52].mxu0 }
 0x1cc   : > { %v1945_v62 = vadd.f32 %v12388_v61, %v13945_v17  ;;  %v1936_v63 = vpop.f32.mrb[53].mxu0 }
 0x1cd   : > { %v1937_v0 = vadd.f32 %v13945_v17, %v1936_v63  ;;  %v12389_v1 = vpop.f32.mrb[54].mxu0  ;;  %12518 = vmatprep.mubr.msk.bf16.mxu1 %vm2470_vm1, %v2391_v60 }
 0x1ce   : > { %v1948_v2 = vadd.f32 %v12389_v1, %v13945_v17  ;;  %v1939_v3 = vpop.f32.mrb[55].mxu0  ;;  %12519 = vmatmul.mubr.msk.bf16.gmra.mrb[48].mxu1 %vm2470_vm1, %v2392_v40  ;;  %v2293_v5 = vmax.f32 %v1945_v62, 0.0 }
 0x1cf   : > { %v1940_v4 = vadd.f32 %v13945_v17, %v1939_v3  ;;  %v2291_v7 = vmax.f32 %v1937_v0, 0.0 }
 0x1d0   : > { %v2294_v6 = vmax.f32 %v1948_v2, 0.0 }
 0x1d1   : > { %v2292_v8 = vmax.f32 %v1940_v4, 0.0 }
 0x1d2   : > { %v2394_v9 = vpack.c.bf16 %v2294_v6, %v2293_v5 }
 0x1d3   : > { %v2393_v12 = vpack.c.bf16 %v2292_v8, %v2291_v7  ;;  %v12392_v13 = vpop.f32.mrb[56].mxu0  ;;  %v14145_v7 = vld [vmem:[%s16553_s5 + $0x10] sm:$0xff] }
 0x1d4   : > { %v1961_v16 = vadd.f32 %v12392_v13, %v13945_v17  ;;  %v1952_v18 = vpop.f32.mrb[57].mxu0  ;;  %v14150_v8 = vld [vmem:[%s16553_s5 + $0x30] sm:$0xff]  ;;  %v14164_v13 = vld [vmem:[%s16553_s5 + $0x38] sm:$0xff] }
 0x1d5   : > { %v1953_v19 = vadd.f32 %v13945_v17, %v1952_v18  ;;  %v12393_v20 = vpop.f32.mrb[58].mxu0  ;;  %12522 = vmatprep.mubr.msk.bf16.mxu1 %vm2470_vm1, %v2393_v12  ;;  %v11808_v11 = vcombine.low %v14145_v7, %v14150_v8  ;;  %v11809_v12 = vcombine.high %v14145_v7, %v14150_v8 }
 0x1d6   : > { %v1964_v21 = vadd.f32 %v12393_v20, %v13945_v17  ;;  %v1955_v22 = vpop.f32.mrb[59].mxu0  ;;  %12523 = vmatmul.mubr.msk.bf16.gmra.mrb[52].mxu1 %vm2470_vm1, %v2394_v9  ;;  %v2297_v24 = vmax.f32 %v1961_v16, 0.0  ;;  %v14155_v9 = vld [vmem:[%s16553_s5 + $0x18] sm:$0xff] }
 0x1d7   : > { %v1956_v23 = vadd.f32 %v13945_v17, %v1955_v22  ;;  %v2295_v26 = vmax.f32 %v1953_v19, 0.0  ;;  %v11824_v16 = vcombine.low %v14155_v9, %v14164_v13  ;;  %v11825_v18 = vcombine.high %v14155_v9, %v14164_v13  ;;  %6202 = vmatprep.subr.bf16.mxu0 %v11809_v12  ;;  %v7442_v9 = vld [vmem:[%s16553_s5 + $0x98] sm:$0xff] }
 0x1d8   : > { %v2298_v25 = vmax.f32 %v1964_v21, 0.0 }
 0x1d9   : > { %v2296_v27 = vmax.f32 %v1956_v23, 0.0  ;;  %7546 = vmatprep.subr.bf16.mxu1 %v11825_v18 }
 0x1da   : > { %v2396_v28 = vpack.c.bf16 %v2298_v25, %v2297_v24 }
 0x1db   : > { %v2395_v29 = vpack.c.bf16 %v2296_v27, %v2295_v26  ;;  %v12396_v30 = vpop.f32.mrb[60].mxu0 }
 0x1dc   : > { %v1977_v31 = vadd.f32 %v12396_v30, %v13945_v17  ;;  %v1968_v32 = vpop.f32.mrb[61].mxu0 }
 0x1dd   : > { %v1969_v33 = vadd.f32 %v13945_v17, %v1968_v32  ;;  %v12397_v34 = vpop.f32.mrb[62].mxu0  ;;  %12526 = vmatprep.mubr.msk.bf16.mxu1 %vm2470_vm1, %v2395_v29 }
 0x1de   : > { %v1980_v36 = vadd.f32 %v12397_v34, %v13945_v17  ;;  %v1971_v37 = vpop.f32.mrb[63].mxu0  ;;  %12527 = vmatmul.mubr.msk.bf16.gmra.mrb[56].mxu1 %vm2470_vm1, %v2396_v28  ;;  %v2301_v41 = vmax.f32 %v1977_v31, 0.0 }
 0x1df   : > { %v1972_v39 = vadd.f32 %v13945_v17, %v1971_v37  ;;  %v2299_v43 = vmax.f32 %v1969_v33, 0.0 }
 0x1e0   : > { %v2302_v42 = vmax.f32 %v1980_v36, 0.0 }
 0x1e1   : > { %v2300_v44 = vmax.f32 %v1972_v39, 0.0 }
 0x1e2   : > { %v2398_v45 = vpack.c.bf16 %v2302_v42, %v2301_v41 }
 0x1e3   : > { %v2397_v46 = vpack.c.bf16 %v2300_v44, %v2299_v43  ;;  %v12400_v47 = vpop.f32.mrb[64].mxu0 }
 0x1e4   : > { %v1993_v48 = vadd.f32 %v12400_v47, %v13945_v17  ;;  %v1984_v49 = vpop.f32.mrb[65].mxu0 }
 0x1e5   : > { %v1985_v50 = vadd.f32 %v13945_v17, %v1984_v49  ;;  %v12401_v51 = vpop.f32.mrb[66].mxu0  ;;  %12530 = vmatprep.mubr.msk.bf16.mxu1 %vm2470_vm1, %v2397_v46 }
 0x1e6   : > { %v1996_v52 = vadd.f32 %v12401_v51, %v13945_v17  ;;  %v1987_v53 = vpop.f32.mrb[67].mxu0  ;;  %12531 = vmatmul.mubr.msk.bf16.gmra.mrb[60].mxu1 %vm2470_vm1, %v2398_v45  ;;  %v2305_v55 = vmax.f32 %v1993_v48, 0.0 }
 0x1e7   : > { %v1988_v54 = vadd.f32 %v13945_v17, %v1987_v53  ;;  %v2303_v57 = vmax.f32 %v1985_v50, 0.0 }
 0x1e8   : > { %v2306_v56 = vmax.f32 %v1996_v52, 0.0 }
 0x1e9   : > { %v2304_v58 = vmax.f32 %v1988_v54, 0.0 }
 0x1ea   : > { %v2400_v35 = vpack.c.bf16 %v2306_v56, %v2305_v55 }
 0x1eb   : > { %v2399_v38 = vpack.c.bf16 %v2304_v58, %v2303_v57  ;;  %v12404_v40 = vpop.f32.mrb[68].mxu0 }
 0x1ec   : > { %v2009_v60 = vadd.f32 %v12404_v40, %v13945_v17  ;;  %v2000_v61 = vpop.f32.mrb[69].mxu0 }
 0x1ed   : > { %v2001_v62 = vadd.f32 %v13945_v17, %v2000_v61  ;;  %v12405_v63 = vpop.f32.mrb[70].mxu0  ;;  %12534 = vmatprep.mubr.msk.bf16.mxu1 %vm2470_vm1, %v2399_v38 }
 0x1ee   : > { %v2012_v0 = vadd.f32 %v12405_v63, %v13945_v17  ;;  %v2003_v1 = vpop.f32.mrb[71].mxu0  ;;  %12535 = vmatmul.mubr.msk.bf16.gmra.mrb[64].mxu1 %vm2470_vm1, %v2400_v35  ;;  %v2309_v3 = vmax.f32 %v2009_v60, 0.0 }
 0x1ef   : > { %v2004_v2 = vadd.f32 %v13945_v17, %v2003_v1  ;;  %v2307_v5 = vmax.f32 %v2001_v62, 0.0 }
 0x1f0   : > { %v2310_v4 = vmax.f32 %v2012_v0, 0.0 }
 0x1f1   : > { %v2308_v6 = vmax.f32 %v2004_v2, 0.0 }
 0x1f2   : > { %v2402_v10 = vpack.c.bf16 %v2310_v4, %v2309_v3 }
 0x1f3   : > { %v2401_v14 = vpack.c.bf16 %v2308_v6, %v2307_v5  ;;  %v12408_v15 = vpop.f32.mrb[72].mxu0 }
 0x1f4   : > { %v2025_v19 = vadd.f32 %v12408_v15, %v13945_v17  ;;  %v2016_v20 = vpop.f32.mrb[73].mxu0 }
 0x1f5   : > { %v2017_v21 = vadd.f32 %v13945_v17, %v2016_v20  ;;  %v12409_v22 = vpop.f32.mrb[74].mxu0  ;;  %12538 = vmatprep.mubr.msk.bf16.mxu1 %vm2470_vm1, %v2401_v14 }
 0x1f6   : > { %v2028_v23 = vadd.f32 %v12409_v22, %v13945_v17  ;;  %v2019_v24 = vpop.f32.mrb[75].mxu0  ;;  %12539 = vmatmul.mubr.msk.bf16.gmra.mrb[68].mxu1 %vm2470_vm1, %v2402_v10  ;;  %v2313_v26 = vmax.f32 %v2025_v19, 0.0 }
 0x1f7   : > { %v2020_v25 = vadd.f32 %v13945_v17, %v2019_v24  ;;  %v2311_v28 = vmax.f32 %v2017_v21, 0.0 }
 0x1f8   : > { %v2314_v27 = vmax.f32 %v2028_v23, 0.0 }
 0x1f9   : > { %v2312_v29 = vmax.f32 %v2020_v25, 0.0 }
 0x1fa   : > { %v2404_v30 = vpack.c.bf16 %v2314_v27, %v2313_v26 }
 0x1fb   : > { %v2403_v31 = vpack.c.bf16 %v2312_v29, %v2311_v28  ;;  %v12412_v32 = vpop.f32.mrb[76].mxu0 }
 0x1fc   : > { %v2041_v33 = vadd.f32 %v12412_v32, %v13945_v17  ;;  %v2032_v34 = vpop.f32.mrb[77].mxu0 }
 0x1fd   : > { %v2033_v36 = vadd.f32 %v13945_v17, %v2032_v34  ;;  %v12413_v37 = vpop.f32.mrb[78].mxu0  ;;  %12542 = vmatprep.mubr.msk.bf16.mxu1 %vm2470_vm1, %v2403_v31 }
 0x1fe   : > { %v2044_v39 = vadd.f32 %v12413_v37, %v13945_v17  ;;  %v2035_v41 = vpop.f32.mrb[79].mxu0  ;;  %12543 = vmatmul.mubr.msk.bf16.gmra.mrb[72].mxu1 %vm2470_vm1, %v2404_v30  ;;  %v2317_v43 = vmax.f32 %v2041_v33, 0.0 }
 0x1ff   : > { %v2036_v42 = vadd.f32 %v13945_v17, %v2035_v41  ;;  %v2315_v45 = vmax.f32 %v2033_v36, 0.0 }
 0x200   : > { %v2318_v44 = vmax.f32 %v2044_v39, 0.0 }
 0x201   : > { %v2316_v46 = vmax.f32 %v2036_v42, 0.0 }
 0x202   : > { %v2406_v47 = vpack.c.bf16 %v2318_v44, %v2317_v43 }
 0x203   : > { %v2405_v48 = vpack.c.bf16 %v2316_v46, %v2315_v45  ;;  %v12416_v49 = vpop.f32.mrb[80].mxu0 }
 0x204   : > { %v2057_v50 = vadd.f32 %v12416_v49, %v13945_v17  ;;  %v2048_v51 = vpop.f32.mrb[81].mxu0 }
 0x205   : > { %v2049_v52 = vadd.f32 %v13945_v17, %v2048_v51  ;;  %v12417_v53 = vpop.f32.mrb[82].mxu0  ;;  %12546 = vmatprep.mubr.msk.bf16.mxu1 %vm2470_vm1, %v2405_v48 }
 0x206   : > { %v2060_v54 = vadd.f32 %v12417_v53, %v13945_v17  ;;  %v2051_v55 = vpop.f32.mrb[83].mxu0  ;;  %12547 = vmatmul.mubr.msk.bf16.gmra.mrb[76].mxu1 %vm2470_vm1, %v2406_v47  ;;  %v2321_v57 = vmax.f32 %v2057_v50, 0.0 }
 0x207   : > { %v2052_v56 = vadd.f32 %v13945_v17, %v2051_v55  ;;  %v2319_v35 = vmax.f32 %v2049_v52, 0.0 }
 0x208   : > { %v2322_v58 = vmax.f32 %v2060_v54, 0.0 }
 0x209   : > { %v2320_v38 = vmax.f32 %v2052_v56, 0.0 }
 0x20a   : > { %v2408_v40 = vpack.c.bf16 %v2322_v58, %v2321_v57 }
 0x20b   : > { %v2407_v60 = vpack.c.bf16 %v2320_v38, %v2319_v35  ;;  %v12420_v61 = vpop.f32.mrb[84].mxu0 }
 0x20c   : > { %v2073_v62 = vadd.f32 %v12420_v61, %v13945_v17  ;;  %v2064_v63 = vpop.f32.mrb[85].mxu0 }
 0x20d   : > { %v2065_v0 = vadd.f32 %v13945_v17, %v2064_v63  ;;  %v12421_v1 = vpop.f32.mrb[86].mxu0  ;;  %12550 = vmatprep.mubr.msk.bf16.mxu1 %vm2470_vm1, %v2407_v60 }
 0x20e   : > { %v2076_v2 = vadd.f32 %v12421_v1, %v13945_v17  ;;  %v2067_v3 = vpop.f32.mrb[87].mxu0  ;;  %12551 = vmatmul.mubr.msk.bf16.gmra.mrb[80].mxu1 %vm2470_vm1, %v2408_v40  ;;  %v2325_v5 = vmax.f32 %v2073_v62, 0.0 }
 0x20f   : > { %v2068_v4 = vadd.f32 %v13945_v17, %v2067_v3  ;;  %v2323_v10 = vmax.f32 %v2065_v0, 0.0 }
 0x210   : > { %v2326_v6 = vmax.f32 %v2076_v2, 0.0 }
 0x211   : > { %v2324_v12 = vmax.f32 %v2068_v4, 0.0 }
 0x212   : > { %v2410_v14 = vpack.c.bf16 %v2326_v6, %v2325_v5 }
 0x213   : > { %v2409_v15 = vpack.c.bf16 %v2324_v12, %v2323_v10  ;;  %v12424_v18 = vpop.f32.mrb[88].mxu0 }
 0x214   : > { %v2089_v19 = vadd.f32 %v12424_v18, %v13945_v17  ;;  %v2080_v20 = vpop.f32.mrb[89].mxu0 }
 0x215   : > { %v2081_v21 = vadd.f32 %v13945_v17, %v2080_v20  ;;  %v12425_v22 = vpop.f32.mrb[90].mxu0  ;;  %12554 = vmatprep.mubr.msk.bf16.mxu1 %vm2470_vm1, %v2409_v15 }
 0x216   : > { %v2092_v23 = vadd.f32 %v12425_v22, %v13945_v17  ;;  %v2083_v24 = vpop.f32.mrb[91].mxu0  ;;  %12555 = vmatmul.mubr.msk.bf16.gmra.mrb[84].mxu1 %vm2470_vm1, %v2410_v14  ;;  %v2329_v26 = vmax.f32 %v2089_v19, 0.0  ;;  %v14221_v19 = vld [vmem:[%s16550_s2] ss:$0 sm:$0xff] }
 0x217   : > { %v2084_v25 = vadd.f32 %v13945_v17, %v2083_v24  ;;  %v2327_v28 = vmax.f32 %v2081_v21, 0.0 }
 0x218   : > { %v2330_v27 = vmax.f32 %v2092_v23, 0.0 }
 0x219   : > { %v2328_v29 = vmax.f32 %v2084_v25, 0.0 }
 0x21a   : > { %v2412_v30 = vpack.c.bf16 %v2330_v27, %v2329_v26 }
 0x21b   : > { %v2411_v31 = vpack.c.bf16 %v2328_v29, %v2327_v28  ;;  %v12428_v32 = vpop.f32.mrb[92].mxu0 }
 0x21c   : > { %v2105_v33 = vadd.f32 %v12428_v32, %v13945_v17  ;;  %v2096_v34 = vpop.f32.mrb[93].mxu0 }
 0x21d   : > { %v2097_v36 = vadd.f32 %v13945_v17, %v2096_v34  ;;  %v12429_v37 = vpop.f32.mrb[94].mxu0  ;;  %12558 = vmatprep.mubr.msk.bf16.mxu1 %vm2470_vm1, %v2411_v31 }
 0x21e   : > { %v2108_v39 = vadd.f32 %v12429_v37, %v13945_v17  ;;  %v2099_v41 = vpop.f32.mrb[95].mxu0  ;;  %12559 = vmatmul.mubr.msk.bf16.gmra.mrb[88].mxu1 %vm2470_vm1, %v2412_v30  ;;  %v2333_v43 = vmax.f32 %v2105_v33, 0.0 }
 0x21f   : > { %v2100_v42 = vadd.f32 %v13945_v17, %v2099_v41  ;;  %v2331_v45 = vmax.f32 %v2097_v36, 0.0 }
 0x220   : > { %v2334_v44 = vmax.f32 %v2108_v39, 0.0 }
 0x221   : > { %v2332_v46 = vmax.f32 %v2100_v42, 0.0 }
 0x222   : > { %v2414_v47 = vpack.c.bf16 %v2334_v44, %v2333_v43  ;;  %v14238_v43 = vld [vmem:[%s16552_s4] ss:$0 sm:$0xff] }
 0x223   : > { %v2413_v48 = vpack.c.bf16 %v2332_v46, %v2331_v45  ;;  %v12432_v49 = vpop.f32.mrb[96].mxu0 }
 0x224   : > { %v2121_v50 = vadd.f32 %v12432_v49, %v13945_v17  ;;  %v2112_v51 = vpop.f32.mrb[97].mxu0 }
 0x225   : > { %v2113_v52 = vadd.f32 %v13945_v17, %v2112_v51  ;;  %v12433_v53 = vpop.f32.mrb[98].mxu0  ;;  %12562 = vmatprep.mubr.msk.bf16.mxu1 %vm2470_vm1, %v2413_v48 }
 0x226   : > { %v2124_v54 = vadd.f32 %v12433_v53, %v13945_v17  ;;  %v2115_v55 = vpop.f32.mrb[99].mxu0  ;;  %12563 = vmatmul.mubr.msk.bf16.gmra.mrb[92].mxu1 %vm2470_vm1, %v2414_v47  ;;  %v2337_v57 = vmax.f32 %v2121_v50, 0.0 }
 0x227   : > { %v2116_v56 = vadd.f32 %v13945_v17, %v2115_v55  ;;  %v2335_v35 = vmax.f32 %v2113_v52, 0.0 }
 0x228   : > { %v2338_v58 = vmax.f32 %v2124_v54, 0.0 }
 0x229   : > { %v2336_v38 = vmax.f32 %v2116_v56, 0.0 }
 0x22a   : > { %v2416_v40 = vpack.c.bf16 %v2338_v58, %v2337_v57 }
 0x22b   : > { %v2415_v60 = vpack.c.bf16 %v2336_v38, %v2335_v35  ;;  %v12436_v61 = vpop.f32.mrb[100].mxu0 }
 0x22c   : > { %v2137_v62 = vadd.f32 %v12436_v61, %v13945_v17  ;;  %v2128_v63 = vpop.f32.mrb[101].mxu0 }
 0x22d   : > { %v2129_v0 = vadd.f32 %v13945_v17, %v2128_v63  ;;  %v12437_v1 = vpop.f32.mrb[102].mxu0  ;;  %12566 = vmatprep.mubr.msk.bf16.mxu1 %vm2470_vm1, %v2415_v60 }
 0x22e   : > { %v2140_v2 = vadd.f32 %v12437_v1, %v13945_v17  ;;  %v2131_v3 = vpop.f32.mrb[103].mxu0  ;;  %12567 = vmatmul.mubr.msk.bf16.gmra.mrb[96].mxu1 %vm2470_vm1, %v2416_v40  ;;  %v2341_v5 = vmax.f32 %v2137_v62, 0.0  ;;  %v6096_v1 = vld [vmem:[%s16553_s5 + $0x50] sm:$0xff] }
 0x22f   : > { %v2132_v4 = vadd.f32 %v13945_v17, %v2131_v3  ;;  %v2339_v10 = vmax.f32 %v2129_v0, 0.0 }
 0x230   : > { %v2342_v6 = vmax.f32 %v2140_v2, 0.0  ;;  %v6097_v2 = vld [vmem:[%s16553_s5 + $0x70] sm:$0xff] }
 0x231   : > { %v2340_v12 = vmax.f32 %v2132_v4, 0.0 }
 0x232   : > { %v2418_v14 = vpack.c.bf16 %v2342_v6, %v2341_v5 }
 0x233   : > { %v2417_v15 = vpack.c.bf16 %v2340_v12, %v2339_v10  ;;  %v12440_v18 = vpop.f32.mrb[104].mxu0 }
 0x234   : > { %v2153_v20 = vadd.f32 %v14221_v19, %v12440_v18  ;;  %v2144_v21 = vpop.f32.mrb[105].mxu0 }
 0x235   : > { %v2145_v22 = vadd.f32 %v14221_v19, %v2144_v21  ;;  %v12441_v23 = vpop.f32.mrb[106].mxu0  ;;  %12570 = vmatprep.mubr.msk.bf16.mxu1 %vm2470_vm1, %v2417_v15  ;;  %v11811_v21 = vcombine.high %v6096_v1, %v6097_v2 }
 0x236   : > { %v2156_v17 = vadd.f32 %v14221_v19, %v12441_v23  ;;  %v2147_v24 = vpop.f32.mrb[107].mxu0  ;;  %12571 = vmatmul.mubr.msk.bf16.gmra.mrb[100].mxu1 %vm2470_vm1, %v2418_v14  ;;  %v2345_v26 = vmax.f32 %v2153_v20, 0.0 }
 0x237   : > { %v2148_v25 = vadd.f32 %v14221_v19, %v2147_v24  ;;  %v2343_v28 = vmax.f32 %v2145_v22, 0.0 }
 0x238   : > { %v2346_v27 = vmax.f32 %v2156_v17, 0.0 }
 0x239   : > { %v2344_v29 = vmax.f32 %v2148_v25, 0.0 }
 0x23a   : > { %v2420_v30 = vpack.c.bf16 %v2346_v27, %v2345_v26 }
 0x23b   : > { %v2419_v31 = vpack.c.bf16 %v2344_v29, %v2343_v28  ;;  %v12444_v32 = vpop.f32.mrb[108].mxu0 }
 0x23c   : > { %v2169_v33 = vadd.f32 %v14221_v19, %v12444_v32  ;;  %v2160_v34 = vpop.f32.mrb[109].mxu0  ;;  %v11810_v32 = vcombine.low %v6096_v1, %v6097_v2 }
 0x23d   : > { %v2161_v36 = vadd.f32 %v14221_v19, %v2160_v34  ;;  %v12445_v37 = vpop.f32.mrb[110].mxu0  ;;  %12574 = vmatprep.mubr.msk.bf16.mxu1 %vm2470_vm1, %v2419_v31 }
 0x23e   : > { %v2172_v39 = vadd.f32 %v14221_v19, %v12445_v37  ;;  %v2163_v41 = vpop.f32.mrb[111].mxu0  ;;  %12575 = vmatmul.mubr.msk.bf16.gmra.mrb[104].mxu1 %vm2470_vm1, %v2420_v30  ;;  %v2349_v44 = vmax.f32 %v2169_v33, 0.0 }
 0x23f   : > { %v2164_v42 = vadd.f32 %v14221_v19, %v2163_v41  ;;  %v2347_v46 = vmax.f32 %v2161_v36, 0.0 }
 0x240   : > { %v2350_v45 = vmax.f32 %v2172_v39, 0.0 }
 0x241   : > { %v2348_v47 = vmax.f32 %v2164_v42, 0.0  ;;  %v12472_v48 = vpop.f32.mrb[0].mxu1 }
 0x242   : > { %v2422_v49 = vpack.c.bf16 %v2350_v45, %v2349_v44  ;;  %v2706_v50 = vadd.f32 %v12472_v48, %v14238_v43  ;;  %v2697_v51 = vpop.f32.mrb[1].mxu1 }
 0x243   : > { %v2421_v52 = vpack.c.bf16 %v2348_v47, %v2347_v46  ;;  %v2698_v53 = vadd.f32 %v14238_v43, %v2697_v51  ;;  %v12448_v54 = vpop.f32.mrb[112].mxu0  ;;  %v12473_v55 = vpop.f32.mrb[2].mxu1 }
 0x244   : > { %v2185_v56 = vadd.f32 %v14221_v19, %v12448_v54  ;;  %v2709_v57 = vadd.f32 %v12473_v55, %v14238_v43  ;;  %v2176_v58 = vpop.f32.mrb[113].mxu0  ;;  %v2700_v35 = vpop.f32.mrb[3].mxu1  ;;  %v3210_v61 = vmax.f32 %v2706_v50, 0.0 }
 0x245   : > { %v2177_v38 = vadd.f32 %v14221_v19, %v2176_v58  ;;  %v2701_v40 = vadd.f32 %v14238_v43, %v2700_v35  ;;  %v12449_v60 = vpop.f32.mrb[114].mxu0  ;;  %12578 = vmatprep.mubr.msk.bf16.mxu1 %vm2470_vm1, %v2421_v52  ;;  %v3208_v3 = vmax.f32 %v2698_v53, 0.0 }
 0x246   : > { %v3211_v62 = vmax.f32 %v2709_v57, 0.0  ;;  %v2188_v63 = vadd.f32 %v14221_v19, %v12449_v60  ;;  %v2179_v0 = vpop.f32.mrb[115].mxu0  ;;  %12579 = vmatmul.mubr.msk.bf16.gmra.mrb[108].mxu1 %vm2470_vm1, %v2422_v49  ;;  %v2353_v6 = vmax.f32 %v2185_v56, 0.0 }
 0x247   : > { %v3209_v4 = vmax.f32 %v2701_v40, 0.0  ;;  %v2180_v5 = vadd.f32 %v14221_v19, %v2179_v0  ;;  %v2351_v14 = vmax.f32 %v2177_v38, 0.0 }
 0x248   : > { %v14256_v10 = vpack.c.bf16 %v3211_v62, %v3210_v61  ;;  %v2354_v12 = vmax.f32 %v2188_v63, 0.0 }
 0x249   : > { %v14258_v15 = vpack.c.bf16 %v3209_v4, %v3208_v3  ;;  %v2352_v18 = vmax.f32 %v2180_v5, 0.0  ;;  %v12476_v20 = vpop.f32.mrb[4].mxu1 }
 0x24a   : > { %16678 = vst [vmem:[#allocation15_spill] sm:$0xff] %v14256_v10  ;;  %v2424_v22 = vpack.c.bf16 %v2354_v12, %v2353_v6  ;;  %v2722_v23 = vadd.f32 %v12476_v20, %v14238_v43  ;;  %v2713_v17 = vpop.f32.mrb[5].mxu1 }
 0x24b   : > { %16679 = vst [vmem:[#allocation16_spill] sm:$0xff] %v14258_v15  ;;  %v2423_v24 = vpack.c.bf16 %v2352_v18, %v2351_v14  ;;  %v2714_v25 = vadd.f32 %v14238_v43, %v2713_v17  ;;  %v12452_v26 = vpop.f32.mrb[116].mxu0  ;;  %v12477_v27 = vpop.f32.mrb[6].mxu1  ;;  %3541 = vmatmul.mubr.bf16.vlgmr.msra.gmra.mrb[128].mxu0 %v14258_v15 }
 0x24c   : > { %v2201_v28 = vadd.f32 %v14221_v19, %v12452_v26  ;;  %v2725_v29 = vadd.f32 %v12477_v27, %v14238_v43  ;;  %v2192_v30 = vpop.f32.mrb[117].mxu0  ;;  %v2716_v31 = vpop.f32.mrb[7].mxu1  ;;  %3550 = vmatprep.mubr.bf16.mxu0 %v16577_v59  ;;  %6203 = vmatpush1.bf16.msra.mxu0 %v11808_v11  ;;  %v3214_v37 = vmax.f32 %v2722_v23, 0.0 }
 0x24d   : > { %v2193_v33 = vadd.f32 %v14221_v19, %v2192_v30  ;;  %v2717_v34 = vadd.f32 %v14238_v43, %v2716_v31  ;;  %v12453_v36 = vpop.f32.mrb[118].mxu0  ;;  %12582 = vmatprep.mubr.msk.bf16.mxu1 %vm2470_vm1, %v2423_v24  ;;  %6204 = vmatprep.subr.bf16.mxu0 %v11811_v21  ;;  %v3212_v44 = vmax.f32 %v2714_v25, 0.0 }
 0x24e   : > { %v3215_v39 = vmax.f32 %v2725_v29, 0.0  ;;  %v2204_v41 = vadd.f32 %v14221_v19, %v12453_v36  ;;  %v2195_v42 = vpop.f32.mrb[119].mxu0  ;;  %12583 = vmatmul.mubr.msk.bf16.gmra.mrb[112].mxu1 %vm2470_vm1, %v2424_v22  ;;  %v2357_v8 = vmax.f32 %v2201_v28, 0.0 }
 0x24f   : > { %v3213_v45 = vmax.f32 %v2717_v34, 0.0  ;;  %v2196_v7 = vadd.f32 %v14221_v19, %v2195_v42  ;;  %v2355_v47 = vmax.f32 %v2193_v33, 0.0 }
 0x250   : > { %v14275_v11 = vpack.c.bf16 %v3215_v39, %v3214_v37  ;;  %v2358_v46 = vmax.f32 %v2204_v41, 0.0  ;;  %6205 = vmatpush1.bf16.msra.mxu0 %v11810_v32 }
 0x251   : > { %v14277_v48 = vpack.c.bf16 %v3213_v45, %v3212_v44  ;;  %v2356_v49 = vmax.f32 %v2196_v7, 0.0  ;;  %v12480_v50 = vpop.f32.mrb[8].mxu1 }
 0x252   : > { %16680 = vst [vmem:[#allocation17_spill] sm:$0xff] %v14275_v11  ;;  %v2426_v51 = vpack.c.bf16 %v2358_v46, %v2357_v8  ;;  %v2738_v52 = vadd.f32 %v12480_v50, %v14238_v43  ;;  %v2729_v53 = vpop.f32.mrb[9].mxu1 }
 0x253   : > { %16681 = vst [vmem:[#allocation18_spill] sm:$0xff] %v14277_v48  ;;  %v2425_v54 = vpack.c.bf16 %v2356_v49, %v2355_v47  ;;  %v2730_v55 = vadd.f32 %v14238_v43, %v2729_v53  ;;  %v12456_v56 = vpop.f32.mrb[120].mxu0  ;;  %v12481_v57 = vpop.f32.mrb[10].mxu1  ;;  %3551 = vmatmul.mubr.bf16.gmra.mrb[132].mxu0 %v14256_v10 }
 0x254   : > { %v2217_v58 = vadd.f32 %v14221_v19, %v12456_v56  ;;  %v2741_v35 = vadd.f32 %v12481_v57, %v14238_v43  ;;  %v2208_v38 = vpop.f32.mrb[121].mxu0  ;;  %v2732_v40 = vpop.f32.mrb[11].mxu1  ;;  %3560 = vmatprep.mubr.bf16.mxu0 %v16577_v59  ;;  %v3218_v63 = vmax.f32 %v2738_v52, 0.0 }
 0x255   : > { %v2209_v60 = vadd.f32 %v14221_v19, %v2208_v38  ;;  %v2733_v61 = vadd.f32 %v14238_v43, %v2732_v40  ;;  %v12457_v62 = vpop.f32.mrb[122].mxu0  ;;  %12586 = vmatprep.mubr.msk.bf16.mxu1 %vm2470_vm1, %v2425_v54  ;;  %v3216_v3 = vmax.f32 %v2730_v55, 0.0 }
 0x256   : > { %v3219_v0 = vmax.f32 %v2741_v35, 0.0  ;;  %v2220_v1 = vadd.f32 %v14221_v19, %v12457_v62  ;;  %v2211_v2 = vpop.f32.mrb[123].mxu0  ;;  %12587 = vmatmul.mubr.msk.bf16.gmra.mrb[116].mxu1 %vm2470_vm1, %v2426_v51  ;;  %v2361_v6 = vmax.f32 %v2217_v58, 0.0 }
 0x257   : > { %v3217_v4 = vmax.f32 %v2733_v61, 0.0  ;;  %v2212_v5 = vadd.f32 %v14221_v19, %v2211_v2  ;;  %v2359_v18 = vmax.f32 %v2209_v60, 0.0  ;;  %v7440_v2 = vld [vmem:[%s16553_s5 + $0x58] sm:$0xff] }
 0x258   : > { %v14291_v12 = vpack.c.bf16 %v3219_v0, %v3218_v63  ;;  %v2362_v14 = vmax.f32 %v2220_v1, 0.0 }
 0x259   : > { %v14293_v20 = vpack.c.bf16 %v3217_v4, %v3216_v3  ;;  %v2360_v21 = vmax.f32 %v2212_v5, 0.0  ;;  %v12484_v22 = vpop.f32.mrb[12].mxu1  ;;  %v7441_v3 = vld [vmem:[%s16553_s5 + $0x78] sm:$0xff] }
 0x25a   : > { %16682 = vst [vmem:[#allocation19_spill] sm:$0xff] %v14291_v12  ;;  %v2428_v23 = vpack.c.bf16 %v2362_v14, %v2361_v6  ;;  %v2754_v17 = vadd.f32 %v12484_v22, %v14238_v43  ;;  %v2745_v24 = vpop.f32.mrb[13].mxu1  ;;  %v11827_v22 = vcombine.high %v7440_v2, %v7441_v3 }
 0x25b   : > { %16683 = vst [vmem:[#allocation20_spill] sm:$0xff] %v14293_v20  ;;  %v2427_v25 = vpack.c.bf16 %v2360_v21, %v2359_v18  ;;  %v2746_v26 = vadd.f32 %v14238_v43, %v2745_v24  ;;  %v12460_v27 = vpop.f32.mrb[124].mxu0  ;;  %v12485_v28 = vpop.f32.mrb[14].mxu1  ;;  %3561 = vmatmul.mubr.bf16.gmra.mrb[136].mxu0 %v14277_v48 }
 0x25c   : > { %v2233_v29 = vadd.f32 %v14221_v19, %v12460_v27  ;;  %v2757_v30 = vadd.f32 %v12485_v28, %v14238_v43  ;;  %v2224_v31 = vpop.f32.mrb[125].mxu0  ;;  %v2748_v32 = vpop.f32.mrb[15].mxu1  ;;  %3570 = vmatprep.mubr.bf16.mxu0 %v16577_v59  ;;  %v3222_v37 = vmax.f32 %v2754_v17, 0.0  ;;  %v11826_v27 = vcombine.low %v7440_v2, %v7441_v3 }
 0x25d   : > { %v2225_v33 = vadd.f32 %v14221_v19, %v2224_v31  ;;  %v2749_v34 = vadd.f32 %v14238_v43, %v2748_v32  ;;  %v12461_v36 = vpop.f32.mrb[126].mxu0  ;;  %12590 = vmatprep.mubr.msk.bf16.mxu1 %vm2470_vm1, %v2427_v25  ;;  %v3220_v44 = vmax.f32 %v2746_v26, 0.0  ;;  %v6098_v31 = vld [vmem:[%s16553_s5 + $0x90] sm:$0xff] }
 0x25e   : > { %v3223_v39 = vmax.f32 %v2757_v30, 0.0  ;;  %v2236_v41 = vadd.f32 %v14221_v19, %v12461_v36  ;;  %v2227_v42 = vpop.f32.mrb[127].mxu0  ;;  %12591 = vmatmul.mubr.msk.bf16.gmra.mrb[120].mxu1 %vm2470_vm1, %v2428_v23  ;;  %v2365_v8 = vmax.f32 %v2233_v29, 0.0  ;;  %v6099_v32 = vld [vmem:[%s16553_s5 + $0xb0] sm:$0xff]  ;;  %v7443_v36 = vld [vmem:[%s16553_s5 + $0xb8] sm:$0xff] }
 0x25f   : > { %v3221_v45 = vmax.f32 %v2749_v34, 0.0  ;;  %v2228_v7 = vadd.f32 %v14221_v19, %v2227_v42  ;;  %v2363_v49 = vmax.f32 %v2225_v33, 0.0  ;;  %v11812_v33 = vcombine.low %v6098_v31, %v6099_v32 }
 0x260   : > { %v14307_v46 = vpack.c.bf16 %v3223_v39, %v3222_v37  ;;  %v2366_v47 = vmax.f32 %v2236_v41, 0.0  ;;  %v11813_v34 = vcombine.high %v6098_v31, %v6099_v32  ;;  %v11828_v41 = vcombine.low %v7442_v9, %v7443_v36 }
 0x261   : > { %v14309_v50 = vpack.c.bf16 %v3221_v45, %v3220_v44  ;;  %v2364_v51 = vmax.f32 %v2228_v7, 0.0  ;;  %v12488_v52 = vpop.f32.mrb[16].mxu1  ;;  %v11829_v42 = vcombine.high %v7442_v9, %v7443_v36 }
 0x262   : > { %16684 = vst [vmem:[#allocation21_spill] sm:$0xff] %v14307_v46  ;;  %v2430_v53 = vpack.c.bf16 %v2366_v47, %v2365_v8  ;;  %v2770_v54 = vadd.f32 %v12488_v52, %v14238_v43  ;;  %v2761_v55 = vpop.f32.mrb[17].mxu1  ;;  %6206 = vmatprep.subr.bf16.mxu0 %v11813_v34 }
 0x263   : > { %16685 = vst [vmem:[#allocation22_spill] sm:$0xff] %v14309_v50  ;;  %v2429_v56 = vpack.c.bf16 %v2364_v51, %v2363_v49  ;;  %v2762_v57 = vadd.f32 %v14238_v43, %v2761_v55  ;;  %v12489_v58 = vpop.f32.mrb[18].mxu1  ;;  %3571 = vmatmul.mubr.bf16.gmra.mrb[140].mxu0 %v14275_v11 }
 0x264   : > { %v2773_v19 = vadd.f32 %v12489_v58, %v14238_v43  ;;  %v2764_v35 = vpop.f32.mrb[19].mxu1  ;;  %3580 = vmatprep.mubr.bf16.mxu0 %v16577_v59  ;;  %v3226_v40 = vmax.f32 %v2770_v54, 0.0  ;;  %6207 = vmatpush1.bf16.msra.mxu0 %v11812_v33 }
 0x265   : > { %v2765_v38 = vadd.f32 %v14238_v43, %v2764_v35  ;;  %12594 = vmatprep.mubr.msk.bf16.mxu1 %vm2470_vm1, %v2429_v56  ;;  %v3224_v61 = vmax.f32 %v2762_v57, 0.0 }
 0x266   : > { %v3227_v60 = vmax.f32 %v2773_v19, 0.0  ;;  %12595 = vmatmul.mubr.msk.bf16.gmra.mrb[124].mxu1 %vm2470_vm1, %v2430_v53 }
 0x267   : > { %v3225_v62 = vmax.f32 %v2765_v38, 0.0  ;;  %4890 = vmatprep.mubr.bf16.mxu1 %v16577_v59 }
 0x268   : > { %v14320_v63 = vpack.c.bf16 %v3227_v60, %v3226_v40 }
 0x269   : > { %v14322_v0 = vpack.c.bf16 %v3225_v62, %v3224_v61  ;;  %v12492_v1 = vpop.f32.mrb[20].mxu1 }
 0x26a   : > { %16686 = vst [vmem:[#allocation23_spill] sm:$0xff] %v14320_v63  ;;  %v2786_v4 = vadd.f32 %v12492_v1, %v14238_v43  ;;  %v2777_v5 = vpop.f32.mrb[21].mxu1 }
 0x26b   : > { %16687 = vst [vmem:[#allocation24_spill] sm:$0xff] %v14322_v0  ;;  %v2778_v6 = vadd.f32 %v14238_v43, %v2777_v5  ;;  %v12493_v14 = vpop.f32.mrb[22].mxu1  ;;  %3581 = vmatmul.mubr.bf16.gmra.mrb[144].mxu0 %v14293_v20 }
 0x26c   : > { %v2789_v18 = vadd.f32 %v12493_v14, %v14238_v43  ;;  %v2780_v21 = vpop.f32.mrb[23].mxu1  ;;  %3590 = vmatprep.mubr.bf16.mxu0 %v16577_v59  ;;  %v3230_v17 = vmax.f32 %v2786_v4, 0.0 }
 0x26d   : > { %v2781_v23 = vadd.f32 %v14238_v43, %v2780_v21  ;;  %v3228_v25 = vmax.f32 %v2778_v6, 0.0 }
 0x26e   : > { %v3231_v24 = vmax.f32 %v2789_v18, 0.0  ;;  %4891 = vmatmul.mubr.bf16.vlgmr.msra.gmra.mrb[128].mxu1 %v14258_v15 }
 0x26f   : > { %v3229_v26 = vmax.f32 %v2781_v23, 0.0  ;;  %7547 = vmatpush1.bf16.msra.mxu1 %v11824_v16  ;;  %4900 = vmatprep.mubr.bf16.mxu1 %v16577_v59 }
 0x270   : > { %v14341_v28 = vpack.c.bf16 %v3231_v24, %v3230_v17  ;;  %7548 = vmatprep.subr.bf16.mxu1 %v11827_v22 }
 0x271   : > { %v14343_v29 = vpack.c.bf16 %v3229_v26, %v3228_v25  ;;  %v12496_v30 = vpop.f32.mrb[24].mxu1 }
 0x272   : > { %16688 = vst [vmem:[#allocation25_spill] sm:$0xff] %v14341_v28  ;;  %v2802_v13 = vadd.f32 %v12496_v30, %v14238_v43  ;;  %v2793_v16 = vpop.f32.mrb[25].mxu1 }
 0x273   : > { %16689 = vst [vmem:[#allocation26_spill] sm:$0xff] %v14343_v29  ;;  %v2794_v37 = vadd.f32 %v14238_v43, %v2793_v16  ;;  %v12497_v39 = vpop.f32.mrb[26].mxu1  ;;  %3591 = vmatmul.mubr.bf16.gmra.mrb[148].mxu0 %v14291_v12  ;;  %7549 = vmatpush1.bf16.msra.mxu1 %v11826_v27 }
 0x274   : > { %v2805_v44 = vadd.f32 %v12497_v39, %v14238_v43  ;;  %v2796_v45 = vpop.f32.mrb[27].mxu1  ;;  %3600 = vmatprep.mubr.bf16.mxu0 %v16577_v59  ;;  %7550 = vmatprep.subr.bf16.mxu1 %v11829_v42  ;;  %v3234_v8 = vmax.f32 %v2802_v13, 0.0 }
 0x275   : > { %v2797_v7 = vadd.f32 %v14238_v43, %v2796_v45  ;;  %v3232_v49 = vmax.f32 %v2794_v37, 0.0 }
 0x276   : > { %v3235_v47 = vmax.f32 %v2805_v44, 0.0  ;;  %4901 = vmatmul.mubr.bf16.gmra.mrb[132].mxu1 %v14256_v10 }
 0x277   : > { %v3233_v51 = vmax.f32 %v2797_v7, 0.0  ;;  %4910 = vmatprep.mubr.bf16.mxu1 %v16577_v59  ;;  %7551 = vmatpush1.bf16.msra.mxu1 %v11828_v41 }
 0x278   : > { %v14365_v52 = vpack.c.bf16 %v3235_v47, %v3234_v8 }
 0x279   : > { %v14367_v53 = vpack.c.bf16 %v3233_v51, %v3232_v49  ;;  %v12500_v54 = vpop.f32.mrb[28].mxu1 }
 0x27a   : > { %16690 = vst [vmem:[#allocation27_spill] sm:$0xff] %v14365_v52  ;;  %v2818_v55 = vadd.f32 %v12500_v54, %v14238_v43  ;;  %v2809_v56 = vpop.f32.mrb[29].mxu1 }
 0x27b   : > { %16691 = vst [vmem:[#allocation28_spill] sm:$0xff] %v14367_v53  ;;  %v2810_v57 = vadd.f32 %v14238_v43, %v2809_v56  ;;  %v12501_v58 = vpop.f32.mrb[30].mxu1  ;;  %3601 = vmatmul.mubr.bf16.gmra.mrb[152].mxu0 %v14309_v50 }
 0x27c   : > { %v2821_v19 = vadd.f32 %v12501_v58, %v14238_v43  ;;  %v2812_v35 = vpop.f32.mrb[31].mxu1  ;;  %3610 = vmatprep.mubr.bf16.mxu0 %v16577_v59  ;;  %v3238_v40 = vmax.f32 %v2818_v55, 0.0 }
 0x27d   : > { %v2813_v38 = vadd.f32 %v14238_v43, %v2812_v35  ;;  %v3236_v61 = vmax.f32 %v2810_v57, 0.0 }
 0x27e   : > { %v3239_v60 = vmax.f32 %v2821_v19, 0.0  ;;  %4911 = vmatmul.mubr.bf16.gmra.mrb[136].mxu1 %v14277_v48 }
 0x27f   : > { %v3237_v62 = vmax.f32 %v2813_v38, 0.0  ;;  %4920 = vmatprep.mubr.bf16.mxu1 %v16577_v59 }
 0x280   : > { %v14377_v1 = vpack.c.bf16 %v3239_v60, %v3238_v40 }
 0x281   : > { %v14379_v2 = vpack.c.bf16 %v3237_v62, %v3236_v61  ;;  %v12504_v3 = vpop.f32.mrb[32].mxu1 }
 0x282   : > { %16692 = vst [vmem:[#allocation29_spill] sm:$0xff] %v14377_v1  ;;  %v2834_v4 = vadd.f32 %v12504_v3, %v14238_v43  ;;  %v2825_v5 = vpop.f32.mrb[33].mxu1 }
 0x283   : > { %16693 = vst [vmem:[#allocation30_spill] sm:$0xff] %v14379_v2  ;;  %v2826_v6 = vadd.f32 %v14238_v43, %v2825_v5  ;;  %v12505_v14 = vpop.f32.mrb[34].mxu1  ;;  %3611 = vmatmul.mubr.bf16.gmra.mrb[156].mxu0 %v14307_v46 }
 0x284   : > { %v2837_v18 = vadd.f32 %v12505_v14, %v14238_v43  ;;  %v2828_v21 = vpop.f32.mrb[35].mxu1  ;;  %3620 = vmatprep.mubr.bf16.mxu0 %v16577_v59  ;;  %v3242_v23 = vmax.f32 %v2834_v4, 0.0 }
 0x285   : > { %v2829_v22 = vadd.f32 %v14238_v43, %v2828_v21  ;;  %v3240_v24 = vmax.f32 %v2826_v6, 0.0 }
 0x286   : > { %v3243_v17 = vmax.f32 %v2837_v18, 0.0  ;;  %4921 = vmatmul.mubr.bf16.gmra.mrb[140].mxu1 %v14275_v11 }
 0x287   : > { %v3241_v25 = vmax.f32 %v2829_v22, 0.0  ;;  %4930 = vmatprep.mubr.bf16.mxu1 %v16577_v59 }
 0x288   : > { %v14389_v26 = vpack.c.bf16 %v3243_v17, %v3242_v23 }
 0x289   : > { %v14391_v27 = vpack.c.bf16 %v3241_v25, %v3240_v24  ;;  %v12508_v30 = vpop.f32.mrb[36].mxu1 }
 0x28a   : > { %16694 = vst [vmem:[#allocation31_spill] sm:$0xff] %v14389_v26  ;;  %v2850_v31 = vadd.f32 %v12508_v30, %v14238_v43  ;;  %v2841_v32 = vpop.f32.mrb[37].mxu1 }
 0x28b   : > { %16695 = vst [vmem:[#allocation32_spill] sm:$0xff] %v14391_v27  ;;  %v2842_v9 = vadd.f32 %v14238_v43, %v2841_v32  ;;  %v12509_v13 = vpop.f32.mrb[38].mxu1  ;;  %3621 = vmatmul.mubr.bf16.gmra.mrb[160].mxu0 %v14322_v0 }
 0x28c   : > { %v2853_v16 = vadd.f32 %v12509_v13, %v14238_v43  ;;  %v2844_v33 = vpop.f32.mrb[39].mxu1  ;;  %3630 = vmatprep.mubr.bf16.mxu0 %v16577_v59  ;;  %v3246_v36 = vmax.f32 %v2850_v31, 0.0 }
 0x28d   : > { %v2845_v34 = vadd.f32 %v14238_v43, %v2844_v33  ;;  %v3244_v39 = vmax.f32 %v2842_v9, 0.0 }
 0x28e   : > { %v3247_v37 = vmax.f32 %v2853_v16, 0.0  ;;  %4931 = vmatmul.mubr.bf16.gmra.mrb[144].mxu1 %v14293_v20 }
 0x28f   : > { %v3245_v41 = vmax.f32 %v2845_v34, 0.0  ;;  %4940 = vmatprep.mubr.bf16.mxu1 %v16577_v59 }
 0x290   : > { %v14401_v42 = vpack.c.bf16 %v3247_v37, %v3246_v36 }
 0x291   : > { %v14403_v44 = vpack.c.bf16 %v3245_v41, %v3244_v39  ;;  %v12512_v45 = vpop.f32.mrb[40].mxu1 }
 0x292   : > { %16696 = vst [vmem:[#allocation33_spill] sm:$0xff] %v14401_v42  ;;  %v2866_v7 = vadd.f32 %v12512_v45, %v14238_v43  ;;  %v2857_v8 = vpop.f32.mrb[41].mxu1 }
 0x293   : > { %16697 = vst [vmem:[#allocation34_spill] sm:$0xff] %v14403_v44  ;;  %v2858_v47 = vadd.f32 %v14238_v43, %v2857_v8  ;;  %v12513_v49 = vpop.f32.mrb[42].mxu1  ;;  %3631 = vmatmul.mubr.bf16.gmra.mrb[164].mxu0 %v14320_v63 }
 0x294   : > { %v2869_v51 = vadd.f32 %v12513_v49, %v14238_v43  ;;  %v2860_v54 = vpop.f32.mrb[43].mxu1  ;;  %3640 = vmatprep.mubr.bf16.mxu0 %v16577_v59  ;;  %v3250_v56 = vmax.f32 %v2866_v7, 0.0 }
 0x295   : > { %v2861_v55 = vadd.f32 %v14238_v43, %v2860_v54  ;;  %v3248_v58 = vmax.f32 %v2858_v47, 0.0 }
 0x296   : > { %v3251_v57 = vmax.f32 %v2869_v51, 0.0  ;;  %4941 = vmatmul.mubr.bf16.gmra.mrb[148].mxu1 %v14291_v12 }
 0x297   : > { %v3249_v19 = vmax.f32 %v2861_v55, 0.0  ;;  %4950 = vmatprep.mubr.bf16.mxu1 %v16577_v59 }
 0x298   : > { %v14413_v35 = vpack.c.bf16 %v3251_v57, %v3250_v56 }
 0x299   : > { %v14415_v38 = vpack.c.bf16 %v3249_v19, %v3248_v58  ;;  %v12516_v40 = vpop.f32.mrb[44].mxu1 }
 0x29a   : > { %16698 = vst [vmem:[#allocation35_spill] sm:$0xff] %v14413_v35  ;;  %v2882_v60 = vadd.f32 %v12516_v40, %v14238_v43  ;;  %v2873_v61 = vpop.f32.mrb[45].mxu1 }
 0x29b   : > { %16699 = vst [vmem:[#allocation36_spill] sm:$0xff] %v14415_v38  ;;  %v2874_v62 = vadd.f32 %v14238_v43, %v2873_v61  ;;  %v12517_v3 = vpop.f32.mrb[46].mxu1  ;;  %3641 = vmatmul.mubr.bf16.gmra.mrb[168].mxu0 %v14343_v29 }
 0x29c   : > { %v2885_v4 = vadd.f32 %v12517_v3, %v14238_v43  ;;  %v2876_v5 = vpop.f32.mrb[47].mxu1  ;;  %3650 = vmatprep.mubr.bf16.mxu0 %v16577_v59  ;;  %v3254_v14 = vmax.f32 %v2882_v60, 0.0  ;;  %v6101_v3 = vld [vmem:[%s16553_s5 + $0xf0] sm:$0xff] }
 0x29d   : > { %v2877_v6 = vadd.f32 %v14238_v43, %v2876_v5  ;;  %v3252_v21 = vmax.f32 %v2874_v62, 0.0  ;;  %v6100_v62 = vld [vmem:[%s16553_s5 + $0xd0] sm:$0xff] }
 0x29e   : > { %v3255_v18 = vmax.f32 %v2885_v4, 0.0  ;;  %4951 = vmatmul.mubr.bf16.gmra.mrb[152].mxu1 %v14309_v50  ;;  %v7444_v4 = vld [vmem:[%s16553_s5 + $0xd8] sm:$0xff] }
 0x29f   : > { %v3253_v22 = vmax.f32 %v2877_v6, 0.0  ;;  %4960 = vmatprep.mubr.bf16.mxu1 %v16577_v59 }
 0x2a0   : > { %v14425_v23 = vpack.c.bf16 %v3255_v18, %v3254_v14  ;;  %v11814_v14 = vcombine.low %v6100_v62, %v6101_v3  ;;  %v11815_v18 = vcombine.high %v6100_v62, %v6101_v3 }
 0x2a1   : > { %v14427_v17 = vpack.c.bf16 %v3253_v22, %v3252_v21  ;;  %v12520_v24 = vpop.f32.mrb[48].mxu1  ;;  %v7445_v21 = vld [vmem:[%s16553_s5 + $0xf8] sm:$0xff] }
 0x2a2   : > { %16700 = vst [vmem:[#allocation37_spill] sm:$0xff] %v14425_v23  ;;  %v2898_v25 = vadd.f32 %v12520_v24, %v14238_v43  ;;  %v2889_v30 = vpop.f32.mrb[49].mxu1  ;;  %6208 = vmatprep.subr.bf16.mxu0 %v11815_v18 }
 0x2a3   : > { %16701 = vst [vmem:[#allocation38_spill] sm:$0xff] %v14427_v17  ;;  %v2890_v31 = vadd.f32 %v14238_v43, %v2889_v30  ;;  %v12521_v32 = vpop.f32.mrb[50].mxu1  ;;  %3651 = vmatmul.mubr.bf16.gmra.mrb[172].mxu0 %v14341_v28  ;;  %v11831_v30 = vcombine.high %v7444_v4, %v7445_v21 }
 0x2a4   : > { %v2901_v9 = vadd.f32 %v12521_v32, %v14238_v43  ;;  %v2892_v13 = vpop.f32.mrb[51].mxu1  ;;  %3660 = vmatprep.mubr.bf16.mxu0 %v16577_v59  ;;  %v3258_v33 = vmax.f32 %v2898_v25, 0.0  ;;  %v11830_v25 = vcombine.low %v7444_v4, %v7445_v21  ;;  %6209 = vmatpush1.bf16.msra.mxu0 %v11814_v14 }
 0x2a5   : > { %v2893_v16 = vadd.f32 %v14238_v43, %v2892_v13  ;;  %v3256_v36 = vmax.f32 %v2890_v31, 0.0  ;;  %7552 = vmatprep.subr.bf16.mxu1 %v11831_v30 }
 0x2a6   : > { %v3259_v34 = vmax.f32 %v2901_v9, 0.0  ;;  %4961 = vmatmul.mubr.bf16.gmra.mrb[156].mxu1 %v14307_v46 }
 0x2a7   : > { %v3257_v37 = vmax.f32 %v2893_v16, 0.0  ;;  %4970 = vmatprep.mubr.bf16.mxu1 %v16577_v59  ;;  %7553 = vmatpush1.bf16.msra.mxu1 %v11830_v25 }
 0x2a8   : > { %v14437_v39 = vpack.c.bf16 %v3259_v34, %v3258_v33 }
 0x2a9   : > { %v14439_v41 = vpack.c.bf16 %v3257_v37, %v3256_v36  ;;  %v12524_v45 = vpop.f32.mrb[52].mxu1 }
 0x2aa   : > { %v2914_v7 = vadd.f32 %v12524_v45, %v14238_v43  ;;  %v2905_v8 = vpop.f32.mrb[53].mxu1 }
 0x2ab   : > { %16702 = vst [vmem:[#allocation39_spill] sm:$0xff] %v14439_v41  ;;  %v2906_v47 = vadd.f32 %v14238_v43, %v2905_v8  ;;  %v12525_v49 = vpop.f32.mrb[54].mxu1  ;;  %3661 = vmatmul.mubr.bf16.gmra.mrb[176].mxu0 %v14367_v53 }
 0x2ac   : > { %v2917_v51 = vadd.f32 %v12525_v49, %v14238_v43  ;;  %v2908_v54 = vpop.f32.mrb[55].mxu1  ;;  %3670 = vmatprep.mubr.bf16.mxu0 %v16577_v59  ;;  %v3262_v56 = vmax.f32 %v2914_v7, 0.0 }
 0x2ad   : > { %v2909_v55 = vadd.f32 %v14238_v43, %v2908_v54  ;;  %v3260_v58 = vmax.f32 %v2906_v47, 0.0 }
 0x2ae   : > { %v3263_v57 = vmax.f32 %v2917_v51, 0.0  ;;  %4971 = vmatmul.mubr.bf16.gmra.mrb[160].mxu1 %v14322_v0 }
 0x2af   : > { %v3261_v19 = vmax.f32 %v2909_v55, 0.0  ;;  %4980 = vmatprep.mubr.bf16.mxu1 %v16577_v59 }
 0x2b0   : > { %v14449_v40 = vpack.c.bf16 %v3263_v57, %v3262_v56 }
 0x2b1   : > { %v14451_v60 = vpack.c.bf16 %v3261_v19, %v3260_v58  ;;  %v12528_v61 = vpop.f32.mrb[56].mxu1 }
 0x2b2   : > { %16703 = vst [vmem:[#allocation40_spill] sm:$0xff] %v14449_v40  ;;  %v2930_v5 = vadd.f32 %v12528_v61, %v14238_v43  ;;  %v2921_v6 = vpop.f32.mrb[57].mxu1 }
 0x2b3   : > { %16704 = vst [vmem:[#allocation41_spill] sm:$0xff] %v14451_v60  ;;  %v2922_v22 = vadd.f32 %v14238_v43, %v2921_v6  ;;  %v12529_v24 = vpop.f32.mrb[58].mxu1  ;;  %3671 = vmatmul.mubr.bf16.gmra.mrb[180].mxu0 %v14365_v52 }
 0x2b4   : > { %v2933_v31 = vadd.f32 %v12529_v24, %v14238_v43  ;;  %v2924_v32 = vpop.f32.mrb[59].mxu1  ;;  %3680 = vmatprep.mubr.bf16.mxu0 %v16577_v59  ;;  %v3266_v13 = vmax.f32 %v2930_v5, 0.0 }
 0x2b5   : > { %v2925_v9 = vadd.f32 %v14238_v43, %v2924_v32  ;;  %v3264_v33 = vmax.f32 %v2922_v22, 0.0 }
 0x2b6   : > { %v3267_v16 = vmax.f32 %v2933_v31, 0.0  ;;  %4981 = vmatmul.mubr.bf16.gmra.mrb[164].mxu1 %v14320_v63 }
 0x2b7   : > { %v3265_v34 = vmax.f32 %v2925_v9, 0.0  ;;  %4990 = vmatprep.mubr.bf16.mxu1 %v16577_v59 }
 0x2b8   : > { %v14473_v36 = vpack.c.bf16 %v3267_v16, %v3266_v13 }
 0x2b9   : > { %v14475_v37 = vpack.c.bf16 %v3265_v34, %v3264_v33  ;;  %v12532_v45 = vpop.f32.mrb[60].mxu1 }
 0x2ba   : > { %16705 = vst [vmem:[#allocation42_spill] sm:$0xff] %v14473_v36  ;;  %v2946_v7 = vadd.f32 %v12532_v45, %v14238_v43  ;;  %v2937_v8 = vpop.f32.mrb[61].mxu1 }
 0x2bb   : > { %16706 = vst [vmem:[#allocation43_spill] sm:$0xff] %v14475_v37  ;;  %v2938_v47 = vadd.f32 %v14238_v43, %v2937_v8  ;;  %v12533_v49 = vpop.f32.mrb[62].mxu1  ;;  %3681 = vmatmul.mubr.bf16.gmra.mrb[184].mxu0 %v14379_v2 }
 0x2bc   : > { %v2949_v51 = vadd.f32 %v12533_v49, %v14238_v43  ;;  %v2940_v54 = vpop.f32.mrb[63].mxu1  ;;  %3690 = vmatprep.mubr.bf16.mxu0 %v16577_v59  ;;  %v3270_v56 = vmax.f32 %v2946_v7, 0.0 }
 0x2bd   : > { %v2941_v55 = vadd.f32 %v14238_v43, %v2940_v54  ;;  %v3268_v58 = vmax.f32 %v2938_v47, 0.0 }
 0x2be   : > { %v3271_v57 = vmax.f32 %v2949_v51, 0.0  ;;  %4991 = vmatmul.mubr.bf16.gmra.mrb[168].mxu1 %v14343_v29 }
 0x2bf   : > { %v3269_v19 = vmax.f32 %v2941_v55, 0.0  ;;  %5000 = vmatprep.mubr.bf16.mxu1 %v16577_v59 }
 0x2c0   : > { %v14485_v61 = vpack.c.bf16 %v3271_v57, %v3270_v56 }
 0x2c1   : > { %v14487_v62 = vpack.c.bf16 %v3269_v19, %v3268_v58  ;;  %v12536_v3 = vpop.f32.mrb[64].mxu1 }
 0x2c2   : > { %16707 = vst [vmem:[#allocation44_spill] sm:$0xff] %v14485_v61  ;;  %v2962_v4 = vadd.f32 %v12536_v3, %v14238_v43  ;;  %v2953_v5 = vpop.f32.mrb[65].mxu1 }
 0x2c3   : > { %16708 = vst [vmem:[#allocation45_spill] sm:$0xff] %v14487_v62  ;;  %v2954_v6 = vadd.f32 %v14238_v43, %v2953_v5  ;;  %v12537_v14 = vpop.f32.mrb[66].mxu1  ;;  %3691 = vmatmul.mubr.bf16.gmra.mrb[188].mxu0 %v14377_v1 }
 0x2c4   : > { %v2965_v18 = vadd.f32 %v12537_v14, %v14238_v43  ;;  %v2956_v21 = vpop.f32.mrb[67].mxu1  ;;  %3700 = vmatprep.mubr.bf16.mxu0 %v16577_v59  ;;  %v3274_v24 = vmax.f32 %v2962_v4, 0.0 }
 0x2c5   : > { %v2957_v22 = vadd.f32 %v14238_v43, %v2956_v21  ;;  %v3272_v30 = vmax.f32 %v2954_v6, 0.0 }
 0x2c6   : > { %v3275_v25 = vmax.f32 %v2965_v18, 0.0  ;;  %5001 = vmatmul.mubr.bf16.gmra.mrb[172].mxu1 %v14341_v28 }
 0x2c7   : > { %v3273_v31 = vmax.f32 %v2957_v22, 0.0  ;;  %5010 = vmatprep.mubr.bf16.mxu1 %v16577_v59 }
 0x2c8   : > { %v14497_v32 = vpack.c.bf16 %v3275_v25, %v3274_v24 }
 0x2c9   : > { %v14499_v9 = vpack.c.bf16 %v3273_v31, %v3272_v30  ;;  %v12540_v13 = vpop.f32.mrb[68].mxu1 }
 0x2ca   : > { %v2978_v16 = vadd.f32 %v12540_v13, %v14238_v43  ;;  %v2969_v33 = vpop.f32.mrb[69].mxu1 }
 0x2cb   : > { %16709 = vst [vmem:[#allocation46_spill] sm:$0xff] %v14499_v9  ;;  %v2970_v34 = vadd.f32 %v14238_v43, %v2969_v33  ;;  %v12541_v45 = vpop.f32.mrb[70].mxu1  ;;  %3701 = vmatmul.mubr.bf16.gmra.mrb[192].mxu0 %v14391_v27 }
 0x2cc   : > { %v2981_v7 = vadd.f32 %v12541_v45, %v14238_v43  ;;  %v2972_v8 = vpop.f32.mrb[71].mxu1  ;;  %3710 = vmatprep.mubr.bf16.mxu0 %v16577_v59  ;;  %v3278_v49 = vmax.f32 %v2978_v16, 0.0 }
 0x2cd   : > { %v2973_v47 = vadd.f32 %v14238_v43, %v2972_v8  ;;  %v3276_v54 = vmax.f32 %v2970_v34, 0.0 }
 0x2ce   : > { %v3279_v51 = vmax.f32 %v2981_v7, 0.0  ;;  %5011 = vmatmul.mubr.bf16.gmra.mrb[176].mxu1 %v14367_v53 }
 0x2cf   : > { %v3277_v55 = vmax.f32 %v2973_v47, 0.0  ;;  %5020 = vmatprep.mubr.bf16.mxu1 %v16577_v59 }
 0x2d0   : > { %v14509_v56 = vpack.c.bf16 %v3279_v51, %v3278_v49 }
 0x2d1   : > { %v14511_v57 = vpack.c.bf16 %v3277_v55, %v3276_v54  ;;  %v12544_v58 = vpop.f32.mrb[72].mxu1 }
 0x2d2   : > { %v2994_v19 = vadd.f32 %v12544_v58, %v14238_v43  ;;  %v2985_v3 = vpop.f32.mrb[73].mxu1 }
 0x2d3   : > { %v2986_v4 = vadd.f32 %v14238_v43, %v2985_v3  ;;  %v12545_v5 = vpop.f32.mrb[74].mxu1  ;;  %3711 = vmatmul.mubr.bf16.gmra.mrb[196].mxu0 %v14389_v26 }
 0x2d4   : > { %v2997_v6 = vadd.f32 %v12545_v5, %v14238_v43  ;;  %v2988_v14 = vpop.f32.mrb[75].mxu1  ;;  %3720 = vmatprep.mubr.bf16.mxu0 %v16577_v59  ;;  %v3282_v21 = vmax.f32 %v2994_v19, 0.0 }
 0x2d5   : > { %v2989_v18 = vadd.f32 %v14238_v43, %v2988_v14  ;;  %v3280_v24 = vmax.f32 %v2986_v4, 0.0 }
 0x2d6   : > { %v3283_v22 = vmax.f32 %v2997_v6, 0.0  ;;  %5021 = vmatmul.mubr.bf16.gmra.mrb[180].mxu1 %v14365_v52 }
 0x2d7   : > { %v3281_v25 = vmax.f32 %v2989_v18, 0.0  ;;  %5030 = vmatprep.mubr.bf16.mxu1 %v16577_v59 }
 0x2d8   : > { %v14521_v30 = vpack.c.bf16 %v3283_v22, %v3282_v21 }
 0x2d9   : > { %v14523_v31 = vpack.c.bf16 %v3281_v25, %v3280_v24  ;;  %v12548_v13 = vpop.f32.mrb[76].mxu1 }
 0x2da   : > { %v3010_v16 = vadd.f32 %v12548_v13, %v14238_v43  ;;  %v3001_v33 = vpop.f32.mrb[77].mxu1 }
 0x2db   : > { %v3002_v34 = vadd.f32 %v14238_v43, %v3001_v33  ;;  %v12549_v45 = vpop.f32.mrb[78].mxu1  ;;  %3721 = vmatmul.mubr.bf16.gmra.mrb[200].mxu0 %v14403_v44 }
 0x2dc   : > { %v3013_v7 = vadd.f32 %v12549_v45, %v14238_v43  ;;  %v3004_v8 = vpop.f32.mrb[79].mxu1  ;;  %3730 = vmatprep.mubr.bf16.mxu0 %v16577_v59  ;;  %v3286_v49 = vmax.f32 %v3010_v16, 0.0 }
 0x2dd   : > { %v3005_v47 = vadd.f32 %v14238_v43, %v3004_v8  ;;  %v3284_v54 = vmax.f32 %v3002_v34, 0.0 }
 0x2de   : > { %v3287_v51 = vmax.f32 %v3013_v7, 0.0  ;;  %5031 = vmatmul.mubr.bf16.gmra.mrb[184].mxu1 %v14379_v2 }
 0x2df   : > { %v3285_v55 = vmax.f32 %v3005_v47, 0.0  ;;  %5040 = vmatprep.mubr.bf16.mxu1 %v16577_v59 }
 0x2e0   : > { %v14533_v58 = vpack.c.bf16 %v3287_v51, %v3286_v49 }
 0x2e1   : > { %v14535_v19 = vpack.c.bf16 %v3285_v55, %v3284_v54  ;;  %v12552_v3 = vpop.f32.mrb[80].mxu1 }
 0x2e2   : > { %v3026_v4 = vadd.f32 %v12552_v3, %v14238_v43  ;;  %v3017_v5 = vpop.f32.mrb[81].mxu1 }
 0x2e3   : > { %v3018_v6 = vadd.f32 %v14238_v43, %v3017_v5  ;;  %v12553_v14 = vpop.f32.mrb[82].mxu1  ;;  %3731 = vmatmul.mubr.bf16.gmra.mrb[204].mxu0 %v14401_v42 }
 0x2e4   : > { %v3029_v18 = vadd.f32 %v12553_v14, %v14238_v43  ;;  %v3020_v21 = vpop.f32.mrb[83].mxu1  ;;  %3740 = vmatprep.mubr.bf16.mxu0 %v16577_v59  ;;  %v3290_v24 = vmax.f32 %v3026_v4, 0.0 }
 0x2e5   : > { %v3021_v22 = vadd.f32 %v14238_v43, %v3020_v21  ;;  %v3288_v13 = vmax.f32 %v3018_v6, 0.0 }
 0x2e6   : > { %v3291_v25 = vmax.f32 %v3029_v18, 0.0  ;;  %5041 = vmatmul.mubr.bf16.gmra.mrb[188].mxu1 %v14377_v1 }
 0x2e7   : > { %v3289_v16 = vmax.f32 %v3021_v22, 0.0  ;;  %5050 = vmatprep.mubr.bf16.mxu1 %v16577_v59  ;;  %v6102_v22 = vld [vmem:[%s16553_s5 + $0x110] sm:$0xff] }
 0x2e8   : > { %v14545_v33 = vpack.c.bf16 %v3291_v25, %v3290_v24  ;;  %v6103_v24 = vld [vmem:[%s16553_s5 + $0x130] sm:$0xff]  ;;  %v7446_v25 = vld [vmem:[%s16553_s5 + $0x118] sm:$0xff] }
 0x2e9   : > { %v14547_v34 = vpack.c.bf16 %v3289_v16, %v3288_v13  ;;  %v12556_v45 = vpop.f32.mrb[84].mxu1 }
 0x2ea   : > { %v3042_v7 = vadd.f32 %v12556_v45, %v14238_v43  ;;  %v3033_v8 = vpop.f32.mrb[85].mxu1  ;;  %v11816_v45 = vcombine.low %v6102_v22, %v6103_v24 }
 0x2eb   : > { %v3034_v47 = vadd.f32 %v14238_v43, %v3033_v8  ;;  %v12557_v49 = vpop.f32.mrb[86].mxu1  ;;  %3741 = vmatmul.mubr.bf16.gmra.mrb[208].mxu0 %v14415_v38  ;;  %v7447_v8 = vld [vmem:[%s16553_s5 + $0x138] sm:$0xff] }
 0x2ec   : > { %v3045_v51 = vadd.f32 %v12557_v49, %v14238_v43  ;;  %v3036_v54 = vpop.f32.mrb[87].mxu1  ;;  %3750 = vmatprep.mubr.bf16.mxu0 %v16577_v59  ;;  %v3294_v3 = vmax.f32 %v3042_v7, 0.0  ;;  %v11817_v7 = vcombine.high %v6102_v22, %v6103_v24 }
 0x2ed   : > { %v3037_v55 = vadd.f32 %v14238_v43, %v3036_v54  ;;  %v3292_v5 = vmax.f32 %v3034_v47, 0.0  ;;  %v11833_v54 = vcombine.high %v7446_v25, %v7447_v8 }
 0x2ee   : > { %v3295_v4 = vmax.f32 %v3045_v51, 0.0  ;;  %5051 = vmatmul.mubr.bf16.gmra.mrb[192].mxu1 %v14391_v27  ;;  %v11832_v51 = vcombine.low %v7446_v25, %v7447_v8  ;;  %6210 = vmatprep.subr.bf16.mxu0 %v11817_v7 }
 0x2ef   : > { %v3293_v6 = vmax.f32 %v3037_v55, 0.0  ;;  %5060 = vmatprep.mubr.bf16.mxu1 %v16577_v59  ;;  %7554 = vmatprep.subr.bf16.mxu1 %v11833_v54 }
 0x2f0   : > { %v14557_v14 = vpack.c.bf16 %v3295_v4, %v3294_v3  ;;  %v14581_v4 = vld [vmem:[%s16552_s4] ss:$0 sm:$0xff]  ;;  %6211 = vmatpush1.bf16.msra.mxu0 %v11816_v45  ;;  %7555 = vmatpush1.bf16.msra.mxu1 %v11832_v51 }
 0x2f1   : > { %v14559_v18 = vpack.c.bf16 %v3293_v6, %v3292_v5  ;;  %v12560_v21 = vpop.f32.mrb[88].mxu1 }
 0x2f2   : > { %v3058_v13 = vadd.f32 %v12560_v21, %v14238_v43  ;;  %v3049_v16 = vpop.f32.mrb[89].mxu1 }
 0x2f3   : > { %v3050_v47 = vadd.f32 %v14238_v43, %v3049_v16  ;;  %v12561_v49 = vpop.f32.mrb[90].mxu1  ;;  %3751 = vmatmul.mubr.bf16.gmra.mrb[212].mxu0 %v14413_v35 }
 0x2f4   : > { %v3061_v55 = vadd.f32 %v12561_v49, %v14238_v43  ;;  %v3052_v3 = vpop.f32.mrb[91].mxu1  ;;  %3760 = vmatprep.mubr.bf16.mxu0 %v16577_v59  ;;  %v3298_v6 = vmax.f32 %v3058_v13, 0.0 }
 0x2f5   : > { %v3053_v5 = vadd.f32 %v14581_v4, %v3052_v3  ;;  %v3296_v22 = vmax.f32 %v3050_v47, 0.0 }
 0x2f6   : > { %v3299_v21 = vmax.f32 %v3061_v55, 0.0  ;;  %5061 = vmatmul.mubr.bf16.gmra.mrb[196].mxu1 %v14389_v26 }
 0x2f7   : > { %v3297_v24 = vmax.f32 %v3053_v5, 0.0  ;;  %5070 = vmatprep.mubr.bf16.mxu1 %v16577_v59 }
 0x2f8   : > { %v14586_v43 = vpack.c.bf16 %v3299_v21, %v3298_v6 }
 0x2f9   : > { %v14588_v25 = vpack.c.bf16 %v3297_v24, %v3296_v22  ;;  %v12564_v16 = vpop.f32.mrb[92].mxu1 }
 0x2fa   : > { %v3074_v7 = vadd.f32 %v14581_v4, %v12564_v16  ;;  %v3065_v8 = vpop.f32.mrb[93].mxu1 }
 0x2fb   : > { %v3066_v49 = vadd.f32 %v14581_v4, %v3065_v8  ;;  %v12565_v45 = vpop.f32.mrb[94].mxu1  ;;  %3761 = vmatmul.mubr.bf16.gmra.mrb[216].mxu0 %v14427_v17 }
 0x2fc   : > { %v3077_v13 = vadd.f32 %v14581_v4, %v12565_v45  ;;  %v3068_v47 = vpop.f32.mrb[95].mxu1  ;;  %3770 = vmatprep.mubr.bf16.mxu0 %v16577_v59  ;;  %v3302_v54 = vmax.f32 %v3074_v7, 0.0 }
 0x2fd   : > { %v3069_v51 = vadd.f32 %v14581_v4, %v3068_v47  ;;  %v3300_v3 = vmax.f32 %v3066_v49, 0.0 }
 0x2fe   : > { %v3303_v55 = vmax.f32 %v3077_v13, 0.0  ;;  %5071 = vmatmul.mubr.bf16.gmra.mrb[200].mxu1 %v14403_v44 }
 0x2ff   : > { %v3301_v5 = vmax.f32 %v3069_v51, 0.0  ;;  %5080 = vmatprep.mubr.bf16.mxu1 %v16577_v59 }
 0x300   : > { %v14598_v6 = vpack.c.bf16 %v3303_v55, %v3302_v54 }
 0x301   : > { %v14600_v21 = vpack.c.bf16 %v3301_v5, %v3300_v3  ;;  %v12568_v22 = vpop.f32.mrb[96].mxu1 }
 0x302   : > { %v3090_v24 = vadd.f32 %v14581_v4, %v12568_v22  ;;  %v3081_v16 = vpop.f32.mrb[97].mxu1 }
 0x303   : > { %v3082_v8 = vadd.f32 %v14581_v4, %v3081_v16  ;;  %v12569_v45 = vpop.f32.mrb[98].mxu1  ;;  %3771 = vmatmul.mubr.bf16.gmra.mrb[220].mxu0 %v14425_v23 }
 0x304   : > { %v3093_v7 = vadd.f32 %v14581_v4, %v12569_v45  ;;  %v3084_v13 = vpop.f32.mrb[99].mxu1  ;;  %3780 = vmatprep.mubr.bf16.mxu0 %v16577_v59  ;;  %v3306_v47 = vmax.f32 %v3090_v24, 0.0 }
 0x305   : > { %v3085_v49 = vadd.f32 %v14581_v4, %v3084_v13  ;;  %v3304_v54 = vmax.f32 %v3082_v8, 0.0 }
 0x306   : > { %v3307_v51 = vmax.f32 %v3093_v7, 0.0  ;;  %5081 = vmatmul.mubr.bf16.gmra.mrb[204].mxu1 %v14401_v42 }
 0x307   : > { %v3305_v55 = vmax.f32 %v3085_v49, 0.0  ;;  %5090 = vmatprep.mubr.bf16.mxu1 %v16577_v59 }
 0x308   : > { %v14610_v3 = vpack.c.bf16 %v3307_v51, %v3306_v47 }
 0x309   : > { %v14612_v5 = vpack.c.bf16 %v3305_v55, %v3304_v54  ;;  %v12572_v22 = vpop.f32.mrb[100].mxu1  ;;  %v3418_v54 = vlaneseq }
 0x30a   : > { %v3106_v16 = vadd.f32 %v14581_v4, %v12572_v22  ;;  %v3097_v45 = vpop.f32.mrb[101].mxu1 }
 0x30b   : > { %v3098_v44 = vadd.f32 %v14581_v4, %v3097_v45  ;;  %v12573_v26 = vpop.f32.mrb[102].mxu1  ;;  %3781 = vmatmul.mubr.bf16.gmra.mrb[224].mxu0 %v14439_v41 }
 0x30c   : > { %v3109_v24 = vadd.f32 %v14581_v4, %v12573_v26  ;;  %v3100_v7 = vpop.f32.mrb[103].mxu1  ;;  %3790 = vmatprep.mubr.bf16.mxu0 %v16577_v59  ;;  %v3310_v13 = vmax.f32 %v3106_v16, 0.0  ;;  %v14629_v16 = vshrl.u32 %v3418_v54, 7 }
 0x30d   : > { %v3101_v8 = vadd.f32 %v14581_v4, %v3100_v7  ;;  %v3308_v47 = vmax.f32 %v3098_v44, 0.0 }
 0x30e   : > { %v3311_v49 = vmax.f32 %v3109_v24, 0.0  ;;  %5091 = vmatmul.mubr.bf16.gmra.mrb[208].mxu1 %v14415_v38  ;;  %16710 = vst [vmem:[#allocation47_spill] sm:$0xff] %v14629_v16 }
 0x30f   : > { %v3309_v51 = vmax.f32 %v3101_v8, 0.0  ;;  %5100 = vmatprep.mubr.bf16.mxu1 %v16577_v59 }
 0x310   : > { %v14622_v55 = vpack.c.bf16 %v3311_v49, %v3310_v13 }
 0x311   : > { %v14624_v22 = vpack.c.bf16 %v3309_v51, %v3308_v47  ;;  %v12576_v45 = vpop.f32.mrb[104].mxu1 }
 0x312   : > { %v3122_v26 = vadd.f32 %v14581_v4, %v12576_v45  ;;  %v3113_v42 = vpop.f32.mrb[105].mxu1  ;;  %v3416_v45 = vld [vmem:[%s16554_s6] sm:$0x3] }
 0x313   : > { %v3114_v27 = vadd.f32 %v14581_v4, %v3113_v42  ;;  %v12577_v7 = vpop.f32.mrb[106].mxu1  ;;  %3791 = vmatmul.mubr.bf16.gmra.mrb[228].mxu0 %v14437_v39  ;;  %v14637_v42 = vsub.s32 0, %v14629_v16 }
 0x314   : > { %v3125_v44 = vadd.f32 %v14581_v4, %v12577_v7  ;;  %v3116_v24 = vpop.f32.mrb[107].mxu1  ;;  %3800 = vmatprep.mubr.bf16.mxu0 %v16577_v59  ;;  %v3314_v13 = vmax.f32 %v3122_v26, 0.0  ;;  %v14645_v7 = vsub.s32 1, %v14629_v16 }
 0x315   : > { %v3117_v8 = vadd.f32 %v14581_v4, %v3116_v24  ;;  %v3312_v47 = vmax.f32 %v3114_v27, 0.0 }
 0x316   : > { %v3315_v49 = vmax.f32 %v3125_v44, 0.0  ;;  %5101 = vmatmul.mubr.bf16.gmra.mrb[212].mxu1 %v14413_v35  ;;  %16712 = vst [vmem:[#allocation49_spill] sm:$0xff] %v14645_v7  ;;  %v14657_v16 = vrot.slane %v3416_v45, %v14645_v7 }
 0x317   : > { %v3313_v51 = vmax.f32 %v3117_v8, 0.0  ;;  %5110 = vmatprep.mubr.bf16.mxu1 %v16577_v59 }
 0x318   : > { %v14639_v54 = vpack.c.bf16 %v3315_v49, %v3314_v13  ;;  %v14653_v13 = vrot.slane %v3416_v45, %v14637_v42 }
 0x319   : > { %v14647_v26 = vpack.c.bf16 %v3313_v51, %v3312_v47  ;;  %v12580_v44 = vpop.f32.mrb[108].mxu1  ;;  %v16714_v47 = vmov 0  }
 0x31a   : > { %16711 = vst [vmem:[#allocation48_spill] sm:$0xff] %v14639_v54  ;;  %v3138_v27 = vadd.f32 %v14581_v4, %v12580_v44  ;;  %v3129_v24 = vpop.f32.mrb[109].mxu1 }
 0x31b   : > { %16713 = vst [vmem:[#allocation50_spill] sm:$0xff] %v14647_v26  ;;  %v3130_v8 = vadd.f32 %v14581_v4, %v3129_v24  ;;  %v12581_v59 = vpop.f32.mrb[110].mxu1  ;;  %3801 = vmatmul.mubr.bf16.gmra.mrb[232].mxu0 %v14451_v60 }
 0x31c   : > { %v3141_v49 = vadd.f32 %v14581_v4, %v12581_v59  ;;  %v3132_v35 = vpop.f32.mrb[111].mxu1  ;;  %3810 = vmatprep.mubr.bf16.mxu0 %v16714_v47  ;;  %v3318_v44 = vmax.f32 %v3138_v27, 0.0 }
 0x31d   : > { %v3133_v51 = vadd.f32 %v14581_v4, %v3132_v35  ;;  %v3316_v24 = vmax.f32 %v3130_v8, 0.0 }
 0x31e   : > { %v3319_v38 = vmax.f32 %v3141_v49, 0.0  ;;  %v3542_v1 = vpop.f32.mrb[128].mxu0  ;;  %5111 = vmatmul.mubr.bf16.gmra.mrb[216].mxu1 %v14427_v17 }
 0x31f   : > { %v3317_v2 = vmax.f32 %v3133_v51, 0.0  ;;  %v3543_v52 = vadd.f32 %v3542_v1, %v14653_v13  ;;  %v3544_v53 = vpop.f32.mrb[129].mxu0  ;;  %5120 = vmatprep.mubr.bf16.mxu1 %v16714_v47 }
 0x320   : > { %v14664_v59 = vpack.c.bf16 %v3319_v38, %v3318_v44  ;;  %v3545_v45 = vadd.f32 %v3544_v53, %v14657_v16  ;;  %v3546_v28 = vpop.f32.mrb[130].mxu0 }
 0x321   : > { %v14667_v29 = vpack.c.bf16 %v3317_v2, %v3316_v24  ;;  %v3547_v35 = vadd.f32 %v3546_v28, %v14653_v13  ;;  %v12584_v27 = vpop.f32.mrb[112].mxu1  ;;  %v3548_v49 = vpop.f32.mrb[131].mxu0  ;;  %v4181_v1 = vmax.f32 %v3543_v52, 0.0 }
 0x322   : > { %16715 = vst [vmem:[#allocation51_spill] sm:$0xff] %v14664_v59  ;;  %v3154_v17 = vadd.f32 %v14581_v4, %v12584_v27  ;;  %v3549_v8 = vadd.f32 %v3548_v49, %v14657_v16  ;;  %v3145_v51 = vpop.f32.mrb[113].mxu1  ;;  %v4182_v53 = vmax.f32 %v3545_v45, 0.0 }
 0x323   : > { %16716 = vst [vmem:[#allocation52_spill] sm:$0xff] %v14667_v29  ;;  %v4183_v63 = vmax.f32 %v3547_v35, 0.0  ;;  %v3146_v0 = vadd.f32 %v14581_v4, %v3145_v51  ;;  %v12585_v38 = vpop.f32.mrb[114].mxu1  ;;  %3811 = vmatmul.mubr.bf16.gmra.mrb[236].mxu0 %v14449_v40 }
 0x324   : > { %v4184_v44 = vmax.f32 %v3549_v8, 0.0  ;;  %v3157_v2 = vadd.f32 %v14581_v4, %v12585_v38  ;;  %v3148_v24 = vpop.f32.mrb[115].mxu1  ;;  %3820 = vmatprep.mubr.bf16.mxu0 %v16714_v47  ;;  %v3322_v46 = vmax.f32 %v3154_v17, 0.0 }
 0x325   : > { %v4437_v28 = vmax.f32 %v4181_v1, %v4183_v63  ;;  %v3149_v27 = vadd.f32 %v14581_v4, %v3148_v24  ;;  %v3320_v35 = vmax.f32 %v3146_v0, 0.0 }
 0x326   : > { %v4506_v49 = vmax.f32 %v4182_v53, %v4184_v44  ;;  %v3323_v50 = vmax.f32 %v3157_v2, 0.0  ;;  %v3552_v52 = vpop.f32.mrb[132].mxu0  ;;  %5121 = vmatmul.mubr.bf16.gmra.mrb[220].mxu1 %v14425_v23 }
 0x327   : > { %v3321_v51 = vmax.f32 %v3149_v27, 0.0  ;;  %v3553_v12 = vadd.f32 %v3552_v52, %v14653_v13  ;;  %v3554_v45 = vpop.f32.mrb[133].mxu0  ;;  %5130 = vmatprep.mubr.bf16.mxu1 %v16714_v47 }
 0x328   : > { %v14680_v8 = vpack.c.bf16 %v3323_v50, %v3322_v46  ;;  %v3555_v38 = vadd.f32 %v3554_v45, %v14657_v16  ;;  %v3556_v63 = vpop.f32.mrb[134].mxu0 }
 0x329   : > { %v14683_v1 = vpack.c.bf16 %v3321_v51, %v3320_v35  ;;  %v4185_v17 = vmax.f32 %v3553_v12, 0.0  ;;  %v3557_v53 = vadd.f32 %v3556_v63, %v14653_v13  ;;  %v12588_v44 = vpop.f32.mrb[116].mxu1  ;;  %v3558_v2 = vpop.f32.mrb[135].mxu0 }
 0x32a   : > { %16717 = vst [vmem:[#allocation53_spill] sm:$0xff] %v14680_v8  ;;  %v4186_v24 = vmax.f32 %v3555_v38, 0.0  ;;  %v3170_v0 = vadd.f32 %v14581_v4, %v12588_v44  ;;  %v3559_v27 = vadd.f32 %v3558_v2, %v14657_v16  ;;  %v3161_v52 = vpop.f32.mrb[117].mxu1 }
 0x32b   : > { %16718 = vst [vmem:[#allocation54_spill] sm:$0xff] %v14683_v1  ;;  %v4438_v23 = vmax.f32 %v4437_v28, %v4185_v17  ;;  %v4187_v20 = vmax.f32 %v3557_v53, 0.0  ;;  %v3162_v46 = vadd.f32 %v14581_v4, %v3161_v52  ;;  %v12589_v50 = vpop.f32.mrb[118].mxu1  ;;  %3821 = vmatmul.mubr.bf16.gmra.mrb[240].mxu0 %v14475_v37 }
 0x32c   : > { %v4507_v35 = vmax.f32 %v4506_v49, %v4186_v24  ;;  %v4188_v51 = vmax.f32 %v3559_v27, 0.0  ;;  %v3173_v12 = vadd.f32 %v14581_v4, %v12589_v50  ;;  %v3164_v45 = vpop.f32.mrb[119].mxu1  ;;  %3830 = vmatprep.mubr.bf16.mxu0 %v16714_v47  ;;  %v3326_v44 = vmax.f32 %v3170_v0, 0.0 }
 0x32d   : > { %v4439_v38 = vmax.f32 %v4438_v23, %v4187_v20  ;;  %v3165_v63 = vadd.f32 %v14581_v4, %v3164_v45  ;;  %v3324_v17 = vmax.f32 %v3162_v46, 0.0  ;;  %v6104_v46 = vld [vmem:[%s16553_s5 + $0x150] sm:$0xff] }
 0x32e   : > { %v4508_v2 = vmax.f32 %v4507_v35, %v4188_v51  ;;  %v3327_v11 = vmax.f32 %v3173_v12, 0.0  ;;  %v3562_v28 = vpop.f32.mrb[136].mxu0  ;;  %5131 = vmatmul.mubr.bf16.gmra.mrb[224].mxu1 %v14439_v41  ;;  %v6105_v12 = vld [vmem:[%s16553_s5 + $0x170] sm:$0xff] }
 0x32f   : > { %v3325_v53 = vmax.f32 %v3165_v63, 0.0  ;;  %v3563_v52 = vadd.f32 %v3562_v28, %v14653_v13  ;;  %v3564_v49 = vpop.f32.mrb[137].mxu0  ;;  %5140 = vmatprep.mubr.bf16.mxu1 %v16714_v47  ;;  %v11818_v28 = vcombine.low %v6104_v46, %v6105_v12 }
 0x330   : > { %v14696_v24 = vpack.c.bf16 %v3327_v11, %v3326_v44  ;;  %v3565_v27 = vadd.f32 %v3564_v49, %v14657_v16  ;;  %v3566_v20 = vpop.f32.mrb[138].mxu0 }
 0x331   : > { %v14699_v23 = vpack.c.bf16 %v3325_v53, %v3324_v17  ;;  %v4189_v0 = vmax.f32 %v3563_v52, 0.0  ;;  %v3567_v50 = vadd.f32 %v3566_v20, %v14653_v13  ;;  %v12592_v35 = vpop.f32.mrb[120].mxu1  ;;  %v3568_v51 = vpop.f32.mrb[139].mxu0  ;;  %v7448_v17 = vld [vmem:[%s16553_s5 + $0x158] sm:$0xff] }
 0x332   : > { %16719 = vst [vmem:[#allocation55_spill] sm:$0xff] %v14696_v24  ;;  %v4190_v11 = vmax.f32 %v3565_v27, 0.0  ;;  %v3186_v45 = vadd.f32 %v14581_v4, %v12592_v35  ;;  %v3569_v63 = vadd.f32 %v3568_v51, %v14657_v16  ;;  %v3177_v44 = vpop.f32.mrb[121].mxu1  ;;  %v7449_v53 = vld [vmem:[%s16553_s5 + $0x178] sm:$0xff]  ;;  %v11819_v27 = vcombine.high %v6104_v46, %v6105_v12 }
 0x333   : > { %16720 = vst [vmem:[#allocation56_spill] sm:$0xff] %v14699_v23  ;;  %v4440_v52 = vmax.f32 %v4439_v38, %v4189_v0  ;;  %v4191_v49 = vmax.f32 %v3567_v50, 0.0  ;;  %v3178_v20 = vadd.f32 %v14581_v4, %v3177_v44  ;;  %v12593_v41 = vpop.f32.mrb[122].mxu1  ;;  %3831 = vmatmul.mubr.bf16.gmra.mrb[244].mxu0 %v14473_v36  ;;  %v11834_v23 = vcombine.low %v7448_v17, %v7449_v53 }
 0x334   : > { %v4509_v35 = vmax.f32 %v4508_v2, %v4190_v11  ;;  %v4192_v51 = vmax.f32 %v3569_v63, 0.0  ;;  %v3189_v48 = vadd.f32 %v14581_v4, %v12593_v41  ;;  %v3180_v10 = vpop.f32.mrb[123].mxu1  ;;  %3840 = vmatprep.mubr.bf16.mxu0 %v16714_v47  ;;  %6212 = vmatprep.subr.bf16.mxu0 %v11819_v27  ;;  %v3330_v38 = vmax.f32 %v3186_v45, 0.0 }
 0x335   : > { %v4441_v15 = vmax.f32 %v4440_v52, %v4191_v49  ;;  %v3181_v24 = vadd.f32 %v14581_v4, %v3180_v10  ;;  %v11835_v8 = vcombine.high %v7448_v17, %v7449_v53  ;;  %6213 = vmatpush1.bf16.msra.mxu0 %v11818_v28  ;;  %v3328_v2 = vmax.f32 %v3178_v20, 0.0 }
 0x336   : > { %v4510_v0 = vmax.f32 %v4509_v35, %v4192_v51  ;;  %v3331_v50 = vmax.f32 %v3189_v48, 0.0  ;;  %v3572_v44 = vpop.f32.mrb[140].mxu0  ;;  %5141 = vmatmul.mubr.bf16.gmra.mrb[228].mxu1 %v14437_v39 }
 0x337   : > { %v3329_v46 = vmax.f32 %v3181_v24, 0.0  ;;  %v3573_v41 = vadd.f32 %v3572_v44, %v14653_v13  ;;  %v3574_v12 = vpop.f32.mrb[141].mxu0  ;;  %5150 = vmatprep.mubr.bf16.mxu1 %v16714_v47  ;;  %7556 = vmatprep.subr.bf16.mxu1 %v11835_v8  ;;  %v4766_v8 = vld [vmem:[%s16554_s6 + $0x2] sm:$0x3] }
 0x338   : > { %v14724_v11 = vpack.c.bf16 %v3331_v50, %v3330_v38  ;;  %v3575_v10 = vadd.f32 %v3574_v12, %v14657_v16  ;;  %v3576_v63 = vpop.f32.mrb[142].mxu0  ;;  %7557 = vmatpush1.bf16.msra.mxu1 %v11834_v23 }
 0x339   : > { %v14727_v45 = vpack.c.bf16 %v3329_v46, %v3328_v2  ;;  %v4193_v48 = vmax.f32 %v3573_v41, 0.0  ;;  %v3577_v52 = vadd.f32 %v3576_v63, %v14653_v13  ;;  %v12596_v17 = vpop.f32.mrb[124].mxu1  ;;  %v3578_v28 = vpop.f32.mrb[143].mxu0 }
 0x33a   : > { %16721 = vst [vmem:[#allocation57_spill] sm:$0xff] %v14724_v11  ;;  %v4194_v24 = vmax.f32 %v3575_v10, 0.0  ;;  %v3202_v53 = vadd.f32 %v14581_v4, %v12596_v17  ;;  %v3579_v49 = vadd.f32 %v3578_v28, %v14657_v16  ;;  %v3193_v20 = vpop.f32.mrb[125].mxu1 }
 0x33b   : > { %16722 = vst [vmem:[#allocation58_spill] sm:$0xff] %v14727_v45  ;;  %v4442_v27 = vmax.f32 %v4441_v15, %v4193_v48  ;;  %v4195_v35 = vmax.f32 %v3577_v52, 0.0  ;;  %v3194_v51 = vadd.f32 %v14581_v4, %v3193_v20  ;;  %v12597_v38 = vpop.f32.mrb[126].mxu1  ;;  %3841 = vmatmul.mubr.bf16.gmra.mrb[248].mxu0 %v14487_v62  ;;  %v14742_v48 = vrot.slane %v4766_v8, %v14637_v42 }
 0x33c   : > { %v4511_v50 = vmax.f32 %v4510_v0, %v4194_v24  ;;  %v4196_v44 = vmax.f32 %v3579_v49, 0.0  ;;  %v3205_v23 = vadd.f32 %v14581_v4, %v12597_v38  ;;  %v3196_v2 = vpop.f32.mrb[127].mxu1  ;;  %3850 = vmatprep.mubr.bf16.mxu0 %v16714_v47  ;;  %v3334_v41 = vmax.f32 %v3202_v53, 0.0 }
 0x33d   : > { %v4443_v46 = vmax.f32 %v4442_v27, %v4195_v35  ;;  %v3197_v15 = vadd.f32 %v14581_v4, %v3196_v2  ;;  %v3332_v52 = vmax.f32 %v3194_v51, 0.0  ;;  %v14746_v24 = vrot.slane %v4766_v8, %v14645_v7 }
 0x33e   : > { %v4512_v12 = vmax.f32 %v4511_v50, %v4196_v44  ;;  %v3335_v10 = vmax.f32 %v3205_v23, 0.0  ;;  %v3582_v63 = vpop.f32.mrb[144].mxu0  ;;  %5151 = vmatmul.mubr.bf16.gmra.mrb[232].mxu1 %v14451_v60 }
 0x33f   : > { %v3333_v0 = vmax.f32 %v3197_v15, 0.0  ;;  %v3583_v17 = vadd.f32 %v3582_v63, %v14653_v13  ;;  %v3584_v28 = vpop.f32.mrb[145].mxu0  ;;  %5160 = vmatprep.mubr.bf16.mxu1 %v16714_v47 }
 0x340   : > { %v14749_v4 = vpack.c.bf16 %v3335_v10, %v3334_v41  ;;  %v3585_v53 = vadd.f32 %v3584_v28, %v14657_v16  ;;  %v3586_v49 = vpop.f32.mrb[146].mxu0 }
 0x341   : > { %v14752_v20 = vpack.c.bf16 %v3333_v0, %v3332_v52  ;;  %v4197_v27 = vmax.f32 %v3583_v17, 0.0  ;;  %v3587_v35 = vadd.f32 %v3586_v49, %v14653_v13  ;;  %v3588_v51 = vpop.f32.mrb[147].mxu0  ;;  %v4892_v38 = vpop.f32.mrb[128].mxu1 }
 0x342   : > { %16723 = vst [vmem:[#allocation59_spill] sm:$0xff] %v14749_v4  ;;  %v4198_v50 = vmax.f32 %v3585_v53, 0.0  ;;  %v3589_v44 = vadd.f32 %v3588_v51, %v14657_v16  ;;  %v4893_v8 = vadd.f32 %v4892_v38, %v14742_v48  ;;  %v4894_v23 = vpop.f32.mrb[129].mxu1 }
 0x343   : > { %16724 = vst [vmem:[#allocation60_spill] sm:$0xff] %v14752_v20  ;;  %v4444_v2 = vmax.f32 %v4443_v46, %v4197_v27  ;;  %v4199_v15 = vmax.f32 %v3587_v35, 0.0  ;;  %v4895_v41 = vadd.f32 %v4894_v23, %v14746_v24  ;;  %3851 = vmatmul.mubr.bf16.gmra.mrb[252].mxu0 %v14485_v61  ;;  %v4896_v10 = vpop.f32.mrb[130].mxu1 }
 0x344   : > { %v4513_v63 = vmax.f32 %v4512_v12, %v4198_v50  ;;  %v4200_v52 = vmax.f32 %v3589_v44, 0.0  ;;  %v4897_v0 = vadd.f32 %v4896_v10, %v14742_v48  ;;  %v4898_v17 = vpop.f32.mrb[131].mxu1  ;;  %3860 = vmatprep.mubr.bf16.mxu0 %v16714_v47  ;;  %v5531_v51 = vmax.f32 %v4893_v8, 0.0 }
 0x345   : > { %v4445_v28 = vmax.f32 %v4444_v2, %v4199_v15  ;;  %v4899_v53 = vadd.f32 %v4898_v17, %v14746_v24  ;;  %v5532_v27 = vmax.f32 %v4895_v41, 0.0 }
 0x346   : > { %v4514_v49 = vmax.f32 %v4513_v63, %v4200_v52  ;;  %v5533_v38 = vmax.f32 %v4897_v0, 0.0  ;;  %v3592_v46 = vpop.f32.mrb[148].mxu0  ;;  %5161 = vmatmul.mubr.bf16.gmra.mrb[236].mxu1 %v14449_v40 }
 0x347   : > { %v5534_v35 = vmax.f32 %v4899_v53, 0.0  ;;  %v3593_v23 = vadd.f32 %v3592_v46, %v14653_v13  ;;  %v3594_v12 = vpop.f32.mrb[149].mxu0  ;;  %5170 = vmatprep.mubr.bf16.mxu1 %v16714_v47 }
 0x348   : > { %v5787_v50 = vmax.f32 %v5531_v51, %v5533_v38  ;;  %v3595_v44 = vadd.f32 %v3594_v12, %v14657_v16  ;;  %v3596_v10 = vpop.f32.mrb[150].mxu0 }
 0x349   : > { %v5856_v2 = vmax.f32 %v5532_v27, %v5534_v35  ;;  %v4201_v15 = vmax.f32 %v3593_v23, 0.0  ;;  %v3597_v63 = vadd.f32 %v3596_v10, %v14653_v13  ;;  %v3598_v8 = vpop.f32.mrb[151].mxu0  ;;  %v4902_v52 = vpop.f32.mrb[132].mxu1 }
 0x34a   : > { %v4202_v0 = vmax.f32 %v3595_v44, 0.0  ;;  %v3599_v17 = vadd.f32 %v3598_v8, %v14657_v16  ;;  %v4903_v41 = vadd.f32 %v4902_v52, %v14742_v48  ;;  %v4904_v53 = vpop.f32.mrb[133].mxu1 }
 0x34b   : > { %v4446_v46 = vmax.f32 %v4445_v28, %v4201_v15  ;;  %v4203_v40 = vmax.f32 %v3597_v63, 0.0  ;;  %v4905_v7 = vadd.f32 %v4904_v53, %v14746_v24  ;;  %3861 = vmatmul.mubr.bf16.gmra.mrb[0].mxu0 %v14499_v9  ;;  %v4906_v51 = vpop.f32.mrb[134].mxu1 }
 0x34c   : > { %v4515_v38 = vmax.f32 %v4514_v49, %v4202_v0  ;;  %v4204_v27 = vmax.f32 %v3599_v17, 0.0  ;;  %v5535_v35 = vmax.f32 %v4903_v41, 0.0  ;;  %v4907_v23 = vadd.f32 %v4906_v51, %v14742_v48  ;;  %v4908_v12 = vpop.f32.mrb[135].mxu1  ;;  %3870 = vmatprep.mubr.bf16.mxu0 %v16714_v47 }
 0x34d   : > { %v4447_v44 = vmax.f32 %v4446_v46, %v4203_v40  ;;  %v5536_v10 = vmax.f32 %v4905_v7, 0.0  ;;  %v4909_v8 = vadd.f32 %v4908_v12, %v14746_v24 }
 0x34e   : > { %v4516_v52 = vmax.f32 %v4515_v38, %v4204_v27  ;;  %v5788_v28 = vmax.f32 %v5787_v50, %v5535_v35  ;;  %v5537_v15 = vmax.f32 %v4907_v23, 0.0  ;;  %v3602_v63 = vpop.f32.mrb[152].mxu0  ;;  %5171 = vmatmul.mubr.bf16.gmra.mrb[240].mxu1 %v14475_v37 }
 0x34f   : > { %v5857_v53 = vmax.f32 %v5856_v2, %v5536_v10  ;;  %v5538_v60 = vmax.f32 %v4909_v8, 0.0  ;;  %v3603_v49 = vadd.f32 %v3602_v63, %v14653_v13  ;;  %v3604_v0 = vpop.f32.mrb[153].mxu0  ;;  %5180 = vmatprep.mubr.bf16.mxu1 %v16714_v47 }
 0x350   : > { %v5789_v17 = vmax.f32 %v5788_v28, %v5537_v15  ;;  %v3605_v41 = vadd.f32 %v3604_v0, %v14657_v16  ;;  %v3606_v40 = vpop.f32.mrb[154].mxu0 }
 0x351   : > { %v5858_v7 = vmax.f32 %v5857_v53, %v5538_v60  ;;  %v4205_v46 = vmax.f32 %v3603_v49, 0.0  ;;  %v3607_v51 = vadd.f32 %v3606_v40, %v14653_v13  ;;  %v3608_v50 = vpop.f32.mrb[155].mxu0  ;;  %v4912_v38 = vpop.f32.mrb[136].mxu1 }
 0x352   : > { %v4206_v27 = vmax.f32 %v3605_v41, 0.0  ;;  %v3609_v35 = vadd.f32 %v3608_v50, %v14657_v16  ;;  %v4913_v2 = vadd.f32 %v4912_v38, %v14742_v48  ;;  %v4914_v23 = vpop.f32.mrb[137].mxu1 }
 0x353   : > { %v4448_v12 = vmax.f32 %v4447_v44, %v4205_v46  ;;  %v4207_v10 = vmax.f32 %v3607_v51, 0.0  ;;  %v4915_v8 = vadd.f32 %v4914_v23, %v14746_v24  ;;  %3871 = vmatmul.mubr.bf16.gmra.mrb[4].mxu0 %v14497_v32  ;;  %v4916_v28 = vpop.f32.mrb[138].mxu1 }
 0x354   : > { %v4517_v15 = vmax.f32 %v4516_v52, %v4206_v27  ;;  %v4208_v60 = vmax.f32 %v3609_v35, 0.0  ;;  %v5539_v63 = vmax.f32 %v4913_v2, 0.0  ;;  %v4917_v53 = vadd.f32 %v4916_v28, %v14742_v48  ;;  %v4918_v49 = vpop.f32.mrb[139].mxu1  ;;  %3880 = vmatprep.mubr.bf16.mxu0 %v16714_v47 }
 0x355   : > { %v4449_v0 = vmax.f32 %v4448_v12, %v4207_v10  ;;  %v5540_v41 = vmax.f32 %v4915_v8, 0.0  ;;  %v4919_v40 = vadd.f32 %v4918_v49, %v14746_v24 }
 0x356   : > { %v4518_v50 = vmax.f32 %v4517_v15, %v4208_v60  ;;  %v5790_v44 = vmax.f32 %v5789_v17, %v5539_v63  ;;  %v5541_v46 = vmax.f32 %v4917_v53, 0.0  ;;  %v3612_v51 = vpop.f32.mrb[156].mxu0  ;;  %5181 = vmatmul.mubr.bf16.gmra.mrb[244].mxu1 %v14473_v36 }
 0x357   : > { %v5859_v38 = vmax.f32 %v5858_v7, %v5540_v41  ;;  %v5542_v23 = vmax.f32 %v4919_v40, 0.0  ;;  %v3613_v52 = vadd.f32 %v3612_v51, %v14653_v13  ;;  %v3614_v27 = vpop.f32.mrb[157].mxu0  ;;  %5190 = vmatprep.mubr.bf16.mxu1 %v16714_v47 }
 0x358   : > { %v5791_v35 = vmax.f32 %v5790_v44, %v5541_v46  ;;  %v3615_v2 = vadd.f32 %v3614_v27, %v14657_v16  ;;  %v3616_v12 = vpop.f32.mrb[158].mxu0 }
 0x359   : > { %v5860_v10 = vmax.f32 %v5859_v38, %v5542_v23  ;;  %v4209_v8 = vmax.f32 %v3613_v52, 0.0  ;;  %v3617_v28 = vadd.f32 %v3616_v12, %v14653_v13  ;;  %v3618_v17 = vpop.f32.mrb[159].mxu0  ;;  %v4922_v15 = vpop.f32.mrb[140].mxu1 }
 0x35a   : > { %v4210_v60 = vmax.f32 %v3615_v2, 0.0  ;;  %v3619_v63 = vadd.f32 %v3618_v17, %v14657_v16  ;;  %v4923_v7 = vadd.f32 %v4922_v15, %v14742_v48  ;;  %v4924_v53 = vpop.f32.mrb[141].mxu1 }
 0x35b   : > { %v4450_v49 = vmax.f32 %v4449_v0, %v4209_v8  ;;  %v4211_v41 = vmax.f32 %v3617_v28, 0.0  ;;  %v4925_v40 = vadd.f32 %v4924_v53, %v14746_v24  ;;  %3881 = vmatmul.mubr.bf16.gmra.mrb[8].mxu0 %v14511_v57  ;;  %v4926_v44 = vpop.f32.mrb[142].mxu1 }
 0x35c   : > { %v4519_v46 = vmax.f32 %v4518_v50, %v4210_v60  ;;  %v4212_v51 = vmax.f32 %v3619_v63, 0.0  ;;  %v5543_v38 = vmax.f32 %v4923_v7, 0.0  ;;  %v4927_v23 = vadd.f32 %v4926_v44, %v14742_v48  ;;  %v4928_v52 = vpop.f32.mrb[143].mxu1  ;;  %3890 = vmatprep.mubr.bf16.mxu0 %v16714_v47 }
 0x35d   : > { %v4451_v27 = vmax.f32 %v4450_v49, %v4211_v41  ;;  %v5544_v2 = vmax.f32 %v4925_v40, 0.0  ;;  %v4929_v12 = vadd.f32 %v4928_v52, %v14746_v24 }
 0x35e   : > { %v4520_v17 = vmax.f32 %v4519_v46, %v4212_v51  ;;  %v5792_v0 = vmax.f32 %v5791_v35, %v5543_v38  ;;  %v5545_v8 = vmax.f32 %v4927_v23, 0.0  ;;  %v3622_v28 = vpop.f32.mrb[160].mxu0  ;;  %5191 = vmatmul.mubr.bf16.gmra.mrb[248].mxu1 %v14487_v62 }
 0x35f   : > { %v5861_v15 = vmax.f32 %v5860_v10, %v5544_v2  ;;  %v5546_v53 = vmax.f32 %v4929_v12, 0.0  ;;  %v3623_v50 = vadd.f32 %v3622_v28, %v14653_v13  ;;  %v3624_v60 = vpop.f32.mrb[161].mxu0  ;;  %5200 = vmatprep.mubr.bf16.mxu1 %v16714_v47 }
 0x360   : > { %v5793_v63 = vmax.f32 %v5792_v0, %v5545_v8  ;;  %v3625_v7 = vadd.f32 %v3624_v60, %v14657_v16  ;;  %v3626_v49 = vpop.f32.mrb[162].mxu0 }
 0x361   : > { %v5862_v41 = vmax.f32 %v5861_v15, %v5546_v53  ;;  %v4213_v40 = vmax.f32 %v3623_v50, 0.0  ;;  %v3627_v44 = vadd.f32 %v3626_v49, %v14653_v13  ;;  %v3628_v35 = vpop.f32.mrb[163].mxu0  ;;  %v4932_v46 = vpop.f32.mrb[144].mxu1 }
 0x362   : > { %v4214_v51 = vmax.f32 %v3625_v7, 0.0  ;;  %v3629_v38 = vadd.f32 %v3628_v35, %v14657_v16  ;;  %v4933_v10 = vadd.f32 %v4932_v46, %v14742_v48  ;;  %v4934_v23 = vpop.f32.mrb[145].mxu1 }
 0x363   : > { %v4452_v52 = vmax.f32 %v4451_v27, %v4213_v40  ;;  %v4215_v2 = vmax.f32 %v3627_v44, 0.0  ;;  %v4935_v12 = vadd.f32 %v4934_v23, %v14746_v24  ;;  %3891 = vmatmul.mubr.bf16.gmra.mrb[12].mxu0 %v14509_v56  ;;  %v4936_v0 = vpop.f32.mrb[146].mxu1 }
 0x364   : > { %v4521_v8 = vmax.f32 %v4520_v17, %v4214_v51  ;;  %v4216_v28 = vmax.f32 %v3629_v38, 0.0  ;;  %v5547_v15 = vmax.f32 %v4933_v10, 0.0  ;;  %v4937_v53 = vadd.f32 %v4936_v0, %v14742_v48  ;;  %v4938_v50 = vpop.f32.mrb[147].mxu1  ;;  %3900 = vmatprep.mubr.bf16.mxu0 %v16714_v47 }
 0x365   : > { %v4453_v60 = vmax.f32 %v4452_v52, %v4215_v2  ;;  %v5548_v7 = vmax.f32 %v4935_v12, 0.0  ;;  %v4939_v49 = vadd.f32 %v4938_v50, %v14746_v24 }
 0x366   : > { %v4522_v35 = vmax.f32 %v4521_v8, %v4216_v28  ;;  %v5794_v27 = vmax.f32 %v5793_v63, %v5547_v15  ;;  %v5549_v40 = vmax.f32 %v4937_v53, 0.0  ;;  %v3632_v44 = vpop.f32.mrb[164].mxu0  ;;  %5201 = vmatmul.mubr.bf16.gmra.mrb[252].mxu1 %v14485_v61 }
 0x367   : > { %v5863_v46 = vmax.f32 %v5862_v41, %v5548_v7  ;;  %v5550_v23 = vmax.f32 %v4939_v49, 0.0  ;;  %v3633_v17 = vadd.f32 %v3632_v44, %v14653_v13  ;;  %v3634_v51 = vpop.f32.mrb[165].mxu0  ;;  %5210 = vmatprep.mubr.bf16.mxu1 %v16714_v47 }
 0x368   : > { %v5795_v38 = vmax.f32 %v5794_v27, %v5549_v40  ;;  %v3635_v10 = vadd.f32 %v3634_v51, %v14657_v16  ;;  %v3636_v52 = vpop.f32.mrb[166].mxu0 }
 0x369   : > { %v5864_v2 = vmax.f32 %v5863_v46, %v5550_v23  ;;  %v4217_v12 = vmax.f32 %v3633_v17, 0.0  ;;  %v3637_v0 = vadd.f32 %v3636_v52, %v14653_v13  ;;  %v3638_v63 = vpop.f32.mrb[167].mxu0  ;;  %v4942_v8 = vpop.f32.mrb[148].mxu1 }
 0x36a   : > { %v4218_v28 = vmax.f32 %v3635_v10, 0.0  ;;  %v3639_v15 = vadd.f32 %v3638_v63, %v14657_v16  ;;  %v4943_v41 = vadd.f32 %v4942_v8, %v14742_v48  ;;  %v4944_v53 = vpop.f32.mrb[149].mxu1 }
 0x36b   : > { %v4454_v50 = vmax.f32 %v4453_v60, %v4217_v12  ;;  %v4219_v7 = vmax.f32 %v3637_v0, 0.0  ;;  %v4945_v49 = vadd.f32 %v4944_v53, %v14746_v24  ;;  %3901 = vmatmul.mubr.bf16.gmra.mrb[16].mxu0 %v14523_v31  ;;  %v4946_v27 = vpop.f32.mrb[150].mxu1 }
 0x36c   : > { %v4523_v40 = vmax.f32 %v4522_v35, %v4218_v28  ;;  %v4220_v44 = vmax.f32 %v3639_v15, 0.0  ;;  %v5551_v46 = vmax.f32 %v4943_v41, 0.0  ;;  %v4947_v23 = vadd.f32 %v4946_v27, %v14742_v48  ;;  %v4948_v17 = vpop.f32.mrb[151].mxu1  ;;  %3910 = vmatprep.mubr.bf16.mxu0 %v16714_v47 }
 0x36d   : > { %v4455_v51 = vmax.f32 %v4454_v50, %v4219_v7  ;;  %v5552_v10 = vmax.f32 %v4945_v49, 0.0  ;;  %v4949_v52 = vadd.f32 %v4948_v17, %v14746_v24 }
 0x36e   : > { %v4524_v63 = vmax.f32 %v4523_v40, %v4220_v44  ;;  %v5796_v60 = vmax.f32 %v5795_v38, %v5551_v46  ;;  %v5553_v12 = vmax.f32 %v4947_v23, 0.0  ;;  %v3642_v0 = vpop.f32.mrb[168].mxu0  ;;  %5211 = vmatmul.mubr.bf16.gmra.mrb[0].mxu1 %v14499_v9  ;;  %v6107_v44 = vld [vmem:[%s16553_s5 + $0x1b0] sm:$0xff] }
 0x36f   : > { %v5865_v8 = vmax.f32 %v5864_v2, %v5552_v10  ;;  %v5554_v53 = vmax.f32 %v4949_v52, 0.0  ;;  %v3643_v35 = vadd.f32 %v3642_v0, %v14653_v13  ;;  %v3644_v28 = vpop.f32.mrb[169].mxu0  ;;  %5220 = vmatprep.mubr.bf16.mxu1 %v16714_v47  ;;  %v6106_v2 = vld [vmem:[%s16553_s5 + $0x190] sm:$0xff] }
 0x370   : > { %v5797_v15 = vmax.f32 %v5796_v60, %v5553_v12  ;;  %v3645_v41 = vadd.f32 %v3644_v28, %v14657_v16  ;;  %v3646_v50 = vpop.f32.mrb[170].mxu0  ;;  %v11820_v52 = vcombine.low %v6106_v2, %v6107_v44  ;;  %v7450_v60 = vld [vmem:[%s16553_s5 + $0x198] sm:$0xff]  ;;  %v11821_v28 = vcombine.high %v6106_v2, %v6107_v44 }
 0x371   : > { %v5866_v7 = vmax.f32 %v5865_v8, %v5554_v53  ;;  %v4221_v49 = vmax.f32 %v3643_v35, 0.0  ;;  %v3647_v27 = vadd.f32 %v3646_v50, %v14653_v13  ;;  %v3648_v38 = vpop.f32.mrb[171].mxu0  ;;  %v4952_v40 = vpop.f32.mrb[152].mxu1  ;;  %v7451_v12 = vld [vmem:[%s16553_s5 + $0x1b8] sm:$0xff] }
 0x372   : > { %v4222_v46 = vmax.f32 %v3645_v41, 0.0  ;;  %v3649_v23 = vadd.f32 %v3648_v38, %v14657_v16  ;;  %v4953_v17 = vadd.f32 %v4952_v40, %v14742_v48  ;;  %v4954_v10 = vpop.f32.mrb[153].mxu1  ;;  %6214 = vmatprep.subr.bf16.mxu0 %v11821_v28 }
 0x373   : > { %v4456_v0 = vmax.f32 %v4455_v51, %v4221_v49  ;;  %v4223_v8 = vmax.f32 %v3647_v27, 0.0  ;;  %v4955_v53 = vadd.f32 %v4954_v10, %v14746_v24  ;;  %3911 = vmatmul.mubr.bf16.gmra.mrb[20].mxu0 %v14521_v30  ;;  %v4956_v35 = vpop.f32.mrb[154].mxu1  ;;  %v11836_v51 = vcombine.low %v7450_v60, %v7451_v12 }
 0x374   : > { %v4525_v41 = vmax.f32 %v4524_v63, %v4222_v46  ;;  %v4224_v50 = vmax.f32 %v3649_v23, 0.0  ;;  %v5555_v38 = vmax.f32 %v4953_v17, 0.0  ;;  %v4957_v40 = vadd.f32 %v4956_v35, %v14742_v48  ;;  %v4958_v9 = vpop.f32.mrb[155].mxu1  ;;  %3920 = vmatprep.mubr.bf16.mxu0 %v16714_v47  ;;  %6215 = vmatpush1.bf16.msra.mxu0 %v11820_v52 }
 0x375   : > { %v4457_v61 = vmax.f32 %v4456_v0, %v4223_v8  ;;  %v5556_v62 = vmax.f32 %v4955_v53, 0.0  ;;  %v4959_v36 = vadd.f32 %v4958_v9, %v14746_v24  ;;  %v11837_v63 = vcombine.high %v7450_v60, %v7451_v12 }
 0x376   : > { %v4526_v49 = vmax.f32 %v4525_v41, %v4224_v50  ;;  %v5798_v27 = vmax.f32 %v5797_v15, %v5555_v38  ;;  %v5557_v10 = vmax.f32 %v4957_v40, 0.0  ;;  %v3652_v37 = vpop.f32.mrb[172].mxu0  ;;  %5221 = vmatmul.mubr.bf16.gmra.mrb[4].mxu1 %v14497_v32 }
 0x377   : > { %v5867_v2 = vmax.f32 %v5866_v7, %v5556_v62  ;;  %v5558_v44 = vmax.f32 %v4959_v36, 0.0  ;;  %v3653_v46 = vadd.f32 %v3652_v37, %v14653_v13  ;;  %v3654_v23 = vpop.f32.mrb[173].mxu0  ;;  %5230 = vmatprep.mubr.bf16.mxu1 %v16714_v47  ;;  %7558 = vmatprep.subr.bf16.mxu1 %v11837_v63 }
 0x378   : > { %v5799_v17 = vmax.f32 %v5798_v27, %v5557_v10  ;;  %v3655_v9 = vadd.f32 %v3654_v23, %v14657_v16  ;;  %v3656_v0 = vpop.f32.mrb[174].mxu0  ;;  %7559 = vmatpush1.bf16.msra.mxu1 %v11836_v51 }
 0x379   : > { %v5868_v8 = vmax.f32 %v5867_v2, %v5558_v44  ;;  %v4225_v15 = vmax.f32 %v3653_v46, 0.0  ;;  %v3657_v53 = vadd.f32 %v3656_v0, %v14653_v13  ;;  %v3658_v35 = vpop.f32.mrb[175].mxu0  ;;  %v4962_v28 = vpop.f32.mrb[156].mxu1 }
 0x37a   : > { %v4226_v52 = vmax.f32 %v3655_v9, 0.0  ;;  %v3659_v36 = vadd.f32 %v3658_v35, %v14657_v16  ;;  %v4963_v37 = vadd.f32 %v4962_v28, %v14742_v48  ;;  %v4964_v62 = vpop.f32.mrb[157].mxu1 }
 0x37b   : > { %v4458_v7 = vmax.f32 %v4457_v61, %v4225_v15  ;;  %v4227_v60 = vmax.f32 %v3657_v53, 0.0  ;;  %v4965_v12 = vadd.f32 %v4964_v62, %v14746_v24  ;;  %3921 = vmatmul.mubr.bf16.gmra.mrb[24].mxu0 %v14535_v19  ;;  %v4966_v41 = vpop.f32.mrb[158].mxu1 }
 0x37c   : > { %v4527_v50 = vmax.f32 %v4526_v49, %v4226_v52  ;;  %v4228_v38 = vmax.f32 %v3659_v36, 0.0  ;;  %v5559_v40 = vmax.f32 %v4963_v37, 0.0  ;;  %v4967_v27 = vadd.f32 %v4966_v41, %v14742_v48  ;;  %v4968_v10 = vpop.f32.mrb[159].mxu1  ;;  %3930 = vmatprep.mubr.bf16.mxu0 %v16714_v47 }
 0x37d   : > { %v4459_v51 = vmax.f32 %v4458_v7, %v4227_v60  ;;  %v5560_v63 = vmax.f32 %v4965_v12, 0.0  ;;  %v4969_v2 = vadd.f32 %v4968_v10, %v14746_v24 }
 0x37e   : > { %v4528_v44 = vmax.f32 %v4527_v50, %v4228_v38  ;;  %v5800_v61 = vmax.f32 %v5799_v17, %v5559_v40  ;;  %v5561_v46 = vmax.f32 %v4967_v27, 0.0  ;;  %v3662_v23 = vpop.f32.mrb[176].mxu0  ;;  %5231 = vmatmul.mubr.bf16.gmra.mrb[8].mxu1 %v14511_v57 }
 0x37f   : > { %v5869_v9 = vmax.f32 %v5868_v8, %v5560_v63  ;;  %v5562_v0 = vmax.f32 %v4969_v2, 0.0  ;;  %v3663_v49 = vadd.f32 %v3662_v23, %v14653_v13  ;;  %v3664_v15 = vpop.f32.mrb[177].mxu0  ;;  %5240 = vmatprep.mubr.bf16.mxu1 %v16714_v47 }
 0x380   : > { %v5801_v53 = vmax.f32 %v5800_v61, %v5561_v46  ;;  %v3665_v35 = vadd.f32 %v3664_v15, %v14657_v16  ;;  %v3666_v28 = vpop.f32.mrb[178].mxu0 }
 0x381   : > { %v5870_v52 = vmax.f32 %v5869_v9, %v5562_v0  ;;  %v4229_v36 = vmax.f32 %v3663_v49, 0.0  ;;  %v3667_v37 = vadd.f32 %v3666_v28, %v14653_v13  ;;  %v3668_v17 = vpop.f32.mrb[179].mxu0  ;;  %v4972_v62 = vpop.f32.mrb[160].mxu1 }
 0x382   : > { %v4230_v7 = vmax.f32 %v3665_v35, 0.0  ;;  %v3669_v60 = vadd.f32 %v3668_v17, %v14657_v16  ;;  %v4973_v8 = vadd.f32 %v4972_v62, %v14742_v48  ;;  %v4974_v12 = vpop.f32.mrb[161].mxu1 }
 0x383   : > { %v4460_v41 = vmax.f32 %v4459_v51, %v4229_v36  ;;  %v4231_v50 = vmax.f32 %v3667_v37, 0.0  ;;  %v4975_v38 = vadd.f32 %v4974_v12, %v14746_v24  ;;  %3931 = vmatmul.mubr.bf16.gmra.mrb[28].mxu0 %v14533_v58  ;;  %v4976_v40 = vpop.f32.mrb[162].mxu1 }
 0x384   : > { %v4529_v27 = vmax.f32 %v4528_v44, %v4230_v7  ;;  %v4232_v10 = vmax.f32 %v3669_v60, 0.0  ;;  %v5563_v63 = vmax.f32 %v4973_v8, 0.0  ;;  %v4977_v2 = vadd.f32 %v4976_v40, %v14742_v48  ;;  %v4978_v61 = vpop.f32.mrb[163].mxu1  ;;  %3940 = vmatprep.mubr.bf16.mxu0 %v16714_v47 }
 0x385   : > { %v4461_v46 = vmax.f32 %v4460_v41, %v4231_v50  ;;  %v5564_v23 = vmax.f32 %v4975_v38, 0.0  ;;  %v4979_v9 = vadd.f32 %v4978_v61, %v14746_v24 }
 0x386   : > { %v4530_v0 = vmax.f32 %v4529_v27, %v4232_v10  ;;  %v5802_v51 = vmax.f32 %v5801_v53, %v5563_v63  ;;  %v5565_v49 = vmax.f32 %v4977_v2, 0.0  ;;  %v3672_v15 = vpop.f32.mrb[180].mxu0  ;;  %5241 = vmatmul.mubr.bf16.gmra.mrb[12].mxu1 %v14509_v56 }
 0x387   : > { %v5871_v35 = vmax.f32 %v5870_v52, %v5564_v23  ;;  %v5566_v28 = vmax.f32 %v4979_v9, 0.0  ;;  %v3673_v44 = vadd.f32 %v3672_v15, %v14653_v13  ;;  %v3674_v36 = vpop.f32.mrb[181].mxu0  ;;  %5250 = vmatprep.mubr.bf16.mxu1 %v16714_v47 }
 0x388   : > { %v5803_v37 = vmax.f32 %v5802_v51, %v5565_v49  ;;  %v3675_v17 = vadd.f32 %v3674_v36, %v14657_v16  ;;  %v3676_v62 = vpop.f32.mrb[182].mxu0 }
 0x389   : > { %v5872_v7 = vmax.f32 %v5871_v35, %v5566_v28  ;;  %v4233_v60 = vmax.f32 %v3673_v44, 0.0  ;;  %v3677_v8 = vadd.f32 %v3676_v62, %v14653_v13  ;;  %v3678_v53 = vpop.f32.mrb[183].mxu0  ;;  %v4982_v12 = vpop.f32.mrb[164].mxu1 }
 0x38a   : > { %v4234_v41 = vmax.f32 %v3675_v17, 0.0  ;;  %v3679_v50 = vadd.f32 %v3678_v53, %v14657_v16  ;;  %v4983_v52 = vadd.f32 %v4982_v12, %v14742_v48  ;;  %v4984_v38 = vpop.f32.mrb[165].mxu1 }
 0x38b   : > { %v4462_v40 = vmax.f32 %v4461_v46, %v4233_v60  ;;  %v4235_v27 = vmax.f32 %v3677_v8, 0.0  ;;  %v4985_v10 = vadd.f32 %v4984_v38, %v14746_v24  ;;  %3941 = vmatmul.mubr.bf16.gmra.mrb[32].mxu0 %v14547_v34  ;;  %v4986_v63 = vpop.f32.mrb[166].mxu1 }
 0x38c   : > { %v4531_v2 = vmax.f32 %v4530_v0, %v4234_v41  ;;  %v4236_v61 = vmax.f32 %v3679_v50, 0.0  ;;  %v5567_v23 = vmax.f32 %v4983_v52, 0.0  ;;  %v4987_v9 = vadd.f32 %v4986_v63, %v14742_v48  ;;  %v4988_v51 = vpop.f32.mrb[167].mxu1  ;;  %3950 = vmatprep.mubr.bf16.mxu0 %v16714_v47 }
 0x38d   : > { %v4463_v49 = vmax.f32 %v4462_v40, %v4235_v27  ;;  %v5568_v15 = vmax.f32 %v4985_v10, 0.0  ;;  %v4989_v35 = vadd.f32 %v4988_v51, %v14746_v24 }
 0x38e   : > { %v4532_v28 = vmax.f32 %v4531_v2, %v4236_v61  ;;  %v5804_v46 = vmax.f32 %v5803_v37, %v5567_v23  ;;  %v5569_v44 = vmax.f32 %v4987_v9, 0.0  ;;  %v3682_v36 = vpop.f32.mrb[184].mxu0  ;;  %5251 = vmatmul.mubr.bf16.gmra.mrb[16].mxu1 %v14523_v31 }
 0x38f   : > { %v5873_v17 = vmax.f32 %v5872_v7, %v5568_v15  ;;  %v5570_v62 = vmax.f32 %v4989_v35, 0.0  ;;  %v3683_v0 = vadd.f32 %v3682_v36, %v14653_v13  ;;  %v3684_v60 = vpop.f32.mrb[185].mxu0  ;;  %5260 = vmatprep.mubr.bf16.mxu1 %v16714_v47 }
 0x390   : > { %v5805_v8 = vmax.f32 %v5804_v46, %v5569_v44  ;;  %v3685_v53 = vadd.f32 %v3684_v60, %v14657_v16  ;;  %v3686_v12 = vpop.f32.mrb[186].mxu0 }
 0x391   : > { %v5874_v41 = vmax.f32 %v5873_v17, %v5570_v62  ;;  %v4237_v50 = vmax.f32 %v3683_v0, 0.0  ;;  %v3687_v52 = vadd.f32 %v3686_v12, %v14653_v13  ;;  %v3688_v37 = vpop.f32.mrb[187].mxu0  ;;  %v4992_v38 = vpop.f32.mrb[168].mxu1 }
 0x392   : > { %v4238_v40 = vmax.f32 %v3685_v53, 0.0  ;;  %v3689_v27 = vadd.f32 %v3688_v37, %v14657_v16  ;;  %v4993_v7 = vadd.f32 %v4992_v38, %v14742_v48  ;;  %v4994_v10 = vpop.f32.mrb[169].mxu1 }
 0x393   : > { %v4464_v63 = vmax.f32 %v4463_v49, %v4237_v50  ;;  %v4239_v2 = vmax.f32 %v3687_v52, 0.0  ;;  %v4995_v61 = vadd.f32 %v4994_v10, %v14746_v24  ;;  %3951 = vmatmul.mubr.bf16.gmra.mrb[36].mxu0 %v14545_v33  ;;  %v4996_v23 = vpop.f32.mrb[170].mxu1 }
 0x394   : > { %v4533_v9 = vmax.f32 %v4532_v28, %v4238_v40  ;;  %v4240_v51 = vmax.f32 %v3689_v27, 0.0  ;;  %v5571_v15 = vmax.f32 %v4993_v7, 0.0  ;;  %v4997_v35 = vadd.f32 %v4996_v23, %v14742_v48  ;;  %v4998_v46 = vpop.f32.mrb[171].mxu1  ;;  %3960 = vmatprep.mubr.bf16.mxu0 %v16714_v47 }
 0x395   : > { %v4465_v44 = vmax.f32 %v4464_v63, %v4239_v2  ;;  %v5572_v36 = vmax.f32 %v4995_v61, 0.0  ;;  %v4999_v17 = vadd.f32 %v4998_v46, %v14746_v24 }
 0x396   : > { %v4534_v62 = vmax.f32 %v4533_v9, %v4240_v51  ;;  %v5806_v49 = vmax.f32 %v5805_v8, %v5571_v15  ;;  %v5573_v0 = vmax.f32 %v4997_v35, 0.0  ;;  %v3692_v60 = vpop.f32.mrb[188].mxu0  ;;  %5261 = vmatmul.mubr.bf16.gmra.mrb[20].mxu1 %v14521_v30 }
 0x397   : > { %v5875_v53 = vmax.f32 %v5874_v41, %v5572_v36  ;;  %v5574_v12 = vmax.f32 %v4999_v17, 0.0  ;;  %v3693_v28 = vadd.f32 %v3692_v60, %v14653_v13  ;;  %v3694_v50 = vpop.f32.mrb[189].mxu0  ;;  %5270 = vmatprep.mubr.bf16.mxu1 %v16714_v47 }
 0x398   : > { %v5807_v52 = vmax.f32 %v5806_v49, %v5573_v0  ;;  %v3695_v37 = vadd.f32 %v3694_v50, %v14657_v16  ;;  %v3696_v38 = vpop.f32.mrb[190].mxu0 }
 0x399   : > { %v5876_v40 = vmax.f32 %v5875_v53, %v5574_v12  ;;  %v4241_v27 = vmax.f32 %v3693_v28, 0.0  ;;  %v3697_v7 = vadd.f32 %v3696_v38, %v14653_v13  ;;  %v3698_v8 = vpop.f32.mrb[191].mxu0  ;;  %v5002_v10 = vpop.f32.mrb[172].mxu1 }
 0x39a   : > { %v4242_v63 = vmax.f32 %v3695_v37, 0.0  ;;  %v3699_v2 = vadd.f32 %v3698_v8, %v14657_v16  ;;  %v5003_v41 = vadd.f32 %v5002_v10, %v14742_v48  ;;  %v5004_v61 = vpop.f32.mrb[173].mxu1 }
 0x39b   : > { %v4466_v23 = vmax.f32 %v4465_v44, %v4241_v27  ;;  %v4243_v9 = vmax.f32 %v3697_v7, 0.0  ;;  %v5005_v51 = vadd.f32 %v5004_v61, %v14746_v24  ;;  %3961 = vmatmul.mubr.bf16.gmra.mrb[40].mxu0 %v14559_v18  ;;  %v5006_v15 = vpop.f32.mrb[174].mxu1 }
 0x39c   : > { %v4535_v35 = vmax.f32 %v4534_v62, %v4242_v63  ;;  %v4244_v46 = vmax.f32 %v3699_v2, 0.0  ;;  %v5575_v36 = vmax.f32 %v5003_v41, 0.0  ;;  %v5007_v17 = vadd.f32 %v5006_v15, %v14742_v48  ;;  %v5008_v49 = vpop.f32.mrb[175].mxu1  ;;  %3970 = vmatprep.mubr.bf16.mxu0 %v16714_v47 }
 0x39d   : > { %v4467_v0 = vmax.f32 %v4466_v23, %v4243_v9  ;;  %v5576_v60 = vmax.f32 %v5005_v51, 0.0  ;;  %v5009_v53 = vadd.f32 %v5008_v49, %v14746_v24 }
 0x39e   : > { %v4536_v12 = vmax.f32 %v4535_v35, %v4244_v46  ;;  %v5808_v44 = vmax.f32 %v5807_v52, %v5575_v36  ;;  %v5577_v28 = vmax.f32 %v5007_v17, 0.0  ;;  %v3702_v50 = vpop.f32.mrb[192].mxu0  ;;  %5271 = vmatmul.mubr.bf16.gmra.mrb[24].mxu1 %v14535_v19 }
 0x39f   : > { %v5877_v37 = vmax.f32 %v5876_v40, %v5576_v60  ;;  %v5578_v38 = vmax.f32 %v5009_v53, 0.0  ;;  %v3703_v62 = vadd.f32 %v3702_v50, %v14653_v13  ;;  %v3704_v27 = vpop.f32.mrb[193].mxu0  ;;  %5280 = vmatprep.mubr.bf16.mxu1 %v16714_v47 }
 0x3a0   : > { %v5809_v7 = vmax.f32 %v5808_v44, %v5577_v28  ;;  %v3705_v8 = vadd.f32 %v3704_v27, %v14657_v16  ;;  %v3706_v10 = vpop.f32.mrb[194].mxu0 }
 0x3a1   : > { %v5878_v63 = vmax.f32 %v5877_v37, %v5578_v38  ;;  %v4245_v2 = vmax.f32 %v3703_v62, 0.0  ;;  %v3707_v41 = vadd.f32 %v3706_v10, %v14653_v13  ;;  %v3708_v52 = vpop.f32.mrb[195].mxu0  ;;  %v5012_v61 = vpop.f32.mrb[176].mxu1 }
 0x3a2   : > { %v4246_v23 = vmax.f32 %v3705_v8, 0.0  ;;  %v3709_v9 = vadd.f32 %v3708_v52, %v14657_v16  ;;  %v5013_v40 = vadd.f32 %v5012_v61, %v14742_v48  ;;  %v5014_v51 = vpop.f32.mrb[177].mxu1 }
 0x3a3   : > { %v4468_v15 = vmax.f32 %v4467_v0, %v4245_v2  ;;  %v4247_v35 = vmax.f32 %v3707_v41, 0.0  ;;  %v5015_v46 = vadd.f32 %v5014_v51, %v14746_v24  ;;  %3971 = vmatmul.mubr.bf16.gmra.mrb[44].mxu0 %v14557_v14  ;;  %v5016_v36 = vpop.f32.mrb[178].mxu1 }
 0x3a4   : > { %v4537_v17 = vmax.f32 %v4536_v12, %v4246_v23  ;;  %v4248_v49 = vmax.f32 %v3709_v9, 0.0  ;;  %v5579_v60 = vmax.f32 %v5013_v40, 0.0  ;;  %v5017_v53 = vadd.f32 %v5016_v36, %v14742_v48  ;;  %v5018_v44 = vpop.f32.mrb[179].mxu1  ;;  %3980 = vmatprep.mubr.bf16.mxu0 %v16714_v47 }
 0x3a5   : > { %v4469_v28 = vmax.f32 %v4468_v15, %v4247_v35  ;;  %v5580_v50 = vmax.f32 %v5015_v46, 0.0  ;;  %v5019_v37 = vadd.f32 %v5018_v44, %v14746_v24 }
 0x3a6   : > { %v4538_v38 = vmax.f32 %v4537_v17, %v4248_v49  ;;  %v5810_v0 = vmax.f32 %v5809_v7, %v5579_v60  ;;  %v5581_v62 = vmax.f32 %v5017_v53, 0.0  ;;  %v3712_v27 = vpop.f32.mrb[196].mxu0  ;;  %5281 = vmatmul.mubr.bf16.gmra.mrb[28].mxu1 %v14533_v58 }
 0x3a7   : > { %v5879_v8 = vmax.f32 %v5878_v63, %v5580_v50  ;;  %v5582_v10 = vmax.f32 %v5019_v37, 0.0  ;;  %v3713_v12 = vadd.f32 %v3712_v27, %v14653_v13  ;;  %v3714_v2 = vpop.f32.mrb[197].mxu0  ;;  %5290 = vmatprep.mubr.bf16.mxu1 %v16714_v47 }
 0x3a8   : > { %v5811_v41 = vmax.f32 %v5810_v0, %v5581_v62  ;;  %v3715_v52 = vadd.f32 %v3714_v2, %v14657_v16  ;;  %v3716_v61 = vpop.f32.mrb[198].mxu0 }
 0x3a9   : > { %v5880_v23 = vmax.f32 %v5879_v8, %v5582_v10  ;;  %v4249_v9 = vmax.f32 %v3713_v12, 0.0  ;;  %v3717_v40 = vadd.f32 %v3716_v61, %v14653_v13  ;;  %v3718_v7 = vpop.f32.mrb[199].mxu0  ;;  %v5022_v51 = vpop.f32.mrb[180].mxu1 }
 0x3aa   : > { %v4250_v15 = vmax.f32 %v3715_v52, 0.0  ;;  %v3719_v35 = vadd.f32 %v3718_v7, %v14657_v16  ;;  %v5023_v63 = vadd.f32 %v5022_v51, %v14742_v48  ;;  %v5024_v46 = vpop.f32.mrb[181].mxu1 }
 0x3ab   : > { %v4470_v36 = vmax.f32 %v4469_v28, %v4249_v9  ;;  %v4251_v17 = vmax.f32 %v3717_v40, 0.0  ;;  %v5025_v49 = vadd.f32 %v5024_v46, %v14746_v24  ;;  %3981 = vmatmul.mubr.bf16.gmra.mrb[48].mxu0 %v14588_v25  ;;  %v5026_v60 = vpop.f32.mrb[182].mxu1 }
 0x3ac   : > { %v4539_v53 = vmax.f32 %v4538_v38, %v4250_v15  ;;  %v4252_v44 = vmax.f32 %v3719_v35, 0.0  ;;  %v5583_v50 = vmax.f32 %v5023_v63, 0.0  ;;  %v5027_v37 = vadd.f32 %v5026_v60, %v14742_v48  ;;  %v5028_v0 = vpop.f32.mrb[183].mxu1  ;;  %3990 = vmatprep.mubr.bf16.mxu0 %v16714_v47 }
 0x3ad   : > { %v4471_v62 = vmax.f32 %v4470_v36, %v4251_v17  ;;  %v5584_v27 = vmax.f32 %v5025_v49, 0.0  ;;  %v5029_v8 = vadd.f32 %v5028_v0, %v14746_v24  ;;  %v6109_v36 = vld [vmem:[%s16553_s5 + $0x1f0] sm:$0xff] }
 0x3ae   : > { %v4540_v10 = vmax.f32 %v4539_v53, %v4252_v44  ;;  %v5812_v28 = vmax.f32 %v5811_v41, %v5583_v50  ;;  %v5585_v12 = vmax.f32 %v5027_v37, 0.0  ;;  %v3722_v2 = vpop.f32.mrb[200].mxu0  ;;  %5291 = vmatmul.mubr.bf16.gmra.mrb[32].mxu1 %v14547_v34  ;;  %v7452_v50 = vld [vmem:[%s16553_s5 + $0x1d8] sm:$0xff] }
 0x3af   : > { %v5881_v52 = vmax.f32 %v5880_v23, %v5584_v27  ;;  %v5586_v61 = vmax.f32 %v5029_v8, 0.0  ;;  %v3723_v38 = vadd.f32 %v3722_v2, %v14653_v13  ;;  %v3724_v9 = vpop.f32.mrb[201].mxu0  ;;  %5300 = vmatprep.mubr.bf16.mxu1 %v16714_v47  ;;  %v6108_v23 = vld [vmem:[%s16553_s5 + $0x1d0] sm:$0xff]  ;;  %v7453_v37 = vld [vmem:[%s16553_s5 + $0x1f8] sm:$0xff] }
 0x3b0   : > { %v5813_v40 = vmax.f32 %v5812_v28, %v5585_v12  ;;  %v3725_v7 = vadd.f32 %v3724_v9, %v14657_v16  ;;  %v3726_v51 = vpop.f32.mrb[202].mxu0  ;;  %v11822_v44 = vcombine.low %v6108_v23, %v6109_v36  ;;  %v11823_v12 = vcombine.high %v6108_v23, %v6109_v36 }
 0x3b1   : > { %v5882_v15 = vmax.f32 %v5881_v52, %v5586_v61  ;;  %v4253_v35 = vmax.f32 %v3723_v38, 0.0  ;;  %v3727_v63 = vadd.f32 %v3726_v51, %v14653_v13  ;;  %v3728_v41 = vpop.f32.mrb[203].mxu0  ;;  %v5032_v46 = vpop.f32.mrb[184].mxu1 }
 0x3b2   : > { %v4254_v17 = vmax.f32 %v3725_v7, 0.0  ;;  %v3729_v49 = vadd.f32 %v3728_v41, %v14657_v16  ;;  %v5033_v60 = vadd.f32 %v5032_v46, %v14742_v48  ;;  %v5034_v53 = vpop.f32.mrb[185].mxu1  ;;  %6216 = vmatprep.subr.bf16.mxu0 %v11823_v12 }
 0x3b3   : > { %v4472_v0 = vmax.f32 %v4471_v62, %v4253_v35  ;;  %v4255_v27 = vmax.f32 %v3727_v63, 0.0  ;;  %v5035_v8 = vadd.f32 %v5034_v53, %v14746_v24  ;;  %3991 = vmatmul.mubr.bf16.gmra.mrb[52].mxu0 %v14586_v43  ;;  %v5036_v28 = vpop.f32.mrb[186].mxu1  ;;  %v11838_v62 = vcombine.low %v7452_v50, %v7453_v37 }
 0x3b4   : > { %v4541_v2 = vmax.f32 %v4540_v10, %v4254_v17  ;;  %v4256_v52 = vmax.f32 %v3729_v49, 0.0  ;;  %v5587_v61 = vmax.f32 %v5033_v60, 0.0  ;;  %v5037_v38 = vadd.f32 %v5036_v28, %v14742_v48  ;;  %v5038_v9 = vpop.f32.mrb[187].mxu1  ;;  %4000 = vmatprep.mubr.bf16.mxu0 %v16714_v47  ;;  %6217 = vmatpush1.bf16.msra.mxu0 %v11822_v44 }
 0x3b5   : > { %v4473_v7 = vmax.f32 %v4472_v0, %v4255_v27  ;;  %v5588_v51 = vmax.f32 %v5035_v8, 0.0  ;;  %v5039_v41 = vadd.f32 %v5038_v9, %v14746_v24  ;;  %v11839_v10 = vcombine.high %v7452_v50, %v7453_v37 }
 0x3b6   : > { %v4542_v35 = vmax.f32 %v4541_v2, %v4256_v52  ;;  %v5814_v63 = vmax.f32 %v5813_v40, %v5587_v61  ;;  %v5589_v46 = vmax.f32 %v5037_v38, 0.0  ;;  %v3732_v53 = vpop.f32.mrb[204].mxu0  ;;  %5301 = vmatmul.mubr.bf16.gmra.mrb[36].mxu1 %v14545_v33 }
 0x3b7   : > { %v5883_v23 = vmax.f32 %v5882_v15, %v5588_v51  ;;  %v5590_v36 = vmax.f32 %v5039_v41, 0.0  ;;  %v3733_v17 = vadd.f32 %v3732_v53, %v14653_v13  ;;  %v3734_v49 = vpop.f32.mrb[205].mxu0  ;;  %5310 = vmatprep.mubr.bf16.mxu1 %v16714_v47  ;;  %7560 = vmatprep.subr.bf16.mxu1 %v11839_v10 }
 0x3b8   : > { %v5815_v60 = vmax.f32 %v5814_v63, %v5589_v46  ;;  %v3735_v0 = vadd.f32 %v3734_v49, %v14657_v16  ;;  %v3736_v27 = vpop.f32.mrb[206].mxu0  ;;  %7561 = vmatpush1.bf16.msra.mxu1 %v11838_v62 }
 0x3b9   : > { %v5884_v8 = vmax.f32 %v5883_v23, %v5590_v36  ;;  %v4257_v40 = vmax.f32 %v3733_v17, 0.0  ;;  %v3737_v28 = vadd.f32 %v3736_v27, %v14653_v13  ;;  %v3738_v12 = vpop.f32.mrb[207].mxu0  ;;  %v5042_v2 = vpop.f32.mrb[188].mxu1 }
 0x3ba   : > { %v4258_v44 = vmax.f32 %v3735_v0, 0.0  ;;  %v3739_v15 = vadd.f32 %v3738_v12, %v14657_v16  ;;  %v5043_v50 = vadd.f32 %v5042_v2, %v14742_v48  ;;  %v5044_v37 = vpop.f32.mrb[189].mxu1 }
 0x3bb   : > { %v4474_v52 = vmax.f32 %v4473_v7, %v4257_v40  ;;  %v4259_v61 = vmax.f32 %v3737_v28, 0.0  ;;  %v5045_v38 = vadd.f32 %v5044_v37, %v14746_v24  ;;  %4001 = vmatmul.mubr.bf16.gmra.mrb[56].mxu0 %v14600_v21  ;;  %v5046_v9 = vpop.f32.mrb[190].mxu1 }
 0x3bc   : > { %v4543_v51 = vmax.f32 %v4542_v35, %v4258_v44  ;;  %v4260_v41 = vmax.f32 %v3739_v15, 0.0  ;;  %v5591_v63 = vmax.f32 %v5043_v50, 0.0  ;;  %v5047_v46 = vadd.f32 %v5046_v9, %v14742_v48  ;;  %v5048_v53 = vpop.f32.mrb[191].mxu1  ;;  %4010 = vmatprep.mubr.bf16.mxu0 %v16714_v47 }
 0x3bd   : > { %v4475_v62 = vmax.f32 %v4474_v52, %v4259_v61  ;;  %v5592_v10 = vmax.f32 %v5045_v38, 0.0  ;;  %v5049_v23 = vadd.f32 %v5048_v53, %v14746_v24 }
 0x3be   : > { %v4544_v36 = vmax.f32 %v4543_v51, %v4260_v41  ;;  %v5816_v7 = vmax.f32 %v5815_v60, %v5591_v63  ;;  %v5593_v17 = vmax.f32 %v5047_v46, 0.0  ;;  %v3742_v49 = vpop.f32.mrb[208].mxu0  ;;  %5311 = vmatmul.mubr.bf16.gmra.mrb[40].mxu1 %v14559_v18 }
 0x3bf   : > { %v5885_v0 = vmax.f32 %v5884_v8, %v5592_v10  ;;  %v5594_v27 = vmax.f32 %v5049_v23, 0.0  ;;  %v3743_v35 = vadd.f32 %v3742_v49, %v14653_v13  ;;  %v3744_v40 = vpop.f32.mrb[209].mxu0  ;;  %5320 = vmatprep.mubr.bf16.mxu1 %v16714_v47 }
 0x3c0   : > { %v5817_v28 = vmax.f32 %v5816_v7, %v5593_v17  ;;  %v3745_v12 = vadd.f32 %v3744_v40, %v14657_v16  ;;  %v3746_v2 = vpop.f32.mrb[210].mxu0 }
 0x3c1   : > { %v5886_v44 = vmax.f32 %v5885_v0, %v5594_v27  ;;  %v4261_v15 = vmax.f32 %v3743_v35, 0.0  ;;  %v3747_v50 = vadd.f32 %v3746_v2, %v14653_v13  ;;  %v3748_v60 = vpop.f32.mrb[211].mxu0  ;;  %v5052_v37 = vpop.f32.mrb[192].mxu1 }
 0x3c2   : > { %v4262_v52 = vmax.f32 %v3745_v12, 0.0  ;;  %v3749_v61 = vadd.f32 %v3748_v60, %v14657_v16  ;;  %v5053_v8 = vadd.f32 %v5052_v37, %v14742_v48  ;;  %v5054_v38 = vpop.f32.mrb[193].mxu1 }
 0x3c3   : > { %v4476_v9 = vmax.f32 %v4475_v62, %v4261_v15  ;;  %v4263_v51 = vmax.f32 %v3747_v50, 0.0  ;;  %v5055_v41 = vadd.f32 %v5054_v38, %v14746_v24  ;;  %4011 = vmatmul.mubr.bf16.gmra.mrb[60].mxu0 %v14598_v6  ;;  %v5056_v63 = vpop.f32.mrb[194].mxu1 }
 0x3c4   : > { %v4545_v46 = vmax.f32 %v4544_v36, %v4262_v52  ;;  %v4264_v53 = vmax.f32 %v3749_v61, 0.0  ;;  %v5595_v10 = vmax.f32 %v5053_v8, 0.0  ;;  %v5057_v23 = vadd.f32 %v5056_v63, %v14742_v48  ;;  %v5058_v7 = vpop.f32.mrb[195].mxu1  ;;  %4020 = vmatprep.mubr.bf16.mxu0 %v16714_v47 }
 0x3c5   : > { %v4477_v17 = vmax.f32 %v4476_v9, %v4263_v51  ;;  %v5596_v49 = vmax.f32 %v5055_v41, 0.0  ;;  %v5059_v0 = vadd.f32 %v5058_v7, %v14746_v24 }
 0x3c6   : > { %v4546_v27 = vmax.f32 %v4545_v46, %v4264_v53  ;;  %v5818_v62 = vmax.f32 %v5817_v28, %v5595_v10  ;;  %v5597_v35 = vmax.f32 %v5057_v23, 0.0  ;;  %v3752_v40 = vpop.f32.mrb[212].mxu0  ;;  %5321 = vmatmul.mubr.bf16.gmra.mrb[44].mxu1 %v14557_v14 }
 0x3c7   : > { %v5887_v12 = vmax.f32 %v5886_v44, %v5596_v49  ;;  %v5598_v2 = vmax.f32 %v5059_v0, 0.0  ;;  %v3753_v36 = vadd.f32 %v3752_v40, %v14653_v13  ;;  %v3754_v15 = vpop.f32.mrb[213].mxu0  ;;  %5330 = vmatprep.mubr.bf16.mxu1 %v16714_v47 }
 0x3c8   : > { %v5819_v50 = vmax.f32 %v5818_v62, %v5597_v35  ;;  %v3755_v60 = vadd.f32 %v3754_v15, %v14657_v16  ;;  %v3756_v37 = vpop.f32.mrb[214].mxu0 }
 0x3c9   : > { %v5888_v52 = vmax.f32 %v5887_v12, %v5598_v2  ;;  %v4265_v61 = vmax.f32 %v3753_v36, 0.0  ;;  %v3757_v8 = vadd.f32 %v3756_v37, %v14653_v13  ;;  %v3758_v28 = vpop.f32.mrb[215].mxu0  ;;  %v5062_v38 = vpop.f32.mrb[196].mxu1 }
 0x3ca   : > { %v4266_v9 = vmax.f32 %v3755_v60, 0.0  ;;  %v3759_v51 = vadd.f32 %v3758_v28, %v14657_v16  ;;  %v5063_v44 = vadd.f32 %v5062_v38, %v14742_v48  ;;  %v5064_v41 = vpop.f32.mrb[197].mxu1 }
 0x3cb   : > { %v4478_v63 = vmax.f32 %v4477_v17, %v4265_v61  ;;  %v4267_v46 = vmax.f32 %v3757_v8, 0.0  ;;  %v5065_v53 = vadd.f32 %v5064_v41, %v14746_v24  ;;  %4021 = vmatmul.mubr.bf16.gmra.mrb[64].mxu0 %v14612_v5  ;;  %v5066_v10 = vpop.f32.mrb[198].mxu1 }
 0x3cc   : > { %v4547_v23 = vmax.f32 %v4546_v27, %v4266_v9  ;;  %v4268_v7 = vmax.f32 %v3759_v51, 0.0  ;;  %v5599_v49 = vmax.f32 %v5063_v44, 0.0  ;;  %v5067_v0 = vadd.f32 %v5066_v10, %v14742_v48  ;;  %v5068_v62 = vpop.f32.mrb[199].mxu1  ;;  %4030 = vmatprep.mubr.bf16.mxu0 %v16714_v47 }
 0x3cd   : > { %v4479_v35 = vmax.f32 %v4478_v63, %v4267_v46  ;;  %v5600_v40 = vmax.f32 %v5065_v53, 0.0  ;;  %v5069_v12 = vadd.f32 %v5068_v62, %v14746_v24 }
 0x3ce   : > { %v4548_v2 = vmax.f32 %v4547_v23, %v4268_v7  ;;  %v5820_v17 = vmax.f32 %v5819_v50, %v5599_v49  ;;  %v5601_v36 = vmax.f32 %v5067_v0, 0.0  ;;  %v3762_v15 = vpop.f32.mrb[216].mxu0  ;;  %5331 = vmatmul.mubr.bf16.gmra.mrb[48].mxu1 %v14588_v25 }
 0x3cf   : > { %v5889_v60 = vmax.f32 %v5888_v52, %v5600_v40  ;;  %v5602_v37 = vmax.f32 %v5069_v12, 0.0  ;;  %v3763_v27 = vadd.f32 %v3762_v15, %v14653_v13  ;;  %v3764_v61 = vpop.f32.mrb[217].mxu0  ;;  %5340 = vmatprep.mubr.bf16.mxu1 %v16714_v47 }
 0x3d0   : > { %v5821_v8 = vmax.f32 %v5820_v17, %v5601_v36  ;;  %v3765_v28 = vadd.f32 %v3764_v61, %v14657_v16  ;;  %v3766_v38 = vpop.f32.mrb[218].mxu0 }
 0x3d1   : > { %v5890_v9 = vmax.f32 %v5889_v60, %v5602_v37  ;;  %v4269_v51 = vmax.f32 %v3763_v27, 0.0  ;;  %v3767_v44 = vadd.f32 %v3766_v38, %v14653_v13  ;;  %v3768_v50 = vpop.f32.mrb[219].mxu0  ;;  %v5072_v41 = vpop.f32.mrb[200].mxu1 }
 0x3d2   : > { %v4270_v63 = vmax.f32 %v3765_v28, 0.0  ;;  %v3769_v46 = vadd.f32 %v3768_v50, %v14657_v16  ;;  %v5073_v52 = vadd.f32 %v5072_v41, %v14742_v48  ;;  %v5074_v53 = vpop.f32.mrb[201].mxu1 }
 0x3d3   : > { %v4480_v10 = vmax.f32 %v4479_v35, %v4269_v51  ;;  %v4271_v23 = vmax.f32 %v3767_v44, 0.0  ;;  %v5075_v7 = vadd.f32 %v5074_v53, %v14746_v24  ;;  %4031 = vmatmul.mubr.bf16.gmra.mrb[68].mxu0 %v14610_v3  ;;  %v5076_v49 = vpop.f32.mrb[202].mxu1 }
 0x3d4   : > { %v4549_v0 = vmax.f32 %v4548_v2, %v4270_v63  ;;  %v4272_v62 = vmax.f32 %v3769_v46, 0.0  ;;  %v5603_v40 = vmax.f32 %v5073_v52, 0.0  ;;  %v5077_v12 = vadd.f32 %v5076_v49, %v14742_v48  ;;  %v5078_v17 = vpop.f32.mrb[203].mxu1  ;;  %4040 = vmatprep.mubr.bf16.mxu0 %v16714_v47 }
 0x3d5   : > { %v4481_v36 = vmax.f32 %v4480_v10, %v4271_v23  ;;  %v5604_v15 = vmax.f32 %v5075_v7, 0.0  ;;  %v5079_v60 = vadd.f32 %v5078_v17, %v14746_v24 }
 0x3d6   : > { %v4550_v37 = vmax.f32 %v4549_v0, %v4272_v62  ;;  %v5822_v35 = vmax.f32 %v5821_v8, %v5603_v40  ;;  %v5605_v27 = vmax.f32 %v5077_v12, 0.0  ;;  %v3772_v61 = vpop.f32.mrb[220].mxu0  ;;  %5341 = vmatmul.mubr.bf16.gmra.mrb[52].mxu1 %v14586_v43 }
 0x3d7   : > { %v5891_v28 = vmax.f32 %v5890_v9, %v5604_v15  ;;  %v5606_v38 = vmax.f32 %v5079_v60, 0.0  ;;  %v3773_v2 = vadd.f32 %v3772_v61, %v14653_v13  ;;  %v3774_v51 = vpop.f32.mrb[221].mxu0  ;;  %5350 = vmatprep.mubr.bf16.mxu1 %v16714_v47 }
 0x3d8   : > { %v5823_v44 = vmax.f32 %v5822_v35, %v5605_v27  ;;  %v3775_v50 = vadd.f32 %v3774_v51, %v14657_v16  ;;  %v3776_v41 = vpop.f32.mrb[222].mxu0 }
 0x3d9   : > { %v5892_v63 = vmax.f32 %v5891_v28, %v5606_v38  ;;  %v4273_v46 = vmax.f32 %v3773_v2, 0.0  ;;  %v3777_v52 = vadd.f32 %v3776_v41, %v14653_v13  ;;  %v3778_v8 = vpop.f32.mrb[223].mxu0  ;;  %v5082_v53 = vpop.f32.mrb[204].mxu1 }
 0x3da   : > { %v4274_v10 = vmax.f32 %v3775_v50, 0.0  ;;  %v3779_v23 = vadd.f32 %v3778_v8, %v14657_v16  ;;  %v5083_v9 = vadd.f32 %v5082_v53, %v14742_v48  ;;  %v5084_v7 = vpop.f32.mrb[205].mxu1 }
 0x3db   : > { %v4482_v49 = vmax.f32 %v4481_v36, %v4273_v46  ;;  %v4275_v0 = vmax.f32 %v3777_v52, 0.0  ;;  %v5085_v62 = vadd.f32 %v5084_v7, %v14746_v24  ;;  %4041 = vmatmul.mubr.bf16.gmra.mrb[72].mxu0 %v14624_v22  ;;  %v5086_v40 = vpop.f32.mrb[206].mxu1 }
 0x3dc   : > { %v4551_v12 = vmax.f32 %v4550_v37, %v4274_v10  ;;  %v4276_v17 = vmax.f32 %v3779_v23, 0.0  ;;  %v5607_v15 = vmax.f32 %v5083_v9, 0.0  ;;  %v5087_v60 = vadd.f32 %v5086_v40, %v14742_v48  ;;  %v5088_v35 = vpop.f32.mrb[207].mxu1  ;;  %4050 = vmatprep.mubr.bf16.mxu0 %v16714_v47 }
 0x3dd   : > { %v4483_v27 = vmax.f32 %v4482_v49, %v4275_v0  ;;  %v5608_v61 = vmax.f32 %v5085_v62, 0.0  ;;  %v5089_v28 = vadd.f32 %v5088_v35, %v14746_v24 }
 0x3de   : > { %v4552_v38 = vmax.f32 %v4551_v12, %v4276_v17  ;;  %v5824_v36 = vmax.f32 %v5823_v44, %v5607_v15  ;;  %v5609_v2 = vmax.f32 %v5087_v60, 0.0  ;;  %v3782_v51 = vpop.f32.mrb[224].mxu0  ;;  %5351 = vmatmul.mubr.bf16.gmra.mrb[56].mxu1 %v14600_v21 }
 0x3df   : > { %v5893_v50 = vmax.f32 %v5892_v63, %v5608_v61  ;;  %v5610_v41 = vmax.f32 %v5089_v28, 0.0  ;;  %v3783_v37 = vadd.f32 %v3782_v51, %v14653_v13  ;;  %v3784_v46 = vpop.f32.mrb[225].mxu0  ;;  %5360 = vmatprep.mubr.bf16.mxu1 %v16714_v47 }
 0x3e0   : > { %v5825_v52 = vmax.f32 %v5824_v36, %v5609_v2  ;;  %v3785_v8 = vadd.f32 %v3784_v46, %v14657_v16  ;;  %v3786_v53 = vpop.f32.mrb[226].mxu0 }
 0x3e1   : > { %v5894_v10 = vmax.f32 %v5893_v50, %v5610_v41  ;;  %v4277_v23 = vmax.f32 %v3783_v37, 0.0  ;;  %v3787_v9 = vadd.f32 %v3786_v53, %v14653_v13  ;;  %v3788_v44 = vpop.f32.mrb[227].mxu0  ;;  %v5092_v7 = vpop.f32.mrb[208].mxu1 }
 0x3e2   : > { %v4278_v49 = vmax.f32 %v3785_v8, 0.0  ;;  %v3789_v0 = vadd.f32 %v3788_v44, %v14657_v16  ;;  %v5093_v63 = vadd.f32 %v5092_v7, %v14742_v48  ;;  %v5094_v62 = vpop.f32.mrb[209].mxu1 }
 0x3e3   : > { %v4484_v40 = vmax.f32 %v4483_v27, %v4277_v23  ;;  %v4279_v12 = vmax.f32 %v3787_v9, 0.0  ;;  %v5095_v17 = vadd.f32 %v5094_v62, %v14746_v24  ;;  %4051 = vmatmul.mubr.bf16.gmra.mrb[76].mxu0 %v14622_v55  ;;  %v5096_v15 = vpop.f32.mrb[210].mxu1 }
 0x3e4   : > { %v4553_v60 = vmax.f32 %v4552_v38, %v4278_v49  ;;  %v4280_v35 = vmax.f32 %v3789_v0, 0.0  ;;  %v5611_v61 = vmax.f32 %v5093_v63, 0.0  ;;  %v5097_v28 = vadd.f32 %v5096_v15, %v14742_v48  ;;  %v5098_v36 = vpop.f32.mrb[211].mxu1  ;;  %4060 = vmatprep.mubr.bf16.mxu0 %v16714_v47 }
 0x3e5   : > { %v4485_v2 = vmax.f32 %v4484_v40, %v4279_v12  ;;  %v5612_v51 = vmax.f32 %v5095_v17, 0.0  ;;  %v5099_v50 = vadd.f32 %v5098_v36, %v14746_v24 }
 0x3e6   : > { %v4554_v41 = vmax.f32 %v4553_v60, %v4280_v35  ;;  %v5826_v27 = vmax.f32 %v5825_v52, %v5611_v61  ;;  %v5613_v37 = vmax.f32 %v5097_v28, 0.0  ;;  %v3792_v46 = vpop.f32.mrb[228].mxu0  ;;  %5361 = vmatmul.mubr.bf16.gmra.mrb[60].mxu1 %v14598_v6 }
 0x3e7   : > { %v5895_v8 = vmax.f32 %v5894_v10, %v5612_v51  ;;  %v5614_v53 = vmax.f32 %v5099_v50, 0.0  ;;  %v3793_v38 = vadd.f32 %v3792_v46, %v14653_v13  ;;  %v3794_v23 = vpop.f32.mrb[229].mxu0  ;;  %5370 = vmatprep.mubr.bf16.mxu1 %v16714_v47 }
 0x3e8   : > { %v5827_v9 = vmax.f32 %v5826_v27, %v5613_v37  ;;  %v3795_v44 = vadd.f32 %v3794_v23, %v14657_v16  ;;  %v3796_v7 = vpop.f32.mrb[230].mxu0 }
 0x3e9   : > { %v5896_v49 = vmax.f32 %v5895_v8, %v5614_v53  ;;  %v4281_v0 = vmax.f32 %v3793_v38, 0.0  ;;  %v3797_v63 = vadd.f32 %v3796_v7, %v14653_v13  ;;  %v3798_v52 = vpop.f32.mrb[231].mxu0  ;;  %v5102_v62 = vpop.f32.mrb[212].mxu1 }
 0x3ea   : > { %v4282_v40 = vmax.f32 %v3795_v44, 0.0  ;;  %v3799_v12 = vadd.f32 %v3798_v52, %v14657_v16  ;;  %v5103_v10 = vadd.f32 %v5102_v62, %v14742_v48  ;;  %v5104_v17 = vpop.f32.mrb[213].mxu1 }
 0x3eb   : > { %v4486_v15 = vmax.f32 %v4485_v2, %v4281_v0  ;;  %v4283_v60 = vmax.f32 %v3797_v63, 0.0  ;;  %v5105_v35 = vadd.f32 %v5104_v17, %v14746_v24  ;;  %4061 = vmatmul.mubr.bf16.gmra.mrb[80].mxu0 %v14647_v26  ;;  %v5106_v61 = vpop.f32.mrb[214].mxu1 }
 0x3ec   : > { %v4555_v28 = vmax.f32 %v4554_v41, %v4282_v40  ;;  %v4284_v36 = vmax.f32 %v3799_v12, 0.0  ;;  %v5615_v51 = vmax.f32 %v5103_v10, 0.0  ;;  %v5107_v50 = vadd.f32 %v5106_v61, %v14742_v48  ;;  %v5108_v27 = vpop.f32.mrb[215].mxu1  ;;  %4070 = vmatprep.mubr.bf16.mxu0 %v16714_v47 }
 0x3ed   : > { %v4487_v37 = vmax.f32 %v4486_v15, %v4283_v60  ;;  %v5616_v46 = vmax.f32 %v5105_v35, 0.0  ;;  %v5109_v8 = vadd.f32 %v5108_v27, %v14746_v24 }
 0x3ee   : > { %v4556_v53 = vmax.f32 %v4555_v28, %v4284_v36  ;;  %v5828_v2 = vmax.f32 %v5827_v9, %v5615_v51  ;;  %v5617_v38 = vmax.f32 %v5107_v50, 0.0  ;;  %v3802_v23 = vpop.f32.mrb[232].mxu0  ;;  %5371 = vmatmul.mubr.bf16.gmra.mrb[64].mxu1 %v14612_v5 }
 0x3ef   : > { %v5897_v44 = vmax.f32 %v5896_v49, %v5616_v46  ;;  %v5618_v7 = vmax.f32 %v5109_v8, 0.0  ;;  %v3803_v41 = vadd.f32 %v3802_v23, %v14653_v13  ;;  %v3804_v0 = vpop.f32.mrb[233].mxu0  ;;  %5380 = vmatprep.mubr.bf16.mxu1 %v16714_v47 }
 0x3f0   : > { %v5829_v63 = vmax.f32 %v5828_v2, %v5617_v38  ;;  %v3805_v52 = vadd.f32 %v3804_v0, %v14657_v16  ;;  %v3806_v62 = vpop.f32.mrb[234].mxu0 }
 0x3f1   : > { %v5898_v40 = vmax.f32 %v5897_v44, %v5618_v7  ;;  %v4285_v12 = vmax.f32 %v3803_v41, 0.0  ;;  %v3807_v10 = vadd.f32 %v3806_v62, %v14653_v13  ;;  %v3808_v9 = vpop.f32.mrb[235].mxu0  ;;  %v5112_v17 = vpop.f32.mrb[216].mxu1 }
 0x3f2   : > { %v4286_v15 = vmax.f32 %v3805_v52, 0.0  ;;  %v3809_v60 = vadd.f32 %v3808_v9, %v14657_v16  ;;  %v5113_v49 = vadd.f32 %v5112_v17, %v14742_v48  ;;  %v5114_v35 = vpop.f32.mrb[217].mxu1 }
 0x3f3   : > { %v4488_v61 = vmax.f32 %v4487_v37, %v4285_v12  ;;  %v4287_v28 = vmax.f32 %v3807_v10, 0.0  ;;  %v5115_v36 = vadd.f32 %v5114_v35, %v14746_v24  ;;  %4071 = vmatmul.mubr.bf16.gmra.mrb[84].mxu0 %v14639_v54  ;;  %v5116_v51 = vpop.f32.mrb[218].mxu1 }
 0x3f4   : > { %v4557_v50 = vmax.f32 %v4556_v53, %v4286_v15  ;;  %v4288_v27 = vmax.f32 %v3809_v60, 0.0  ;;  %v5619_v46 = vmax.f32 %v5113_v49, 0.0  ;;  %v5117_v8 = vadd.f32 %v5116_v51, %v14742_v48  ;;  %v5118_v2 = vpop.f32.mrb[219].mxu1  ;;  %4080 = vmatprep.mubr.bf16.mxu0 %v16714_v47 }
 0x3f5   : > { %v4489_v38 = vmax.f32 %v4488_v61, %v4287_v28  ;;  %v5620_v23 = vmax.f32 %v5115_v36, 0.0  ;;  %v5119_v44 = vadd.f32 %v5118_v2, %v14746_v24 }
 0x3f6   : > { %v4558_v7 = vmax.f32 %v4557_v50, %v4288_v27  ;;  %v5830_v37 = vmax.f32 %v5829_v63, %v5619_v46  ;;  %v5621_v41 = vmax.f32 %v5117_v8, 0.0  ;;  %v3812_v0 = vpop.f32.mrb[236].mxu0  ;;  %5381 = vmatmul.mubr.bf16.gmra.mrb[68].mxu1 %v14610_v3 }
 0x3f7   : > { %v5899_v52 = vmax.f32 %v5898_v40, %v5620_v23  ;;  %v5622_v62 = vmax.f32 %v5119_v44, 0.0  ;;  %v3813_v53 = vadd.f32 %v3812_v0, %v14653_v13  ;;  %v3814_v12 = vpop.f32.mrb[237].mxu0  ;;  %5390 = vmatprep.mubr.bf16.mxu1 %v16714_v47 }
 0x3f8   : > { %v5831_v10 = vmax.f32 %v5830_v37, %v5621_v41  ;;  %v3815_v9 = vadd.f32 %v3814_v12, %v14657_v16  ;;  %v3816_v17 = vpop.f32.mrb[238].mxu0 }
 0x3f9   : > { %v5900_v15 = vmax.f32 %v5899_v52, %v5622_v62  ;;  %v4289_v60 = vmax.f32 %v3813_v53, 0.0  ;;  %v3817_v49 = vadd.f32 %v3816_v17, %v14653_v13  ;;  %v3818_v63 = vpop.f32.mrb[239].mxu0  ;;  %v5122_v35 = vpop.f32.mrb[220].mxu1 }
 0x3fa   : > { %v4290_v61 = vmax.f32 %v3815_v9, 0.0  ;;  %v3819_v28 = vadd.f32 %v3818_v63, %v14657_v16  ;;  %v5123_v40 = vadd.f32 %v5122_v35, %v14742_v48  ;;  %v5124_v36 = vpop.f32.mrb[221].mxu1 }
 0x3fb   : > { %v4490_v51 = vmax.f32 %v4489_v38, %v4289_v60  ;;  %v4291_v50 = vmax.f32 %v3817_v49, 0.0  ;;  %v5125_v27 = vadd.f32 %v5124_v36, %v14746_v24  ;;  %4081 = vmatmul.mubr.bf16.gmra.mrb[88].mxu0 %v14667_v29  ;;  %v5126_v46 = vpop.f32.mrb[222].mxu1 }
 0x3fc   : > { %v4559_v8 = vmax.f32 %v4558_v7, %v4290_v61  ;;  %v4292_v2 = vmax.f32 %v3819_v28, 0.0  ;;  %v5623_v23 = vmax.f32 %v5123_v40, 0.0  ;;  %v5127_v44 = vadd.f32 %v5126_v46, %v14742_v48  ;;  %v5128_v37 = vpop.f32.mrb[223].mxu1  ;;  %4090 = vmatprep.mubr.bf16.mxu0 %v16714_v47 }
 0x3fd   : > { %v4491_v41 = vmax.f32 %v4490_v51, %v4291_v50  ;;  %v5624_v0 = vmax.f32 %v5125_v27, 0.0  ;;  %v5129_v52 = vadd.f32 %v5128_v37, %v14746_v24 }
 0x3fe   : > { %v4560_v62 = vmax.f32 %v4559_v8, %v4292_v2  ;;  %v5832_v38 = vmax.f32 %v5831_v10, %v5623_v23  ;;  %v5625_v53 = vmax.f32 %v5127_v44, 0.0  ;;  %v3822_v12 = vpop.f32.mrb[240].mxu0  ;;  %5391 = vmatmul.mubr.bf16.gmra.mrb[72].mxu1 %v14624_v22 }
 0x3ff   : > { %v5901_v9 = vmax.f32 %v5900_v15, %v5624_v0  ;;  %v5626_v17 = vmax.f32 %v5129_v52, 0.0  ;;  %v3823_v7 = vadd.f32 %v3822_v12, %v14653_v13  ;;  %v3824_v60 = vpop.f32.mrb[241].mxu0  ;;  %5400 = vmatprep.mubr.bf16.mxu1 %v16714_v47 }
 0x400   : > { %v5833_v49 = vmax.f32 %v5832_v38, %v5625_v53  ;;  %v3825_v63 = vadd.f32 %v3824_v60, %v14657_v16  ;;  %v3826_v35 = vpop.f32.mrb[242].mxu0 }
 0x401   : > { %v5902_v61 = vmax.f32 %v5901_v9, %v5626_v17  ;;  %v4293_v28 = vmax.f32 %v3823_v7, 0.0  ;;  %v3827_v40 = vadd.f32 %v3826_v35, %v14653_v13  ;;  %v3828_v10 = vpop.f32.mrb[243].mxu0  ;;  %v5132_v36 = vpop.f32.mrb[224].mxu1 }
 0x402   : > { %v4294_v51 = vmax.f32 %v3825_v63, 0.0  ;;  %v3829_v50 = vadd.f32 %v3828_v10, %v14657_v16  ;;  %v5133_v15 = vadd.f32 %v5132_v36, %v14742_v48  ;;  %v5134_v27 = vpop.f32.mrb[225].mxu1 }
 0x403   : > { %v4492_v46 = vmax.f32 %v4491_v41, %v4293_v28  ;;  %v4295_v8 = vmax.f32 %v3827_v40, 0.0  ;;  %v5135_v2 = vadd.f32 %v5134_v27, %v14746_v24  ;;  %4091 = vmatmul.mubr.bf16.gmra.mrb[92].mxu0 %v14664_v59  ;;  %v5136_v23 = vpop.f32.mrb[226].mxu1 }
 0x404   : > { %v4561_v44 = vmax.f32 %v4560_v62, %v4294_v51  ;;  %v4296_v37 = vmax.f32 %v3829_v50, 0.0  ;;  %v5627_v0 = vmax.f32 %v5133_v15, 0.0  ;;  %v5137_v52 = vadd.f32 %v5136_v23, %v14742_v48  ;;  %v5138_v38 = vpop.f32.mrb[227].mxu1  ;;  %4100 = vmatprep.mubr.bf16.mxu0 %v16714_v47 }
 0x405   : > { %v4493_v53 = vmax.f32 %v4492_v46, %v4295_v8  ;;  %v5628_v12 = vmax.f32 %v5135_v2, 0.0  ;;  %v5139_v9 = vadd.f32 %v5138_v38, %v14746_v24 }
 0x406   : > { %v4562_v17 = vmax.f32 %v4561_v44, %v4296_v37  ;;  %v5834_v41 = vmax.f32 %v5833_v49, %v5627_v0  ;;  %v5629_v7 = vmax.f32 %v5137_v52, 0.0  ;;  %v3832_v60 = vpop.f32.mrb[244].mxu0  ;;  %5401 = vmatmul.mubr.bf16.gmra.mrb[76].mxu1 %v14622_v55 }
 0x407   : > { %v5903_v63 = vmax.f32 %v5902_v61, %v5628_v12  ;;  %v5630_v35 = vmax.f32 %v5139_v9, 0.0  ;;  %v3833_v62 = vadd.f32 %v3832_v60, %v14653_v13  ;;  %v3834_v28 = vpop.f32.mrb[245].mxu0  ;;  %5410 = vmatprep.mubr.bf16.mxu1 %v16714_v47 }
 0x408   : > { %v5835_v40 = vmax.f32 %v5834_v41, %v5629_v7  ;;  %v3835_v10 = vadd.f32 %v3834_v28, %v14657_v16  ;;  %v3836_v36 = vpop.f32.mrb[246].mxu0 }
 0x409   : > { %v5904_v51 = vmax.f32 %v5903_v63, %v5630_v35  ;;  %v4297_v50 = vmax.f32 %v3833_v62, 0.0  ;;  %v3837_v15 = vadd.f32 %v3836_v36, %v14653_v13  ;;  %v3838_v49 = vpop.f32.mrb[247].mxu0  ;;  %v5142_v27 = vpop.f32.mrb[228].mxu1 }
 0x40a   : > { %v4298_v46 = vmax.f32 %v3835_v10, 0.0  ;;  %v3839_v8 = vadd.f32 %v3838_v49, %v14657_v16  ;;  %v5143_v61 = vadd.f32 %v5142_v27, %v14742_v48  ;;  %v5144_v2 = vpop.f32.mrb[229].mxu1 }
 0x40b   : > { %v4494_v23 = vmax.f32 %v4493_v53, %v4297_v50  ;;  %v4299_v44 = vmax.f32 %v3837_v15, 0.0  ;;  %v5145_v37 = vadd.f32 %v5144_v2, %v14746_v24  ;;  %4101 = vmatmul.mubr.bf16.gmra.mrb[96].mxu0 %v14683_v1  ;;  %v5146_v0 = vpop.f32.mrb[230].mxu1 }
 0x40c   : > { %v4563_v52 = vmax.f32 %v4562_v17, %v4298_v46  ;;  %v4300_v38 = vmax.f32 %v3839_v8, 0.0  ;;  %v5631_v12 = vmax.f32 %v5143_v61, 0.0  ;;  %v5147_v9 = vadd.f32 %v5146_v0, %v14742_v48  ;;  %v5148_v41 = vpop.f32.mrb[231].mxu1  ;;  %4110 = vmatprep.mubr.bf16.mxu0 %v16714_v47 }
 0x40d   : > { %v4495_v7 = vmax.f32 %v4494_v23, %v4299_v44  ;;  %v5632_v60 = vmax.f32 %v5145_v37, 0.0  ;;  %v5149_v63 = vadd.f32 %v5148_v41, %v14746_v24 }
 0x40e   : > { %v4564_v35 = vmax.f32 %v4563_v52, %v4300_v38  ;;  %v5836_v53 = vmax.f32 %v5835_v40, %v5631_v12  ;;  %v5633_v62 = vmax.f32 %v5147_v9, 0.0  ;;  %v3842_v28 = vpop.f32.mrb[248].mxu0  ;;  %5411 = vmatmul.mubr.bf16.gmra.mrb[80].mxu1 %v14647_v26  ;;  %v16725_v12 = vld [vmem:[#allocation53_spill] sm:$0xff] }
 0x40f   : > { %v5905_v10 = vmax.f32 %v5904_v51, %v5632_v60  ;;  %v5634_v36 = vmax.f32 %v5149_v63, 0.0  ;;  %v3843_v17 = vadd.f32 %v3842_v28, %v14653_v13  ;;  %v3844_v50 = vpop.f32.mrb[249].mxu0  ;;  %5420 = vmatprep.mubr.bf16.mxu1 %v16714_v47 }
 0x410   : > { %v5837_v15 = vmax.f32 %v5836_v53, %v5633_v62  ;;  %v3845_v49 = vadd.f32 %v3844_v50, %v14657_v16  ;;  %v3846_v27 = vpop.f32.mrb[250].mxu0 }
 0x411   : > { %v5906_v46 = vmax.f32 %v5905_v10, %v5634_v36  ;;  %v4301_v8 = vmax.f32 %v3843_v17, 0.0  ;;  %v3847_v61 = vadd.f32 %v3846_v27, %v14653_v13  ;;  %v3848_v40 = vpop.f32.mrb[251].mxu0  ;;  %v5152_v2 = vpop.f32.mrb[232].mxu1 }
 0x412   : > { %v4302_v23 = vmax.f32 %v3845_v49, 0.0  ;;  %v3849_v44 = vadd.f32 %v3848_v40, %v14657_v16  ;;  %v5153_v51 = vadd.f32 %v5152_v2, %v14742_v48  ;;  %v5154_v37 = vpop.f32.mrb[233].mxu1 }
 0x413   : > { %v4496_v0 = vmax.f32 %v4495_v7, %v4301_v8  ;;  %v4303_v52 = vmax.f32 %v3847_v61, 0.0  ;;  %v5155_v38 = vadd.f32 %v5154_v37, %v14746_v24  ;;  %4111 = vmatmul.mubr.bf16.gmra.mrb[100].mxu0 %v16725_v12  ;;  %v5156_v9 = vpop.f32.mrb[234].mxu1 }
 0x414   : > { %v4565_v41 = vmax.f32 %v4564_v35, %v4302_v23  ;;  %v4304_v60 = vmax.f32 %v3849_v44, 0.0  ;;  %v5635_v63 = vmax.f32 %v5153_v51, 0.0  ;;  %v5157_v53 = vadd.f32 %v5156_v9, %v14742_v48  ;;  %v5158_v62 = vpop.f32.mrb[235].mxu1  ;;  %4120 = vmatprep.mubr.bf16.mxu0 %v16714_v47 }
 0x415   : > { %v4497_v28 = vmax.f32 %v4496_v0, %v4303_v52  ;;  %v5636_v10 = vmax.f32 %v5155_v38, 0.0  ;;  %v5159_v36 = vadd.f32 %v5158_v62, %v14746_v24 }
 0x416   : > { %v4566_v17 = vmax.f32 %v4565_v41, %v4304_v60  ;;  %v5838_v7 = vmax.f32 %v5837_v15, %v5635_v63  ;;  %v5637_v50 = vmax.f32 %v5157_v53, 0.0  ;;  %v3852_v49 = vpop.f32.mrb[252].mxu0  ;;  %5421 = vmatmul.mubr.bf16.gmra.mrb[84].mxu1 %v14639_v54  ;;  %v16726_v53 = vld [vmem:[#allocation56_spill] sm:$0xff] }
 0x417   : > { %v5907_v27 = vmax.f32 %v5906_v46, %v5636_v10  ;;  %v5638_v8 = vmax.f32 %v5159_v36, 0.0  ;;  %v3853_v35 = vadd.f32 %v3852_v49, %v14653_v13  ;;  %v3854_v61 = vpop.f32.mrb[253].mxu0  ;;  %5430 = vmatprep.mubr.bf16.mxu1 %v16714_v47 }
 0x418   : > { %v5839_v40 = vmax.f32 %v5838_v7, %v5637_v50  ;;  %v3855_v2 = vadd.f32 %v3854_v61, %v14657_v16  ;;  %v3856_v23 = vpop.f32.mrb[254].mxu0 }
 0x419   : > { %v5908_v44 = vmax.f32 %v5907_v27, %v5638_v8  ;;  %v4305_v51 = vmax.f32 %v3853_v35, 0.0  ;;  %v3857_v37 = vadd.f32 %v3856_v23, %v14653_v13  ;;  %v3858_v15 = vpop.f32.mrb[255].mxu0  ;;  %v5162_v0 = vpop.f32.mrb[236].mxu1 }
 0x41a   : > { %v4306_v52 = vmax.f32 %v3855_v2, 0.0  ;;  %v3859_v38 = vadd.f32 %v3858_v15, %v14657_v16  ;;  %v5163_v46 = vadd.f32 %v5162_v0, %v14742_v48  ;;  %v5164_v9 = vpop.f32.mrb[237].mxu1 }
 0x41b   : > { %v4498_v41 = vmax.f32 %v4497_v28, %v4305_v51  ;;  %v4307_v60 = vmax.f32 %v3857_v37, 0.0  ;;  %v5165_v63 = vadd.f32 %v5164_v9, %v14746_v24  ;;  %4121 = vmatmul.mubr.bf16.gmra.mrb[104].mxu0 %v16726_v53  ;;  %v5166_v62 = vpop.f32.mrb[238].mxu1 }
 0x41c   : > { %v4567_v10 = vmax.f32 %v4566_v17, %v4306_v52  ;;  %v4308_v36 = vmax.f32 %v3859_v38, 0.0  ;;  %v5639_v7 = vmax.f32 %v5163_v46, 0.0  ;;  %v5167_v50 = vadd.f32 %v5166_v62, %v14742_v48  ;;  %v5168_v49 = vpop.f32.mrb[239].mxu1  ;;  %4130 = vmatprep.mubr.bf16.mxu0 %v16714_v47 }
 0x41d   : > { %v4499_v27 = vmax.f32 %v4498_v41, %v4307_v60  ;;  %v5640_v8 = vmax.f32 %v5165_v63, 0.0  ;;  %v5169_v35 = vadd.f32 %v5168_v49, %v14746_v24 }
 0x41e   : > { %v4568_v61 = vmax.f32 %v4567_v10, %v4308_v36  ;;  %v5840_v28 = vmax.f32 %v5839_v40, %v5639_v7  ;;  %v5641_v2 = vmax.f32 %v5167_v50, 0.0  ;;  %v3862_v23 = vpop.f32.mrb[0].mxu0  ;;  %5431 = vmatmul.mubr.bf16.gmra.mrb[88].mxu1 %v14667_v29 }
 0x41f   : > { %v4500_v51 = vrot.slane %v4499_v27, 4  ;;  %v5909_v37 = vmax.f32 %v5908_v44, %v5640_v8  ;;  %v5642_v17 = vmax.f32 %v5169_v35, 0.0  ;;  %v3863_v15 = vadd.f32 %v3862_v23, %v14653_v13  ;;  %v3864_v0 = vpop.f32.mrb[1].mxu0  ;;  %5440 = vmatprep.mubr.bf16.mxu1 %v16714_v47 }
 0x420   : > { %v4569_v52 = vrot.slane %v4568_v61, 4  ;;  %v5841_v38 = vmax.f32 %v5840_v28, %v5641_v2  ;;  %v3865_v46 = vadd.f32 %v3864_v0, %v14657_v16  ;;  %v3866_v9 = vpop.f32.mrb[2].mxu0  ;;  %v16727_v2 = vld [vmem:[#allocation55_spill] sm:$0xff] }
 0x421   : > { %v4501_v41 = vmax.f32 %v4499_v27, %v4500_v51  ;;  %v5910_v60 = vmax.f32 %v5909_v37, %v5642_v17  ;;  %v3867_v40 = vadd.f32 %v3866_v9, %v14653_v13  ;;  %v3868_v63 = vpop.f32.mrb[3].mxu0  ;;  %v5172_v62 = vpop.f32.mrb[240].mxu1  ;;  %v4309_v36 = vmax.f32 %v3863_v15, 0.0 }
 0x422   : > { %v4570_v10 = vmax.f32 %v4568_v61, %v4569_v52  ;;  %v3869_v44 = vadd.f32 %v3868_v63, %v14657_v16  ;;  %v5173_v7 = vadd.f32 %v5172_v62, %v14742_v48  ;;  %v5174_v50 = vpop.f32.mrb[241].mxu1  ;;  %v4310_v8 = vmax.f32 %v3865_v46, 0.0 }
 0x423   : > { %v4502_v49 = vrot.slane %v4501_v41, 2  ;;  %v4311_v35 = vmax.f32 %v3867_v40, 0.0  ;;  %v5175_v28 = vadd.f32 %v5174_v50, %v14746_v24  ;;  %4131 = vmatmul.mubr.bf16.gmra.mrb[108].mxu0 %v16727_v2  ;;  %v5176_v27 = vpop.f32.mrb[242].mxu1 }
 0x424   : > { %v4571_v23 = vrot.slane %v4570_v10, 2  ;;  %v4312_v51 = vmax.f32 %v3869_v44, 0.0  ;;  %v5643_v37 = vmax.f32 %v5173_v7, 0.0  ;;  %v5177_v17 = vadd.f32 %v5176_v27, %v14742_v48  ;;  %v5178_v61 = vpop.f32.mrb[243].mxu1  ;;  %4140 = vmatprep.mubr.bf16.mxu0 %v16714_v47 }
 0x425   : > { %v4503_v15 = vmax.f32 %v4501_v41, %v4502_v49  ;;  %v4575_v0 = vmax.f32 %v4309_v36, %v4311_v35  ;;  %v5644_v52 = vmax.f32 %v5175_v28, 0.0  ;;  %v5179_v9 = vadd.f32 %v5178_v61, %v14746_v24 }
 0x426   : > { %v4572_v46 = vmax.f32 %v4570_v10, %v4571_v23  ;;  %v4644_v40 = vmax.f32 %v4310_v8, %v4312_v51  ;;  %v5842_v63 = vmax.f32 %v5841_v38, %v5643_v37  ;;  %v5645_v62 = vmax.f32 %v5177_v17, 0.0  ;;  %v3872_v50 = vpop.f32.mrb[4].mxu0  ;;  %5441 = vmatmul.mubr.bf16.gmra.mrb[92].mxu1 %v14664_v59 }
 0x427   : > { %v4504_v29 = vrot.slane %v4503_v15, 1  ;;  %v5911_v44 = vmax.f32 %v5910_v60, %v5644_v52  ;;  %v5646_v7 = vmax.f32 %v5179_v9, 0.0  ;;  %v3873_v27 = vadd.f32 %v3872_v50, %v14653_v13  ;;  %v3874_v54 = vpop.f32.mrb[5].mxu0  ;;  %5450 = vmatprep.mubr.bf16.mxu1 %v16714_v47 }
 0x428   : > { %v4573_v41 = vrot.slane %v4572_v46, 1  ;;  %v5843_v36 = vmax.f32 %v5842_v63, %v5645_v62  ;;  %v3875_v49 = vadd.f32 %v3874_v54, %v14657_v16  ;;  %v3876_v35 = vpop.f32.mrb[6].mxu0 }
 0x429   : > { %v15126_v10 = vmax.f32 %v4503_v15, %v4504_v29  ;;  %v5912_v38 = vmax.f32 %v5911_v44, %v5646_v7  ;;  %v4313_v8 = vmax.f32 %v3873_v27, 0.0  ;;  %v3877_v28 = vadd.f32 %v3876_v35, %v14653_v13  ;;  %v3878_v23 = vpop.f32.mrb[7].mxu0  ;;  %v5182_v51 = vpop.f32.mrb[244].mxu1 }
 0x42a   : > { %v15129_v60 = vmax.f32 %v4572_v46, %v4573_v41  ;;  %v4314_v37 = vmax.f32 %v3875_v49, 0.0  ;;  %v3879_v17 = vadd.f32 %v3878_v23, %v14657_v16  ;;  %v5183_v61 = vadd.f32 %v5182_v51, %v14742_v48  ;;  %v5184_v52 = vpop.f32.mrb[245].mxu1 }
 0x42b   : > { %v4576_v9 = vmax.f32 %v4575_v0, %v4313_v8  ;;  %v4315_v63 = vmax.f32 %v3877_v28, 0.0  ;;  %v5185_v54 = vadd.f32 %v5184_v52, %v14746_v24  ;;  %4141 = vmatmul.mubr.bf16.gmra.mrb[112].mxu0 %v14727_v45  ;;  %v5186_v29 = vpop.f32.mrb[246].mxu1 }
 0x42c   : > { %v4645_v62 = vmax.f32 %v4644_v40, %v4314_v37  ;;  %v4316_v50 = vmax.f32 %v3879_v17, 0.0  ;;  %v5647_v46 = vmax.f32 %v5183_v61, 0.0  ;;  %v5188_v44 = vpop.f32.mrb[247].mxu1  ;;  %4150 = vmatprep.mubr.bf16.mxu0 %v16714_v47  ;;  %v5187_v41 = vadd.f32 %v5186_v29, %v14742_v48 }
 0x42d   : > { %v4577_v7 = vmax.f32 %v4576_v9, %v4315_v63  ;;  %v5648_v27 = vmax.f32 %v5185_v54, 0.0  ;;  %v5189_v0 = vadd.f32 %v5188_v44, %v14746_v24 }
 0x42e   : > { %v4646_v49 = vmax.f32 %v4645_v62, %v4316_v50  ;;  %v5844_v35 = vmax.f32 %v5843_v36, %v5647_v46  ;;  %v3882_v8 = vpop.f32.mrb[8].mxu0  ;;  %5451 = vmatmul.mubr.bf16.gmra.mrb[96].mxu1 %v14683_v1  ;;  %v5649_v23 = vmax.f32 %v5187_v41, 0.0 }
 0x42f   : > { %v5913_v28 = vmax.f32 %v5912_v38, %v5648_v27  ;;  %v5650_v51 = vmax.f32 %v5189_v0, 0.0  ;;  %v3883_v40 = vadd.f32 %v3882_v8, %v14653_v13  ;;  %v3884_v37 = vpop.f32.mrb[9].mxu0  ;;  %5460 = vmatprep.mubr.bf16.mxu1 %v16714_v47 }
 0x430   : > { %v3885_v17 = vadd.f32 %v3884_v37, %v14657_v16  ;;  %v3886_v61 = vpop.f32.mrb[10].mxu0  ;;  %v5845_v52 = vmax.f32 %v5844_v35, %v5649_v23 }
 0x431   : > { %v5914_v9 = vmax.f32 %v5913_v28, %v5650_v51  ;;  %v4317_v63 = vmax.f32 %v3883_v40, 0.0  ;;  %v3887_v54 = vadd.f32 %v3886_v61, %v14653_v13  ;;  %v3888_v36 = vpop.f32.mrb[11].mxu0  ;;  %v5192_v29 = vpop.f32.mrb[248].mxu1 }
 0x432   : > { %v4318_v62 = vmax.f32 %v3885_v17, 0.0  ;;  %v3889_v38 = vadd.f32 %v3888_v36, %v14657_v16  ;;  %v5193_v50 = vadd.f32 %v5192_v29, %v14742_v48  ;;  %v5194_v46 = vpop.f32.mrb[249].mxu1 }
 0x433   : > { %v4578_v44 = vmax.f32 %v4577_v7, %v4317_v63  ;;  %v4319_v27 = vmax.f32 %v3887_v54, 0.0  ;;  %v5195_v41 = vadd.f32 %v5194_v46, %v14746_v24  ;;  %4151 = vmatmul.mubr.bf16.gmra.mrb[116].mxu0 %v14724_v11  ;;  %v5196_v0 = vpop.f32.mrb[250].mxu1 }
 0x434   : > { %v4647_v35 = vmax.f32 %v4646_v49, %v4318_v62  ;;  %v4320_v8 = vmax.f32 %v3889_v38, 0.0  ;;  %v5651_v28 = vmax.f32 %v5193_v50, 0.0  ;;  %v5197_v23 = vadd.f32 %v5196_v0, %v14742_v48  ;;  %v5198_v51 = vpop.f32.mrb[251].mxu1  ;;  %4160 = vmatprep.mubr.bf16.mxu0 %v16714_v47 }
 0x435   : > { %v4579_v40 = vmax.f32 %v4578_v44, %v4319_v27  ;;  %v5652_v37 = vmax.f32 %v5195_v41, 0.0  ;;  %v5199_v17 = vadd.f32 %v5198_v51, %v14746_v24 }
 0x436   : > { %v4648_v61 = vmax.f32 %v4647_v35, %v4320_v8  ;;  %v5846_v7 = vmax.f32 %v5845_v52, %v5651_v28  ;;  %v5653_v63 = vmax.f32 %v5197_v23, 0.0  ;;  %v3892_v54 = vpop.f32.mrb[12].mxu0  ;;  %5461 = vmatmul.mubr.bf16.gmra.mrb[100].mxu1 %v16725_v12 }
 0x437   : > { %v5915_v36 = vmax.f32 %v5914_v9, %v5652_v37  ;;  %v5654_v29 = vmax.f32 %v5199_v17, 0.0  ;;  %v3893_v49 = vadd.f32 %v3892_v54, %v14653_v13  ;;  %v3894_v62 = vpop.f32.mrb[13].mxu0  ;;  %5470 = vmatprep.mubr.bf16.mxu1 %v16714_v47 }
 0x438   : > { %v5847_v38 = vmax.f32 %v5846_v7, %v5653_v63  ;;  %v3895_v50 = vadd.f32 %v3894_v62, %v14657_v16  ;;  %v3896_v46 = vpop.f32.mrb[14].mxu0 }
 0x439   : > { %v5916_v44 = vmax.f32 %v5915_v36, %v5654_v29  ;;  %v4321_v27 = vmax.f32 %v3893_v49, 0.0  ;;  %v3897_v41 = vadd.f32 %v3896_v46, %v14653_v13  ;;  %v3898_v52 = vpop.f32.mrb[15].mxu0  ;;  %v5202_v0 = vpop.f32.mrb[252].mxu1 }
 0x43a   : > { %v4322_v35 = vmax.f32 %v3895_v50, 0.0  ;;  %v3899_v8 = vadd.f32 %v3898_v52, %v14657_v16  ;;  %v5203_v9 = vadd.f32 %v5202_v0, %v14742_v48  ;;  %v5204_v28 = vpop.f32.mrb[253].mxu1 }
 0x43b   : > { %v4580_v23 = vmax.f32 %v4579_v40, %v4321_v27  ;;  %v4323_v51 = vmax.f32 %v3897_v41, 0.0  ;;  %v5205_v37 = vadd.f32 %v5204_v28, %v14746_v24  ;;  %4161 = vmatmul.mubr.bf16.gmra.mrb[120].mxu0 %v14752_v20  ;;  %v5206_v17 = vpop.f32.mrb[254].mxu1 }
 0x43c   : > { %v4649_v7 = vmax.f32 %v4648_v61, %v4322_v35  ;;  %v4324_v63 = vmax.f32 %v3899_v8, 0.0  ;;  %v5655_v54 = vmax.f32 %v5203_v9, 0.0  ;;  %v5207_v36 = vadd.f32 %v5206_v17, %v14742_v48  ;;  %v5208_v29 = vpop.f32.mrb[255].mxu1  ;;  %4170 = vmatprep.mubr.bf16.mxu0 %v16714_v47 }
 0x43d   : > { %v4581_v49 = vmax.f32 %v4580_v23, %v4323_v51  ;;  %v5656_v62 = vmax.f32 %v5205_v37, 0.0  ;;  %v5209_v50 = vadd.f32 %v5208_v29, %v14746_v24 }
 0x43e   : > { %v4650_v46 = vmax.f32 %v4649_v7, %v4324_v63  ;;  %v5848_v40 = vmax.f32 %v5847_v38, %v5655_v54  ;;  %v5657_v27 = vmax.f32 %v5207_v36, 0.0  ;;  %v3902_v41 = vpop.f32.mrb[16].mxu0  ;;  %5471 = vmatmul.mubr.bf16.gmra.mrb[104].mxu1 %v16726_v53 }
 0x43f   : > { %v5917_v52 = vmax.f32 %v5916_v44, %v5656_v62  ;;  %v5658_v0 = vmax.f32 %v5209_v50, 0.0  ;;  %v3903_v61 = vadd.f32 %v3902_v41, %v14653_v13  ;;  %v3904_v35 = vpop.f32.mrb[17].mxu0  ;;  %5480 = vmatprep.mubr.bf16.mxu1 %v16714_v47 }
 0x440   : > { %v5849_v8 = vmax.f32 %v5848_v40, %v5657_v27  ;;  %v3905_v9 = vadd.f32 %v3904_v35, %v14657_v16  ;;  %v3906_v28 = vpop.f32.mrb[18].mxu0 }
 0x441   : > { %v5918_v23 = vmax.f32 %v5917_v52, %v5658_v0  ;;  %v4325_v51 = vmax.f32 %v3903_v61, 0.0  ;;  %v3907_v37 = vadd.f32 %v3906_v28, %v14653_v13  ;;  %v3908_v38 = vpop.f32.mrb[19].mxu0  ;;  %v5212_v17 = vpop.f32.mrb[0].mxu1 }
 0x442   : > { %v5850_v7 = vrot.slane %v5849_v8, 4  ;;  %v4326_v63 = vmax.f32 %v3905_v9, 0.0  ;;  %v3909_v44 = vadd.f32 %v3908_v38, %v14657_v16  ;;  %v5214_v54 = vpop.f32.mrb[1].mxu1  ;;  %v5213_v50 = vadd.f32 %v5212_v17, %v14742_v48 }
 0x443   : > { %v5919_v36 = vrot.slane %v5918_v23, 4  ;;  %v4582_v29 = vmax.f32 %v4581_v49, %v4325_v51  ;;  %v4327_v62 = vmax.f32 %v3907_v37, 0.0  ;;  %4171 = vmatmul.mubr.bf16.gmra.mrb[124].mxu0 %v14749_v4  ;;  %v5216_v40 = vpop.f32.mrb[2].mxu1  ;;  %v5215_v0 = vadd.f32 %v5214_v54, %v14746_v24 }
 0x444   : > { %v5851_v27 = vmax.f32 %v5849_v8, %v5850_v7  ;;  %v4651_v41 = vmax.f32 %v4650_v46, %v4326_v63  ;;  %v4328_v52 = vmax.f32 %v3909_v44, 0.0  ;;  %v5218_v61 = vpop.f32.mrb[3].mxu1  ;;  %6234 = vmatprep.mubr.bf16.mxu0 %v16714_v47  ;;  %v5217_v28 = vadd.f32 %v5216_v40, %v14742_v48 }
 0x445   : > { %v5920_v35 = vmax.f32 %v5918_v23, %v5919_v36  ;;  %v4583_v9 = vmax.f32 %v4582_v29, %v4327_v62  ;;  %v5219_v51 = vadd.f32 %v5218_v61, %v14746_v24  ;;  %v5659_v8 = vmax.f32 %v5213_v50, 0.0 }
 0x446   : > { %v5852_v38 = vrot.slane %v5851_v27, 2  ;;  %v4652_v49 = vmax.f32 %v4651_v41, %v4328_v52  ;;  %v3912_v37 = vpop.f32.mrb[20].mxu0  ;;  %5481 = vmatmul.mubr.bf16.gmra.mrb[108].mxu1 %v16727_v2  ;;  %v5661_v46 = vmax.f32 %v5217_v28, 0.0  ;;  %v5660_v23 = vmax.f32 %v5215_v0, 0.0 }
 0x447   : > { %v5921_v17 = vrot.slane %v5920_v35, 2  ;;  %v3913_v7 = vadd.f32 %v3912_v37, %v14653_v13  ;;  %v3914_v63 = vpop.f32.mrb[21].mxu0  ;;  %5490 = vmatprep.mubr.bf16.mxu1 %v16714_v47  ;;  %v5662_v54 = vmax.f32 %v5219_v51, 0.0 }
 0x448   : > { %v5853_v44 = vmax.f32 %v5851_v27, %v5852_v38  ;;  %v3915_v36 = vadd.f32 %v3914_v63, %v14657_v16  ;;  %v3916_v29 = vpop.f32.mrb[22].mxu0  ;;  %v5925_v40 = vmax.f32 %v5659_v8, %v5661_v46  ;;  %v16728_v63 = vld [vmem:[#allocation16_spill] sm:$0xff] }
 0x449   : > { %v5922_v62 = vmax.f32 %v5920_v35, %v5921_v17  ;;  %v4329_v41 = vmax.f32 %v3913_v7, 0.0  ;;  %v3917_v52 = vadd.f32 %v3916_v29, %v14653_v13  ;;  %v3918_v61 = vpop.f32.mrb[23].mxu0  ;;  %v5222_v15 = vpop.f32.mrb[4].mxu1  ;;  %v5994_v28 = vmax.f32 %v5660_v23, %v5662_v54 }
 0x44a   : > { %v5854_v50 = vrot.slane %v5853_v44, 1  ;;  %v4330_v2 = vmax.f32 %v3915_v36, 0.0  ;;  %v3919_v37 = vadd.f32 %v3918_v61, %v14657_v16  ;;  %v5224_v53 = vpop.f32.mrb[5].mxu1  ;;  %v5223_v38 = vadd.f32 %v5222_v15, %v14742_v48 }
 0x44b   : > { %v5923_v12 = vrot.slane %v5922_v62, 1  ;;  %v4584_v27 = vmax.f32 %v4583_v9, %v4329_v41  ;;  %v4331_v0 = vmax.f32 %v3917_v52, 0.0  ;;  %v5226_v51 = vpop.f32.mrb[6].mxu1  ;;  %6235 = vmatmul.mubr.bf16.vlgmr.msra.gmra.mrb[128].mxu0 %v16728_v63  ;;  %v5225_v46 = vadd.f32 %v5224_v53, %v14746_v24 }
 0x44c   : > { %v15184_v35 = vmax.f32 %v5853_v44, %v5854_v50  ;;  %v4653_v17 = vmax.f32 %v4652_v49, %v4330_v2  ;;  %v4332_v8 = vmax.f32 %v3919_v37, 0.0  ;;  %v5228_v7 = vpop.f32.mrb[7].mxu1  ;;  %6244 = vmatprep.mubr.bf16.mxu0 %v16714_v47  ;;  %v5663_v36 = vmax.f32 %v5223_v38, 0.0 }
 0x44d   : > { %v15188_v23 = vmax.f32 %v5922_v62, %v5923_v12  ;;  %v4585_v54 = vmax.f32 %v4584_v27, %v4331_v0  ;;  %v5227_v9 = vadd.f32 %v5226_v51, %v14742_v48  ;;  %v5664_v15 = vmax.f32 %v5225_v46, 0.0 }
 0x44e   : > { %v4654_v29 = vmax.f32 %v4653_v17, %v4332_v8  ;;  %v5229_v41 = vadd.f32 %v5228_v7, %v14746_v24  ;;  %v3922_v52 = vpop.f32.mrb[24].mxu0  ;;  %5491 = vmatmul.mubr.bf16.gmra.mrb[112].mxu1 %v14727_v45  ;;  %v5926_v53 = vmax.f32 %v5925_v40, %v5663_v36 }
 0x44f   : > { %v5665_v49 = vmax.f32 %v5227_v9, 0.0  ;;  %v3923_v44 = vadd.f32 %v3922_v52, %v14653_v13  ;;  %v3924_v12 = vpop.f32.mrb[25].mxu0  ;;  %5500 = vmatprep.mubr.bf16.mxu1 %v16714_v47  ;;  %v5995_v62 = vmax.f32 %v5994_v28, %v5664_v15 }
 0x450   : > { %v5666_v61 = vmax.f32 %v5229_v41, 0.0  ;;  %v3925_v50 = vadd.f32 %v3924_v12, %v14657_v16  ;;  %v3926_v37 = vpop.f32.mrb[26].mxu0  ;;  %v16729_v41 = vld [vmem:[#allocation15_spill] sm:$0xff] }
 0x451   : > { %v5927_v27 = vmax.f32 %v5926_v53, %v5665_v49  ;;  %v4333_v0 = vmax.f32 %v3923_v44, 0.0  ;;  %v3927_v38 = vadd.f32 %v3926_v37, %v14653_v13  ;;  %v3928_v51 = vpop.f32.mrb[27].mxu0  ;;  %v5232_v17 = vpop.f32.mrb[8].mxu1 }
 0x452   : > { %v5996_v8 = vmax.f32 %v5995_v62, %v5666_v61  ;;  %v4334_v46 = vmax.f32 %v3925_v50, 0.0  ;;  %v3929_v40 = vadd.f32 %v3928_v51, %v14657_v16  ;;  %v5233_v7 = vadd.f32 %v5232_v17, %v14742_v48  ;;  %v5234_v36 = vpop.f32.mrb[9].mxu1 }
 0x453   : > { %v4586_v9 = vmax.f32 %v4585_v54, %v4333_v0  ;;  %v4335_v52 = vmax.f32 %v3927_v38, 0.0  ;;  %v5235_v28 = vadd.f32 %v5234_v36, %v14746_v24  ;;  %v5236_v15 = vpop.f32.mrb[10].mxu1  ;;  %6245 = vmatmul.mubr.bf16.gmra.mrb[132].mxu0 %v16729_v41 }
 0x454   : > { %v4655_v53 = vmax.f32 %v4654_v29, %v4334_v46  ;;  %v4336_v49 = vmax.f32 %v3929_v40, 0.0  ;;  %v5667_v44 = vmax.f32 %v5233_v7, 0.0  ;;  %v5237_v12 = vadd.f32 %v5236_v15, %v14742_v48  ;;  %v5238_v37 = vpop.f32.mrb[11].mxu1  ;;  %6254 = vmatprep.mubr.bf16.mxu0 %v16714_v47 }
 0x455   : > { %v4587_v62 = vmax.f32 %v4586_v9, %v4335_v52  ;;  %v5668_v61 = vmax.f32 %v5235_v28, 0.0  ;;  %v5239_v50 = vadd.f32 %v5238_v37, %v14746_v24 }
 0x456   : > { %v4656_v51 = vmax.f32 %v4655_v53, %v4336_v49  ;;  %v5928_v54 = vmax.f32 %v5927_v27, %v5667_v44  ;;  %v5669_v0 = vmax.f32 %v5237_v12, 0.0  ;;  %v3932_v38 = vpop.f32.mrb[28].mxu0  ;;  %5501 = vmatmul.mubr.bf16.gmra.mrb[116].mxu1 %v14724_v11 }
 0x457   : > { %v5997_v17 = vmax.f32 %v5996_v8, %v5668_v61  ;;  %v5670_v36 = vmax.f32 %v5239_v50, 0.0  ;;  %v3933_v29 = vadd.f32 %v3932_v38, %v14653_v13  ;;  %v3934_v46 = vpop.f32.mrb[29].mxu0  ;;  %5510 = vmatprep.mubr.bf16.mxu1 %v16714_v47 }
 0x458   : > { %v5929_v40 = vmax.f32 %v5928_v54, %v5669_v0  ;;  %v3935_v7 = vadd.f32 %v3934_v46, %v14657_v16  ;;  %v3936_v9 = vpop.f32.mrb[30].mxu0  ;;  %v16730_v0 = vld [vmem:[#allocation18_spill] sm:$0xff] }
 0x459   : > { %v5998_v52 = vmax.f32 %v5997_v17, %v5670_v36  ;;  %v4337_v28 = vmax.f32 %v3933_v29, 0.0  ;;  %v3937_v15 = vadd.f32 %v3936_v9, %v14653_v13  ;;  %v3938_v27 = vpop.f32.mrb[31].mxu0  ;;  %v5242_v53 = vpop.f32.mrb[12].mxu1 }
 0x45a   : > { %v4338_v49 = vmax.f32 %v3935_v7, 0.0  ;;  %v3939_v44 = vadd.f32 %v3938_v27, %v14657_v16  ;;  %v5243_v8 = vadd.f32 %v5242_v53, %v14742_v48  ;;  %v5244_v12 = vpop.f32.mrb[13].mxu1 }
 0x45b   : > { %v4588_v37 = vmax.f32 %v4587_v62, %v4337_v28  ;;  %v4339_v61 = vmax.f32 %v3937_v15, 0.0  ;;  %v5245_v50 = vadd.f32 %v5244_v12, %v14746_v24  ;;  %v5246_v54 = vpop.f32.mrb[14].mxu1  ;;  %6255 = vmatmul.mubr.bf16.gmra.mrb[136].mxu0 %v16730_v0 }
 0x45c   : > { %v4657_v38 = vmax.f32 %v4656_v51, %v4338_v49  ;;  %v4340_v17 = vmax.f32 %v3939_v44, 0.0  ;;  %v5671_v36 = vmax.f32 %v5243_v8, 0.0  ;;  %v5247_v29 = vadd.f32 %v5246_v54, %v14742_v48  ;;  %v5248_v46 = vpop.f32.mrb[15].mxu1  ;;  %6264 = vmatprep.mubr.bf16.mxu0 %v16714_v47 }
 0x45d   : > { %v4589_v7 = vmax.f32 %v4588_v37, %v4339_v61  ;;  %v5672_v9 = vmax.f32 %v5245_v50, 0.0  ;;  %v5249_v27 = vadd.f32 %v5248_v46, %v14746_v24 }
 0x45e   : > { %v4658_v53 = vmax.f32 %v4657_v38, %v4340_v17  ;;  %v5930_v62 = vmax.f32 %v5929_v40, %v5671_v36  ;;  %v5673_v28 = vmax.f32 %v5247_v29, 0.0  ;;  %v3942_v15 = vpop.f32.mrb[32].mxu0  ;;  %5511 = vmatmul.mubr.bf16.gmra.mrb[120].mxu1 %v14752_v20 }
 0x45f   : > { %v5999_v12 = vmax.f32 %v5998_v52, %v5672_v9  ;;  %v5674_v2 = vmax.f32 %v5249_v27, 0.0  ;;  %v3943_v51 = vadd.f32 %v3942_v15, %v14653_v13  ;;  %v3944_v49 = vpop.f32.mrb[33].mxu0  ;;  %5520 = vmatprep.mubr.bf16.mxu1 %v16714_v47 }
 0x460   : > { %v5931_v44 = vmax.f32 %v5930_v62, %v5673_v28  ;;  %v3945_v8 = vadd.f32 %v3944_v49, %v14657_v16  ;;  %v3946_v37 = vpop.f32.mrb[34].mxu0  ;;  %v16731_v28 = vld [vmem:[#allocation17_spill] sm:$0xff] }
 0x461   : > { %v6000_v61 = vmax.f32 %v5999_v12, %v5674_v2  ;;  %v4341_v50 = vmax.f32 %v3943_v51, 0.0  ;;  %v3947_v54 = vadd.f32 %v3946_v37, %v14653_v13  ;;  %v3948_v40 = vpop.f32.mrb[35].mxu0  ;;  %v5252_v38 = vpop.f32.mrb[16].mxu1 }
 0x462   : > { %v4342_v17 = vmax.f32 %v3945_v8, 0.0  ;;  %v3949_v36 = vadd.f32 %v3948_v40, %v14657_v16  ;;  %v5253_v52 = vadd.f32 %v5252_v38, %v14742_v48  ;;  %v5254_v29 = vpop.f32.mrb[17].mxu1 }
 0x463   : > { %v4590_v46 = vmax.f32 %v4589_v7, %v4341_v50  ;;  %v4343_v9 = vmax.f32 %v3947_v54, 0.0  ;;  %v5255_v27 = vadd.f32 %v5254_v29, %v14746_v24  ;;  %v5256_v62 = vpop.f32.mrb[18].mxu1  ;;  %6265 = vmatmul.mubr.bf16.gmra.mrb[140].mxu0 %v16731_v28 }
 0x464   : > { %v4659_v15 = vmax.f32 %v4658_v53, %v4342_v17  ;;  %v4344_v2 = vmax.f32 %v3949_v36, 0.0  ;;  %v5675_v12 = vmax.f32 %v5253_v52, 0.0  ;;  %v5257_v51 = vadd.f32 %v5256_v62, %v14742_v48  ;;  %v5258_v49 = vpop.f32.mrb[19].mxu1  ;;  %6274 = vmatprep.mubr.bf16.mxu0 %v16714_v47 }
 0x465   : > { %v4591_v8 = vmax.f32 %v4590_v46, %v4343_v9  ;;  %v5676_v37 = vmax.f32 %v5255_v27, 0.0  ;;  %v5259_v40 = vadd.f32 %v5258_v49, %v14746_v24 }
 0x466   : > { %v4660_v38 = vmax.f32 %v4659_v15, %v4344_v2  ;;  %v5932_v7 = vmax.f32 %v5931_v44, %v5675_v12  ;;  %v5677_v50 = vmax.f32 %v5257_v51, 0.0  ;;  %v3952_v54 = vpop.f32.mrb[36].mxu0  ;;  %5521 = vmatmul.mubr.bf16.gmra.mrb[124].mxu1 %v14749_v4 }
 0x467   : > { %v6001_v29 = vmax.f32 %v6000_v61, %v5676_v37  ;;  %v5678_v20 = vmax.f32 %v5259_v40, 0.0  ;;  %v3953_v53 = vadd.f32 %v3952_v54, %v14653_v13  ;;  %v3954_v17 = vpop.f32.mrb[37].mxu0  ;;  %7578 = vmatprep.mubr.bf16.mxu1 %v16714_v47 }
 0x468   : > { %v5933_v36 = vmax.f32 %v5932_v7, %v5677_v50  ;;  %v3955_v52 = vadd.f32 %v3954_v17, %v14657_v16  ;;  %v3956_v46 = vpop.f32.mrb[38].mxu0  ;;  %v16732_v50 = vld [vmem:[#allocation20_spill] sm:$0xff] }
 0x469   : > { %v6002_v9 = vmax.f32 %v6001_v29, %v5678_v20  ;;  %v4345_v27 = vmax.f32 %v3953_v53, 0.0  ;;  %v3957_v62 = vadd.f32 %v3956_v46, %v14653_v13  ;;  %v3958_v44 = vpop.f32.mrb[39].mxu0  ;;  %v5262_v15 = vpop.f32.mrb[20].mxu1 }
 0x46a   : > { %v4346_v2 = vmax.f32 %v3955_v52, 0.0  ;;  %v3959_v12 = vadd.f32 %v3958_v44, %v14657_v16  ;;  %v5263_v61 = vadd.f32 %v5262_v15, %v14742_v48  ;;  %v5264_v51 = vpop.f32.mrb[21].mxu1 }
 0x46b   : > { %v4592_v49 = vmax.f32 %v4591_v8, %v4345_v27  ;;  %v4347_v37 = vmax.f32 %v3957_v62, 0.0  ;;  %v5265_v40 = vadd.f32 %v5264_v51, %v14746_v24  ;;  %v5266_v7 = vpop.f32.mrb[22].mxu1  ;;  %6275 = vmatmul.mubr.bf16.gmra.mrb[144].mxu0 %v16732_v50 }
 0x46c   : > { %v4661_v54 = vmax.f32 %v4660_v38, %v4346_v2  ;;  %v4348_v20 = vmax.f32 %v3959_v12, 0.0  ;;  %v5679_v29 = vmax.f32 %v5263_v61, 0.0  ;;  %v5267_v53 = vadd.f32 %v5266_v7, %v14742_v48  ;;  %v5268_v17 = vpop.f32.mrb[23].mxu1  ;;  %6284 = vmatprep.mubr.bf16.mxu0 %v16714_v47 }
 0x46d   : > { %v4593_v52 = vmax.f32 %v4592_v49, %v4347_v37  ;;  %v5680_v46 = vmax.f32 %v5265_v40, 0.0  ;;  %v5269_v44 = vadd.f32 %v5268_v17, %v14746_v24 }
 0x46e   : > { %v4662_v15 = vmax.f32 %v4661_v54, %v4348_v20  ;;  %v5934_v8 = vmax.f32 %v5933_v36, %v5679_v29  ;;  %v5681_v27 = vmax.f32 %v5267_v53, 0.0  ;;  %v3962_v62 = vpop.f32.mrb[40].mxu0  ;;  %7579 = vmatmul.mubr.bf16.vlgmr.msra.gmra.mrb[128].mxu1 %v16728_v63 }
 0x46f   : > { %v6003_v51 = vmax.f32 %v6002_v9, %v5680_v46  ;;  %v5682_v4 = vmax.f32 %v5269_v44, 0.0  ;;  %v3963_v38 = vadd.f32 %v3962_v62, %v14653_v13  ;;  %v3964_v2 = vpop.f32.mrb[41].mxu0  ;;  %7588 = vmatprep.mubr.bf16.mxu1 %v16714_v47 }
 0x470   : > { %v5935_v12 = vmax.f32 %v5934_v8, %v5681_v27  ;;  %v3965_v61 = vadd.f32 %v3964_v2, %v14657_v16  ;;  %v3966_v49 = vpop.f32.mrb[42].mxu0  ;;  %v16733_v8 = vld [vmem:[#allocation19_spill] sm:$0xff] }
 0x471   : > { %v6004_v37 = vmax.f32 %v6003_v51, %v5682_v4  ;;  %v4349_v40 = vmax.f32 %v3963_v38, 0.0  ;;  %v3967_v7 = vadd.f32 %v3966_v49, %v14653_v13  ;;  %v3968_v36 = vpop.f32.mrb[43].mxu0  ;;  %v5272_v54 = vpop.f32.mrb[24].mxu1 }
 0x472   : > { %v4350_v20 = vmax.f32 %v3965_v61, 0.0  ;;  %v3969_v63 = vadd.f32 %v3968_v36, %v14657_v16  ;;  %v5273_v9 = vadd.f32 %v5272_v54, %v14742_v48  ;;  %v5274_v29 = vpop.f32.mrb[25].mxu1 }
 0x473   : > { %v4594_v53 = vmax.f32 %v4593_v52, %v4349_v40  ;;  %v4351_v17 = vmax.f32 %v3967_v7, 0.0  ;;  %v5275_v46 = vadd.f32 %v5274_v29, %v14746_v24  ;;  %v5276_v44 = vpop.f32.mrb[26].mxu1  ;;  %6285 = vmatmul.mubr.bf16.gmra.mrb[148].mxu0 %v16733_v8 }
 0x474   : > { %v4663_v27 = vmax.f32 %v4662_v15, %v4350_v20  ;;  %v4352_v4 = vmax.f32 %v3969_v63, 0.0  ;;  %v5683_v62 = vmax.f32 %v5273_v9, 0.0  ;;  %v5277_v51 = vadd.f32 %v5276_v44, %v14742_v48  ;;  %v5278_v38 = vpop.f32.mrb[27].mxu1  ;;  %6294 = vmatprep.mubr.bf16.mxu0 %v16714_v47 }
 0x475   : > { %v4595_v2 = vmax.f32 %v4594_v53, %v4351_v17  ;;  %v5684_v61 = vmax.f32 %v5275_v46, 0.0  ;;  %v5279_v49 = vadd.f32 %v5278_v38, %v14746_v24 }
 0x476   : > { %v4664_v36 = vmax.f32 %v4663_v27, %v4352_v4  ;;  %v5936_v52 = vmax.f32 %v5935_v12, %v5683_v62  ;;  %v5685_v40 = vmax.f32 %v5277_v51, 0.0  ;;  %v3972_v7 = vpop.f32.mrb[44].mxu0  ;;  %7589 = vmatmul.mubr.bf16.gmra.mrb[132].mxu1 %v16729_v41 }
 0x477   : > { %v6005_v54 = vmax.f32 %v6004_v37, %v5684_v61  ;;  %v5686_v29 = vmax.f32 %v5279_v49, 0.0  ;;  %v3973_v15 = vadd.f32 %v3972_v7, %v14653_v13  ;;  %v3974_v20 = vpop.f32.mrb[45].mxu0  ;;  %7598 = vmatprep.mubr.bf16.mxu1 %v16714_v47 }
 0x478   : > { %v5937_v63 = vmax.f32 %v5936_v52, %v5685_v40  ;;  %v3975_v9 = vadd.f32 %v3974_v20, %v14657_v16  ;;  %v3976_v53 = vpop.f32.mrb[46].mxu0  ;;  %v16734_v52 = vld [vmem:[#allocation22_spill] sm:$0xff] }
 0x479   : > { %v6006_v17 = vmax.f32 %v6005_v54, %v5686_v29  ;;  %v4353_v46 = vmax.f32 %v3973_v15, 0.0  ;;  %v3977_v44 = vadd.f32 %v3976_v53, %v14653_v13  ;;  %v3978_v12 = vpop.f32.mrb[47].mxu0  ;;  %v5282_v27 = vpop.f32.mrb[28].mxu1 }
 0x47a   : > { %v4354_v4 = vmax.f32 %v3975_v9, 0.0  ;;  %v3979_v41 = vadd.f32 %v3978_v12, %v14657_v16  ;;  %v5283_v37 = vadd.f32 %v5282_v27, %v14742_v48  ;;  %v5284_v62 = vpop.f32.mrb[29].mxu1 }
 0x47b   : > { %v4596_v51 = vmax.f32 %v4595_v2, %v4353_v46  ;;  %v4355_v38 = vmax.f32 %v3977_v44, 0.0  ;;  %v5285_v61 = vadd.f32 %v5284_v62, %v14746_v24  ;;  %v5286_v49 = vpop.f32.mrb[30].mxu1  ;;  %6295 = vmatmul.mubr.bf16.gmra.mrb[152].mxu0 %v16734_v52 }
 0x47c   : > { %v4665_v40 = vmax.f32 %v4664_v36, %v4354_v4  ;;  %v4356_v7 = vmax.f32 %v3979_v41, 0.0  ;;  %v5687_v54 = vmax.f32 %v5283_v37, 0.0  ;;  %v5287_v29 = vadd.f32 %v5286_v49, %v14742_v48  ;;  %v5288_v15 = vpop.f32.mrb[31].mxu1  ;;  %6304 = vmatprep.mubr.bf16.mxu0 %v16714_v47 }
 0x47d   : > { %v4597_v20 = vmax.f32 %v4596_v51, %v4355_v38  ;;  %v5688_v9 = vmax.f32 %v5285_v61, 0.0  ;;  %v5289_v53 = vadd.f32 %v5288_v15, %v14746_v24 }
 0x47e   : > { %v4666_v12 = vmax.f32 %v4665_v40, %v4356_v7  ;;  %v5938_v2 = vmax.f32 %v5937_v63, %v5687_v54  ;;  %v5689_v46 = vmax.f32 %v5287_v29, 0.0  ;;  %v3982_v44 = vpop.f32.mrb[48].mxu0  ;;  %7599 = vmatmul.mubr.bf16.gmra.mrb[136].mxu1 %v16730_v0 }
 0x47f   : > { %v6007_v27 = vmax.f32 %v6006_v17, %v5688_v9  ;;  %v5690_v62 = vmax.f32 %v5289_v53, 0.0  ;;  %v3983_v36 = vadd.f32 %v3982_v44, %v14653_v13  ;;  %v3984_v4 = vpop.f32.mrb[49].mxu0  ;;  %7608 = vmatprep.mubr.bf16.mxu1 %v16714_v47 }
 0x480   : > { %v5939_v41 = vmax.f32 %v5938_v2, %v5689_v46  ;;  %v3985_v37 = vadd.f32 %v3984_v4, %v14657_v16  ;;  %v3986_v51 = vpop.f32.mrb[50].mxu0  ;;  %v16735_v2 = vld [vmem:[#allocation21_spill] sm:$0xff] }
 0x481   : > { %v6008_v38 = vmax.f32 %v6007_v27, %v5690_v62  ;;  %v4357_v61 = vmax.f32 %v3983_v36, 0.0  ;;  %v3987_v49 = vadd.f32 %v3986_v51, %v14653_v13  ;;  %v3988_v63 = vpop.f32.mrb[51].mxu0  ;;  %v5292_v40 = vpop.f32.mrb[32].mxu1 }
 0x482   : > { %v4358_v7 = vmax.f32 %v3985_v37, 0.0  ;;  %v3989_v0 = vadd.f32 %v3988_v63, %v14657_v16  ;;  %v5293_v17 = vadd.f32 %v5292_v40, %v14742_v48  ;;  %v5294_v54 = vpop.f32.mrb[33].mxu1 }
 0x483   : > { %v4598_v29 = vmax.f32 %v4597_v20, %v4357_v61  ;;  %v4359_v15 = vmax.f32 %v3987_v49, 0.0  ;;  %v5295_v9 = vadd.f32 %v5294_v54, %v14746_v24  ;;  %v5296_v53 = vpop.f32.mrb[34].mxu1  ;;  %6305 = vmatmul.mubr.bf16.gmra.mrb[156].mxu0 %v16735_v2 }
 0x484   : > { %v4667_v46 = vmax.f32 %v4666_v12, %v4358_v7  ;;  %v4360_v44 = vmax.f32 %v3989_v0, 0.0  ;;  %v5691_v27 = vmax.f32 %v5293_v17, 0.0  ;;  %v5297_v62 = vadd.f32 %v5296_v53, %v14742_v48  ;;  %v5298_v36 = vpop.f32.mrb[35].mxu1  ;;  %6314 = vmatprep.mubr.bf16.mxu0 %v16714_v47 }
 0x485   : > { %v4599_v4 = vmax.f32 %v4598_v29, %v4359_v15  ;;  %v5692_v37 = vmax.f32 %v5295_v9, 0.0  ;;  %v5299_v51 = vadd.f32 %v5298_v36, %v14746_v24 }
 0x486   : > { %v4668_v63 = vmax.f32 %v4667_v46, %v4360_v44  ;;  %v5940_v20 = vmax.f32 %v5939_v41, %v5691_v27  ;;  %v5693_v61 = vmax.f32 %v5297_v62, 0.0  ;;  %v3992_v49 = vpop.f32.mrb[52].mxu0  ;;  %7609 = vmatmul.mubr.bf16.gmra.mrb[140].mxu1 %v16731_v28 }
 0x487   : > { %v6009_v40 = vmax.f32 %v6008_v38, %v5692_v37  ;;  %v5694_v54 = vmax.f32 %v5299_v51, 0.0  ;;  %v3993_v12 = vadd.f32 %v3992_v49, %v14653_v13  ;;  %v3994_v7 = vpop.f32.mrb[53].mxu0  ;;  %7618 = vmatprep.mubr.bf16.mxu1 %v16714_v47 }
 0x488   : > { %v5941_v0 = vmax.f32 %v5940_v20, %v5693_v61  ;;  %v3995_v17 = vadd.f32 %v3994_v7, %v14657_v16  ;;  %v3996_v29 = vpop.f32.mrb[54].mxu0  ;;  %v16736_v20 = vld [vmem:[#allocation24_spill] sm:$0xff] }
 0x489   : > { %v6010_v15 = vmax.f32 %v6009_v40, %v5694_v54  ;;  %v4361_v9 = vmax.f32 %v3993_v12, 0.0  ;;  %v3997_v53 = vadd.f32 %v3996_v29, %v14653_v13  ;;  %v3998_v41 = vpop.f32.mrb[55].mxu0  ;;  %v5302_v46 = vpop.f32.mrb[36].mxu1 }
 0x48a   : > { %v4362_v44 = vmax.f32 %v3995_v17, 0.0  ;;  %v3999_v28 = vadd.f32 %v3998_v41, %v14657_v16  ;;  %v5303_v38 = vadd.f32 %v5302_v46, %v14742_v48  ;;  %v5304_v27 = vpop.f32.mrb[37].mxu1 }
 0x48b   : > { %v4600_v62 = vmax.f32 %v4599_v4, %v4361_v9  ;;  %v4363_v36 = vmax.f32 %v3997_v53, 0.0  ;;  %v5305_v37 = vadd.f32 %v5304_v27, %v14746_v24  ;;  %v5306_v51 = vpop.f32.mrb[38].mxu1  ;;  %6315 = vmatmul.mubr.bf16.gmra.mrb[160].mxu0 %v16736_v20 }
 0x48c   : > { %v4669_v61 = vmax.f32 %v4668_v63, %v4362_v44  ;;  %v4364_v49 = vmax.f32 %v3999_v28, 0.0  ;;  %v5695_v40 = vmax.f32 %v5303_v38, 0.0  ;;  %v5307_v54 = vadd.f32 %v5306_v51, %v14742_v48  ;;  %v5308_v12 = vpop.f32.mrb[39].mxu1  ;;  %6324 = vmatprep.mubr.bf16.mxu0 %v16714_v47 }
 0x48d   : > { %v4601_v7 = vmax.f32 %v4600_v62, %v4363_v36  ;;  %v5696_v17 = vmax.f32 %v5305_v37, 0.0  ;;  %v5309_v29 = vadd.f32 %v5308_v12, %v14746_v24 }
 0x48e   : > { %v4670_v41 = vmax.f32 %v4669_v61, %v4364_v49  ;;  %v5942_v4 = vmax.f32 %v5941_v0, %v5695_v40  ;;  %v5697_v9 = vmax.f32 %v5307_v54, 0.0  ;;  %v4002_v53 = vpop.f32.mrb[56].mxu0  ;;  %7619 = vmatmul.mubr.bf16.gmra.mrb[144].mxu1 %v16732_v50 }
 0x48f   : > { %v6011_v46 = vmax.f32 %v6010_v15, %v5696_v17  ;;  %v5698_v27 = vmax.f32 %v5309_v29, 0.0  ;;  %v4003_v63 = vadd.f32 %v4002_v53, %v14653_v13  ;;  %v4004_v44 = vpop.f32.mrb[57].mxu0  ;;  %7628 = vmatprep.mubr.bf16.mxu1 %v16714_v47 }
 0x490   : > { %v5943_v28 = vmax.f32 %v5942_v4, %v5697_v9  ;;  %v4005_v38 = vadd.f32 %v4004_v44, %v14657_v16  ;;  %v4006_v62 = vpop.f32.mrb[58].mxu0  ;;  %v16737_v4 = vld [vmem:[#allocation23_spill] sm:$0xff] }
 0x491   : > { %v6012_v36 = vmax.f32 %v6011_v46, %v5698_v27  ;;  %v4365_v37 = vmax.f32 %v4003_v63, 0.0  ;;  %v4007_v51 = vadd.f32 %v4006_v62, %v14653_v13  ;;  %v4008_v0 = vpop.f32.mrb[59].mxu0  ;;  %v5312_v61 = vpop.f32.mrb[40].mxu1 }
 0x492   : > { %v4366_v49 = vmax.f32 %v4005_v38, 0.0  ;;  %v4009_v50 = vadd.f32 %v4008_v0, %v14657_v16  ;;  %v5313_v15 = vadd.f32 %v5312_v61, %v14742_v48  ;;  %v5314_v40 = vpop.f32.mrb[41].mxu1 }
 0x493   : > { %v4602_v54 = vmax.f32 %v4601_v7, %v4365_v37  ;;  %v4367_v12 = vmax.f32 %v4007_v51, 0.0  ;;  %v5315_v17 = vadd.f32 %v5314_v40, %v14746_v24  ;;  %v5316_v29 = vpop.f32.mrb[42].mxu1  ;;  %6325 = vmatmul.mubr.bf16.gmra.mrb[164].mxu0 %v16737_v4 }
 0x494   : > { %v4671_v9 = vmax.f32 %v4670_v41, %v4366_v49  ;;  %v4368_v53 = vmax.f32 %v4009_v50, 0.0  ;;  %v5699_v46 = vmax.f32 %v5313_v15, 0.0  ;;  %v5317_v27 = vadd.f32 %v5316_v29, %v14742_v48  ;;  %v5318_v63 = vpop.f32.mrb[43].mxu1  ;;  %6334 = vmatprep.mubr.bf16.mxu0 %v16714_v47 }
 0x495   : > { %v4603_v44 = vmax.f32 %v4602_v54, %v4367_v12  ;;  %v5700_v38 = vmax.f32 %v5315_v17, 0.0  ;;  %v5319_v62 = vadd.f32 %v5318_v63, %v14746_v24 }
 0x496   : > { %v4672_v0 = vmax.f32 %v4671_v9, %v4368_v53  ;;  %v5944_v7 = vmax.f32 %v5943_v28, %v5699_v46  ;;  %v5701_v37 = vmax.f32 %v5317_v27, 0.0  ;;  %v4012_v51 = vpop.f32.mrb[60].mxu0  ;;  %7629 = vmatmul.mubr.bf16.gmra.mrb[148].mxu1 %v16733_v8 }
 0x497   : > { %v6013_v61 = vmax.f32 %v6012_v36, %v5700_v38  ;;  %v5702_v40 = vmax.f32 %v5319_v62, 0.0  ;;  %v4013_v41 = vadd.f32 %v4012_v51, %v14653_v13  ;;  %v4014_v49 = vpop.f32.mrb[61].mxu0  ;;  %7638 = vmatprep.mubr.bf16.mxu1 %v16714_v47 }
 0x498   : > { %v5945_v50 = vmax.f32 %v5944_v7, %v5701_v37  ;;  %v4015_v15 = vadd.f32 %v4014_v49, %v14657_v16  ;;  %v4016_v54 = vpop.f32.mrb[62].mxu0  ;;  %v16738_v7 = vld [vmem:[#allocation26_spill] sm:$0xff] }
 0x499   : > { %v6014_v12 = vmax.f32 %v6013_v61, %v5702_v40  ;;  %v4369_v17 = vmax.f32 %v4013_v41, 0.0  ;;  %v4017_v29 = vadd.f32 %v4016_v54, %v14653_v13  ;;  %v4018_v28 = vpop.f32.mrb[63].mxu0  ;;  %v5322_v9 = vpop.f32.mrb[44].mxu1 }
 0x49a   : > { %v4370_v53 = vmax.f32 %v4015_v15, 0.0  ;;  %v4019_v8 = vadd.f32 %v4018_v28, %v14657_v16  ;;  %v5323_v36 = vadd.f32 %v5322_v9, %v14742_v48  ;;  %v5324_v46 = vpop.f32.mrb[45].mxu1 }
 0x49b   : > { %v4604_v27 = vmax.f32 %v4603_v44, %v4369_v17  ;;  %v4371_v63 = vmax.f32 %v4017_v29, 0.0  ;;  %v5325_v38 = vadd.f32 %v5324_v46, %v14746_v24  ;;  %v5326_v62 = vpop.f32.mrb[46].mxu1  ;;  %6335 = vmatmul.mubr.bf16.gmra.mrb[168].mxu0 %v16738_v7 }
 0x49c   : > { %v4673_v37 = vmax.f32 %v4672_v0, %v4370_v53  ;;  %v4372_v51 = vmax.f32 %v4019_v8, 0.0  ;;  %v5703_v61 = vmax.f32 %v5323_v36, 0.0  ;;  %v5327_v40 = vadd.f32 %v5326_v62, %v14742_v48  ;;  %v5328_v41 = vpop.f32.mrb[47].mxu1  ;;  %6344 = vmatprep.mubr.bf16.mxu0 %v16714_v47 }
 0x49d   : > { %v4605_v49 = vmax.f32 %v4604_v27, %v4371_v63  ;;  %v5704_v15 = vmax.f32 %v5325_v38, 0.0  ;;  %v5329_v54 = vadd.f32 %v5328_v41, %v14746_v24 }
 0x49e   : > { %v4674_v28 = vmax.f32 %v4673_v37, %v4372_v51  ;;  %v5946_v44 = vmax.f32 %v5945_v50, %v5703_v61  ;;  %v5705_v17 = vmax.f32 %v5327_v40, 0.0  ;;  %v4022_v29 = vpop.f32.mrb[64].mxu0  ;;  %7639 = vmatmul.mubr.bf16.gmra.mrb[152].mxu1 %v16734_v52 }
 0x49f   : > { %v6015_v9 = vmax.f32 %v6014_v12, %v5704_v15  ;;  %v5706_v46 = vmax.f32 %v5329_v54, 0.0  ;;  %v4023_v0 = vadd.f32 %v4022_v29, %v14653_v13  ;;  %v4024_v53 = vpop.f32.mrb[65].mxu0  ;;  %7648 = vmatprep.mubr.bf16.mxu1 %v16714_v47 }
 0x4a0   : > { %v5947_v8 = vmax.f32 %v5946_v44, %v5705_v17  ;;  %v4025_v36 = vadd.f32 %v4024_v53, %v14657_v16  ;;  %v4026_v27 = vpop.f32.mrb[66].mxu0  ;;  %v16739_v44 = vld [vmem:[#allocation25_spill] sm:$0xff] }
 0x4a1   : > { %v6016_v63 = vmax.f32 %v6015_v9, %v5706_v46  ;;  %v4373_v38 = vmax.f32 %v4023_v0, 0.0  ;;  %v4027_v62 = vadd.f32 %v4026_v27, %v14653_v13  ;;  %v4028_v50 = vpop.f32.mrb[67].mxu0  ;;  %v5332_v37 = vpop.f32.mrb[48].mxu1 }
 0x4a2   : > { %v4374_v51 = vmax.f32 %v4025_v36, 0.0  ;;  %v4029_v52 = vadd.f32 %v4028_v50, %v14657_v16  ;;  %v5333_v12 = vadd.f32 %v5332_v37, %v14742_v48  ;;  %v5334_v61 = vpop.f32.mrb[49].mxu1 }
 0x4a3   : > { %v4606_v40 = vmax.f32 %v4605_v49, %v4373_v38  ;;  %v4375_v41 = vmax.f32 %v4027_v62, 0.0  ;;  %v5335_v15 = vadd.f32 %v5334_v61, %v14746_v24  ;;  %v5336_v54 = vpop.f32.mrb[50].mxu1  ;;  %6345 = vmatmul.mubr.bf16.gmra.mrb[172].mxu0 %v16739_v44 }
 0x4a4   : > { %v4675_v17 = vmax.f32 %v4674_v28, %v4374_v51  ;;  %v4376_v29 = vmax.f32 %v4029_v52, 0.0  ;;  %v5707_v9 = vmax.f32 %v5333_v12, 0.0  ;;  %v5337_v46 = vadd.f32 %v5336_v54, %v14742_v48  ;;  %v5338_v0 = vpop.f32.mrb[51].mxu1  ;;  %6354 = vmatprep.mubr.bf16.mxu0 %v16714_v47 }
 0x4a5   : > { %v4607_v53 = vmax.f32 %v4606_v40, %v4375_v41  ;;  %v5708_v36 = vmax.f32 %v5335_v15, 0.0  ;;  %v5339_v27 = vadd.f32 %v5338_v0, %v14746_v24 }
 0x4a6   : > { %v4676_v50 = vmax.f32 %v4675_v17, %v4376_v29  ;;  %v5948_v49 = vmax.f32 %v5947_v8, %v5707_v9  ;;  %v5709_v38 = vmax.f32 %v5337_v46, 0.0  ;;  %v4032_v62 = vpop.f32.mrb[68].mxu0  ;;  %7649 = vmatmul.mubr.bf16.gmra.mrb[156].mxu1 %v16735_v2 }
 0x4a7   : > { %v6017_v37 = vmax.f32 %v6016_v63, %v5708_v36  ;;  %v5710_v61 = vmax.f32 %v5339_v27, 0.0  ;;  %v4033_v28 = vadd.f32 %v4032_v62, %v14653_v13  ;;  %v4034_v51 = vpop.f32.mrb[69].mxu0  ;;  %7658 = vmatprep.mubr.bf16.mxu1 %v16714_v47 }
 0x4a8   : > { %v5949_v52 = vmax.f32 %v5948_v49, %v5709_v38  ;;  %v4035_v12 = vadd.f32 %v4034_v51, %v14657_v16  ;;  %v4036_v40 = vpop.f32.mrb[70].mxu0  ;;  %v16740_v49 = vld [vmem:[#allocation28_spill] sm:$0xff] }
 0x4a9   : > { %v6018_v41 = vmax.f32 %v6017_v37, %v5710_v61  ;;  %v4377_v15 = vmax.f32 %v4033_v28, 0.0  ;;  %v4037_v54 = vadd.f32 %v4036_v40, %v14653_v13  ;;  %v4038_v8 = vpop.f32.mrb[71].mxu0  ;;  %v5342_v17 = vpop.f32.mrb[52].mxu1 }
 0x4aa   : > { %v4378_v29 = vmax.f32 %v4035_v12, 0.0  ;;  %v4039_v2 = vadd.f32 %v4038_v8, %v14657_v16  ;;  %v5343_v63 = vadd.f32 %v5342_v17, %v14742_v48  ;;  %v5344_v9 = vpop.f32.mrb[53].mxu1 }
 0x4ab   : > { %v4608_v46 = vmax.f32 %v4607_v53, %v4377_v15  ;;  %v4379_v0 = vmax.f32 %v4037_v54, 0.0  ;;  %v5345_v36 = vadd.f32 %v5344_v9, %v14746_v24  ;;  %v5346_v27 = vpop.f32.mrb[54].mxu1  ;;  %6355 = vmatmul.mubr.bf16.gmra.mrb[176].mxu0 %v16740_v49 }
 0x4ac   : > { %v4677_v38 = vmax.f32 %v4676_v50, %v4378_v29  ;;  %v4380_v62 = vmax.f32 %v4039_v2, 0.0  ;;  %v5711_v37 = vmax.f32 %v5343_v63, 0.0  ;;  %v5347_v61 = vadd.f32 %v5346_v27, %v14742_v48  ;;  %v5348_v28 = vpop.f32.mrb[55].mxu1  ;;  %6364 = vmatprep.mubr.bf16.mxu0 %v16714_v47 }
 0x4ad   : > { %v4609_v51 = vmax.f32 %v4608_v46, %v4379_v0  ;;  %v5712_v12 = vmax.f32 %v5345_v36, 0.0  ;;  %v5349_v40 = vadd.f32 %v5348_v28, %v14746_v24 }
 0x4ae   : > { %v4678_v8 = vmax.f32 %v4677_v38, %v4380_v62  ;;  %v5950_v53 = vmax.f32 %v5949_v52, %v5711_v37  ;;  %v5713_v15 = vmax.f32 %v5347_v61, 0.0  ;;  %v4042_v54 = vpop.f32.mrb[72].mxu0  ;;  %7659 = vmatmul.mubr.bf16.gmra.mrb[160].mxu1 %v16736_v20 }
 0x4af   : > { %v6019_v17 = vmax.f32 %v6018_v41, %v5712_v12  ;;  %v5714_v9 = vmax.f32 %v5349_v40, 0.0  ;;  %v4043_v50 = vadd.f32 %v4042_v54, %v14653_v13  ;;  %v4044_v29 = vpop.f32.mrb[73].mxu0  ;;  %7668 = vmatprep.mubr.bf16.mxu1 %v16714_v47 }
 0x4b0   : > { %v5951_v2 = vmax.f32 %v5950_v53, %v5713_v15  ;;  %v4045_v63 = vadd.f32 %v4044_v29, %v14657_v16  ;;  %v4046_v46 = vpop.f32.mrb[74].mxu0  ;;  %v16741_v53 = vld [vmem:[#allocation27_spill] sm:$0xff] }
 0x4b1   : > { %v6020_v0 = vmax.f32 %v6019_v17, %v5714_v9  ;;  %v4381_v36 = vmax.f32 %v4043_v50, 0.0  ;;  %v4047_v27 = vadd.f32 %v4046_v46, %v14653_v13  ;;  %v4048_v52 = vpop.f32.mrb[75].mxu0  ;;  %v5352_v38 = vpop.f32.mrb[56].mxu1 }
 0x4b2   : > { %v4382_v62 = vmax.f32 %v4045_v63, 0.0  ;;  %v4049_v20 = vadd.f32 %v4048_v52, %v14657_v16  ;;  %v5353_v41 = vadd.f32 %v5352_v38, %v14742_v48  ;;  %v5354_v37 = vpop.f32.mrb[57].mxu1 }
 0x4b3   : > { %v4610_v61 = vmax.f32 %v4609_v51, %v4381_v36  ;;  %v4383_v28 = vmax.f32 %v4047_v27, 0.0  ;;  %v5355_v12 = vadd.f32 %v5354_v37, %v14746_v24  ;;  %v5356_v40 = vpop.f32.mrb[58].mxu1  ;;  %6365 = vmatmul.mubr.bf16.gmra.mrb[180].mxu0 %v16741_v53 }
 0x4b4   : > { %v4679_v15 = vmax.f32 %v4678_v8, %v4382_v62  ;;  %v4384_v54 = vmax.f32 %v4049_v20, 0.0  ;;  %v5715_v17 = vmax.f32 %v5353_v41, 0.0  ;;  %v5357_v9 = vadd.f32 %v5356_v40, %v14742_v48  ;;  %v5358_v50 = vpop.f32.mrb[59].mxu1  ;;  %6374 = vmatprep.mubr.bf16.mxu0 %v16714_v47 }
 0x4b5   : > { %v4611_v29 = vmax.f32 %v4610_v61, %v4383_v28  ;;  %v5716_v63 = vmax.f32 %v5355_v12, 0.0  ;;  %v5359_v46 = vadd.f32 %v5358_v50, %v14746_v24 }
 0x4b6   : > { %v4680_v52 = vmax.f32 %v4679_v15, %v4384_v54  ;;  %v5952_v51 = vmax.f32 %v5951_v2, %v5715_v17  ;;  %v5717_v36 = vmax.f32 %v5357_v9, 0.0  ;;  %v4052_v27 = vpop.f32.mrb[76].mxu0  ;;  %7669 = vmatmul.mubr.bf16.gmra.mrb[164].mxu1 %v16737_v4 }
 0x4b7   : > { %v6021_v38 = vmax.f32 %v6020_v0, %v5716_v63  ;;  %v5718_v37 = vmax.f32 %v5359_v46, 0.0  ;;  %v4053_v8 = vadd.f32 %v4052_v27, %v14653_v13  ;;  %v4054_v62 = vpop.f32.mrb[77].mxu0  ;;  %7678 = vmatprep.mubr.bf16.mxu1 %v16714_v47 }
 0x4b8   : > { %v5953_v20 = vmax.f32 %v5952_v51, %v5717_v36  ;;  %v4055_v41 = vadd.f32 %v4054_v62, %v14657_v16  ;;  %v4056_v61 = vpop.f32.mrb[78].mxu0  ;;  %v16742_v51 = vld [vmem:[#allocation30_spill] sm:$0xff] }
 0x4b9   : > { %v6022_v28 = vmax.f32 %v6021_v38, %v5718_v37  ;;  %v4385_v12 = vmax.f32 %v4053_v8, 0.0  ;;  %v4057_v40 = vadd.f32 %v4056_v61, %v14653_v13  ;;  %v4058_v2 = vpop.f32.mrb[79].mxu0  ;;  %v5362_v15 = vpop.f32.mrb[60].mxu1 }
 0x4ba   : > { %v4386_v54 = vmax.f32 %v4055_v41, 0.0  ;;  %v4059_v4 = vadd.f32 %v4058_v2, %v14657_v16  ;;  %v5363_v0 = vadd.f32 %v5362_v15, %v14742_v48  ;;  %v5364_v17 = vpop.f32.mrb[61].mxu1 }
 0x4bb   : > { %v4612_v9 = vmax.f32 %v4611_v29, %v4385_v12  ;;  %v4387_v50 = vmax.f32 %v4057_v40, 0.0  ;;  %v5365_v63 = vadd.f32 %v5364_v17, %v14746_v24  ;;  %v5366_v46 = vpop.f32.mrb[62].mxu1  ;;  %6375 = vmatmul.mubr.bf16.gmra.mrb[184].mxu0 %v16742_v51 }
 0x4bc   : > { %v4681_v36 = vmax.f32 %v4680_v52, %v4386_v54  ;;  %v4388_v27 = vmax.f32 %v4059_v4, 0.0  ;;  %v5719_v38 = vmax.f32 %v5363_v0, 0.0  ;;  %v5367_v37 = vadd.f32 %v5366_v46, %v14742_v48  ;;  %v5368_v8 = vpop.f32.mrb[63].mxu1  ;;  %6384 = vmatprep.mubr.bf16.mxu0 %v16714_v47 }
 0x4bd   : > { %v4613_v62 = vmax.f32 %v4612_v9, %v4387_v50  ;;  %v5720_v41 = vmax.f32 %v5365_v63, 0.0  ;;  %v5369_v61 = vadd.f32 %v5368_v8, %v14746_v24 }
 0x4be   : > { %v4682_v2 = vmax.f32 %v4681_v36, %v4388_v27  ;;  %v5954_v29 = vmax.f32 %v5953_v20, %v5719_v38  ;;  %v5721_v12 = vmax.f32 %v5367_v37, 0.0  ;;  %v4062_v40 = vpop.f32.mrb[80].mxu0  ;;  %7679 = vmatmul.mubr.bf16.gmra.mrb[168].mxu1 %v16738_v7 }
 0x4bf   : > { %v6023_v15 = vmax.f32 %v6022_v28, %v5720_v41  ;;  %v5722_v17 = vmax.f32 %v5369_v61, 0.0  ;;  %v4063_v52 = vadd.f32 %v4062_v40, %v14653_v13  ;;  %v4064_v54 = vpop.f32.mrb[81].mxu0  ;;  %7688 = vmatprep.mubr.bf16.mxu1 %v16714_v47 }
 0x4c0   : > { %v5955_v4 = vmax.f32 %v5954_v29, %v5721_v12  ;;  %v4065_v0 = vadd.f32 %v4064_v54, %v14657_v16  ;;  %v4066_v9 = vpop.f32.mrb[82].mxu0  ;;  %v16743_v29 = vld [vmem:[#allocation29_spill] sm:$0xff] }
 0x4c1   : > { %v6024_v50 = vmax.f32 %v6023_v15, %v5722_v17  ;;  %v4389_v63 = vmax.f32 %v4063_v52, 0.0  ;;  %v4067_v46 = vadd.f32 %v4066_v9, %v14653_v13  ;;  %v4068_v20 = vpop.f32.mrb[83].mxu0  ;;  %v5372_v36 = vpop.f32.mrb[64].mxu1 }
 0x4c2   : > { %v4390_v27 = vmax.f32 %v4065_v0, 0.0  ;;  %v4069_v7 = vadd.f32 %v4068_v20, %v14657_v16  ;;  %v5373_v28 = vadd.f32 %v5372_v36, %v14742_v48  ;;  %v5374_v38 = vpop.f32.mrb[65].mxu1 }
 0x4c3   : > { %v4614_v37 = vmax.f32 %v4613_v62, %v4389_v63  ;;  %v4391_v8 = vmax.f32 %v4067_v46, 0.0  ;;  %v5375_v41 = vadd.f32 %v5374_v38, %v14746_v24  ;;  %v5376_v61 = vpop.f32.mrb[66].mxu1  ;;  %6385 = vmatmul.mubr.bf16.gmra.mrb[188].mxu0 %v16743_v29 }
 0x4c4   : > { %v4683_v12 = vmax.f32 %v4682_v2, %v4390_v27  ;;  %v4392_v40 = vmax.f32 %v4069_v7, 0.0  ;;  %v5723_v15 = vmax.f32 %v5373_v28, 0.0  ;;  %v5377_v17 = vadd.f32 %v5376_v61, %v14742_v48  ;;  %v5378_v52 = vpop.f32.mrb[67].mxu1  ;;  %6394 = vmatprep.mubr.bf16.mxu0 %v16714_v47 }
 0x4c5   : > { %v4615_v54 = vmax.f32 %v4614_v37, %v4391_v8  ;;  %v5724_v0 = vmax.f32 %v5375_v41, 0.0  ;;  %v5379_v9 = vadd.f32 %v5378_v52, %v14746_v24 }
 0x4c6   : > { %v4684_v20 = vmax.f32 %v4683_v12, %v4392_v40  ;;  %v5956_v62 = vmax.f32 %v5955_v4, %v5723_v15  ;;  %v5725_v63 = vmax.f32 %v5377_v17, 0.0  ;;  %v4072_v46 = vpop.f32.mrb[84].mxu0  ;;  %7689 = vmatmul.mubr.bf16.gmra.mrb[172].mxu1 %v16739_v44 }
 0x4c7   : > { %v6025_v36 = vmax.f32 %v6024_v50, %v5724_v0  ;;  %v5726_v38 = vmax.f32 %v5379_v9, 0.0  ;;  %v4073_v2 = vadd.f32 %v4072_v46, %v14653_v13  ;;  %v4074_v27 = vpop.f32.mrb[85].mxu0  ;;  %7698 = vmatprep.mubr.bf16.mxu1 %v16714_v47 }
 0x4c8   : > { %v5957_v7 = vmax.f32 %v5956_v62, %v5725_v63  ;;  %v4075_v28 = vadd.f32 %v4074_v27, %v14657_v16  ;;  %v4076_v37 = vpop.f32.mrb[86].mxu0  ;;  %v16744_v62 = vld [vmem:[#allocation32_spill] sm:$0xff] }
 0x4c9   : > { %v6026_v8 = vmax.f32 %v6025_v36, %v5726_v38  ;;  %v4393_v41 = vmax.f32 %v4073_v2, 0.0  ;;  %v4077_v61 = vadd.f32 %v4076_v37, %v14653_v13  ;;  %v4078_v4 = vpop.f32.mrb[87].mxu0  ;;  %v5382_v12 = vpop.f32.mrb[68].mxu1 }
 0x4ca   : > { %v4394_v40 = vmax.f32 %v4075_v28, 0.0  ;;  %v4079_v44 = vadd.f32 %v4078_v4, %v14657_v16  ;;  %v5383_v50 = vadd.f32 %v5382_v12, %v14742_v48  ;;  %v5384_v15 = vpop.f32.mrb[69].mxu1 }
 0x4cb   : > { %v4616_v17 = vmax.f32 %v4615_v54, %v4393_v41  ;;  %v4395_v52 = vmax.f32 %v4077_v61, 0.0  ;;  %v5385_v0 = vadd.f32 %v5384_v15, %v14746_v24  ;;  %v5386_v9 = vpop.f32.mrb[70].mxu1  ;;  %6395 = vmatmul.mubr.bf16.gmra.mrb[192].mxu0 %v16744_v62 }
 0x4cc   : > { %v4685_v63 = vmax.f32 %v4684_v20, %v4394_v40  ;;  %v4396_v46 = vmax.f32 %v4079_v44, 0.0  ;;  %v5727_v36 = vmax.f32 %v5383_v50, 0.0  ;;  %v5387_v38 = vadd.f32 %v5386_v9, %v14742_v48  ;;  %v5388_v2 = vpop.f32.mrb[71].mxu1  ;;  %6404 = vmatprep.mubr.bf16.mxu0 %v16714_v47 }
 0x4cd   : > { %v4617_v27 = vmax.f32 %v4616_v17, %v4395_v52  ;;  %v5728_v28 = vmax.f32 %v5385_v0, 0.0  ;;  %v5389_v37 = vadd.f32 %v5388_v2, %v14746_v24 }
 0x4ce   : > { %v4686_v4 = vmax.f32 %v4685_v63, %v4396_v46  ;;  %v5958_v54 = vmax.f32 %v5957_v7, %v5727_v36  ;;  %v5729_v41 = vmax.f32 %v5387_v38, 0.0  ;;  %v4082_v61 = vpop.f32.mrb[88].mxu0  ;;  %7699 = vmatmul.mubr.bf16.gmra.mrb[176].mxu1 %v16740_v49 }
 0x4cf   : > { %v6027_v12 = vmax.f32 %v6026_v8, %v5728_v28  ;;  %v5730_v15 = vmax.f32 %v5389_v37, 0.0  ;;  %v4083_v20 = vadd.f32 %v4082_v61, %v14653_v13  ;;  %v4084_v40 = vpop.f32.mrb[89].mxu0  ;;  %7708 = vmatprep.mubr.bf16.mxu1 %v16714_v47 }
 0x4d0   : > { %v5959_v44 = vmax.f32 %v5958_v54, %v5729_v41  ;;  %v4085_v50 = vadd.f32 %v4084_v40, %v14657_v16  ;;  %v4086_v17 = vpop.f32.mrb[90].mxu0  ;;  %v16745_v54 = vld [vmem:[#allocation31_spill] sm:$0xff] }
 0x4d1   : > { %v6028_v52 = vmax.f32 %v6027_v12, %v5730_v15  ;;  %v4397_v0 = vmax.f32 %v4083_v20, 0.0  ;;  %v4087_v9 = vadd.f32 %v4086_v17, %v14653_v13  ;;  %v4088_v7 = vpop.f32.mrb[91].mxu0  ;;  %v5392_v63 = vpop.f32.mrb[72].mxu1 }
 0x4d2   : > { %v4398_v46 = vmax.f32 %v4085_v50, 0.0  ;;  %v4089_v49 = vadd.f32 %v4088_v7, %v14657_v16  ;;  %v5393_v8 = vadd.f32 %v5392_v63, %v14742_v48  ;;  %v5394_v36 = vpop.f32.mrb[73].mxu1 }
 0x4d3   : > { %v4618_v38 = vmax.f32 %v4617_v27, %v4397_v0  ;;  %v4399_v2 = vmax.f32 %v4087_v9, 0.0  ;;  %v5395_v28 = vadd.f32 %v5394_v36, %v14746_v24  ;;  %v5396_v37 = vpop.f32.mrb[74].mxu1  ;;  %6405 = vmatmul.mubr.bf16.gmra.mrb[196].mxu0 %v16745_v54 }
 0x4d4   : > { %v4687_v41 = vmax.f32 %v4686_v4, %v4398_v46  ;;  %v4400_v61 = vmax.f32 %v4089_v49, 0.0  ;;  %v5731_v12 = vmax.f32 %v5393_v8, 0.0  ;;  %v5397_v15 = vadd.f32 %v5396_v37, %v14742_v48  ;;  %v5398_v20 = vpop.f32.mrb[75].mxu1  ;;  %6414 = vmatprep.mubr.bf16.mxu0 %v16714_v47 }
 0x4d5   : > { %v4619_v40 = vmax.f32 %v4618_v38, %v4399_v2  ;;  %v5732_v50 = vmax.f32 %v5395_v28, 0.0  ;;  %v5399_v17 = vadd.f32 %v5398_v20, %v14746_v24 }
 0x4d6   : > { %v4688_v7 = vmax.f32 %v4687_v41, %v4400_v61  ;;  %v5960_v27 = vmax.f32 %v5959_v44, %v5731_v12  ;;  %v5733_v0 = vmax.f32 %v5397_v15, 0.0  ;;  %v4092_v9 = vpop.f32.mrb[92].mxu0  ;;  %7709 = vmatmul.mubr.bf16.gmra.mrb[180].mxu1 %v16741_v53 }
 0x4d7   : > { %v6029_v63 = vmax.f32 %v6028_v52, %v5732_v50  ;;  %v5734_v36 = vmax.f32 %v5399_v17, 0.0  ;;  %v4093_v4 = vadd.f32 %v4092_v9, %v14653_v13  ;;  %v4094_v46 = vpop.f32.mrb[93].mxu0  ;;  %7718 = vmatprep.mubr.bf16.mxu1 %v16714_v47 }
 0x4d8   : > { %v5961_v49 = vmax.f32 %v5960_v27, %v5733_v0  ;;  %v4095_v8 = vadd.f32 %v4094_v46, %v14657_v16  ;;  %v4096_v38 = vpop.f32.mrb[94].mxu0  ;;  %v16746_v27 = vld [vmem:[#allocation34_spill] sm:$0xff] }
 0x4d9   : > { %v6030_v2 = vmax.f32 %v6029_v63, %v5734_v36  ;;  %v4401_v28 = vmax.f32 %v4093_v4, 0.0  ;;  %v4097_v37 = vadd.f32 %v4096_v38, %v14653_v13  ;;  %v4098_v44 = vpop.f32.mrb[95].mxu0  ;;  %v5402_v41 = vpop.f32.mrb[76].mxu1 }
 0x4da   : > { %v4402_v61 = vmax.f32 %v4095_v8, 0.0  ;;  %v4099_v53 = vadd.f32 %v4098_v44, %v14657_v16  ;;  %v5403_v52 = vadd.f32 %v5402_v41, %v14742_v48  ;;  %v5404_v12 = vpop.f32.mrb[77].mxu1 }
 0x4db   : > { %v4620_v15 = vmax.f32 %v4619_v40, %v4401_v28  ;;  %v4403_v20 = vmax.f32 %v4097_v37, 0.0  ;;  %v5405_v50 = vadd.f32 %v5404_v12, %v14746_v24  ;;  %v5406_v17 = vpop.f32.mrb[78].mxu1  ;;  %6415 = vmatmul.mubr.bf16.gmra.mrb[200].mxu0 %v16746_v27 }
 0x4dc   : > { %v4689_v0 = vmax.f32 %v4688_v7, %v4402_v61  ;;  %v4404_v9 = vmax.f32 %v4099_v53, 0.0  ;;  %v5735_v63 = vmax.f32 %v5403_v52, 0.0  ;;  %v5407_v36 = vadd.f32 %v5406_v17, %v14742_v48  ;;  %v5408_v4 = vpop.f32.mrb[79].mxu1  ;;  %6424 = vmatprep.mubr.bf16.mxu0 %v16714_v47 }
 0x4dd   : > { %v4621_v46 = vmax.f32 %v4620_v15, %v4403_v20  ;;  %v5736_v8 = vmax.f32 %v5405_v50, 0.0  ;;  %v5409_v38 = vadd.f32 %v5408_v4, %v14746_v24 }
 0x4de   : > { %v4690_v44 = vmax.f32 %v4689_v0, %v4404_v9  ;;  %v5962_v40 = vmax.f32 %v5961_v49, %v5735_v63  ;;  %v5737_v28 = vmax.f32 %v5407_v36, 0.0  ;;  %v4102_v37 = vpop.f32.mrb[96].mxu0  ;;  %7719 = vmatmul.mubr.bf16.gmra.mrb[184].mxu1 %v16742_v51 }
 0x4df   : > { %v6031_v41 = vmax.f32 %v6030_v2, %v5736_v8  ;;  %v5738_v12 = vmax.f32 %v5409_v38, 0.0  ;;  %v4103_v7 = vadd.f32 %v4102_v37, %v14653_v13  ;;  %v4104_v61 = vpop.f32.mrb[97].mxu0  ;;  %7728 = vmatprep.mubr.bf16.mxu1 %v16714_v47 }
 0x4e0   : > { %v5963_v53 = vmax.f32 %v5962_v40, %v5737_v28  ;;  %v4105_v52 = vadd.f32 %v4104_v61, %v14657_v16  ;;  %v4106_v15 = vpop.f32.mrb[98].mxu0  ;;  %v16747_v40 = vld [vmem:[#allocation33_spill] sm:$0xff] }
 0x4e1   : > { %v6032_v20 = vmax.f32 %v6031_v41, %v5738_v12  ;;  %v4405_v50 = vmax.f32 %v4103_v7, 0.0  ;;  %v4107_v17 = vadd.f32 %v4106_v15, %v14653_v13  ;;  %v4108_v49 = vpop.f32.mrb[99].mxu0  ;;  %v5412_v0 = vpop.f32.mrb[80].mxu1 }
 0x4e2   : > { %v4406_v9 = vmax.f32 %v4105_v52, 0.0  ;;  %v4109_v51 = vadd.f32 %v4108_v49, %v14657_v16  ;;  %v5413_v2 = vadd.f32 %v5412_v0, %v14742_v48  ;;  %v5414_v63 = vpop.f32.mrb[81].mxu1 }
 0x4e3   : > { %v4622_v36 = vmax.f32 %v4621_v46, %v4405_v50  ;;  %v4407_v4 = vmax.f32 %v4107_v17, 0.0  ;;  %v5415_v8 = vadd.f32 %v5414_v63, %v14746_v24  ;;  %v5416_v38 = vpop.f32.mrb[82].mxu1  ;;  %6425 = vmatmul.mubr.bf16.gmra.mrb[204].mxu0 %v16747_v40 }
 0x4e4   : > { %v4691_v28 = vmax.f32 %v4690_v44, %v4406_v9  ;;  %v4408_v37 = vmax.f32 %v4109_v51, 0.0  ;;  %v5739_v41 = vmax.f32 %v5413_v2, 0.0  ;;  %v5417_v12 = vadd.f32 %v5416_v38, %v14742_v48  ;;  %v5418_v7 = vpop.f32.mrb[83].mxu1  ;;  %6434 = vmatprep.mubr.bf16.mxu0 %v16714_v47 }
 0x4e5   : > { %v4623_v61 = vmax.f32 %v4622_v36, %v4407_v4  ;;  %v5740_v52 = vmax.f32 %v5415_v8, 0.0  ;;  %v5419_v15 = vadd.f32 %v5418_v7, %v14746_v24 }
 0x4e6   : > { %v4692_v49 = vmax.f32 %v4691_v28, %v4408_v37  ;;  %v5964_v46 = vmax.f32 %v5963_v53, %v5739_v41  ;;  %v5741_v50 = vmax.f32 %v5417_v12, 0.0  ;;  %v4112_v17 = vpop.f32.mrb[100].mxu0  ;;  %7729 = vmatmul.mubr.bf16.gmra.mrb[188].mxu1 %v16743_v29 }
 0x4e7   : > { %v6033_v0 = vmax.f32 %v6032_v20, %v5740_v52  ;;  %v5742_v63 = vmax.f32 %v5419_v15, 0.0  ;;  %v4113_v44 = vadd.f32 %v4112_v17, %v14653_v13  ;;  %v4114_v9 = vpop.f32.mrb[101].mxu0  ;;  %7738 = vmatprep.mubr.bf16.mxu1 %v16714_v47 }
 0x4e8   : > { %v5965_v51 = vmax.f32 %v5964_v46, %v5741_v50  ;;  %v4115_v2 = vadd.f32 %v4114_v9, %v14657_v16  ;;  %v4116_v36 = vpop.f32.mrb[102].mxu0  ;;  %v16748_v46 = vld [vmem:[#allocation36_spill] sm:$0xff] }
 0x4e9   : > { %v6034_v4 = vmax.f32 %v6033_v0, %v5742_v63  ;;  %v4409_v8 = vmax.f32 %v4113_v44, 0.0  ;;  %v4117_v38 = vadd.f32 %v4116_v36, %v14653_v13  ;;  %v4118_v53 = vpop.f32.mrb[103].mxu0  ;;  %v5422_v28 = vpop.f32.mrb[84].mxu1 }
 0x4ea   : > { %v4410_v37 = vmax.f32 %v4115_v2, 0.0  ;;  %v4119_v29 = vadd.f32 %v4118_v53, %v14657_v16  ;;  %v5423_v20 = vadd.f32 %v5422_v28, %v14742_v48  ;;  %v5424_v41 = vpop.f32.mrb[85].mxu1 }
 0x4eb   : > { %v4624_v12 = vmax.f32 %v4623_v61, %v4409_v8  ;;  %v4411_v7 = vmax.f32 %v4117_v38, 0.0  ;;  %v5425_v52 = vadd.f32 %v5424_v41, %v14746_v24  ;;  %v5426_v15 = vpop.f32.mrb[86].mxu1  ;;  %6435 = vmatmul.mubr.bf16.gmra.mrb[208].mxu0 %v16748_v46 }
 0x4ec   : > { %v4693_v50 = vmax.f32 %v4692_v49, %v4410_v37  ;;  %v4412_v17 = vmax.f32 %v4119_v29, 0.0  ;;  %v5743_v0 = vmax.f32 %v5423_v20, 0.0  ;;  %v5427_v63 = vadd.f32 %v5426_v15, %v14742_v48  ;;  %v5428_v44 = vpop.f32.mrb[87].mxu1  ;;  %6444 = vmatprep.mubr.bf16.mxu0 %v16714_v47 }
 0x4ed   : > { %v4625_v9 = vmax.f32 %v4624_v12, %v4411_v7  ;;  %v5744_v2 = vmax.f32 %v5425_v52, 0.0  ;;  %v5429_v36 = vadd.f32 %v5428_v44, %v14746_v24 }
 0x4ee   : > { %v4694_v53 = vmax.f32 %v4693_v50, %v4412_v17  ;;  %v5966_v61 = vmax.f32 %v5965_v51, %v5743_v0  ;;  %v5745_v8 = vmax.f32 %v5427_v63, 0.0  ;;  %v4122_v38 = vpop.f32.mrb[104].mxu0  ;;  %7739 = vmatmul.mubr.bf16.gmra.mrb[192].mxu1 %v16744_v62 }
 0x4ef   : > { %v6035_v28 = vmax.f32 %v6034_v4, %v5744_v2  ;;  %v5746_v41 = vmax.f32 %v5429_v36, 0.0  ;;  %v4123_v49 = vadd.f32 %v4122_v38, %v14653_v13  ;;  %v4124_v37 = vpop.f32.mrb[105].mxu0  ;;  %7748 = vmatprep.mubr.bf16.mxu1 %v16714_v47 }
 0x4f0   : > { %v5967_v29 = vmax.f32 %v5966_v61, %v5745_v8  ;;  %v4125_v20 = vadd.f32 %v4124_v37, %v14657_v16  ;;  %v4126_v12 = vpop.f32.mrb[106].mxu0  ;;  %v16749_v61 = vld [vmem:[#allocation35_spill] sm:$0xff] }
 0x4f1   : > { %v6036_v7 = vmax.f32 %v6035_v28, %v5746_v41  ;;  %v4413_v52 = vmax.f32 %v4123_v49, 0.0  ;;  %v4127_v15 = vadd.f32 %v4126_v12, %v14653_v13  ;;  %v4128_v51 = vpop.f32.mrb[107].mxu0  ;;  %v5432_v50 = vpop.f32.mrb[88].mxu1 }
 0x4f2   : > { %v4414_v17 = vmax.f32 %v4125_v20, 0.0  ;;  %v4129_v62 = vadd.f32 %v4128_v51, %v14657_v16  ;;  %v5433_v4 = vadd.f32 %v5432_v50, %v14742_v48  ;;  %v5434_v0 = vpop.f32.mrb[89].mxu1 }
 0x4f3   : > { %v4626_v63 = vmax.f32 %v4625_v9, %v4413_v52  ;;  %v4415_v44 = vmax.f32 %v4127_v15, 0.0  ;;  %v5435_v2 = vadd.f32 %v5434_v0, %v14746_v24  ;;  %v5436_v36 = vpop.f32.mrb[90].mxu1  ;;  %6445 = vmatmul.mubr.bf16.gmra.mrb[212].mxu0 %v16749_v61 }
 0x4f4   : > { %v4695_v8 = vmax.f32 %v4694_v53, %v4414_v17  ;;  %v4416_v38 = vmax.f32 %v4129_v62, 0.0  ;;  %v5747_v28 = vmax.f32 %v5433_v4, 0.0  ;;  %v5437_v41 = vadd.f32 %v5436_v36, %v14742_v48  ;;  %v5438_v49 = vpop.f32.mrb[91].mxu1  ;;  %6454 = vmatprep.mubr.bf16.mxu0 %v16714_v47 }
 0x4f5   : > { %v4627_v37 = vmax.f32 %v4626_v63, %v4415_v44  ;;  %v5748_v20 = vmax.f32 %v5435_v2, 0.0  ;;  %v5439_v12 = vadd.f32 %v5438_v49, %v14746_v24 }
 0x4f6   : > { %v4696_v51 = vmax.f32 %v4695_v8, %v4416_v38  ;;  %v5968_v9 = vmax.f32 %v5967_v29, %v5747_v28  ;;  %v5749_v52 = vmax.f32 %v5437_v41, 0.0  ;;  %v4132_v15 = vpop.f32.mrb[108].mxu0  ;;  %7749 = vmatmul.mubr.bf16.gmra.mrb[196].mxu1 %v16745_v54 }
 0x4f7   : > { %v6037_v50 = vmax.f32 %v6036_v7, %v5748_v20  ;;  %v5750_v0 = vmax.f32 %v5439_v12, 0.0  ;;  %v4133_v53 = vadd.f32 %v4132_v15, %v14653_v13  ;;  %v4134_v17 = vpop.f32.mrb[109].mxu0  ;;  %7758 = vmatprep.mubr.bf16.mxu1 %v16714_v47 }
 0x4f8   : > { %v5969_v62 = vmax.f32 %v5968_v9, %v5749_v52  ;;  %v4135_v4 = vadd.f32 %v4134_v17, %v14657_v16  ;;  %v4136_v63 = vpop.f32.mrb[110].mxu0  ;;  %v16750_v9 = vld [vmem:[#allocation38_spill] sm:$0xff] }
 0x4f9   : > { %v6038_v44 = vmax.f32 %v6037_v50, %v5750_v0  ;;  %v4417_v2 = vmax.f32 %v4133_v53, 0.0  ;;  %v4137_v36 = vadd.f32 %v4136_v63, %v14653_v13  ;;  %v4138_v29 = vpop.f32.mrb[111].mxu0  ;;  %v5442_v8 = vpop.f32.mrb[92].mxu1 }
 0x4fa   : > { %v4418_v38 = vmax.f32 %v4135_v4, 0.0  ;;  %v4139_v54 = vadd.f32 %v4138_v29, %v14657_v16  ;;  %v5443_v7 = vadd.f32 %v5442_v8, %v14742_v48  ;;  %v5444_v28 = vpop.f32.mrb[93].mxu1 }
 0x4fb   : > { %v4628_v41 = vmax.f32 %v4627_v37, %v4417_v2  ;;  %v4419_v49 = vmax.f32 %v4137_v36, 0.0  ;;  %v5445_v20 = vadd.f32 %v5444_v28, %v14746_v24  ;;  %v5446_v12 = vpop.f32.mrb[94].mxu1  ;;  %6455 = vmatmul.mubr.bf16.gmra.mrb[216].mxu0 %v16750_v9 }
 0x4fc   : > { %v4697_v52 = vmax.f32 %v4696_v51, %v4418_v38  ;;  %v4420_v15 = vmax.f32 %v4139_v54, 0.0  ;;  %v5751_v50 = vmax.f32 %v5443_v7, 0.0  ;;  %v5447_v0 = vadd.f32 %v5446_v12, %v14742_v48  ;;  %v5448_v53 = vpop.f32.mrb[95].mxu1  ;;  %6464 = vmatprep.mubr.bf16.mxu0 %v16714_v47 }
 0x4fd   : > { %v4629_v17 = vmax.f32 %v4628_v41, %v4419_v49  ;;  %v5752_v4 = vmax.f32 %v5445_v20, 0.0  ;;  %v5449_v63 = vadd.f32 %v5448_v53, %v14746_v24 }
 0x4fe   : > { %v4698_v29 = vmax.f32 %v4697_v52, %v4420_v15  ;;  %v5970_v37 = vmax.f32 %v5969_v62, %v5751_v50  ;;  %v5753_v2 = vmax.f32 %v5447_v0, 0.0  ;;  %v4142_v36 = vpop.f32.mrb[112].mxu0  ;;  %7759 = vmatmul.mubr.bf16.gmra.mrb[200].mxu1 %v16746_v27 }
 0x4ff   : > { %v6039_v8 = vmax.f32 %v6038_v44, %v5752_v4  ;;  %v5754_v28 = vmax.f32 %v5449_v63, 0.0  ;;  %v4143_v51 = vadd.f32 %v4142_v36, %v14653_v13  ;;  %v4144_v38 = vpop.f32.mrb[113].mxu0  ;;  %7768 = vmatprep.mubr.bf16.mxu1 %v16714_v47 }
 0x500   : > { %v5971_v54 = vmax.f32 %v5970_v37, %v5753_v2  ;;  %v4145_v7 = vadd.f32 %v4144_v38, %v14657_v16  ;;  %v4146_v41 = vpop.f32.mrb[114].mxu0  ;;  %v16751_v37 = vld [vmem:[#allocation37_spill] sm:$0xff] }
 0x501   : > { %v6040_v49 = vmax.f32 %v6039_v8, %v5754_v28  ;;  %v4421_v20 = vmax.f32 %v4143_v51, 0.0  ;;  %v4147_v12 = vadd.f32 %v4146_v41, %v14653_v13  ;;  %v4148_v62 = vpop.f32.mrb[115].mxu0  ;;  %v5452_v52 = vpop.f32.mrb[96].mxu1 }
 0x502   : > { %v4422_v15 = vmax.f32 %v4145_v7, 0.0  ;;  %v4149_v27 = vadd.f32 %v4148_v62, %v14657_v16  ;;  %v5453_v44 = vadd.f32 %v5452_v52, %v14742_v48  ;;  %v5454_v50 = vpop.f32.mrb[97].mxu1 }
 0x503   : > { %v4630_v0 = vmax.f32 %v4629_v17, %v4421_v20  ;;  %v4423_v53 = vmax.f32 %v4147_v12, 0.0  ;;  %v5455_v4 = vadd.f32 %v5454_v50, %v14746_v24  ;;  %v5456_v63 = vpop.f32.mrb[98].mxu1  ;;  %6465 = vmatmul.mubr.bf16.gmra.mrb[220].mxu0 %v16751_v37 }
 0x504   : > { %v4699_v2 = vmax.f32 %v4698_v29, %v4422_v15  ;;  %v4424_v36 = vmax.f32 %v4149_v27, 0.0  ;;  %v5755_v8 = vmax.f32 %v5453_v44, 0.0  ;;  %v5457_v28 = vadd.f32 %v5456_v63, %v14742_v48  ;;  %v5458_v51 = vpop.f32.mrb[99].mxu1  ;;  %6474 = vmatprep.mubr.bf16.mxu0 %v16714_v47 }
 0x505   : > { %v4631_v38 = vmax.f32 %v4630_v0, %v4423_v53  ;;  %v5756_v7 = vmax.f32 %v5455_v4, 0.0  ;;  %v5459_v41 = vadd.f32 %v5458_v51, %v14746_v24 }
 0x506   : > { %v4700_v62 = vmax.f32 %v4699_v2, %v4424_v36  ;;  %v5972_v17 = vmax.f32 %v5971_v54, %v5755_v8  ;;  %v5757_v20 = vmax.f32 %v5457_v28, 0.0  ;;  %v4152_v12 = vpop.f32.mrb[116].mxu0  ;;  %7769 = vmatmul.mubr.bf16.gmra.mrb[204].mxu1 %v16747_v40 }
 0x507   : > { %v6041_v52 = vmax.f32 %v6040_v49, %v5756_v7  ;;  %v5758_v50 = vmax.f32 %v5459_v41, 0.0  ;;  %v4153_v29 = vadd.f32 %v4152_v12, %v14653_v13  ;;  %v4154_v15 = vpop.f32.mrb[117].mxu0  ;;  %7778 = vmatprep.mubr.bf16.mxu1 %v16714_v47 }
 0x508   : > { %v5973_v27 = vmax.f32 %v5972_v17, %v5757_v20  ;;  %v4155_v44 = vadd.f32 %v4154_v15, %v14657_v16  ;;  %v4156_v0 = vpop.f32.mrb[118].mxu0  ;;  %v16752_v17 = vld [vmem:[#allocation39_spill] sm:$0xff] }
 0x509   : > { %v6042_v53 = vmax.f32 %v6041_v52, %v5758_v50  ;;  %v4425_v4 = vmax.f32 %v4153_v29, 0.0  ;;  %v4157_v63 = vadd.f32 %v4156_v0, %v14653_v13  ;;  %v4158_v54 = vpop.f32.mrb[119].mxu0  ;;  %v5462_v2 = vpop.f32.mrb[100].mxu1 }
 0x50a   : > { %v4426_v36 = vmax.f32 %v4155_v44, 0.0  ;;  %v4159_v40 = vadd.f32 %v4158_v54, %v14657_v16  ;;  %v5463_v49 = vadd.f32 %v5462_v2, %v14742_v48  ;;  %v5464_v8 = vpop.f32.mrb[101].mxu1 }
 0x50b   : > { %v4632_v28 = vmax.f32 %v4631_v38, %v4425_v4  ;;  %v4427_v51 = vmax.f32 %v4157_v63, 0.0  ;;  %v5465_v7 = vadd.f32 %v5464_v8, %v14746_v24  ;;  %v5466_v41 = vpop.f32.mrb[102].mxu1  ;;  %6475 = vmatmul.mubr.bf16.gmra.mrb[224].mxu0 %v16752_v17 }
 0x50c   : > { %v4701_v20 = vmax.f32 %v4700_v62, %v4426_v36  ;;  %v4428_v12 = vmax.f32 %v4159_v40, 0.0  ;;  %v5759_v52 = vmax.f32 %v5463_v49, 0.0  ;;  %v5467_v50 = vadd.f32 %v5466_v41, %v14742_v48  ;;  %v5468_v29 = vpop.f32.mrb[103].mxu1  ;;  %6484 = vmatprep.mubr.bf16.mxu0 %v16714_v47 }
 0x50d   : > { %v4633_v15 = vmax.f32 %v4632_v28, %v4427_v51  ;;  %v5760_v44 = vmax.f32 %v5465_v7, 0.0  ;;  %v5469_v0 = vadd.f32 %v5468_v29, %v14746_v24 }
 0x50e   : > { %v4702_v54 = vmax.f32 %v4701_v20, %v4428_v12  ;;  %v5974_v38 = vmax.f32 %v5973_v27, %v5759_v52  ;;  %v5761_v4 = vmax.f32 %v5467_v50, 0.0  ;;  %v4162_v63 = vpop.f32.mrb[120].mxu0  ;;  %7779 = vmatmul.mubr.bf16.gmra.mrb[208].mxu1 %v16748_v46 }
 0x50f   : > { %v6043_v2 = vmax.f32 %v6042_v53, %v5760_v44  ;;  %v5762_v8 = vmax.f32 %v5469_v0, 0.0  ;;  %v4163_v62 = vadd.f32 %v4162_v63, %v14653_v13  ;;  %v4164_v36 = vpop.f32.mrb[121].mxu0  ;;  %7788 = vmatprep.mubr.bf16.mxu1 %v16714_v47 }
 0x510   : > { %v5975_v40 = vmax.f32 %v5974_v38, %v5761_v4  ;;  %v4165_v49 = vadd.f32 %v4164_v36, %v14657_v16  ;;  %v4166_v28 = vpop.f32.mrb[122].mxu0 }
 0x511   : > { %v6044_v51 = vmax.f32 %v6043_v2, %v5762_v8  ;;  %v4429_v7 = vmax.f32 %v4163_v62, 0.0  ;;  %v4167_v41 = vadd.f32 %v4166_v28, %v14653_v13  ;;  %v4168_v27 = vpop.f32.mrb[123].mxu0  ;;  %v5472_v20 = vpop.f32.mrb[104].mxu1 }
 0x512   : > { %v4430_v12 = vmax.f32 %v4165_v49, 0.0  ;;  %v4169_v46 = vadd.f32 %v4168_v27, %v14657_v16  ;;  %v5473_v53 = vadd.f32 %v5472_v20, %v14742_v48  ;;  %v5474_v52 = vpop.f32.mrb[105].mxu1 }
 0x513   : > { %v4634_v50 = vmax.f32 %v4633_v15, %v4429_v7  ;;  %v4431_v29 = vmax.f32 %v4167_v41, 0.0  ;;  %v5475_v44 = vadd.f32 %v5474_v52, %v14746_v24  ;;  %v5476_v0 = vpop.f32.mrb[106].mxu1  ;;  %6485 = vmatmul.mubr.bf16.gmra.mrb[228].mxu0 %v14437_v39 }
 0x514   : > { %v4703_v38 = vmax.f32 %v4702_v54, %v4430_v12  ;;  %v4432_v4 = vmax.f32 %v4169_v46, 0.0  ;;  %v5763_v63 = vmax.f32 %v5473_v53, 0.0  ;;  %v5477_v2 = vadd.f32 %v5476_v0, %v14742_v48  ;;  %v5478_v8 = vpop.f32.mrb[107].mxu1  ;;  %6494 = vmatprep.mubr.bf16.mxu0 %v16714_v47  ;;  %v6110_v46 = vld [vmem:[%s16554_s6 + $0x4] sm:$0x3] }
 0x515   : > { %v4635_v62 = vmax.f32 %v4634_v50, %v4431_v29  ;;  %v5764_v36 = vmax.f32 %v5475_v44, 0.0  ;;  %v5479_v49 = vadd.f32 %v5478_v8, %v14746_v24 }
 0x516   : > { %v4704_v28 = vmax.f32 %v4703_v38, %v4432_v4  ;;  %v5976_v15 = vmax.f32 %v5975_v40, %v5763_v63  ;;  %v5765_v7 = vmax.f32 %v5477_v2, 0.0  ;;  %v4172_v41 = vpop.f32.mrb[124].mxu0  ;;  %7789 = vmatmul.mubr.bf16.gmra.mrb[212].mxu1 %v16749_v61  ;;  %v13450_v40 = vmov 1983009808  }
 0x517   : > { %v6045_v27 = vmax.f32 %v6044_v51, %v5764_v36  ;;  %v5766_v20 = vmax.f32 %v5479_v49, 0.0  ;;  %v4173_v54 = vadd.f32 %v4172_v41, %v14653_v13  ;;  %v4174_v12 = vpop.f32.mrb[125].mxu0  ;;  %7798 = vmatprep.mubr.bf16.mxu1 %v16714_v47  ;;  %v4720_v29 = vunpack.c.l.s4 %v13450_v40 }
 0x518   : > { %v5977_v53 = vmax.f32 %v5976_v15, %v5765_v7  ;;  %v4175_v52 = vadd.f32 %v4174_v12, %v14657_v16  ;;  %v4176_v50 = vpop.f32.mrb[126].mxu0  ;;  %v15505_v36 = vrot.slane %v6110_v46, %v14637_v42 }
 0x519   : > { %v6046_v44 = vmax.f32 %v6045_v27, %v5766_v20  ;;  %v4433_v0 = vmax.f32 %v4173_v54, 0.0  ;;  %v4177_v61 = vadd.f32 %v4176_v50, %v14653_v13  ;;  %v4178_v51 = vpop.f32.mrb[127].mxu0  ;;  %v5482_v38 = vpop.f32.mrb[108].mxu1  ;;  %v16753_v27 = vld [vmem:[#allocation41_spill] sm:$0xff]  ;;  %v4721_v40 = vunpack.c.0.s8 %v4720_v29 }
 0x51a   : > { %v4434_v4 = vmax.f32 %v4175_v52, 0.0  ;;  %v4179_v63 = vadd.f32 %v4178_v51, %v14657_v16  ;;  %v5483_v2 = vadd.f32 %v5482_v38, %v14742_v48  ;;  %v5484_v8 = vpop.f32.mrb[109].mxu1  ;;  %v16754_v20 = vld [vmem:[#allocation49_spill] sm:$0xff] }
 0x51b   : > { %v4636_v49 = vmax.f32 %v4635_v62, %v4433_v0  ;;  %v4435_v15 = vmax.f32 %v4177_v61, 0.0  ;;  %v5485_v7 = vadd.f32 %v5484_v8, %v14746_v24  ;;  %v5486_v41 = vpop.f32.mrb[110].mxu1  ;;  %6495 = vmatmul.mubr.bf16.gmra.mrb[232].mxu0 %v16753_v27  ;;  %v15510_v13 = vrot.slane %v6110_v46, %v16754_v20 }
 0x51c   : > { %v4705_v54 = vmax.f32 %v4704_v28, %v4434_v4  ;;  %v4436_v12 = vmax.f32 %v4179_v63, 0.0  ;;  %v5767_v52 = vmax.f32 %v5483_v2, 0.0  ;;  %v5487_v16 = vadd.f32 %v5486_v41, %v14742_v48  ;;  %v5488_v50 = vpop.f32.mrb[111].mxu1  ;;  %6504 = vmatprep.mubr.bf16.mxu0 %v16714_v47 }
 0x51d   : > { %v4637_v51 = vmax.f32 %v4636_v49, %v4435_v15  ;;  %v5768_v62 = vmax.f32 %v5485_v7, 0.0  ;;  %v5489_v0 = vadd.f32 %v5488_v50, %v14746_v24  ;;  %v16755_v7 = vld [vmem:[#allocation47_spill] sm:$0xff] }
 0x51e   : > { %v4706_v61 = vmax.f32 %v4705_v54, %v4436_v12  ;;  %v5978_v38 = vmax.f32 %v5977_v53, %v5767_v52  ;;  %v5769_v8 = vmax.f32 %v5487_v16, 0.0  ;;  %v6236_v11 = vpop.f32.mrb[128].mxu0  ;;  %7799 = vmatmul.mubr.bf16.gmra.mrb[216].mxu1 %v16750_v9  ;;  %v15520_v54 = vsub.s32 %v4721_v40, %v16755_v7  ;;  %v16756_v7 = vld [vmem:[#allocation40_spill] sm:$0xff] }
 0x51f   : > { %v4638_v46 = vrot.slane %v4637_v51, 4  ;;  %v6047_v28 = vmax.f32 %v6046_v44, %v5768_v62  ;;  %v5770_v4 = vmax.f32 %v5489_v0, 0.0  ;;  %v6237_v63 = vadd.f32 %v6236_v11, %v15505_v36  ;;  %v6238_v2 = vpop.f32.mrb[129].mxu0  ;;  %7808 = vmatprep.mubr.bf16.mxu1 %v16714_v47 }
 0x520   : > { %v4707_v41 = vrot.slane %v4706_v61, 4  ;;  %v5979_v29 = vmax.f32 %v5978_v38, %v5769_v8  ;;  %v6239_v49 = vadd.f32 %v6238_v2, %v15510_v13  ;;  %v6240_v15 = vpop.f32.mrb[130].mxu0 }
 0x521   : > { %v4639_v53 = vmax.f32 %v4637_v51, %v4638_v46  ;;  %v6048_v12 = vmax.f32 %v6047_v28, %v5770_v4  ;;  %v6241_v9 = vadd.f32 %v6240_v15, %v15505_v36  ;;  %v5492_v52 = vpop.f32.mrb[112].mxu1  ;;  %v6242_v44 = vpop.f32.mrb[131].mxu0  ;;  %v6875_v50 = vmax.f32 %v6237_v63, 0.0 }
 0x522   : > { %v4708_v16 = vmax.f32 %v4706_v61, %v4707_v41  ;;  %v5493_v11 = vadd.f32 %v5492_v52, %v14742_v48  ;;  %v6243_v62 = vadd.f32 %v6242_v44, %v15510_v13  ;;  %v5494_v0 = vpop.f32.mrb[113].mxu1  ;;  %v6876_v8 = vmax.f32 %v6239_v49, 0.0 }
 0x523   : > { %v4640_v38 = vrot.slane %v4639_v53, 2  ;;  %v6877_v2 = vmax.f32 %v6241_v9, 0.0  ;;  %v5495_v45 = vadd.f32 %v5494_v0, %v14746_v24  ;;  %v5496_v40 = vpop.f32.mrb[114].mxu1  ;;  %6505 = vmatmul.mubr.bf16.gmra.mrb[236].mxu0 %v16756_v7 }
 0x524   : > { %v4709_v51 = vrot.slane %v4708_v16, 2  ;;  %v5771_v46 = vmax.f32 %v5493_v11, 0.0  ;;  %v6878_v28 = vmax.f32 %v6243_v62, 0.0  ;;  %v5497_v4 = vadd.f32 %v5496_v40, %v14742_v48  ;;  %v5498_v61 = vpop.f32.mrb[115].mxu1  ;;  %6514 = vmatprep.mubr.bf16.mxu0 %v16714_v47 }
 0x525   : > { %v4641_v63 = vmax.f32 %v4639_v53, %v4640_v38  ;;  %v7131_v41 = vmax.f32 %v6875_v50, %v6877_v2  ;;  %v5772_v15 = vmax.f32 %v5495_v45, 0.0  ;;  %v5499_v52 = vadd.f32 %v5498_v61, %v14746_v24 }
 0x526   : > { %v4710_v49 = vmax.f32 %v4708_v16, %v4709_v51  ;;  %v5980_v9 = vmax.f32 %v5979_v29, %v5771_v46  ;;  %v7200_v44 = vmax.f32 %v6876_v8, %v6878_v28  ;;  %v5773_v0 = vmax.f32 %v5497_v4, 0.0  ;;  %v6246_v1 = vpop.f32.mrb[132].mxu0  ;;  %7809 = vmatmul.mubr.bf16.gmra.mrb[220].mxu1 %v16751_v37 }
 0x527   : > { %v4642_v59 = vrot.slane %v4641_v63, 1  ;;  %v6049_v11 = vmax.f32 %v6048_v12, %v5772_v15  ;;  %v5774_v62 = vmax.f32 %v5499_v52, 0.0  ;;  %v6247_v40 = vadd.f32 %v6246_v1, %v15505_v36  ;;  %v6248_v26 = vpop.f32.mrb[133].mxu0  ;;  %7818 = vmatprep.mubr.bf16.mxu1 %v16714_v47 }
 0x528   : > { %v16757_v45 = vcombine.low %v15126_v10, %v15129_v60  ;;  %v4711_v16 = vrot.slane %v4710_v49, 1  ;;  %v5981_v29 = vmax.f32 %v5980_v9, %v5773_v0  ;;  %v6249_v50 = vadd.f32 %v6248_v26, %v15510_v13  ;;  %v6250_v38 = vpop.f32.mrb[134].mxu0 }
 0x529   : > { %v4643_v8 = vmax.f32 %v4641_v63, %v4642_v59  ;;  %v6050_v37 = vmax.f32 %v6049_v11, %v5774_v62  ;;  %v6879_v2 = vmax.f32 %v6247_v40, 0.0  ;;  %v6251_v12 = vadd.f32 %v6250_v38, %v15505_v36  ;;  %v5502_v51 = vpop.f32.mrb[116].mxu1  ;;  %v6252_v1 = vpop.f32.mrb[135].mxu0  ;;  %v16758_v59 = vld [vmem:[#allocation43_spill] sm:$0xff] }
 0x52a   : > { %v4725_v53 = vrot.slane %v16757_v45, %v15520_v54  ;;  %v4712_v46 = vmax.f32 %v4710_v49, %v4711_v16  ;;  %v6880_v28 = vmax.f32 %v6249_v50, 0.0  ;;  %v5503_v4 = vadd.f32 %v5502_v51, %v14742_v48  ;;  %v5504_v10 = vpop.f32.mrb[117].mxu1 }
 0x52b   : > { %v6253_v61 = vadd.f32 %v6252_v1, %v15510_v13  ;;  %v7132_v60 = vmax.f32 %v7131_v41, %v6879_v2  ;;  %v6881_v15 = vmax.f32 %v6251_v12, 0.0  ;;  %v5505_v26 = vadd.f32 %v5504_v10, %v14746_v24  ;;  %v5506_v52 = vpop.f32.mrb[118].mxu1  ;;  %6515 = vmatmul.mubr.bf16.gmra.mrb[240].mxu0 %v16758_v59 }
 0x52c   : > { %v4726_v63 = vcombine.low %v4643_v8, %v4712_v46  ;;  %v7201_v9 = vmax.f32 %v7200_v44, %v6880_v28  ;;  %v5775_v0 = vmax.f32 %v5503_v4, 0.0  ;;  %v5508_v62 = vpop.f32.mrb[119].mxu1  ;;  %6524 = vmatprep.mubr.bf16.mxu0 %v16714_v47  ;;  %v5507_v45 = vadd.f32 %v5506_v52, %v14742_v48 }
 0x52d   : > { %v6882_v11 = vmax.f32 %v6253_v61, 0.0  ;;  %v7133_v49 = vmax.f32 %v7132_v60, %v6881_v15  ;;  %v5776_v40 = vmax.f32 %v5505_v26, 0.0  ;;  %v5509_v16 = vadd.f32 %v5508_v62, %v14746_v24 }
 0x52e   : > { %v4733_v41 = vrot.slane %v4726_v63, %v15520_v54  ;;  %v5982_v50 = vmax.f32 %v5981_v29, %v5775_v0  ;;  %v6256_v2 = vpop.f32.mrb[136].mxu0  ;;  %7819 = vmatmul.mubr.bf16.gmra.mrb[224].mxu1 %v16752_v17  ;;  %v5777_v8 = vmax.f32 %v5507_v45, 0.0  ;;  %v4713_v0 = vld [vmem:[#allocation2] sm:$0xf] }
 0x52f   : > { %v7202_v38 = vmax.f32 %v7201_v9, %v6882_v11  ;;  %v6051_v44 = vmax.f32 %v6050_v37, %v5776_v40  ;;  %v5778_v12 = vmax.f32 %v5509_v16, 0.0  ;;  %v6257_v51 = vadd.f32 %v6256_v2, %v15505_v36  ;;  %v6258_v1 = vpop.f32.mrb[137].mxu0  ;;  %7828 = vmatprep.mubr.bf16.mxu1 %v16714_v47 }
 0x530   : > { %v4738_v46 = vrot.slane %v4733_v41, 7  ;;  %v6259_v28 = vadd.f32 %v6258_v1, %v15510_v13  ;;  %v6260_v4 = vpop.f32.mrb[138].mxu0  ;;  %v5983_v61 = vmax.f32 %v5982_v50, %v5777_v8  ;;  %v16759_v41 = vld [vmem:[#allocation42_spill] sm:$0xff] }
 0x531   : > { %v6052_v29 = vmax.f32 %v6051_v44, %v5778_v12  ;;  %v6883_v10 = vmax.f32 %v6257_v51, 0.0  ;;  %v6261_v60 = vadd.f32 %v6260_v4, %v15505_v36  ;;  %v5512_v17 = vpop.f32.mrb[120].mxu1  ;;  %v6262_v37 = vpop.f32.mrb[139].mxu0 }
 0x532   : > { %v4740_v15 = vsel %vm4739_vm2, %v4738_v46, %v4725_v53  ;;  %v6884_v26 = vmax.f32 %v6259_v28, 0.0  ;;  %v5513_v52 = vadd.f32 %v5512_v17, %v14742_v48  ;;  %v6263_v63 = vadd.f32 %v6262_v37, %v15510_v13  ;;  %v5514_v9 = vpop.f32.mrb[121].mxu1 }
 0x533   : > { %v4742_v11 = vsel %vm4741_vm3, %v4738_v46, %v4740_v15  ;;  %v7134_v62 = vmax.f32 %v7133_v49, %v6883_v10  ;;  %v6885_v40 = vmax.f32 %v6261_v60, 0.0  ;;  %v5515_v45 = vadd.f32 %v5514_v9, %v14746_v24  ;;  %v5516_v16 = vpop.f32.mrb[122].mxu1  ;;  %6525 = vmatmul.mubr.bf16.gmra.mrb[244].mxu0 %v16759_v41 }
 0x534   : > { %v4744_v50 = vsel %vm4743_vm4, %v4738_v46, %v4742_v11  ;;  %v7203_v2 = vmax.f32 %v7202_v38, %v6884_v26  ;;  %v5779_v53 = vmax.f32 %v5513_v52, 0.0  ;;  %v6886_v44 = vmax.f32 %v6263_v63, 0.0  ;;  %v5518_v8 = vpop.f32.mrb[123].mxu1  ;;  %6534 = vmatprep.mubr.bf16.mxu0 %v16714_v47 }
 0x535   : > { %v4746_v12 = vsel %vm4745_vm5, %v4738_v46, %v4744_v50  ;;  %v7135_v51 = vmax.f32 %v7134_v62, %v6885_v40  ;;  %v5780_v1 = vmax.f32 %v5515_v45, 0.0  ;;  %v5517_v49 = vadd.f32 %v5516_v16, %v14742_v48 }
 0x536   : > { %v4748_v28 = vmax.f32 %v4713_v0, %v4746_v12  ;;  %v5984_v4 = vmax.f32 %v5983_v61, %v5779_v53  ;;  %v7204_v10 = vmax.f32 %v7203_v2, %v6886_v44  ;;  %v5519_v60 = vadd.f32 %v5518_v8, %v14746_v24  ;;  %v6266_v17 = vpop.f32.mrb[140].mxu0  ;;  %7829 = vmatmul.mubr.bf16.gmra.mrb[228].mxu1 %v14437_v39  ;;  %v16760_v8 = vld [vmem:[#allocation45_spill] sm:$0xff] }
 0x537   : > { %v6053_v38 = vmax.f32 %v6052_v29, %v5780_v1  ;;  %v5781_v37 = vmax.f32 %v5517_v49, 0.0  ;;  %v6267_v15 = vadd.f32 %v6266_v17, %v15505_v36  ;;  %v6268_v26 = vpop.f32.mrb[141].mxu0  ;;  %7838 = vmatprep.mubr.bf16.mxu1 %v16714_v47 }
 0x538   : > { %4749 = vst [vmem:[#allocation2] sm:$0xf] %v4748_v28  ;;  %v5782_v46 = vmax.f32 %v5519_v60, 0.0  ;;  %v6269_v52 = vadd.f32 %v6268_v26, %v15510_v13  ;;  %v6270_v63 = vpop.f32.mrb[142].mxu0  ;;  %v7454_v60 = vld [vmem:[%s16554_s6 + $0x6] sm:$0x3] }
 0x539   : > { %v5985_v9 = vmax.f32 %v5984_v4, %v5781_v37  ;;  %v6887_v61 = vmax.f32 %v6267_v15, 0.0  ;;  %v6271_v0 = vadd.f32 %v6270_v63, %v15505_v36  ;;  %v5522_v11 = vpop.f32.mrb[124].mxu1  ;;  %v6272_v62 = vpop.f32.mrb[143].mxu0 }
 0x53a   : > { %v6054_v40 = vmax.f32 %v6053_v38, %v5782_v46  ;;  %v6888_v39 = vmax.f32 %v6269_v52, 0.0  ;;  %v5523_v29 = vadd.f32 %v5522_v11, %v14742_v48  ;;  %v6273_v45 = vadd.f32 %v6272_v62, %v15510_v13  ;;  %v5524_v16 = vpop.f32.mrb[125].mxu1 }
 0x53b   : > { %v7136_v50 = vmax.f32 %v7135_v51, %v6887_v61  ;;  %v6889_v2 = vmax.f32 %v6271_v0, 0.0  ;;  %v5525_v53 = vadd.f32 %v5524_v16, %v14746_v24  ;;  %v5526_v44 = vpop.f32.mrb[126].mxu1  ;;  %6535 = vmatmul.mubr.bf16.gmra.mrb[248].mxu0 %v16760_v8  ;;  %v15581_v61 = vrot.slane %v7454_v60, %v14637_v42 }
 0x53c   : > { %v7205_v12 = vmax.f32 %v7204_v10, %v6888_v39  ;;  %v5783_v1 = vmax.f32 %v5523_v29, 0.0  ;;  %v6890_v49 = vmax.f32 %v6273_v45, 0.0  ;;  %v5527_v28 = vadd.f32 %v5526_v44, %v14742_v48  ;;  %v5528_v4 = vpop.f32.mrb[127].mxu1  ;;  %6544 = vmatprep.mubr.bf16.mxu0 %v16714_v47 }
 0x53d   : > { %v7137_v17 = vmax.f32 %v7136_v50, %v6889_v2  ;;  %v5784_v51 = vmax.f32 %v5525_v53, 0.0  ;;  %v5529_v38 = vadd.f32 %v5528_v4, %v14746_v24 }
 0x53e   : > { %v5986_v37 = vmax.f32 %v5985_v9, %v5783_v1  ;;  %v7206_v15 = vmax.f32 %v7205_v12, %v6890_v49  ;;  %v5785_v26 = vmax.f32 %v5527_v28, 0.0  ;;  %v6276_v46 = vpop.f32.mrb[144].mxu0  ;;  %7839 = vmatmul.mubr.bf16.gmra.mrb[232].mxu1 %v16753_v27  ;;  %v15586_v9 = vrot.slane %v7454_v60, %v16754_v20  ;;  %v16761_v49 = vld [vmem:[#allocation44_spill] sm:$0xff] }
 0x53f   : > { %v6055_v10 = vmax.f32 %v6054_v40, %v5784_v51  ;;  %v5786_v52 = vmax.f32 %v5529_v38, 0.0  ;;  %v6277_v48 = vadd.f32 %v6276_v46, %v15505_v36  ;;  %v6278_v63 = vpop.f32.mrb[145].mxu0  ;;  %7848 = vmatprep.mubr.bf16.mxu1 %v16714_v47 }
 0x540   : > { %v5987_v0 = vmax.f32 %v5986_v37, %v5785_v26  ;;  %v6279_v11 = vadd.f32 %v6278_v63, %v15510_v13  ;;  %v6280_v24 = vpop.f32.mrb[146].mxu0 }
 0x541   : > { %v6056_v62 = vmax.f32 %v6055_v10, %v5786_v52  ;;  %v6891_v39 = vmax.f32 %v6277_v48, 0.0  ;;  %v6281_v27 = vadd.f32 %v6280_v24, %v15505_v36  ;;  %v6282_v40 = vpop.f32.mrb[147].mxu0  ;;  %v7580_v29 = vpop.f32.mrb[128].mxu1 }
 0x542   : > { %v5988_v45 = vrot.slane %v5987_v0, 4  ;;  %v6892_v16 = vmax.f32 %v6279_v11, 0.0  ;;  %v6283_v50 = vadd.f32 %v6282_v40, %v15510_v13  ;;  %v7582_v2 = vpop.f32.mrb[129].mxu1  ;;  %v7581_v1 = vadd.f32 %v7580_v29, %v15581_v61 }
 0x543   : > { %v6057_v53 = vrot.slane %v6056_v62, 4  ;;  %v7138_v44 = vmax.f32 %v7137_v17, %v6891_v39  ;;  %v6893_v12 = vmax.f32 %v6281_v27, 0.0  ;;  %6545 = vmatmul.mubr.bf16.gmra.mrb[252].mxu0 %v16761_v49  ;;  %v7584_v20 = vpop.f32.mrb[130].mxu1  ;;  %v7583_v51 = vadd.f32 %v7582_v2, %v15586_v9 }
 0x544   : > { %v5989_v28 = vmax.f32 %v5987_v0, %v5988_v45  ;;  %v7207_v4 = vmax.f32 %v7206_v15, %v6892_v16  ;;  %v6894_v60 = vmax.f32 %v6283_v50, 0.0  ;;  %v7586_v38 = vpop.f32.mrb[131].mxu1  ;;  %6554 = vmatprep.mubr.bf16.mxu0 %v16714_v47  ;;  %v7585_v46 = vadd.f32 %v7584_v20, %v15581_v61 }
 0x545   : > { %v6058_v37 = vmax.f32 %v6056_v62, %v6057_v53  ;;  %v7139_v26 = vmax.f32 %v7138_v44, %v6893_v12  ;;  %v7587_v52 = vadd.f32 %v7586_v38, %v15586_v9  ;;  %v8219_v0 = vmax.f32 %v7581_v1, 0.0 }
 0x546   : > { %v5990_v10 = vrot.slane %v5989_v28, 2  ;;  %v7208_v17 = vmax.f32 %v7207_v4, %v6894_v60  ;;  %v6286_v48 = vpop.f32.mrb[148].mxu0  ;;  %7849 = vmatmul.mubr.bf16.gmra.mrb[236].mxu1 %v16756_v7  ;;  %v8221_v15 = vmax.f32 %v7585_v46, 0.0  ;;  %v8220_v62 = vmax.f32 %v7583_v51, 0.0  ;;  %v16762_v46 = vld [vmem:[#allocation46_spill] sm:$0xff] }
 0x547   : > { %v6059_v63 = vrot.slane %v6058_v37, 2  ;;  %v6287_v11 = vadd.f32 %v6286_v48, %v15505_v36  ;;  %v6288_v24 = vpop.f32.mrb[149].mxu0  ;;  %7858 = vmatprep.mubr.bf16.mxu1 %v16714_v47  ;;  %v8222_v27 = vmax.f32 %v7587_v52, 0.0 }
 0x548   : > { %v5991_v39 = vmax.f32 %v5989_v28, %v5990_v10  ;;  %v6289_v40 = vadd.f32 %v6288_v24, %v15510_v13  ;;  %v6290_v29 = vpop.f32.mrb[150].mxu0  ;;  %v8475_v16 = vmax.f32 %v8219_v0, %v8221_v15 }
 0x549   : > { %v6060_v45 = vmax.f32 %v6058_v37, %v6059_v63  ;;  %v6895_v50 = vmax.f32 %v6287_v11, 0.0  ;;  %v6291_v2 = vadd.f32 %v6290_v29, %v15505_v36  ;;  %v6292_v7 = vpop.f32.mrb[151].mxu0  ;;  %v7590_v53 = vpop.f32.mrb[132].mxu1  ;;  %v8544_v12 = vmax.f32 %v8220_v62, %v8222_v27 }
 0x54a   : > { %v5992_v44 = vrot.slane %v5991_v39, 1  ;;  %v6896_v1 = vmax.f32 %v6289_v40, 0.0  ;;  %v6293_v20 = vadd.f32 %v6292_v7, %v15510_v13  ;;  %v7592_v4 = vpop.f32.mrb[133].mxu1  ;;  %v7591_v38 = vadd.f32 %v7590_v53, %v15581_v61 }
 0x54b   : > { %v6061_v60 = vrot.slane %v6060_v45, 1  ;;  %v7140_v28 = vmax.f32 %v7139_v26, %v6895_v50  ;;  %v6897_v51 = vmax.f32 %v6291_v2, 0.0  ;;  %6555 = vmatmul.mubr.bf16.gmra.mrb[0].mxu0 %v16762_v46  ;;  %v7594_v37 = vpop.f32.mrb[134].mxu1  ;;  %v7593_v63 = vadd.f32 %v7592_v4, %v15586_v9 }
 0x54c   : > { %v5993_v10 = vmax.f32 %v5991_v39, %v5992_v44  ;;  %v7209_v52 = vmax.f32 %v7208_v17, %v6896_v1  ;;  %v6898_v48 = vmax.f32 %v6293_v20, 0.0  ;;  %v7596_v0 = vpop.f32.mrb[135].mxu1  ;;  %6564 = vmatprep.mubr.bf16.mxu0 %v16714_v47  ;;  %v8223_v24 = vmax.f32 %v7591_v38, 0.0 }
 0x54d   : > { %v6062_v15 = vmax.f32 %v6060_v45, %v6061_v60  ;;  %v7141_v11 = vmax.f32 %v7140_v28, %v6897_v51  ;;  %v7595_v62 = vadd.f32 %v7594_v37, %v15581_v61  ;;  %v8224_v27 = vmax.f32 %v7593_v63, 0.0 }
 0x54e   : > { %v7210_v26 = vmax.f32 %v7209_v52, %v6898_v48  ;;  %v7597_v40 = vadd.f32 %v7596_v0, %v15586_v9  ;;  %v6296_v29 = vpop.f32.mrb[152].mxu0  ;;  %7859 = vmatmul.mubr.bf16.gmra.mrb[240].mxu1 %v16758_v59  ;;  %v8476_v17 = vmax.f32 %v8475_v16, %v8223_v24  ;;  %v16763_v45 = vcombine.low %v15184_v35, %v15188_v23 }
 0x54f   : > { %v6076_v39 = vcombine.low %v5993_v10, %v6062_v15  ;;  %v8225_v50 = vmax.f32 %v7595_v62, 0.0  ;;  %v6297_v2 = vadd.f32 %v6296_v29, %v15505_v36  ;;  %v6298_v7 = vpop.f32.mrb[153].mxu0  ;;  %7868 = vmatprep.mubr.bf16.mxu1 %v16714_v47  ;;  %v8545_v44 = vmax.f32 %v8544_v12, %v8224_v27 }
 0x550   : > { %v6075_v53 = vrot.slane %v16763_v45, %v15520_v54  ;;  %v8226_v1 = vmax.f32 %v7597_v40, 0.0  ;;  %v6299_v20 = vadd.f32 %v6298_v7, %v15510_v13  ;;  %v6300_v4 = vpop.f32.mrb[154].mxu0 }
 0x551   : > { %v6083_v59 = vrot.slane %v6076_v39, %v15520_v54  ;;  %v8477_v60 = vmax.f32 %v8476_v17, %v8225_v50  ;;  %v6899_v16 = vmax.f32 %v6297_v2, 0.0  ;;  %v6301_v28 = vadd.f32 %v6300_v4, %v15505_v36  ;;  %v6302_v51 = vpop.f32.mrb[155].mxu0  ;;  %v7600_v38 = vpop.f32.mrb[136].mxu1  ;;  %v6063_v2 = vld [vmem:[#allocation2 + $0x4] sm:$0xf] }
 0x552   : > { %v8546_v37 = vmax.f32 %v8545_v44, %v8226_v1  ;;  %v6900_v10 = vmax.f32 %v6299_v20, 0.0  ;;  %v6303_v52 = vadd.f32 %v6302_v51, %v15510_v13  ;;  %v7601_v35 = vadd.f32 %v7600_v38, %v15581_v61  ;;  %v7602_v23 = vpop.f32.mrb[137].mxu1 }
 0x553   : > { %v6086_v12 = vrot.slane %v6083_v59, 7  ;;  %v7142_v48 = vmax.f32 %v7141_v11, %v6899_v16  ;;  %v6901_v63 = vmax.f32 %v6301_v28, 0.0  ;;  %v7603_v0 = vadd.f32 %v7602_v23, %v15586_v9  ;;  %6565 = vmatmul.mubr.bf16.gmra.mrb[4].mxu0 %v14497_v32  ;;  %v7604_v15 = vpop.f32.mrb[138].mxu1 }
 0x554   : > { %v7211_v24 = vmax.f32 %v7210_v26, %v6900_v10  ;;  %v6902_v62 = vmax.f32 %v6303_v52, 0.0  ;;  %v8227_v27 = vmax.f32 %v7601_v35, 0.0  ;;  %v7605_v40 = vadd.f32 %v7604_v15, %v15581_v61  ;;  %v7606_v29 = vpop.f32.mrb[139].mxu1  ;;  %6574 = vmatprep.mubr.bf16.mxu0 %v16714_v47 }
 0x555   : > { %v6087_v39 = vsel %vm4739_vm2, %v6086_v12, %v6075_v53  ;;  %v7143_v17 = vmax.f32 %v7142_v48, %v6901_v63  ;;  %v8228_v50 = vmax.f32 %v7603_v0, 0.0  ;;  %v7607_v11 = vadd.f32 %v7606_v29, %v15586_v9 }
 0x556   : > { %v6088_v7 = vsel %vm4741_vm3, %v6086_v12, %v6087_v39  ;;  %v7212_v45 = vmax.f32 %v7211_v24, %v6902_v62  ;;  %v8478_v44 = vmax.f32 %v8477_v60, %v8227_v27  ;;  %v8229_v1 = vmax.f32 %v7605_v40, 0.0  ;;  %v6306_v26 = vpop.f32.mrb[156].mxu0  ;;  %7869 = vmatmul.mubr.bf16.gmra.mrb[244].mxu1 %v16759_v41 }
 0x557   : > { %v6089_v20 = vsel %vm4743_vm4, %v6086_v12, %v6088_v7  ;;  %v8547_v4 = vmax.f32 %v8546_v37, %v8228_v50  ;;  %v8230_v59 = vmax.f32 %v7607_v11, 0.0  ;;  %v6307_v16 = vadd.f32 %v6306_v26, %v15505_v36  ;;  %v6308_v53 = vpop.f32.mrb[157].mxu0  ;;  %7878 = vmatprep.mubr.bf16.mxu1 %v16714_v47 }
 0x558   : > { %v6090_v28 = vsel %vm4745_vm5, %v6086_v12, %v6089_v20  ;;  %v8479_v51 = vmax.f32 %v8478_v44, %v8229_v1  ;;  %v6309_v38 = vadd.f32 %v6308_v53, %v15510_v13  ;;  %v6310_v10 = vpop.f32.mrb[158].mxu0 }
 0x559   : > { %v6092_v60 = vmax.f32 %v6063_v2, %v6090_v28  ;;  %v8548_v52 = vmax.f32 %v8547_v4, %v8230_v59  ;;  %v6903_v35 = vmax.f32 %v6307_v16, 0.0  ;;  %v6311_v41 = vadd.f32 %v6310_v10, %v15505_v36  ;;  %v6312_v23 = vpop.f32.mrb[159].mxu0  ;;  %v7610_v48 = vpop.f32.mrb[140].mxu1 }
 0x55a   : > { %v6904_v37 = vmax.f32 %v6309_v38, 0.0  ;;  %v6313_v63 = vadd.f32 %v6312_v23, %v15510_v13  ;;  %v7611_v0 = vadd.f32 %v7610_v48, %v15581_v61  ;;  %v7612_v15 = vpop.f32.mrb[141].mxu1 }
 0x55b   : > { %6093 = vst [vmem:[#allocation2 + $0x4] sm:$0xf] %v6092_v60  ;;  %v7144_v24 = vmax.f32 %v7143_v17, %v6903_v35  ;;  %v6905_v12 = vmax.f32 %v6311_v41, 0.0  ;;  %v7613_v62 = vadd.f32 %v7612_v15, %v15586_v9  ;;  %6575 = vmatmul.mubr.bf16.gmra.mrb[8].mxu0 %v14511_v57  ;;  %v7614_v27 = vpop.f32.mrb[142].mxu1 }
 0x55c   : > { %v7213_v40 = vmax.f32 %v7212_v45, %v6904_v37  ;;  %v6906_v29 = vmax.f32 %v6313_v63, 0.0  ;;  %v8231_v39 = vmax.f32 %v7611_v0, 0.0  ;;  %v7615_v50 = vadd.f32 %v7614_v27, %v15581_v61  ;;  %v7616_v11 = vpop.f32.mrb[143].mxu1  ;;  %6584 = vmatprep.mubr.bf16.mxu0 %v16714_v47 }
 0x55d   : > { %v7145_v2 = vmax.f32 %v7144_v24, %v6905_v12  ;;  %v8232_v7 = vmax.f32 %v7613_v62, 0.0  ;;  %v7617_v44 = vadd.f32 %v7616_v11, %v15586_v9 }
 0x55e   : > { %v7214_v1 = vmax.f32 %v7213_v40, %v6906_v29  ;;  %v8480_v17 = vmax.f32 %v8479_v51, %v8231_v39  ;;  %v8233_v26 = vmax.f32 %v7615_v50, 0.0  ;;  %v6316_v20 = vpop.f32.mrb[160].mxu0  ;;  %7879 = vmatmul.mubr.bf16.gmra.mrb[248].mxu1 %v16760_v8 }
 0x55f   : > { %v8549_v4 = vmax.f32 %v8548_v52, %v8232_v7  ;;  %v8234_v59 = vmax.f32 %v7617_v44, 0.0  ;;  %v6317_v45 = vadd.f32 %v6316_v20, %v15505_v36  ;;  %v6318_v16 = vpop.f32.mrb[161].mxu0  ;;  %7888 = vmatprep.mubr.bf16.mxu1 %v16714_v47 }
 0x560   : > { %v8481_v53 = vmax.f32 %v8480_v17, %v8233_v26  ;;  %v6319_v28 = vadd.f32 %v6318_v16, %v15510_v13  ;;  %v6320_v38 = vpop.f32.mrb[162].mxu0 }
 0x561   : > { %v8550_v10 = vmax.f32 %v8549_v4, %v8234_v59  ;;  %v6907_v60 = vmax.f32 %v6317_v45, 0.0  ;;  %v6321_v35 = vadd.f32 %v6320_v38, %v15505_v36  ;;  %v6322_v51 = vpop.f32.mrb[163].mxu0  ;;  %v7620_v41 = vpop.f32.mrb[144].mxu1 }
 0x562   : > { %v6908_v23 = vmax.f32 %v6319_v28, 0.0  ;;  %v6323_v8 = vadd.f32 %v6322_v51, %v15510_v13  ;;  %v7621_v52 = vadd.f32 %v7620_v41, %v15581_v61  ;;  %v7622_v48 = vpop.f32.mrb[145].mxu1 }
 0x563   : > { %v7146_v37 = vmax.f32 %v7145_v2, %v6907_v60  ;;  %v6909_v63 = vmax.f32 %v6321_v35, 0.0  ;;  %v7623_v0 = vadd.f32 %v7622_v48, %v15586_v9  ;;  %6585 = vmatmul.mubr.bf16.gmra.mrb[12].mxu0 %v14509_v56  ;;  %v7624_v15 = vpop.f32.mrb[146].mxu1 }
 0x564   : > { %v7215_v24 = vmax.f32 %v7214_v1, %v6908_v23  ;;  %v6910_v12 = vmax.f32 %v6323_v8, 0.0  ;;  %v8235_v62 = vmax.f32 %v7621_v52, 0.0  ;;  %v7625_v27 = vadd.f32 %v7624_v15, %v15581_v61  ;;  %v7626_v40 = vpop.f32.mrb[147].mxu1  ;;  %6594 = vmatprep.mubr.bf16.mxu0 %v16714_v47 }
 0x565   : > { %v7147_v29 = vmax.f32 %v7146_v37, %v6909_v63  ;;  %v8236_v39 = vmax.f32 %v7623_v0, 0.0  ;;  %v7627_v50 = vadd.f32 %v7626_v40, %v15586_v9 }
 0x566   : > { %v7216_v11 = vmax.f32 %v7215_v24, %v6910_v12  ;;  %v8482_v2 = vmax.f32 %v8481_v53, %v8235_v62  ;;  %v8237_v7 = vmax.f32 %v7625_v27, 0.0  ;;  %v6326_v44 = vpop.f32.mrb[164].mxu0  ;;  %7889 = vmatmul.mubr.bf16.gmra.mrb[252].mxu1 %v16761_v49 }
 0x567   : > { %v8551_v17 = vmax.f32 %v8550_v10, %v8236_v39  ;;  %v8238_v26 = vmax.f32 %v7627_v50, 0.0  ;;  %v6327_v1 = vadd.f32 %v6326_v44, %v15505_v36  ;;  %v6328_v20 = vpop.f32.mrb[165].mxu0  ;;  %7898 = vmatprep.mubr.bf16.mxu1 %v16714_v47 }
 0x568   : > { %v8483_v4 = vmax.f32 %v8482_v2, %v8237_v7  ;;  %v6329_v59 = vadd.f32 %v6328_v20, %v15510_v13  ;;  %v6330_v45 = vpop.f32.mrb[166].mxu0 }
 0x569   : > { %v8552_v16 = vmax.f32 %v8551_v17, %v8238_v26  ;;  %v6911_v28 = vmax.f32 %v6327_v1, 0.0  ;;  %v6331_v38 = vadd.f32 %v6330_v45, %v15505_v36  ;;  %v6332_v53 = vpop.f32.mrb[167].mxu0  ;;  %v7630_v60 = vpop.f32.mrb[148].mxu1 }
 0x56a   : > { %v6912_v35 = vmax.f32 %v6329_v59, 0.0  ;;  %v6333_v49 = vadd.f32 %v6332_v53, %v15510_v13  ;;  %v7631_v10 = vadd.f32 %v7630_v60, %v15581_v61  ;;  %v7632_v51 = vpop.f32.mrb[149].mxu1 }
 0x56b   : > { %v7148_v41 = vmax.f32 %v7147_v29, %v6911_v28  ;;  %v6913_v23 = vmax.f32 %v6331_v38, 0.0  ;;  %v7633_v8 = vadd.f32 %v7632_v51, %v15586_v9  ;;  %6595 = vmatmul.mubr.bf16.gmra.mrb[16].mxu0 %v14523_v31  ;;  %v7634_v52 = vpop.f32.mrb[150].mxu1 }
 0x56c   : > { %v7217_v48 = vmax.f32 %v7216_v11, %v6912_v35  ;;  %v6914_v37 = vmax.f32 %v6333_v49, 0.0  ;;  %v8239_v63 = vmax.f32 %v7631_v10, 0.0  ;;  %v7635_v0 = vadd.f32 %v7634_v52, %v15581_v61  ;;  %v7636_v15 = vpop.f32.mrb[151].mxu1  ;;  %6604 = vmatprep.mubr.bf16.mxu0 %v16714_v47 }
 0x56d   : > { %v7149_v24 = vmax.f32 %v7148_v41, %v6913_v23  ;;  %v8240_v12 = vmax.f32 %v7633_v8, 0.0  ;;  %v7637_v62 = vadd.f32 %v7636_v15, %v15586_v9 }
 0x56e   : > { %v7218_v27 = vmax.f32 %v7217_v48, %v6914_v37  ;;  %v8484_v40 = vmax.f32 %v8483_v4, %v8239_v63  ;;  %v8241_v29 = vmax.f32 %v7635_v0, 0.0  ;;  %v6336_v39 = vpop.f32.mrb[168].mxu0  ;;  %7899 = vmatmul.mubr.bf16.gmra.mrb[0].mxu1 %v16762_v46 }
 0x56f   : > { %v8553_v50 = vmax.f32 %v8552_v16, %v8240_v12  ;;  %v8242_v2 = vmax.f32 %v7637_v62, 0.0  ;;  %v6337_v11 = vadd.f32 %v6336_v39, %v15505_v36  ;;  %v6338_v7 = vpop.f32.mrb[169].mxu0  ;;  %7908 = vmatprep.mubr.bf16.mxu1 %v16714_v47 }
 0x570   : > { %v8485_v44 = vmax.f32 %v8484_v40, %v8241_v29  ;;  %v6339_v17 = vadd.f32 %v6338_v7, %v15510_v13  ;;  %v6340_v26 = vpop.f32.mrb[170].mxu0 }
 0x571   : > { %v8554_v1 = vmax.f32 %v8553_v50, %v8242_v2  ;;  %v6915_v20 = vmax.f32 %v6337_v11, 0.0  ;;  %v6341_v59 = vadd.f32 %v6340_v26, %v15505_v36  ;;  %v6342_v4 = vpop.f32.mrb[171].mxu0  ;;  %v7640_v45 = vpop.f32.mrb[152].mxu1 }
 0x572   : > { %v6916_v28 = vmax.f32 %v6339_v17, 0.0  ;;  %v6343_v46 = vadd.f32 %v6342_v4, %v15510_v13  ;;  %v7641_v16 = vadd.f32 %v7640_v45, %v15581_v61  ;;  %v7642_v38 = vpop.f32.mrb[153].mxu1 }
 0x573   : > { %v7150_v53 = vmax.f32 %v7149_v24, %v6915_v20  ;;  %v6917_v60 = vmax.f32 %v6341_v59, 0.0  ;;  %v7643_v35 = vadd.f32 %v7642_v38, %v15586_v9  ;;  %6605 = vmatmul.mubr.bf16.gmra.mrb[20].mxu0 %v14521_v30  ;;  %v7644_v49 = vpop.f32.mrb[154].mxu1 }
 0x574   : > { %v7219_v10 = vmax.f32 %v7218_v27, %v6916_v28  ;;  %v6918_v51 = vmax.f32 %v6343_v46, 0.0  ;;  %v8243_v41 = vmax.f32 %v7641_v16, 0.0  ;;  %v7645_v23 = vadd.f32 %v7644_v49, %v15581_v61  ;;  %v7646_v8 = vpop.f32.mrb[155].mxu1  ;;  %6614 = vmatprep.mubr.bf16.mxu0 %v16714_v47 }
 0x575   : > { %v7151_v52 = vmax.f32 %v7150_v53, %v6917_v60  ;;  %v8244_v48 = vmax.f32 %v7643_v35, 0.0  ;;  %v7647_v37 = vadd.f32 %v7646_v8, %v15586_v9 }
 0x576   : > { %v7220_v63 = vmax.f32 %v7219_v10, %v6918_v51  ;;  %v8486_v0 = vmax.f32 %v8485_v44, %v8243_v41  ;;  %v8245_v15 = vmax.f32 %v7645_v23, 0.0  ;;  %v6346_v24 = vpop.f32.mrb[172].mxu0  ;;  %7909 = vmatmul.mubr.bf16.gmra.mrb[4].mxu1 %v14497_v32 }
 0x577   : > { %v8555_v12 = vmax.f32 %v8554_v1, %v8244_v48  ;;  %v8246_v62 = vmax.f32 %v7647_v37, 0.0  ;;  %v6347_v27 = vadd.f32 %v6346_v24, %v15505_v36  ;;  %v6348_v40 = vpop.f32.mrb[173].mxu0  ;;  %7918 = vmatprep.mubr.bf16.mxu1 %v16714_v47 }
 0x578   : > { %v8487_v29 = vmax.f32 %v8486_v0, %v8245_v15  ;;  %v6349_v39 = vadd.f32 %v6348_v40, %v15510_v13  ;;  %v6350_v50 = vpop.f32.mrb[174].mxu0 }
 0x579   : > { %v8556_v2 = vmax.f32 %v8555_v12, %v8246_v62  ;;  %v6919_v11 = vmax.f32 %v6347_v27, 0.0  ;;  %v6351_v7 = vadd.f32 %v6350_v50, %v15505_v36  ;;  %v6352_v44 = vpop.f32.mrb[175].mxu0  ;;  %v7650_v17 = vpop.f32.mrb[156].mxu1 }
 0x57a   : > { %v6920_v26 = vmax.f32 %v6349_v39, 0.0  ;;  %v6353_v32 = vadd.f32 %v6352_v44, %v15510_v13  ;;  %v7651_v1 = vadd.f32 %v7650_v17, %v15581_v61  ;;  %v7652_v20 = vpop.f32.mrb[157].mxu1 }
 0x57b   : > { %v7152_v59 = vmax.f32 %v7151_v52, %v6919_v11  ;;  %v6921_v4 = vmax.f32 %v6351_v7, 0.0  ;;  %v7653_v45 = vadd.f32 %v7652_v20, %v15586_v9  ;;  %6615 = vmatmul.mubr.bf16.gmra.mrb[24].mxu0 %v14535_v19  ;;  %v7654_v28 = vpop.f32.mrb[158].mxu1 }
 0x57c   : > { %v7221_v46 = vmax.f32 %v7220_v63, %v6920_v26  ;;  %v6922_v16 = vmax.f32 %v6353_v32, 0.0  ;;  %v8247_v38 = vmax.f32 %v7651_v1, 0.0  ;;  %v7655_v53 = vadd.f32 %v7654_v28, %v15581_v61  ;;  %v7656_v60 = vpop.f32.mrb[159].mxu1  ;;  %6624 = vmatprep.mubr.bf16.mxu0 %v16714_v47 }
 0x57d   : > { %v7153_v35 = vmax.f32 %v7152_v59, %v6921_v4  ;;  %v8248_v49 = vmax.f32 %v7653_v45, 0.0  ;;  %v7657_v10 = vadd.f32 %v7656_v60, %v15586_v9 }
 0x57e   : > { %v7222_v51 = vmax.f32 %v7221_v46, %v6922_v16  ;;  %v8488_v41 = vmax.f32 %v8487_v29, %v8247_v38  ;;  %v8249_v23 = vmax.f32 %v7655_v53, 0.0  ;;  %v6356_v8 = vpop.f32.mrb[176].mxu0  ;;  %7919 = vmatmul.mubr.bf16.gmra.mrb[8].mxu1 %v14511_v57 }
 0x57f   : > { %v8557_v52 = vmax.f32 %v8556_v2, %v8248_v49  ;;  %v8250_v48 = vmax.f32 %v7657_v10, 0.0  ;;  %v6357_v37 = vadd.f32 %v6356_v8, %v15505_v36  ;;  %v6358_v63 = vpop.f32.mrb[177].mxu0  ;;  %7928 = vmatprep.mubr.bf16.mxu1 %v16714_v47 }
 0x580   : > { %v8489_v0 = vmax.f32 %v8488_v41, %v8249_v23  ;;  %v6359_v15 = vadd.f32 %v6358_v63, %v15510_v13  ;;  %v6360_v24 = vpop.f32.mrb[178].mxu0 }
 0x581   : > { %v8558_v12 = vmax.f32 %v8557_v52, %v8250_v48  ;;  %v6923_v62 = vmax.f32 %v6357_v37, 0.0  ;;  %v6361_v27 = vadd.f32 %v6360_v24, %v15505_v36  ;;  %v6362_v40 = vpop.f32.mrb[179].mxu0  ;;  %v7660_v29 = vpop.f32.mrb[160].mxu1 }
 0x582   : > { %v6924_v39 = vmax.f32 %v6359_v15, 0.0  ;;  %v6363_v57 = vadd.f32 %v6362_v40, %v15510_v13  ;;  %v7661_v50 = vadd.f32 %v7660_v29, %v15581_v61  ;;  %v7662_v2 = vpop.f32.mrb[161].mxu1 }
 0x583   : > { %v7154_v11 = vmax.f32 %v7153_v35, %v6923_v62  ;;  %v6925_v7 = vmax.f32 %v6361_v27, 0.0  ;;  %v7663_v44 = vadd.f32 %v7662_v2, %v15586_v9  ;;  %6625 = vmatmul.mubr.bf16.gmra.mrb[28].mxu0 %v14533_v58  ;;  %v7664_v17 = vpop.f32.mrb[162].mxu1 }
 0x584   : > { %v7223_v26 = vmax.f32 %v7222_v51, %v6924_v39  ;;  %v6926_v32 = vmax.f32 %v6363_v57, 0.0  ;;  %v8251_v1 = vmax.f32 %v7661_v50, 0.0  ;;  %v7665_v20 = vadd.f32 %v7664_v17, %v15581_v61  ;;  %v7666_v59 = vpop.f32.mrb[163].mxu1  ;;  %6634 = vmatprep.mubr.bf16.mxu0 %v16714_v47 }
 0x585   : > { %v7155_v4 = vmax.f32 %v7154_v11, %v6925_v7  ;;  %v8252_v45 = vmax.f32 %v7663_v44, 0.0  ;;  %v7667_v28 = vadd.f32 %v7666_v59, %v15586_v9 }
 0x586   : > { %v7224_v46 = vmax.f32 %v7223_v26, %v6926_v32  ;;  %v8490_v16 = vmax.f32 %v8489_v0, %v8251_v1  ;;  %v8253_v38 = vmax.f32 %v7665_v20, 0.0  ;;  %v6366_v53 = vpop.f32.mrb[180].mxu0  ;;  %7929 = vmatmul.mubr.bf16.gmra.mrb[12].mxu1 %v14509_v56 }
 0x587   : > { %v8559_v60 = vmax.f32 %v8558_v12, %v8252_v45  ;;  %v8254_v35 = vmax.f32 %v7667_v28, 0.0  ;;  %v6367_v49 = vadd.f32 %v6366_v53, %v15505_v36  ;;  %v6368_v10 = vpop.f32.mrb[181].mxu0  ;;  %7938 = vmatprep.mubr.bf16.mxu1 %v16714_v47 }
 0x588   : > { %v8491_v51 = vmax.f32 %v8490_v16, %v8253_v38  ;;  %v6369_v41 = vadd.f32 %v6368_v10, %v15510_v13  ;;  %v6370_v23 = vpop.f32.mrb[182].mxu0 }
 0x589   : > { %v8560_v8 = vmax.f32 %v8559_v60, %v8254_v35  ;;  %v6927_v52 = vmax.f32 %v6367_v49, 0.0  ;;  %v6371_v48 = vadd.f32 %v6370_v23, %v15505_v36  ;;  %v6372_v37 = vpop.f32.mrb[183].mxu0  ;;  %v7670_v63 = vpop.f32.mrb[164].mxu1 }
 0x58a   : > { %v6928_v0 = vmax.f32 %v6369_v41, 0.0  ;;  %v6373_v56 = vadd.f32 %v6372_v37, %v15510_v13  ;;  %v7671_v15 = vadd.f32 %v7670_v63, %v15581_v61  ;;  %v7672_v24 = vpop.f32.mrb[165].mxu1 }
 0x58b   : > { %v7156_v12 = vmax.f32 %v7155_v4, %v6927_v52  ;;  %v6929_v62 = vmax.f32 %v6371_v48, 0.0  ;;  %v7673_v27 = vadd.f32 %v7672_v24, %v15586_v9  ;;  %6635 = vmatmul.mubr.bf16.gmra.mrb[32].mxu0 %v14547_v34  ;;  %v7674_v40 = vpop.f32.mrb[166].mxu1 }
 0x58c   : > { %v7225_v29 = vmax.f32 %v7224_v46, %v6928_v0  ;;  %v6930_v39 = vmax.f32 %v6373_v56, 0.0  ;;  %v8255_v57 = vmax.f32 %v7671_v15, 0.0  ;;  %v7675_v50 = vadd.f32 %v7674_v40, %v15581_v61  ;;  %v7676_v2 = vpop.f32.mrb[167].mxu1  ;;  %6644 = vmatprep.mubr.bf16.mxu0 %v16714_v47 }
 0x58d   : > { %v7157_v11 = vmax.f32 %v7156_v12, %v6929_v62  ;;  %v8256_v7 = vmax.f32 %v7673_v27, 0.0  ;;  %v7677_v44 = vadd.f32 %v7676_v2, %v15586_v9 }
 0x58e   : > { %v7226_v17 = vmax.f32 %v7225_v29, %v6930_v39  ;;  %v8492_v26 = vmax.f32 %v8491_v51, %v8255_v57  ;;  %v8257_v32 = vmax.f32 %v7675_v50, 0.0  ;;  %v6376_v1 = vpop.f32.mrb[184].mxu0  ;;  %7939 = vmatmul.mubr.bf16.gmra.mrb[16].mxu1 %v14523_v31 }
 0x58f   : > { %v8561_v20 = vmax.f32 %v8560_v8, %v8256_v7  ;;  %v8258_v59 = vmax.f32 %v7677_v44, 0.0  ;;  %v6377_v4 = vadd.f32 %v6376_v1, %v15505_v36  ;;  %v6378_v45 = vpop.f32.mrb[185].mxu0  ;;  %7948 = vmatprep.mubr.bf16.mxu1 %v16714_v47 }
 0x590   : > { %v8493_v28 = vmax.f32 %v8492_v26, %v8257_v32  ;;  %v6379_v46 = vadd.f32 %v6378_v45, %v15510_v13  ;;  %v6380_v16 = vpop.f32.mrb[186].mxu0 }
 0x591   : > { %v8562_v38 = vmax.f32 %v8561_v20, %v8258_v59  ;;  %v6931_v53 = vmax.f32 %v6377_v4, 0.0  ;;  %v6381_v60 = vadd.f32 %v6380_v16, %v15505_v36  ;;  %v6382_v35 = vpop.f32.mrb[187].mxu0  ;;  %v7680_v49 = vpop.f32.mrb[168].mxu1 }
 0x592   : > { %v6932_v10 = vmax.f32 %v6379_v46, 0.0  ;;  %v6383_v31 = vadd.f32 %v6382_v35, %v15510_v13  ;;  %v7681_v51 = vadd.f32 %v7680_v49, %v15581_v61  ;;  %v7682_v41 = vpop.f32.mrb[169].mxu1 }
 0x593   : > { %v7158_v23 = vmax.f32 %v7157_v11, %v6931_v53  ;;  %v6933_v8 = vmax.f32 %v6381_v60, 0.0  ;;  %v7683_v52 = vadd.f32 %v7682_v41, %v15586_v9  ;;  %6645 = vmatmul.mubr.bf16.gmra.mrb[36].mxu0 %v14545_v33  ;;  %v7684_v48 = vpop.f32.mrb[170].mxu1 }
 0x594   : > { %v7227_v37 = vmax.f32 %v7226_v17, %v6932_v10  ;;  %v6934_v63 = vmax.f32 %v6383_v31, 0.0  ;;  %v8259_v0 = vmax.f32 %v7681_v51, 0.0  ;;  %v7685_v56 = vadd.f32 %v7684_v48, %v15581_v61  ;;  %v7686_v15 = vpop.f32.mrb[171].mxu1  ;;  %6654 = vmatprep.mubr.bf16.mxu0 %v16714_v47 }
 0x595   : > { %v7159_v24 = vmax.f32 %v7158_v23, %v6933_v8  ;;  %v8260_v12 = vmax.f32 %v7683_v52, 0.0  ;;  %v7687_v62 = vadd.f32 %v7686_v15, %v15586_v9 }
 0x596   : > { %v7228_v27 = vmax.f32 %v7227_v37, %v6934_v63  ;;  %v8494_v40 = vmax.f32 %v8493_v28, %v8259_v0  ;;  %v8261_v29 = vmax.f32 %v7685_v56, 0.0  ;;  %v6386_v39 = vpop.f32.mrb[188].mxu0  ;;  %7949 = vmatmul.mubr.bf16.gmra.mrb[20].mxu1 %v14521_v30 }
 0x597   : > { %v8563_v57 = vmax.f32 %v8562_v38, %v8260_v12  ;;  %v8262_v50 = vmax.f32 %v7687_v62, 0.0  ;;  %v6387_v2 = vadd.f32 %v6386_v39, %v15505_v36  ;;  %v6388_v11 = vpop.f32.mrb[189].mxu0  ;;  %7958 = vmatprep.mubr.bf16.mxu1 %v16714_v47 }
 0x598   : > { %v8495_v7 = vmax.f32 %v8494_v40, %v8261_v29  ;;  %v6389_v44 = vadd.f32 %v6388_v11, %v15510_v13  ;;  %v6390_v17 = vpop.f32.mrb[190].mxu0 }
 0x599   : > { %v8564_v26 = vmax.f32 %v8563_v57, %v8262_v50  ;;  %v6935_v32 = vmax.f32 %v6387_v2, 0.0  ;;  %v6391_v1 = vadd.f32 %v6390_v17, %v15505_v36  ;;  %v6392_v20 = vpop.f32.mrb[191].mxu0  ;;  %v7690_v59 = vpop.f32.mrb[172].mxu1 }
 0x59a   : > { %v6936_v4 = vmax.f32 %v6389_v44, 0.0  ;;  %v6393_v30 = vadd.f32 %v6392_v20, %v15510_v13  ;;  %v7691_v45 = vadd.f32 %v7690_v59, %v15581_v61  ;;  %v7692_v28 = vpop.f32.mrb[173].mxu1 }
 0x59b   : > { %v7160_v46 = vmax.f32 %v7159_v24, %v6935_v32  ;;  %v6937_v16 = vmax.f32 %v6391_v1, 0.0  ;;  %v7693_v38 = vadd.f32 %v7692_v28, %v15586_v9  ;;  %6655 = vmatmul.mubr.bf16.gmra.mrb[40].mxu0 %v14559_v18  ;;  %v7694_v53 = vpop.f32.mrb[174].mxu1 }
 0x59c   : > { %v7229_v60 = vmax.f32 %v7228_v27, %v6936_v4  ;;  %v6938_v35 = vmax.f32 %v6393_v30, 0.0  ;;  %v8263_v49 = vmax.f32 %v7691_v45, 0.0  ;;  %v7695_v10 = vadd.f32 %v7694_v53, %v15581_v61  ;;  %v7696_v31 = vpop.f32.mrb[175].mxu1  ;;  %6664 = vmatprep.mubr.bf16.mxu0 %v16714_v47 }
 0x59d   : > { %v7161_v51 = vmax.f32 %v7160_v46, %v6937_v16  ;;  %v8264_v41 = vmax.f32 %v7693_v38, 0.0  ;;  %v7697_v23 = vadd.f32 %v7696_v31, %v15586_v9 }
 0x59e   : > { %v7230_v8 = vmax.f32 %v7229_v60, %v6938_v35  ;;  %v8496_v52 = vmax.f32 %v8495_v7, %v8263_v49  ;;  %v8265_v48 = vmax.f32 %v7695_v10, 0.0  ;;  %v6396_v37 = vpop.f32.mrb[192].mxu0  ;;  %7959 = vmatmul.mubr.bf16.gmra.mrb[24].mxu1 %v14535_v19 }
 0x59f   : > { %v8565_v63 = vmax.f32 %v8564_v26, %v8264_v41  ;;  %v8266_v0 = vmax.f32 %v7697_v23, 0.0  ;;  %v6397_v56 = vadd.f32 %v6396_v37, %v15505_v36  ;;  %v6398_v15 = vpop.f32.mrb[193].mxu0  ;;  %7968 = vmatprep.mubr.bf16.mxu1 %v16714_v47 }
 0x5a0   : > { %v8497_v24 = vmax.f32 %v8496_v52, %v8265_v48  ;;  %v6399_v12 = vadd.f32 %v6398_v15, %v15510_v13  ;;  %v6400_v62 = vpop.f32.mrb[194].mxu0 }
 0x5a1   : > { %v8566_v27 = vmax.f32 %v8565_v63, %v8266_v0  ;;  %v6939_v40 = vmax.f32 %v6397_v56, 0.0  ;;  %v6401_v29 = vadd.f32 %v6400_v62, %v15505_v36  ;;  %v6402_v39 = vpop.f32.mrb[195].mxu0  ;;  %v7700_v57 = vpop.f32.mrb[176].mxu1 }
 0x5a2   : > { %v6940_v50 = vmax.f32 %v6399_v12, 0.0  ;;  %v6403_v19 = vadd.f32 %v6402_v39, %v15510_v13  ;;  %v7701_v2 = vadd.f32 %v7700_v57, %v15581_v61  ;;  %v7702_v11 = vpop.f32.mrb[177].mxu1 }
 0x5a3   : > { %v7162_v7 = vmax.f32 %v7161_v51, %v6939_v40  ;;  %v6941_v44 = vmax.f32 %v6401_v29, 0.0  ;;  %v7703_v17 = vadd.f32 %v7702_v11, %v15586_v9  ;;  %6665 = vmatmul.mubr.bf16.gmra.mrb[44].mxu0 %v14557_v14  ;;  %v7704_v26 = vpop.f32.mrb[178].mxu1 }
 0x5a4   : > { %v7231_v32 = vmax.f32 %v7230_v8, %v6940_v50  ;;  %v6942_v1 = vmax.f32 %v6403_v19, 0.0  ;;  %v8267_v20 = vmax.f32 %v7701_v2, 0.0  ;;  %v7705_v59 = vadd.f32 %v7704_v26, %v15581_v61  ;;  %v7706_v4 = vpop.f32.mrb[179].mxu1  ;;  %6674 = vmatprep.mubr.bf16.mxu0 %v16714_v47 }
 0x5a5   : > { %v7163_v30 = vmax.f32 %v7162_v7, %v6941_v44  ;;  %v8268_v45 = vmax.f32 %v7703_v17, 0.0  ;;  %v7707_v28 = vadd.f32 %v7706_v4, %v15586_v9 }
 0x5a6   : > { %v7232_v46 = vmax.f32 %v7231_v32, %v6942_v1  ;;  %v8498_v16 = vmax.f32 %v8497_v24, %v8267_v20  ;;  %v8269_v38 = vmax.f32 %v7705_v59, 0.0  ;;  %v6406_v53 = vpop.f32.mrb[196].mxu0  ;;  %7969 = vmatmul.mubr.bf16.gmra.mrb[28].mxu1 %v14533_v58 }
 0x5a7   : > { %v8567_v60 = vmax.f32 %v8566_v27, %v8268_v45  ;;  %v8270_v35 = vmax.f32 %v7707_v28, 0.0  ;;  %v6407_v49 = vadd.f32 %v6406_v53, %v15505_v36  ;;  %v6408_v10 = vpop.f32.mrb[197].mxu0  ;;  %7978 = vmatprep.mubr.bf16.mxu1 %v16714_v47 }
 0x5a8   : > { %v8499_v31 = vmax.f32 %v8498_v16, %v8269_v38  ;;  %v6409_v51 = vadd.f32 %v6408_v10, %v15510_v13  ;;  %v6410_v41 = vpop.f32.mrb[198].mxu0 }
 0x5a9   : > { %v8568_v23 = vmax.f32 %v8567_v60, %v8270_v35  ;;  %v6943_v8 = vmax.f32 %v6407_v49, 0.0  ;;  %v6411_v52 = vadd.f32 %v6410_v41, %v15505_v36  ;;  %v6412_v48 = vpop.f32.mrb[199].mxu0  ;;  %v7710_v37 = vpop.f32.mrb[180].mxu1 }
 0x5aa   : > { %v6944_v63 = vmax.f32 %v6409_v51, 0.0  ;;  %v6413_v58 = vadd.f32 %v6412_v48, %v15510_v13  ;;  %v7711_v0 = vadd.f32 %v7710_v37, %v15581_v61  ;;  %v7712_v56 = vpop.f32.mrb[181].mxu1 }
 0x5ab   : > { %v7164_v15 = vmax.f32 %v7163_v30, %v6943_v8  ;;  %v6945_v24 = vmax.f32 %v6411_v52, 0.0  ;;  %v7713_v12 = vadd.f32 %v7712_v56, %v15586_v9  ;;  %6675 = vmatmul.mubr.bf16.gmra.mrb[48].mxu0 %v14588_v25  ;;  %v7714_v62 = vpop.f32.mrb[182].mxu1 }
 0x5ac   : > { %v7233_v27 = vmax.f32 %v7232_v46, %v6944_v63  ;;  %v6946_v40 = vmax.f32 %v6413_v58, 0.0  ;;  %v8271_v29 = vmax.f32 %v7711_v0, 0.0  ;;  %v7715_v39 = vadd.f32 %v7714_v62, %v15581_v61  ;;  %v7716_v57 = vpop.f32.mrb[183].mxu1  ;;  %6684 = vmatprep.mubr.bf16.mxu0 %v16714_v47 }
 0x5ad   : > { %v7165_v50 = vmax.f32 %v7164_v15, %v6945_v24  ;;  %v8272_v19 = vmax.f32 %v7713_v12, 0.0  ;;  %v7717_v2 = vadd.f32 %v7716_v57, %v15586_v9 }
 0x5ae   : > { %v7234_v11 = vmax.f32 %v7233_v27, %v6946_v40  ;;  %v8500_v7 = vmax.f32 %v8499_v31, %v8271_v29  ;;  %v8273_v44 = vmax.f32 %v7715_v39, 0.0  ;;  %v6416_v17 = vpop.f32.mrb[200].mxu0  ;;  %7979 = vmatmul.mubr.bf16.gmra.mrb[32].mxu1 %v14547_v34 }
 0x5af   : > { %v8569_v26 = vmax.f32 %v8568_v23, %v8272_v19  ;;  %v8274_v32 = vmax.f32 %v7717_v2, 0.0  ;;  %v6417_v1 = vadd.f32 %v6416_v17, %v15505_v36  ;;  %v6418_v20 = vpop.f32.mrb[201].mxu0  ;;  %7988 = vmatprep.mubr.bf16.mxu1 %v16714_v47 }
 0x5b0   : > { %v8501_v59 = vmax.f32 %v8500_v7, %v8273_v44  ;;  %v6419_v4 = vadd.f32 %v6418_v20, %v15510_v13  ;;  %v6420_v30 = vpop.f32.mrb[202].mxu0 }
 0x5b1   : > { %v8570_v45 = vmax.f32 %v8569_v26, %v8274_v32  ;;  %v6947_v28 = vmax.f32 %v6417_v1, 0.0  ;;  %v6421_v46 = vadd.f32 %v6420_v30, %v15505_v36  ;;  %v6422_v16 = vpop.f32.mrb[203].mxu0  ;;  %v7720_v38 = vpop.f32.mrb[184].mxu1 }
 0x5b2   : > { %v6948_v53 = vmax.f32 %v6419_v4, 0.0  ;;  %v6423_v34 = vadd.f32 %v6422_v16, %v15510_v13  ;;  %v7721_v60 = vadd.f32 %v7720_v38, %v15581_v61  ;;  %v7722_v35 = vpop.f32.mrb[185].mxu1 }
 0x5b3   : > { %v7166_v49 = vmax.f32 %v7165_v50, %v6947_v28  ;;  %v6949_v10 = vmax.f32 %v6421_v46, 0.0  ;;  %v7723_v31 = vadd.f32 %v7722_v35, %v15586_v9  ;;  %6685 = vmatmul.mubr.bf16.gmra.mrb[52].mxu0 %v14586_v43  ;;  %v7724_v51 = vpop.f32.mrb[186].mxu1 }
 0x5b4   : > { %v7235_v41 = vmax.f32 %v7234_v11, %v6948_v53  ;;  %v6950_v23 = vmax.f32 %v6423_v34, 0.0  ;;  %v8275_v8 = vmax.f32 %v7721_v60, 0.0  ;;  %v7725_v52 = vadd.f32 %v7724_v51, %v15581_v61  ;;  %v7726_v48 = vpop.f32.mrb[187].mxu1  ;;  %6694 = vmatprep.mubr.bf16.mxu0 %v16714_v47 }
 0x5b5   : > { %v7167_v37 = vmax.f32 %v7166_v49, %v6949_v10  ;;  %v8276_v63 = vmax.f32 %v7723_v31, 0.0  ;;  %v7727_v58 = vadd.f32 %v7726_v48, %v15586_v9 }
 0x5b6   : > { %v7236_v0 = vmax.f32 %v7235_v41, %v6950_v23  ;;  %v8502_v56 = vmax.f32 %v8501_v59, %v8275_v8  ;;  %v8277_v15 = vmax.f32 %v7725_v52, 0.0  ;;  %v6426_v24 = vpop.f32.mrb[204].mxu0  ;;  %7989 = vmatmul.mubr.bf16.gmra.mrb[36].mxu1 %v14545_v33 }
 0x5b7   : > { %v8571_v12 = vmax.f32 %v8570_v45, %v8276_v63  ;;  %v8278_v62 = vmax.f32 %v7727_v58, 0.0  ;;  %v6427_v27 = vadd.f32 %v6426_v24, %v15505_v36  ;;  %v6428_v40 = vpop.f32.mrb[205].mxu0  ;;  %7998 = vmatprep.mubr.bf16.mxu1 %v16714_v47 }
 0x5b8   : > { %v8503_v29 = vmax.f32 %v8502_v56, %v8277_v15  ;;  %v6429_v39 = vadd.f32 %v6428_v40, %v15510_v13  ;;  %v6430_v57 = vpop.f32.mrb[206].mxu0 }
 0x5b9   : > { %v8572_v50 = vmax.f32 %v8571_v12, %v8278_v62  ;;  %v6951_v19 = vmax.f32 %v6427_v27, 0.0  ;;  %v6431_v2 = vadd.f32 %v6430_v57, %v15505_v36  ;;  %v6432_v11 = vpop.f32.mrb[207].mxu0  ;;  %v7730_v7 = vpop.f32.mrb[188].mxu1 }
 0x5ba   : > { %v6952_v44 = vmax.f32 %v6429_v39, 0.0  ;;  %v6433_v33 = vadd.f32 %v6432_v11, %v15510_v13  ;;  %v7731_v17 = vadd.f32 %v7730_v7, %v15581_v61  ;;  %v7732_v26 = vpop.f32.mrb[189].mxu1 }
 0x5bb   : > { %v7168_v32 = vmax.f32 %v7167_v37, %v6951_v19  ;;  %v6953_v1 = vmax.f32 %v6431_v2, 0.0  ;;  %v7733_v20 = vadd.f32 %v7732_v26, %v15586_v9  ;;  %6695 = vmatmul.mubr.bf16.gmra.mrb[56].mxu0 %v14600_v21  ;;  %v7734_v59 = vpop.f32.mrb[190].mxu1 }
 0x5bc   : > { %v7237_v4 = vmax.f32 %v7236_v0, %v6952_v44  ;;  %v6954_v30 = vmax.f32 %v6433_v33, 0.0  ;;  %v8279_v45 = vmax.f32 %v7731_v17, 0.0  ;;  %v7735_v28 = vadd.f32 %v7734_v59, %v15581_v61  ;;  %v7736_v46 = vpop.f32.mrb[191].mxu1  ;;  %6704 = vmatprep.mubr.bf16.mxu0 %v16714_v47 }
 0x5bd   : > { %v7169_v16 = vmax.f32 %v7168_v32, %v6953_v1  ;;  %v8280_v38 = vmax.f32 %v7733_v20, 0.0  ;;  %v7737_v53 = vadd.f32 %v7736_v46, %v15586_v9 }
 0x5be   : > { %v7238_v34 = vmax.f32 %v7237_v4, %v6954_v30  ;;  %v8504_v60 = vmax.f32 %v8503_v29, %v8279_v45  ;;  %v8281_v35 = vmax.f32 %v7735_v28, 0.0  ;;  %v6436_v49 = vpop.f32.mrb[208].mxu0  ;;  %7999 = vmatmul.mubr.bf16.gmra.mrb[40].mxu1 %v14559_v18 }
 0x5bf   : > { %v8573_v10 = vmax.f32 %v8572_v50, %v8280_v38  ;;  %v8282_v31 = vmax.f32 %v7737_v53, 0.0  ;;  %v6437_v51 = vadd.f32 %v6436_v49, %v15505_v36  ;;  %v6438_v41 = vpop.f32.mrb[209].mxu0  ;;  %8008 = vmatprep.mubr.bf16.mxu1 %v16714_v47 }
 0x5c0   : > { %v8505_v23 = vmax.f32 %v8504_v60, %v8281_v35  ;;  %v6439_v8 = vadd.f32 %v6438_v41, %v15510_v13  ;;  %v6440_v52 = vpop.f32.mrb[210].mxu0 }
 0x5c1   : > { %v8574_v48 = vmax.f32 %v8573_v10, %v8282_v31  ;;  %v6955_v37 = vmax.f32 %v6437_v51, 0.0  ;;  %v6441_v63 = vadd.f32 %v6440_v52, %v15505_v36  ;;  %v6442_v58 = vpop.f32.mrb[211].mxu0  ;;  %v7740_v0 = vpop.f32.mrb[192].mxu1 }
 0x5c2   : > { %v6956_v56 = vmax.f32 %v6439_v8, 0.0  ;;  %v6443_v18 = vadd.f32 %v6442_v58, %v15510_v13  ;;  %v7741_v15 = vadd.f32 %v7740_v0, %v15581_v61  ;;  %v7742_v24 = vpop.f32.mrb[193].mxu1 }
 0x5c3   : > { %v7170_v12 = vmax.f32 %v7169_v16, %v6955_v37  ;;  %v6957_v62 = vmax.f32 %v6441_v63, 0.0  ;;  %v7743_v27 = vadd.f32 %v7742_v24, %v15586_v9  ;;  %6705 = vmatmul.mubr.bf16.gmra.mrb[60].mxu0 %v14598_v6  ;;  %v7744_v40 = vpop.f32.mrb[194].mxu1 }
 0x5c4   : > { %v7239_v29 = vmax.f32 %v7238_v34, %v6956_v56  ;;  %v6958_v39 = vmax.f32 %v6443_v18, 0.0  ;;  %v8283_v57 = vmax.f32 %v7741_v15, 0.0  ;;  %v7745_v50 = vadd.f32 %v7744_v40, %v15581_v61  ;;  %v7746_v19 = vpop.f32.mrb[195].mxu1  ;;  %6714 = vmatprep.mubr.bf16.mxu0 %v16714_v47 }
 0x5c5   : > { %v7171_v2 = vmax.f32 %v7170_v12, %v6957_v62  ;;  %v8284_v11 = vmax.f32 %v7743_v27, 0.0  ;;  %v7747_v7 = vadd.f32 %v7746_v19, %v15586_v9 }
 0x5c6   : > { %v7240_v44 = vmax.f32 %v7239_v29, %v6958_v39  ;;  %v8506_v33 = vmax.f32 %v8505_v23, %v8283_v57  ;;  %v8285_v17 = vmax.f32 %v7745_v50, 0.0  ;;  %v6446_v26 = vpop.f32.mrb[212].mxu0  ;;  %8009 = vmatmul.mubr.bf16.gmra.mrb[44].mxu1 %v14557_v14 }
 0x5c7   : > { %v8575_v32 = vmax.f32 %v8574_v48, %v8284_v11  ;;  %v8286_v1 = vmax.f32 %v7747_v7, 0.0  ;;  %v6447_v20 = vadd.f32 %v6446_v26, %v15505_v36  ;;  %v6448_v59 = vpop.f32.mrb[213].mxu0  ;;  %8018 = vmatprep.mubr.bf16.mxu1 %v16714_v47 }
 0x5c8   : > { %v8507_v4 = vmax.f32 %v8506_v33, %v8285_v17  ;;  %v6449_v30 = vadd.f32 %v6448_v59, %v15510_v13  ;;  %v6450_v45 = vpop.f32.mrb[214].mxu0 }
 0x5c9   : > { %v8576_v28 = vmax.f32 %v8575_v32, %v8286_v1  ;;  %v6959_v46 = vmax.f32 %v6447_v20, 0.0  ;;  %v6451_v16 = vadd.f32 %v6450_v45, %v15505_v36  ;;  %v6452_v38 = vpop.f32.mrb[215].mxu0  ;;  %v7750_v53 = vpop.f32.mrb[196].mxu1 }
 0x5ca   : > { %v6960_v34 = vmax.f32 %v6449_v30, 0.0  ;;  %v6453_v14 = vadd.f32 %v6452_v38, %v15510_v13  ;;  %v7751_v60 = vadd.f32 %v7750_v53, %v15581_v61  ;;  %v7752_v35 = vpop.f32.mrb[197].mxu1 }
 0x5cb   : > { %v7172_v49 = vmax.f32 %v7171_v2, %v6959_v46  ;;  %v6961_v10 = vmax.f32 %v6451_v16, 0.0  ;;  %v7753_v31 = vadd.f32 %v7752_v35, %v15586_v9  ;;  %6715 = vmatmul.mubr.bf16.gmra.mrb[64].mxu0 %v14612_v5  ;;  %v7754_v51 = vpop.f32.mrb[198].mxu1 }
 0x5cc   : > { %v7241_v41 = vmax.f32 %v7240_v44, %v6960_v34  ;;  %v6962_v23 = vmax.f32 %v6453_v14, 0.0  ;;  %v8287_v8 = vmax.f32 %v7751_v60, 0.0  ;;  %v7755_v52 = vadd.f32 %v7754_v51, %v15581_v61  ;;  %v7756_v48 = vpop.f32.mrb[199].mxu1  ;;  %6724 = vmatprep.mubr.bf16.mxu0 %v16714_v47 }
 0x5cd   : > { %v7173_v37 = vmax.f32 %v7172_v49, %v6961_v10  ;;  %v8288_v63 = vmax.f32 %v7753_v31, 0.0  ;;  %v7757_v58 = vadd.f32 %v7756_v48, %v15586_v9 }
 0x5ce   : > { %v7242_v0 = vmax.f32 %v7241_v41, %v6962_v23  ;;  %v8508_v56 = vmax.f32 %v8507_v4, %v8287_v8  ;;  %v8289_v18 = vmax.f32 %v7755_v52, 0.0  ;;  %v6456_v15 = vpop.f32.mrb[216].mxu0  ;;  %8019 = vmatmul.mubr.bf16.gmra.mrb[48].mxu1 %v14588_v25 }
 0x5cf   : > { %v8577_v24 = vmax.f32 %v8576_v28, %v8288_v63  ;;  %v8290_v12 = vmax.f32 %v7757_v58, 0.0  ;;  %v6457_v62 = vadd.f32 %v6456_v15, %v15505_v36  ;;  %v6458_v27 = vpop.f32.mrb[217].mxu0  ;;  %8028 = vmatprep.mubr.bf16.mxu1 %v16714_v47 }
 0x5d0   : > { %v8509_v40 = vmax.f32 %v8508_v56, %v8289_v18  ;;  %v6459_v29 = vadd.f32 %v6458_v27, %v15510_v13  ;;  %v6460_v39 = vpop.f32.mrb[218].mxu0 }
 0x5d1   : > { %v8578_v57 = vmax.f32 %v8577_v24, %v8290_v12  ;;  %v6963_v50 = vmax.f32 %v6457_v62, 0.0  ;;  %v6461_v19 = vadd.f32 %v6460_v39, %v15505_v36  ;;  %v6462_v2 = vpop.f32.mrb[219].mxu0  ;;  %v7760_v11 = vpop.f32.mrb[200].mxu1 }
 0x5d2   : > { %v6964_v7 = vmax.f32 %v6459_v29, 0.0  ;;  %v6463_v25 = vadd.f32 %v6462_v2, %v15510_v13  ;;  %v7761_v44 = vadd.f32 %v7760_v11, %v15581_v61  ;;  %v7762_v33 = vpop.f32.mrb[201].mxu1 }
 0x5d3   : > { %v7174_v17 = vmax.f32 %v7173_v37, %v6963_v50  ;;  %v6965_v26 = vmax.f32 %v6461_v19, 0.0  ;;  %v7763_v32 = vadd.f32 %v7762_v33, %v15586_v9  ;;  %6725 = vmatmul.mubr.bf16.gmra.mrb[68].mxu0 %v14610_v3  ;;  %v7764_v1 = vpop.f32.mrb[202].mxu1 }
 0x5d4   : > { %v7243_v20 = vmax.f32 %v7242_v0, %v6964_v7  ;;  %v6966_v59 = vmax.f32 %v6463_v25, 0.0  ;;  %v8291_v4 = vmax.f32 %v7761_v44, 0.0  ;;  %v7765_v30 = vadd.f32 %v7764_v1, %v15581_v61  ;;  %v7766_v45 = vpop.f32.mrb[203].mxu1  ;;  %6734 = vmatprep.mubr.bf16.mxu0 %v16714_v47 }
 0x5d5   : > { %v7175_v28 = vmax.f32 %v7174_v17, %v6965_v26  ;;  %v8292_v46 = vmax.f32 %v7763_v32, 0.0  ;;  %v7767_v16 = vadd.f32 %v7766_v45, %v15586_v9 }
 0x5d6   : > { %v7244_v38 = vmax.f32 %v7243_v20, %v6966_v59  ;;  %v8510_v53 = vmax.f32 %v8509_v40, %v8291_v4  ;;  %v8293_v34 = vmax.f32 %v7765_v30, 0.0  ;;  %v6466_v14 = vpop.f32.mrb[220].mxu0  ;;  %8029 = vmatmul.mubr.bf16.gmra.mrb[52].mxu1 %v14586_v43 }
 0x5d7   : > { %v8579_v60 = vmax.f32 %v8578_v57, %v8292_v46  ;;  %v8294_v35 = vmax.f32 %v7767_v16, 0.0  ;;  %v6467_v49 = vadd.f32 %v6466_v14, %v15505_v36  ;;  %v6468_v10 = vpop.f32.mrb[221].mxu0  ;;  %8038 = vmatprep.mubr.bf16.mxu1 %v16714_v47 }
 0x5d8   : > { %v8511_v31 = vmax.f32 %v8510_v53, %v8293_v34  ;;  %v6469_v51 = vadd.f32 %v6468_v10, %v15510_v13  ;;  %v6470_v41 = vpop.f32.mrb[222].mxu0 }
 0x5d9   : > { %v8580_v23 = vmax.f32 %v8579_v60, %v8294_v35  ;;  %v6967_v8 = vmax.f32 %v6467_v49, 0.0  ;;  %v6471_v52 = vadd.f32 %v6470_v41, %v15505_v36  ;;  %v6472_v48 = vpop.f32.mrb[223].mxu0  ;;  %v7770_v37 = vpop.f32.mrb[204].mxu1 }
 0x5da   : > { %v6968_v63 = vmax.f32 %v6469_v51, 0.0  ;;  %v6473_v43 = vadd.f32 %v6472_v48, %v15510_v13  ;;  %v7771_v58 = vadd.f32 %v7770_v37, %v15581_v61  ;;  %v7772_v0 = vpop.f32.mrb[205].mxu1 }
 0x5db   : > { %v7176_v56 = vmax.f32 %v7175_v28, %v6967_v8  ;;  %v6969_v18 = vmax.f32 %v6471_v52, 0.0  ;;  %v7773_v15 = vadd.f32 %v7772_v0, %v15586_v9  ;;  %6735 = vmatmul.mubr.bf16.gmra.mrb[72].mxu0 %v14624_v22  ;;  %v7774_v24 = vpop.f32.mrb[206].mxu1 }
 0x5dc   : > { %v7245_v12 = vmax.f32 %v7244_v38, %v6968_v63  ;;  %v6970_v62 = vmax.f32 %v6473_v43, 0.0  ;;  %v8295_v27 = vmax.f32 %v7771_v58, 0.0  ;;  %v7775_v40 = vadd.f32 %v7774_v24, %v15581_v61  ;;  %v7776_v29 = vpop.f32.mrb[207].mxu1  ;;  %6744 = vmatprep.mubr.bf16.mxu0 %v16714_v47 }
 0x5dd   : > { %v7177_v39 = vmax.f32 %v7176_v56, %v6969_v18  ;;  %v8296_v57 = vmax.f32 %v7773_v15, 0.0  ;;  %v7777_v50 = vadd.f32 %v7776_v29, %v15586_v9 }
 0x5de   : > { %v7246_v19 = vmax.f32 %v7245_v12, %v6970_v62  ;;  %v8512_v2 = vmax.f32 %v8511_v31, %v8295_v27  ;;  %v8297_v11 = vmax.f32 %v7775_v40, 0.0  ;;  %v6476_v7 = vpop.f32.mrb[224].mxu0  ;;  %8039 = vmatmul.mubr.bf16.gmra.mrb[56].mxu1 %v14600_v21 }
 0x5df   : > { %v8581_v25 = vmax.f32 %v8580_v23, %v8296_v57  ;;  %v8298_v44 = vmax.f32 %v7777_v50, 0.0  ;;  %v6477_v33 = vadd.f32 %v6476_v7, %v15505_v36  ;;  %v6478_v17 = vpop.f32.mrb[225].mxu0  ;;  %8048 = vmatprep.mubr.bf16.mxu1 %v16714_v47 }
 0x5e0   : > { %v8513_v26 = vmax.f32 %v8512_v2, %v8297_v11  ;;  %v6479_v32 = vadd.f32 %v6478_v17, %v15510_v13  ;;  %v6480_v1 = vpop.f32.mrb[226].mxu0  ;;  %v16764_v11 = vld [vmem:[#allocation50_spill] sm:$0xff] }
 0x5e1   : > { %v8582_v20 = vmax.f32 %v8581_v25, %v8298_v44  ;;  %v6971_v59 = vmax.f32 %v6477_v33, 0.0  ;;  %v6481_v4 = vadd.f32 %v6480_v1, %v15505_v36  ;;  %v6482_v30 = vpop.f32.mrb[227].mxu0  ;;  %v7780_v45 = vpop.f32.mrb[208].mxu1 }
 0x5e2   : > { %v6972_v28 = vmax.f32 %v6479_v32, 0.0  ;;  %v6483_v21 = vadd.f32 %v6482_v30, %v15510_v13  ;;  %v7781_v46 = vadd.f32 %v7780_v45, %v15581_v61  ;;  %v7782_v16 = vpop.f32.mrb[209].mxu1 }
 0x5e3   : > { %v7178_v38 = vmax.f32 %v7177_v39, %v6971_v59  ;;  %v6973_v53 = vmax.f32 %v6481_v4, 0.0  ;;  %v7783_v34 = vadd.f32 %v7782_v16, %v15586_v9  ;;  %6745 = vmatmul.mubr.bf16.gmra.mrb[76].mxu0 %v14622_v55  ;;  %v7784_v14 = vpop.f32.mrb[210].mxu1 }
 0x5e4   : > { %v7247_v60 = vmax.f32 %v7246_v19, %v6972_v28  ;;  %v6974_v35 = vmax.f32 %v6483_v21, 0.0  ;;  %v8299_v49 = vmax.f32 %v7781_v46, 0.0  ;;  %v7785_v10 = vadd.f32 %v7784_v14, %v15581_v61  ;;  %v7786_v31 = vpop.f32.mrb[211].mxu1  ;;  %6754 = vmatprep.mubr.bf16.mxu0 %v16714_v47 }
 0x5e5   : > { %v7179_v51 = vmax.f32 %v7178_v38, %v6973_v53  ;;  %v8300_v41 = vmax.f32 %v7783_v34, 0.0  ;;  %v7787_v23 = vadd.f32 %v7786_v31, %v15586_v9 }
 0x5e6   : > { %v7248_v8 = vmax.f32 %v7247_v60, %v6974_v35  ;;  %v8514_v52 = vmax.f32 %v8513_v26, %v8299_v49  ;;  %v8301_v48 = vmax.f32 %v7785_v10, 0.0  ;;  %v6486_v37 = vpop.f32.mrb[228].mxu0  ;;  %8049 = vmatmul.mubr.bf16.gmra.mrb[60].mxu1 %v14598_v6 }
 0x5e7   : > { %v8583_v63 = vmax.f32 %v8582_v20, %v8300_v41  ;;  %v8302_v43 = vmax.f32 %v7787_v23, 0.0  ;;  %v6487_v58 = vadd.f32 %v6486_v37, %v15505_v36  ;;  %v6488_v0 = vpop.f32.mrb[229].mxu0  ;;  %8058 = vmatprep.mubr.bf16.mxu1 %v16714_v47 }
 0x5e8   : > { %v8515_v56 = vmax.f32 %v8514_v52, %v8301_v48  ;;  %v6489_v18 = vadd.f32 %v6488_v0, %v15510_v13  ;;  %v6490_v15 = vpop.f32.mrb[230].mxu0  ;;  %v16765_v48 = vld [vmem:[#allocation48_spill] sm:$0xff] }
 0x5e9   : > { %v8584_v24 = vmax.f32 %v8583_v63, %v8302_v43  ;;  %v6975_v12 = vmax.f32 %v6487_v58, 0.0  ;;  %v6491_v62 = vadd.f32 %v6490_v15, %v15505_v36  ;;  %v6492_v27 = vpop.f32.mrb[231].mxu0  ;;  %v7790_v40 = vpop.f32.mrb[212].mxu1 }
 0x5ea   : > { %v6976_v29 = vmax.f32 %v6489_v18, 0.0  ;;  %v6493_v6 = vadd.f32 %v6492_v27, %v15510_v13  ;;  %v7791_v39 = vadd.f32 %v7790_v40, %v15581_v61  ;;  %v7792_v57 = vpop.f32.mrb[213].mxu1 }
 0x5eb   : > { %v7180_v50 = vmax.f32 %v7179_v51, %v6975_v12  ;;  %v6977_v19 = vmax.f32 %v6491_v62, 0.0  ;;  %v7793_v2 = vadd.f32 %v7792_v57, %v15586_v9  ;;  %6755 = vmatmul.mubr.bf16.gmra.mrb[80].mxu0 %v16764_v11  ;;  %v7794_v7 = vpop.f32.mrb[214].mxu1 }
 0x5ec   : > { %v7249_v25 = vmax.f32 %v7248_v8, %v6976_v29  ;;  %v6978_v44 = vmax.f32 %v6493_v6, 0.0  ;;  %v8303_v33 = vmax.f32 %v7791_v39, 0.0  ;;  %v7795_v17 = vadd.f32 %v7794_v7, %v15581_v61  ;;  %v7796_v26 = vpop.f32.mrb[215].mxu1  ;;  %6764 = vmatprep.mubr.bf16.mxu0 %v16714_v47 }
 0x5ed   : > { %v7181_v32 = vmax.f32 %v7180_v50, %v6977_v19  ;;  %v8304_v1 = vmax.f32 %v7793_v2, 0.0  ;;  %v7797_v20 = vadd.f32 %v7796_v26, %v15586_v9 }
 0x5ee   : > { %v7250_v59 = vmax.f32 %v7249_v25, %v6978_v44  ;;  %v8516_v4 = vmax.f32 %v8515_v56, %v8303_v33  ;;  %v8305_v30 = vmax.f32 %v7795_v17, 0.0  ;;  %v6496_v45 = vpop.f32.mrb[232].mxu0  ;;  %8059 = vmatmul.mubr.bf16.gmra.mrb[64].mxu1 %v14612_v5 }
 0x5ef   : > { %v8585_v28 = vmax.f32 %v8584_v24, %v8304_v1  ;;  %v8306_v21 = vmax.f32 %v7797_v20, 0.0  ;;  %v6497_v46 = vadd.f32 %v6496_v45, %v15505_v36  ;;  %v6498_v16 = vpop.f32.mrb[233].mxu0  ;;  %8068 = vmatprep.mubr.bf16.mxu1 %v16714_v47 }
 0x5f0   : > { %v8517_v38 = vmax.f32 %v8516_v4, %v8305_v30  ;;  %v6499_v53 = vadd.f32 %v6498_v16, %v15510_v13  ;;  %v6500_v34 = vpop.f32.mrb[234].mxu0  ;;  %v16766_v30 = vld [vmem:[#allocation52_spill] sm:$0xff] }
 0x5f1   : > { %v8586_v14 = vmax.f32 %v8585_v28, %v8306_v21  ;;  %v6979_v60 = vmax.f32 %v6497_v46, 0.0  ;;  %v6501_v35 = vadd.f32 %v6500_v34, %v15505_v36  ;;  %v6502_v49 = vpop.f32.mrb[235].mxu0  ;;  %v7800_v10 = vpop.f32.mrb[216].mxu1 }
 0x5f2   : > { %v6980_v31 = vmax.f32 %v6499_v53, 0.0  ;;  %v6503_v5 = vadd.f32 %v6502_v49, %v15510_v13  ;;  %v7801_v51 = vadd.f32 %v7800_v10, %v15581_v61  ;;  %v7802_v41 = vpop.f32.mrb[217].mxu1 }
 0x5f3   : > { %v7182_v23 = vmax.f32 %v7181_v32, %v6979_v60  ;;  %v6981_v8 = vmax.f32 %v6501_v35, 0.0  ;;  %v7803_v52 = vadd.f32 %v7802_v41, %v15586_v9  ;;  %6765 = vmatmul.mubr.bf16.gmra.mrb[84].mxu0 %v16765_v48  ;;  %v7804_v37 = vpop.f32.mrb[218].mxu1 }
 0x5f4   : > { %v7251_v63 = vmax.f32 %v7250_v59, %v6980_v31  ;;  %v6982_v43 = vmax.f32 %v6503_v5, 0.0  ;;  %v8307_v58 = vmax.f32 %v7801_v51, 0.0  ;;  %v7805_v0 = vadd.f32 %v7804_v37, %v15581_v61  ;;  %v7806_v56 = vpop.f32.mrb[219].mxu1  ;;  %6774 = vmatprep.mubr.bf16.mxu0 %v16714_v47 }
 0x5f5   : > { %v7183_v18 = vmax.f32 %v7182_v23, %v6981_v8  ;;  %v8308_v15 = vmax.f32 %v7803_v52, 0.0  ;;  %v7807_v24 = vadd.f32 %v7806_v56, %v15586_v9 }
 0x5f6   : > { %v7252_v12 = vmax.f32 %v7251_v63, %v6982_v43  ;;  %v8518_v62 = vmax.f32 %v8517_v38, %v8307_v58  ;;  %v8309_v27 = vmax.f32 %v7805_v0, 0.0  ;;  %v6506_v40 = vpop.f32.mrb[236].mxu0  ;;  %8069 = vmatmul.mubr.bf16.gmra.mrb[68].mxu1 %v14610_v3 }
 0x5f7   : > { %v8587_v29 = vmax.f32 %v8586_v14, %v8308_v15  ;;  %v8310_v6 = vmax.f32 %v7807_v24, 0.0  ;;  %v6507_v39 = vadd.f32 %v6506_v40, %v15505_v36  ;;  %v6508_v57 = vpop.f32.mrb[237].mxu0  ;;  %8078 = vmatprep.mubr.bf16.mxu1 %v16714_v47 }
 0x5f8   : > { %v8519_v50 = vmax.f32 %v8518_v62, %v8309_v27  ;;  %v6509_v19 = vadd.f32 %v6508_v57, %v15510_v13  ;;  %v6510_v2 = vpop.f32.mrb[238].mxu0  ;;  %v16767_v27 = vld [vmem:[#allocation51_spill] sm:$0xff] }
 0x5f9   : > { %v8588_v7 = vmax.f32 %v8587_v29, %v8310_v6  ;;  %v6983_v25 = vmax.f32 %v6507_v39, 0.0  ;;  %v6511_v44 = vadd.f32 %v6510_v2, %v15505_v36  ;;  %v6512_v33 = vpop.f32.mrb[239].mxu0  ;;  %v7810_v17 = vpop.f32.mrb[220].mxu1 }
 0x5fa   : > { %v6984_v26 = vmax.f32 %v6509_v19, 0.0  ;;  %v6513_v3 = vadd.f32 %v6512_v33, %v15510_v13  ;;  %v7811_v32 = vadd.f32 %v7810_v17, %v15581_v61  ;;  %v7812_v1 = vpop.f32.mrb[221].mxu1 }
 0x5fb   : > { %v7184_v20 = vmax.f32 %v7183_v18, %v6983_v25  ;;  %v6985_v59 = vmax.f32 %v6511_v44, 0.0  ;;  %v7813_v4 = vadd.f32 %v7812_v1, %v15586_v9  ;;  %6775 = vmatmul.mubr.bf16.gmra.mrb[88].mxu0 %v16766_v30  ;;  %v7814_v45 = vpop.f32.mrb[222].mxu1 }
 0x5fc   : > { %v7253_v28 = vmax.f32 %v7252_v12, %v6984_v26  ;;  %v6986_v21 = vmax.f32 %v6513_v3, 0.0  ;;  %v8311_v46 = vmax.f32 %v7811_v32, 0.0  ;;  %v7815_v16 = vadd.f32 %v7814_v45, %v15581_v61  ;;  %v7816_v38 = vpop.f32.mrb[223].mxu1  ;;  %6784 = vmatprep.mubr.bf16.mxu0 %v16714_v47 }
 0x5fd   : > { %v7185_v53 = vmax.f32 %v7184_v20, %v6985_v59  ;;  %v8312_v34 = vmax.f32 %v7813_v4, 0.0  ;;  %v7817_v14 = vadd.f32 %v7816_v38, %v15586_v9 }
 0x5fe   : > { %v7254_v60 = vmax.f32 %v7253_v28, %v6986_v21  ;;  %v8520_v35 = vmax.f32 %v8519_v50, %v8311_v46  ;;  %v8313_v49 = vmax.f32 %v7815_v16, 0.0  ;;  %v6516_v10 = vpop.f32.mrb[240].mxu0  ;;  %8079 = vmatmul.mubr.bf16.gmra.mrb[72].mxu1 %v14624_v22 }
 0x5ff   : > { %v8589_v31 = vmax.f32 %v8588_v7, %v8312_v34  ;;  %v8314_v5 = vmax.f32 %v7817_v14, 0.0  ;;  %v6517_v51 = vadd.f32 %v6516_v10, %v15505_v36  ;;  %v6518_v41 = vpop.f32.mrb[241].mxu0  ;;  %8088 = vmatprep.mubr.bf16.mxu1 %v16714_v47 }
 0x600   : > { %v8521_v23 = vmax.f32 %v8520_v35, %v8313_v49  ;;  %v6519_v8 = vadd.f32 %v6518_v41, %v15510_v13  ;;  %v6520_v52 = vpop.f32.mrb[242].mxu0  ;;  %v16768_v49 = vld [vmem:[#allocation54_spill] sm:$0xff] }
 0x601   : > { %v8590_v37 = vmax.f32 %v8589_v31, %v8314_v5  ;;  %v6987_v63 = vmax.f32 %v6517_v51, 0.0  ;;  %v6521_v43 = vadd.f32 %v6520_v52, %v15505_v36  ;;  %v6522_v58 = vpop.f32.mrb[243].mxu0  ;;  %v7820_v0 = vpop.f32.mrb[224].mxu1 }
 0x602   : > { %v6988_v56 = vmax.f32 %v6519_v8, 0.0  ;;  %v6523_v22 = vadd.f32 %v6522_v58, %v15510_v13  ;;  %v7821_v18 = vadd.f32 %v7820_v0, %v15581_v61  ;;  %v7822_v15 = vpop.f32.mrb[225].mxu1 }
 0x603   : > { %v7186_v24 = vmax.f32 %v7185_v53, %v6987_v63  ;;  %v6989_v12 = vmax.f32 %v6521_v43, 0.0  ;;  %v7823_v62 = vadd.f32 %v7822_v15, %v15586_v9  ;;  %6785 = vmatmul.mubr.bf16.gmra.mrb[92].mxu0 %v16767_v27  ;;  %v7824_v40 = vpop.f32.mrb[226].mxu1 }
 0x604   : > { %v7255_v29 = vmax.f32 %v7254_v60, %v6988_v56  ;;  %v6990_v6 = vmax.f32 %v6523_v22, 0.0  ;;  %v8315_v39 = vmax.f32 %v7821_v18, 0.0  ;;  %v7825_v57 = vadd.f32 %v7824_v40, %v15581_v61  ;;  %v7826_v50 = vpop.f32.mrb[227].mxu1  ;;  %6794 = vmatprep.mubr.bf16.mxu0 %v16714_v47 }
 0x605   : > { %v7187_v19 = vmax.f32 %v7186_v24, %v6989_v12  ;;  %v8316_v2 = vmax.f32 %v7823_v62, 0.0  ;;  %v7827_v7 = vadd.f32 %v7826_v50, %v15586_v9 }
 0x606   : > { %v7256_v25 = vmax.f32 %v7255_v29, %v6990_v6  ;;  %v8522_v44 = vmax.f32 %v8521_v23, %v8315_v39  ;;  %v8317_v33 = vmax.f32 %v7825_v57, 0.0  ;;  %v6526_v17 = vpop.f32.mrb[244].mxu0  ;;  %8089 = vmatmul.mubr.bf16.gmra.mrb[76].mxu1 %v14622_v55 }
 0x607   : > { %v8591_v26 = vmax.f32 %v8590_v37, %v8316_v2  ;;  %v8318_v3 = vmax.f32 %v7827_v7, 0.0  ;;  %v6527_v32 = vadd.f32 %v6526_v17, %v15505_v36  ;;  %v6528_v1 = vpop.f32.mrb[245].mxu0  ;;  %8098 = vmatprep.mubr.bf16.mxu1 %v16714_v47 }
 0x608   : > { %v8523_v20 = vmax.f32 %v8522_v44, %v8317_v33  ;;  %v6529_v59 = vadd.f32 %v6528_v1, %v15510_v13  ;;  %v6530_v4 = vpop.f32.mrb[246].mxu0  ;;  %v16769_v33 = vld [vmem:[#allocation53_spill] sm:$0xff] }
 0x609   : > { %v8592_v45 = vmax.f32 %v8591_v26, %v8318_v3  ;;  %v6991_v28 = vmax.f32 %v6527_v32, 0.0  ;;  %v6531_v21 = vadd.f32 %v6530_v4, %v15505_v36  ;;  %v6532_v46 = vpop.f32.mrb[247].mxu0  ;;  %v7830_v16 = vpop.f32.mrb[228].mxu1 }
 0x60a   : > { %v6992_v38 = vmax.f32 %v6529_v59, 0.0  ;;  %v6533_v55 = vadd.f32 %v6532_v46, %v15510_v13  ;;  %v7831_v53 = vadd.f32 %v7830_v16, %v15581_v61  ;;  %v7832_v34 = vpop.f32.mrb[229].mxu1 }
 0x60b   : > { %v7188_v14 = vmax.f32 %v7187_v19, %v6991_v28  ;;  %v6993_v60 = vmax.f32 %v6531_v21, 0.0  ;;  %v7833_v35 = vadd.f32 %v7832_v34, %v15586_v9  ;;  %6795 = vmatmul.mubr.bf16.gmra.mrb[96].mxu0 %v16768_v49  ;;  %v7834_v10 = vpop.f32.mrb[230].mxu1 }
 0x60c   : > { %v7257_v31 = vmax.f32 %v7256_v25, %v6992_v38  ;;  %v6994_v5 = vmax.f32 %v6533_v55, 0.0  ;;  %v8319_v51 = vmax.f32 %v7831_v53, 0.0  ;;  %v7835_v41 = vadd.f32 %v7834_v10, %v15581_v61  ;;  %v7836_v23 = vpop.f32.mrb[231].mxu1  ;;  %6804 = vmatprep.mubr.bf16.mxu0 %v16714_v47 }
 0x60d   : > { %v7189_v8 = vmax.f32 %v7188_v14, %v6993_v60  ;;  %v8320_v52 = vmax.f32 %v7833_v35, 0.0  ;;  %v7837_v37 = vadd.f32 %v7836_v23, %v15586_v9 }
 0x60e   : > { %v7258_v63 = vmax.f32 %v7257_v31, %v6994_v5  ;;  %v8524_v43 = vmax.f32 %v8523_v20, %v8319_v51  ;;  %v8321_v58 = vmax.f32 %v7835_v41, 0.0  ;;  %v6536_v0 = vpop.f32.mrb[248].mxu0  ;;  %8099 = vmatmul.mubr.bf16.gmra.mrb[80].mxu1 %v16764_v11 }
 0x60f   : > { %v8593_v56 = vmax.f32 %v8592_v45, %v8320_v52  ;;  %v8322_v22 = vmax.f32 %v7837_v37, 0.0  ;;  %v6537_v18 = vadd.f32 %v6536_v0, %v15505_v36  ;;  %v6538_v15 = vpop.f32.mrb[249].mxu0  ;;  %8108 = vmatprep.mubr.bf16.mxu1 %v16714_v47 }
 0x610   : > { %v8525_v24 = vmax.f32 %v8524_v43, %v8321_v58  ;;  %v6539_v12 = vadd.f32 %v6538_v15, %v15510_v13  ;;  %v6540_v62 = vpop.f32.mrb[250].mxu0  ;;  %v16770_v58 = vld [vmem:[#allocation56_spill] sm:$0xff] }
 0x611   : > { %v8594_v40 = vmax.f32 %v8593_v56, %v8322_v22  ;;  %v6995_v29 = vmax.f32 %v6537_v18, 0.0  ;;  %v6541_v6 = vadd.f32 %v6540_v62, %v15505_v36  ;;  %v6542_v39 = vpop.f32.mrb[251].mxu0  ;;  %v7840_v57 = vpop.f32.mrb[232].mxu1 }
 0x612   : > { %v6996_v50 = vmax.f32 %v6539_v12, 0.0  ;;  %v6543_v11 = vadd.f32 %v6542_v39, %v15510_v13  ;;  %v7841_v19 = vadd.f32 %v7840_v57, %v15581_v61  ;;  %v7842_v2 = vpop.f32.mrb[233].mxu1 }
 0x613   : > { %v7190_v7 = vmax.f32 %v7189_v8, %v6995_v29  ;;  %v6997_v25 = vmax.f32 %v6541_v6, 0.0  ;;  %v7843_v44 = vadd.f32 %v7842_v2, %v15586_v9  ;;  %6805 = vmatmul.mubr.bf16.gmra.mrb[100].mxu0 %v16769_v33  ;;  %v7844_v17 = vpop.f32.mrb[234].mxu1 }
 0x614   : > { %v7259_v26 = vmax.f32 %v7258_v63, %v6996_v50  ;;  %v6998_v3 = vmax.f32 %v6543_v11, 0.0  ;;  %v8323_v32 = vmax.f32 %v7841_v19, 0.0  ;;  %v7845_v1 = vadd.f32 %v7844_v17, %v15581_v61  ;;  %v7846_v20 = vpop.f32.mrb[235].mxu1  ;;  %6814 = vmatprep.mubr.bf16.mxu0 %v16714_v47 }
 0x615   : > { %v7191_v59 = vmax.f32 %v7190_v7, %v6997_v25  ;;  %v8324_v4 = vmax.f32 %v7843_v44, 0.0  ;;  %v7847_v45 = vadd.f32 %v7846_v20, %v15586_v9 }
 0x616   : > { %v7260_v28 = vmax.f32 %v7259_v26, %v6998_v3  ;;  %v8526_v21 = vmax.f32 %v8525_v24, %v8323_v32  ;;  %v8325_v46 = vmax.f32 %v7845_v1, 0.0  ;;  %v6546_v16 = vpop.f32.mrb[252].mxu0  ;;  %8109 = vmatmul.mubr.bf16.gmra.mrb[84].mxu1 %v16765_v48 }
 0x617   : > { %v8595_v38 = vmax.f32 %v8594_v40, %v8324_v4  ;;  %v8326_v55 = vmax.f32 %v7847_v45, 0.0  ;;  %v6547_v53 = vadd.f32 %v6546_v16, %v15505_v36  ;;  %v6548_v34 = vpop.f32.mrb[253].mxu0  ;;  %8118 = vmatprep.mubr.bf16.mxu1 %v16714_v47 }
 0x618   : > { %v8527_v14 = vmax.f32 %v8526_v21, %v8325_v46  ;;  %v6549_v60 = vadd.f32 %v6548_v34, %v15510_v13  ;;  %v6550_v35 = vpop.f32.mrb[254].mxu0 }
 0x619   : > { %v8596_v10 = vmax.f32 %v8595_v38, %v8326_v55  ;;  %v6999_v31 = vmax.f32 %v6547_v53, 0.0  ;;  %v6551_v5 = vadd.f32 %v6550_v35, %v15505_v36  ;;  %v6552_v51 = vpop.f32.mrb[255].mxu0  ;;  %v7850_v41 = vpop.f32.mrb[236].mxu1  ;;  %v16771_v53 = vld [vmem:[#allocation55_spill] sm:$0xff] }
 0x61a   : > { %v7000_v23 = vmax.f32 %v6549_v60, 0.0  ;;  %v6553_v48 = vadd.f32 %v6552_v51, %v15510_v13  ;;  %v7851_v8 = vadd.f32 %v7850_v41, %v15581_v61  ;;  %v7852_v52 = vpop.f32.mrb[237].mxu1 }
 0x61b   : > { %v7192_v37 = vmax.f32 %v7191_v59, %v6999_v31  ;;  %v7001_v63 = vmax.f32 %v6551_v5, 0.0  ;;  %v7853_v43 = vadd.f32 %v7852_v52, %v15586_v9  ;;  %6815 = vmatmul.mubr.bf16.gmra.mrb[104].mxu0 %v16770_v58  ;;  %v7854_v0 = vpop.f32.mrb[238].mxu1 }
 0x61c   : > { %v7261_v56 = vmax.f32 %v7260_v28, %v7000_v23  ;;  %v7002_v22 = vmax.f32 %v6553_v48, 0.0  ;;  %v8327_v18 = vmax.f32 %v7851_v8, 0.0  ;;  %v7855_v15 = vadd.f32 %v7854_v0, %v15581_v61  ;;  %v7856_v24 = vpop.f32.mrb[239].mxu1  ;;  %6824 = vmatprep.mubr.bf16.mxu0 %v16714_v47 }
 0x61d   : > { %v7193_v12 = vmax.f32 %v7192_v37, %v7001_v63  ;;  %v8328_v62 = vmax.f32 %v7853_v43, 0.0  ;;  %v7857_v40 = vadd.f32 %v7856_v24, %v15586_v9 }
 0x61e   : > { %v7262_v29 = vmax.f32 %v7261_v56, %v7002_v22  ;;  %v8528_v6 = vmax.f32 %v8527_v14, %v8327_v18  ;;  %v8329_v39 = vmax.f32 %v7855_v15, 0.0  ;;  %v6556_v57 = vpop.f32.mrb[0].mxu0  ;;  %8119 = vmatmul.mubr.bf16.gmra.mrb[88].mxu1 %v16766_v30 }
 0x61f   : > { %v7194_v50 = vrot.slane %v7193_v12, 4  ;;  %v8597_v11 = vmax.f32 %v8596_v10, %v8328_v62  ;;  %v8330_v19 = vmax.f32 %v7857_v40, 0.0  ;;  %v6557_v2 = vadd.f32 %v6556_v57, %v15505_v36  ;;  %v6558_v7 = vpop.f32.mrb[1].mxu0  ;;  %8128 = vmatprep.mubr.bf16.mxu1 %v16714_v47 }
 0x620   : > { %v7263_v25 = vrot.slane %v7262_v29, 4  ;;  %v8529_v44 = vmax.f32 %v8528_v6, %v8329_v39  ;;  %v6559_v17 = vadd.f32 %v6558_v7, %v15510_v13  ;;  %v6560_v26 = vpop.f32.mrb[2].mxu0 }
 0x621   : > { %v7195_v3 = vmax.f32 %v7193_v12, %v7194_v50  ;;  %v8598_v32 = vmax.f32 %v8597_v11, %v8330_v19  ;;  %v6561_v1 = vadd.f32 %v6560_v26, %v15505_v36  ;;  %v6562_v20 = vpop.f32.mrb[3].mxu0  ;;  %v7860_v59 = vpop.f32.mrb[240].mxu1  ;;  %v7003_v4 = vmax.f32 %v6557_v2, 0.0  ;;  %v16772_v26 = vld [vmem:[#allocation58_spill] sm:$0xff] }
 0x622   : > { %v7264_v30 = vmax.f32 %v7262_v29, %v7263_v25  ;;  %v6563_v45 = vadd.f32 %v6562_v20, %v15510_v13  ;;  %v7861_v28 = vadd.f32 %v7860_v59, %v15581_v61  ;;  %v7862_v21 = vpop.f32.mrb[241].mxu1  ;;  %v7004_v16 = vmax.f32 %v6559_v17, 0.0 }
 0x623   : > { %v7196_v46 = vrot.slane %v7195_v3, 2  ;;  %v7005_v38 = vmax.f32 %v6561_v1, 0.0  ;;  %v7863_v55 = vadd.f32 %v7862_v21, %v15586_v9  ;;  %6825 = vmatmul.mubr.bf16.gmra.mrb[108].mxu0 %v16771_v53  ;;  %v7864_v34 = vpop.f32.mrb[242].mxu1 }
 0x624   : > { %v7265_v14 = vrot.slane %v7264_v30, 2  ;;  %v7006_v60 = vmax.f32 %v6563_v45, 0.0  ;;  %v8331_v35 = vmax.f32 %v7861_v28, 0.0  ;;  %v7865_v10 = vadd.f32 %v7864_v34, %v15581_v61  ;;  %v7866_v31 = vpop.f32.mrb[243].mxu1  ;;  %6834 = vmatprep.mubr.bf16.mxu0 %v16714_v47 }
 0x625   : > { %v7197_v5 = vmax.f32 %v7195_v3, %v7196_v46  ;;  %v7269_v51 = vmax.f32 %v7003_v4, %v7005_v38  ;;  %v8332_v41 = vmax.f32 %v7863_v55, 0.0  ;;  %v7867_v23 = vadd.f32 %v7866_v31, %v15586_v9 }
 0x626   : > { %v7266_v48 = vmax.f32 %v7264_v30, %v7265_v14  ;;  %v7338_v8 = vmax.f32 %v7004_v16, %v7006_v60  ;;  %v8530_v52 = vmax.f32 %v8529_v44, %v8331_v35  ;;  %v8333_v37 = vmax.f32 %v7865_v10, 0.0  ;;  %v6566_v63 = vpop.f32.mrb[4].mxu0  ;;  %8129 = vmatmul.mubr.bf16.gmra.mrb[92].mxu1 %v16767_v27 }
 0x627   : > { %v7198_v43 = vrot.slane %v7197_v5, 1  ;;  %v8599_v0 = vmax.f32 %v8598_v32, %v8332_v41  ;;  %v8334_v56 = vmax.f32 %v7867_v23, 0.0  ;;  %v6567_v22 = vadd.f32 %v6566_v63, %v15505_v36  ;;  %v6568_v18 = vpop.f32.mrb[5].mxu0  ;;  %8138 = vmatprep.mubr.bf16.mxu1 %v16714_v47 }
 0x628   : > { %v7267_v15 = vrot.slane %v7266_v48, 1  ;;  %v8531_v24 = vmax.f32 %v8530_v52, %v8333_v37  ;;  %v6569_v12 = vadd.f32 %v6568_v18, %v15510_v13  ;;  %v6570_v62 = vpop.f32.mrb[6].mxu0 }
 0x629   : > { %v15945_v40 = vmax.f32 %v7197_v5, %v7198_v43  ;;  %v8600_v29 = vmax.f32 %v8599_v0, %v8334_v56  ;;  %v7007_v6 = vmax.f32 %v6567_v22, 0.0  ;;  %v6571_v39 = vadd.f32 %v6570_v62, %v15505_v36  ;;  %v6572_v27 = vpop.f32.mrb[7].mxu0  ;;  %v7870_v57 = vpop.f32.mrb[244].mxu1  ;;  %v16773_v22 = vld [vmem:[#allocation57_spill] sm:$0xff] }
 0x62a   : > { %v15948_v50 = vmax.f32 %v7266_v48, %v7267_v15  ;;  %v7008_v11 = vmax.f32 %v6569_v12, 0.0  ;;  %v6573_v19 = vadd.f32 %v6572_v27, %v15510_v13  ;;  %v7871_v2 = vadd.f32 %v7870_v57, %v15581_v61  ;;  %v7872_v7 = vpop.f32.mrb[245].mxu1 }
 0x62b   : > { %v7270_v25 = vmax.f32 %v7269_v51, %v7007_v6  ;;  %v7009_v44 = vmax.f32 %v6571_v39, 0.0  ;;  %v7873_v17 = vadd.f32 %v7872_v7, %v15586_v9  ;;  %6835 = vmatmul.mubr.bf16.gmra.mrb[112].mxu0 %v16772_v26  ;;  %v7874_v3 = vpop.f32.mrb[246].mxu1 }
 0x62c   : > { %v7412_v32 = vcombine.low %v15945_v40, %v15948_v50  ;;  %v7339_v1 = vmax.f32 %v7338_v8, %v7008_v11  ;;  %v7010_v20 = vmax.f32 %v6573_v19, 0.0  ;;  %v8335_v59 = vmax.f32 %v7871_v2, 0.0  ;;  %v7876_v30 = vpop.f32.mrb[247].mxu1  ;;  %6844 = vmatprep.mubr.bf16.mxu0 %v16714_v47 }
 0x62d   : > { %v7271_v4 = vmax.f32 %v7270_v25, %v7009_v44  ;;  %v8336_v45 = vmax.f32 %v7873_v17, 0.0  ;;  %v7875_v28 = vadd.f32 %v7874_v3, %v15581_v61  ;;  %v7877_v21 = vadd.f32 %v7876_v30, %v15586_v9 }
 0x62e   : > { %v7340_v46 = vmax.f32 %v7339_v1, %v7010_v20  ;;  %v8532_v16 = vmax.f32 %v8531_v24, %v8335_v59  ;;  %v6576_v38 = vpop.f32.mrb[8].mxu0  ;;  %8139 = vmatmul.mubr.bf16.gmra.mrb[96].mxu1 %v16768_v49 }
 0x62f   : > { %v8601_v55 = vmax.f32 %v8600_v29, %v8336_v45  ;;  %v8337_v34 = vmax.f32 %v7875_v28, 0.0  ;;  %v8338_v14 = vmax.f32 %v7877_v21, 0.0  ;;  %v6577_v60 = vadd.f32 %v6576_v38, %v15505_v36  ;;  %v6578_v35 = vpop.f32.mrb[9].mxu0  ;;  %8148 = vmatprep.mubr.bf16.mxu1 %v16714_v47 }
 0x630   : > { %v6579_v10 = vadd.f32 %v6578_v35, %v15510_v13  ;;  %v6580_v31 = vpop.f32.mrb[10].mxu0 }
 0x631   : > { %v8533_v5 = vmax.f32 %v8532_v16, %v8337_v34  ;;  %v8602_v51 = vmax.f32 %v8601_v55, %v8338_v14  ;;  %v7011_v41 = vmax.f32 %v6577_v60, 0.0  ;;  %v6581_v23 = vadd.f32 %v6580_v31, %v15505_v36  ;;  %v6582_v48 = vpop.f32.mrb[11].mxu0  ;;  %v7880_v8 = vpop.f32.mrb[248].mxu1  ;;  %v16774_v14 = vld [vmem:[#allocation60_spill] sm:$0xff] }
 0x632   : > { %v7012_v52 = vmax.f32 %v6579_v10, 0.0  ;;  %v6583_v49 = vadd.f32 %v6582_v48, %v15510_v13  ;;  %v7881_v37 = vadd.f32 %v7880_v8, %v15581_v61  ;;  %v7882_v63 = vpop.f32.mrb[249].mxu1 }
 0x633   : > { %v7272_v43 = vmax.f32 %v7271_v4, %v7011_v41  ;;  %v7013_v0 = vmax.f32 %v6581_v23, 0.0  ;;  %v7883_v56 = vadd.f32 %v7882_v63, %v15586_v9  ;;  %6845 = vmatmul.mubr.bf16.gmra.mrb[116].mxu0 %v16773_v22  ;;  %v7884_v18 = vpop.f32.mrb[250].mxu1 }
 0x634   : > { %v7341_v15 = vmax.f32 %v7340_v46, %v7012_v52  ;;  %v7014_v24 = vmax.f32 %v6583_v49, 0.0  ;;  %v8339_v12 = vmax.f32 %v7881_v37, 0.0  ;;  %v7885_v62 = vadd.f32 %v7884_v18, %v15581_v61  ;;  %v7886_v29 = vpop.f32.mrb[251].mxu1  ;;  %6854 = vmatprep.mubr.bf16.mxu0 %v16714_v47 }
 0x635   : > { %v7273_v6 = vmax.f32 %v7272_v43, %v7013_v0  ;;  %v8340_v39 = vmax.f32 %v7883_v56, 0.0  ;;  %v7887_v27 = vadd.f32 %v7886_v29, %v15586_v9 }
 0x636   : > { %v7342_v57 = vmax.f32 %v7341_v15, %v7014_v24  ;;  %v8534_v11 = vmax.f32 %v8533_v5, %v8339_v12  ;;  %v8341_v19 = vmax.f32 %v7885_v62, 0.0  ;;  %v6586_v2 = vpop.f32.mrb[12].mxu0  ;;  %8149 = vmatmul.mubr.bf16.gmra.mrb[100].mxu1 %v16769_v33 }
 0x637   : > { %v8603_v7 = vmax.f32 %v8602_v51, %v8340_v39  ;;  %v8342_v25 = vmax.f32 %v7887_v27, 0.0  ;;  %v6587_v44 = vadd.f32 %v6586_v2, %v15505_v36  ;;  %v6588_v17 = vpop.f32.mrb[13].mxu0  ;;  %8158 = vmatprep.mubr.bf16.mxu1 %v16714_v47 }
 0x638   : > { %v8535_v3 = vmax.f32 %v8534_v11, %v8341_v19  ;;  %v6589_v1 = vadd.f32 %v6588_v17, %v15510_v13  ;;  %v6590_v20 = vpop.f32.mrb[14].mxu0 }
 0x639   : > { %v8604_v59 = vmax.f32 %v8603_v7, %v8342_v25  ;;  %v7015_v30 = vmax.f32 %v6587_v44, 0.0  ;;  %v6591_v4 = vadd.f32 %v6590_v20, %v15505_v36  ;;  %v6592_v45 = vpop.f32.mrb[15].mxu0  ;;  %v7890_v28 = vpop.f32.mrb[252].mxu1  ;;  %v16775_v44 = vld [vmem:[#allocation59_spill] sm:$0xff] }
 0x63a   : > { %v7016_v21 = vmax.f32 %v6589_v1, 0.0  ;;  %v6593_v33 = vadd.f32 %v6592_v45, %v15510_v13  ;;  %v7891_v46 = vadd.f32 %v7890_v28, %v15581_v61  ;;  %v7892_v16 = vpop.f32.mrb[253].mxu1 }
 0x63b   : > { %v7274_v38 = vmax.f32 %v7273_v6, %v7015_v30  ;;  %v7017_v55 = vmax.f32 %v6591_v4, 0.0  ;;  %v7893_v34 = vadd.f32 %v7892_v16, %v15586_v9  ;;  %6855 = vmatmul.mubr.bf16.gmra.mrb[120].mxu0 %v16774_v14  ;;  %v7894_v60 = vpop.f32.mrb[254].mxu1 }
 0x63c   : > { %v7343_v35 = vmax.f32 %v7342_v57, %v7016_v21  ;;  %v7018_v10 = vmax.f32 %v6593_v33, 0.0  ;;  %v8343_v31 = vmax.f32 %v7891_v46, 0.0  ;;  %v7895_v5 = vadd.f32 %v7894_v60, %v15581_v61  ;;  %v7896_v51 = vpop.f32.mrb[255].mxu1  ;;  %6864 = vmatprep.mubr.bf16.mxu0 %v16714_v47 }
 0x63d   : > { %v7275_v41 = vmax.f32 %v7274_v38, %v7017_v55  ;;  %v8344_v23 = vmax.f32 %v7893_v34, 0.0  ;;  %v7897_v48 = vadd.f32 %v7896_v51, %v15586_v9 }
 0x63e   : > { %v7344_v8 = vmax.f32 %v7343_v35, %v7018_v10  ;;  %v8536_v52 = vmax.f32 %v8535_v3, %v8343_v31  ;;  %v8345_v49 = vmax.f32 %v7895_v5, 0.0  ;;  %v6596_v37 = vpop.f32.mrb[16].mxu0  ;;  %8159 = vmatmul.mubr.bf16.gmra.mrb[104].mxu1 %v16770_v58 }
 0x63f   : > { %v8605_v63 = vmax.f32 %v8604_v59, %v8344_v23  ;;  %v8346_v43 = vmax.f32 %v7897_v48, 0.0  ;;  %v6597_v0 = vadd.f32 %v6596_v37, %v15505_v36  ;;  %v6598_v56 = vpop.f32.mrb[17].mxu0  ;;  %8168 = vmatprep.mubr.bf16.mxu1 %v16714_v47 }
 0x640   : > { %v8537_v18 = vmax.f32 %v8536_v52, %v8345_v49  ;;  %v6599_v15 = vadd.f32 %v6598_v56, %v15510_v13  ;;  %v6600_v24 = vpop.f32.mrb[18].mxu0 }
 0x641   : > { %v8606_v12 = vmax.f32 %v8605_v63, %v8346_v43  ;;  %v7019_v62 = vmax.f32 %v6597_v0, 0.0  ;;  %v6601_v29 = vadd.f32 %v6600_v24, %v15505_v36  ;;  %v6602_v6 = vpop.f32.mrb[19].mxu0  ;;  %v7900_v39 = vpop.f32.mrb[0].mxu1 }
 0x642   : > { %v8538_v27 = vrot.slane %v8537_v18, 4  ;;  %v7020_v57 = vmax.f32 %v6599_v15, 0.0  ;;  %v6603_v58 = vadd.f32 %v6602_v6, %v15510_v13  ;;  %v7902_v11 = vpop.f32.mrb[1].mxu1  ;;  %v7901_v25 = vadd.f32 %v7900_v39, %v15581_v61 }
 0x643   : > { %v8607_v19 = vrot.slane %v8606_v12, 4  ;;  %v7276_v2 = vmax.f32 %v7275_v41, %v7019_v62  ;;  %v7021_v7 = vmax.f32 %v6601_v29, 0.0  ;;  %6865 = vmatmul.mubr.bf16.gmra.mrb[124].mxu0 %v16775_v44  ;;  %v7904_v17 = vpop.f32.mrb[2].mxu1  ;;  %v7903_v59 = vadd.f32 %v7902_v11, %v15586_v9 }
 0x644   : > { %v8539_v3 = vmax.f32 %v8537_v18, %v8538_v27  ;;  %v7345_v1 = vmax.f32 %v7344_v8, %v7020_v57  ;;  %v7022_v20 = vmax.f32 %v6603_v58, 0.0  ;;  %v7906_v30 = vpop.f32.mrb[3].mxu1  ;;  %v7905_v28 = vadd.f32 %v7904_v17, %v15581_v61 }
 0x645   : > { %v8608_v4 = vmax.f32 %v8606_v12, %v8607_v19  ;;  %v7277_v45 = vmax.f32 %v7276_v2, %v7021_v7  ;;  %v7907_v46 = vadd.f32 %v7906_v30, %v15586_v9  ;;  %v8347_v55 = vmax.f32 %v7901_v25, 0.0 }
 0x646   : > { %v8540_v21 = vrot.slane %v8539_v3, 2  ;;  %v7346_v33 = vmax.f32 %v7345_v1, %v7022_v20  ;;  %v6606_v16 = vpop.f32.mrb[20].mxu0  ;;  %8169 = vmatmul.mubr.bf16.gmra.mrb[108].mxu1 %v16771_v53  ;;  %v8349_v34 = vmax.f32 %v7905_v28, 0.0  ;;  %v8348_v31 = vmax.f32 %v7903_v59, 0.0 }
 0x647   : > { %v8609_v38 = vrot.slane %v8608_v4, 2  ;;  %v6607_v60 = vadd.f32 %v6606_v16, %v15505_v36  ;;  %v6608_v35 = vpop.f32.mrb[21].mxu0  ;;  %8178 = vmatprep.mubr.bf16.mxu1 %v16714_v47  ;;  %v8350_v5 = vmax.f32 %v7907_v46, 0.0 }
 0x648   : > { %v8541_v10 = vmax.f32 %v8539_v3, %v8540_v21  ;;  %v6609_v51 = vadd.f32 %v6608_v35, %v15510_v13  ;;  %v6610_v41 = vpop.f32.mrb[22].mxu0  ;;  %v8613_v48 = vmax.f32 %v8347_v55, %v8349_v34 }
 0x649   : > { %v8610_v23 = vmax.f32 %v8608_v4, %v8609_v38  ;;  %v7023_v8 = vmax.f32 %v6607_v60, 0.0  ;;  %v6611_v52 = vadd.f32 %v6610_v41, %v15505_v36  ;;  %v6612_v53 = vpop.f32.mrb[23].mxu0  ;;  %v7910_v49 = vpop.f32.mrb[4].mxu1  ;;  %v8682_v63 = vmax.f32 %v8348_v31, %v8350_v5 }
 0x64a   : > { %v8542_v37 = vrot.slane %v8541_v10, 1  ;;  %v7024_v43 = vmax.f32 %v6609_v51, 0.0  ;;  %v6613_v0 = vadd.f32 %v6612_v53, %v15510_v13  ;;  %v7912_v56 = vpop.f32.mrb[5].mxu1  ;;  %v7911_v12 = vadd.f32 %v7910_v49, %v15581_v61 }
 0x64b   : > { %v8611_v18 = vrot.slane %v8610_v23, 1  ;;  %v7278_v15 = vmax.f32 %v7277_v45, %v7023_v8  ;;  %v7025_v24 = vmax.f32 %v6611_v52, 0.0  ;;  %v7914_v62 = vpop.f32.mrb[6].mxu1  ;;  %v7913_v27 = vadd.f32 %v7912_v56, %v15586_v9 }
 0x64c   : > { %v16001_v29 = vmax.f32 %v8541_v10, %v8542_v37  ;;  %v7347_v6 = vmax.f32 %v7346_v33, %v7024_v43  ;;  %v7026_v39 = vmax.f32 %v6613_v0, 0.0  ;;  %v7916_v57 = vpop.f32.mrb[7].mxu1  ;;  %v8351_v19 = vmax.f32 %v7911_v12, 0.0 }
 0x64d   : > { %v16004_v58 = vmax.f32 %v8610_v23, %v8611_v18  ;;  %v7279_v11 = vmax.f32 %v7278_v15, %v7025_v24  ;;  %v7915_v2 = vadd.f32 %v7914_v62, %v15581_v61  ;;  %v8352_v25 = vmax.f32 %v7913_v27, 0.0 }
 0x64e   : > { %v7348_v7 = vmax.f32 %v7347_v6, %v7026_v39  ;;  %v7917_v17 = vadd.f32 %v7916_v57, %v15586_v9  ;;  %v6616_v3 = vpop.f32.mrb[24].mxu0  ;;  %8179 = vmatmul.mubr.bf16.gmra.mrb[112].mxu1 %v16772_v26  ;;  %v8614_v20 = vmax.f32 %v8613_v48, %v8351_v19 }
 0x64f   : > { %v8756_v1 = vcombine.low %v16001_v29, %v16004_v58  ;;  %v8353_v59 = vmax.f32 %v7915_v2, 0.0  ;;  %v6617_v30 = vadd.f32 %v6616_v3, %v15505_v36  ;;  %v6618_v4 = vpop.f32.mrb[25].mxu0  ;;  %8188 = vmatprep.mubr.bf16.mxu1 %v16714_v47  ;;  %v8683_v45 = vmax.f32 %v8682_v63, %v8352_v25  ;;  %v12782_v29 = vld [vmem:[#allocation4] ss:$16 sps:$4 sm:$0xff] (!%p11840_p11)   ;;  %v12783_v58 = vld [vmem:[#allocation4 + $0x8] ss:$16 sps:$4 sm:$0xff] (!%p11840_p11)  }
 0x650   : > { %v8354_v28 = vmax.f32 %v7917_v17, 0.0  ;;  %v6619_v21 = vadd.f32 %v6618_v4, %v15510_v13  ;;  %v6620_v33 = vpop.f32.mrb[26].mxu0 }
 0x651   : > { %v8615_v46 = vmax.f32 %v8614_v20, %v8353_v59  ;;  %v7027_v16 = vmax.f32 %v6617_v30, 0.0  ;;  %v6621_v38 = vadd.f32 %v6620_v33, %v15505_v36  ;;  %v6622_v26 = vpop.f32.mrb[27].mxu0  ;;  %v7920_v55 = vpop.f32.mrb[8].mxu1 }
 0x652   : > { %v8684_v34 = vmax.f32 %v8683_v45, %v8354_v28  ;;  %v7028_v60 = vmax.f32 %v6619_v21, 0.0  ;;  %v6623_v35 = vadd.f32 %v6622_v26, %v15510_v13  ;;  %v7921_v10 = vadd.f32 %v7920_v55, %v15581_v61  ;;  %v7922_v31 = vpop.f32.mrb[9].mxu1 }
 0x653   : > { %v7280_v5 = vmax.f32 %v7279_v11, %v7027_v16  ;;  %v7029_v51 = vmax.f32 %v6621_v38, 0.0  ;;  %v7923_v41 = vadd.f32 %v7922_v31, %v15586_v9  ;;  %v7924_v23 = vpop.f32.mrb[10].mxu1 }
 0x654   : > { %v7349_v48 = vmax.f32 %v7348_v7, %v7028_v60  ;;  %v7030_v8 = vmax.f32 %v6623_v35, 0.0  ;;  %v8355_v52 = vmax.f32 %v7921_v10, 0.0  ;;  %v7925_v53 = vadd.f32 %v7924_v23, %v15581_v61  ;;  %v7926_v49 = vpop.f32.mrb[11].mxu1 }
 0x655   : > { %v7281_v37 = vmax.f32 %v7280_v5, %v7029_v51  ;;  %v8356_v63 = vmax.f32 %v7923_v41, 0.0  ;;  %v7927_v43 = vadd.f32 %v7926_v49, %v15586_v9 }
 0x656   : > { %v7350_v0 = vmax.f32 %v7349_v48, %v7030_v8  ;;  %v8616_v56 = vmax.f32 %v8615_v46, %v8355_v52  ;;  %v8357_v18 = vmax.f32 %v7925_v53, 0.0  ;;  %v6626_v15 = vpop.f32.mrb[28].mxu0  ;;  %8189 = vmatmul.mubr.bf16.gmra.mrb[116].mxu1 %v16773_v22 }
 0x657   : > { %v8685_v24 = vmax.f32 %v8684_v34, %v8356_v63  ;;  %v8358_v12 = vmax.f32 %v7927_v43, 0.0  ;;  %v6627_v62 = vadd.f32 %v6626_v15, %v15505_v36  ;;  %v6628_v6 = vpop.f32.mrb[29].mxu0  ;;  %8198 = vmatprep.mubr.bf16.mxu1 %v16714_v47 }
 0x658   : > { %v8617_v39 = vmax.f32 %v8616_v56, %v8357_v18  ;;  %v6629_v27 = vadd.f32 %v6628_v6, %v15510_v13  ;;  %v6630_v57 = vpop.f32.mrb[30].mxu0 }
 0x659   : > { %v8686_v11 = vmax.f32 %v8685_v24, %v8358_v12  ;;  %v7031_v19 = vmax.f32 %v6627_v62, 0.0  ;;  %v6631_v2 = vadd.f32 %v6630_v57, %v15505_v36  ;;  %v6632_v7 = vpop.f32.mrb[31].mxu0  ;;  %v7930_v25 = vpop.f32.mrb[12].mxu1 }
 0x65a   : > { %v7032_v17 = vmax.f32 %v6629_v27, 0.0  ;;  %v6633_v22 = vadd.f32 %v6632_v7, %v15510_v13  ;;  %v7931_v3 = vadd.f32 %v7930_v25, %v15581_v61  ;;  %v7932_v20 = vpop.f32.mrb[13].mxu1 }
 0x65b   : > { %v7282_v59 = vmax.f32 %v7281_v37, %v7031_v19  ;;  %v7033_v30 = vmax.f32 %v6631_v2, 0.0  ;;  %v7933_v4 = vadd.f32 %v7932_v20, %v15586_v9  ;;  %v7934_v45 = vpop.f32.mrb[14].mxu1 }
 0x65c   : > { %v7351_v28 = vmax.f32 %v7350_v0, %v7032_v17  ;;  %v7034_v21 = vmax.f32 %v6633_v22, 0.0  ;;  %v8359_v33 = vmax.f32 %v7931_v3, 0.0  ;;  %v7935_v46 = vadd.f32 %v7934_v45, %v15581_v61  ;;  %v7936_v16 = vpop.f32.mrb[15].mxu1 }
 0x65d   : > { %v7283_v38 = vmax.f32 %v7282_v59, %v7033_v30  ;;  %v8360_v26 = vmax.f32 %v7933_v4, 0.0  ;;  %v7937_v55 = vadd.f32 %v7936_v16, %v15586_v9 }
 0x65e   : > { %v7352_v34 = vmax.f32 %v7351_v28, %v7034_v21  ;;  %v8618_v60 = vmax.f32 %v8617_v39, %v8359_v33  ;;  %v8361_v35 = vmax.f32 %v7935_v46, 0.0  ;;  %v6636_v10 = vpop.f32.mrb[32].mxu0  ;;  %8199 = vmatmul.mubr.bf16.gmra.mrb[120].mxu1 %v16774_v14 }
 0x65f   : > { %v8687_v31 = vmax.f32 %v8686_v11, %v8360_v26  ;;  %v8362_v5 = vmax.f32 %v7937_v55, 0.0  ;;  %v6637_v51 = vadd.f32 %v6636_v10, %v15505_v36  ;;  %v6638_v41 = vpop.f32.mrb[33].mxu0  ;;  %8208 = vmatprep.mubr.bf16.mxu1 %v16714_v47 }
 0x660   : > { %v8619_v23 = vmax.f32 %v8618_v60, %v8361_v35  ;;  %v6639_v48 = vadd.f32 %v6638_v41, %v15510_v13  ;;  %v6640_v8 = vpop.f32.mrb[34].mxu0 }
 0x661   : > { %v8688_v52 = vmax.f32 %v8687_v31, %v8362_v5  ;;  %v7035_v53 = vmax.f32 %v6637_v51, 0.0  ;;  %v6641_v49 = vadd.f32 %v6640_v8, %v15505_v36  ;;  %v6642_v37 = vpop.f32.mrb[35].mxu0  ;;  %v7940_v63 = vpop.f32.mrb[16].mxu1 }
 0x662   : > { %v7036_v43 = vmax.f32 %v6639_v48, 0.0  ;;  %v6643_v14 = vadd.f32 %v6642_v37, %v15510_v13  ;;  %v7941_v0 = vadd.f32 %v7940_v63, %v15581_v61  ;;  %v7942_v56 = vpop.f32.mrb[17].mxu1 }
 0x663   : > { %v7284_v18 = vmax.f32 %v7283_v38, %v7035_v53  ;;  %v7037_v15 = vmax.f32 %v6641_v49, 0.0  ;;  %v7943_v47 = vadd.f32 %v7942_v56, %v15586_v9  ;;  %v7944_v24 = vpop.f32.mrb[18].mxu1 }
 0x664   : > { %v7353_v12 = vmax.f32 %v7352_v34, %v7036_v43  ;;  %v7038_v62 = vmax.f32 %v6643_v14, 0.0  ;;  %v8363_v6 = vmax.f32 %v7941_v0, 0.0  ;;  %v7945_v39 = vadd.f32 %v7944_v24, %v15581_v61  ;;  %v7946_v27 = vpop.f32.mrb[19].mxu1 }
 0x665   : > { %v7285_v57 = vmax.f32 %v7284_v18, %v7037_v15  ;;  %v8364_v11 = vmax.f32 %v7943_v47, 0.0  ;;  %v7947_v19 = vadd.f32 %v7946_v27, %v15586_v9 }
 0x666   : > { %v7354_v2 = vmax.f32 %v7353_v12, %v7038_v62  ;;  %v8620_v7 = vmax.f32 %v8619_v23, %v8363_v6  ;;  %v8365_v25 = vmax.f32 %v7945_v39, 0.0  ;;  %v6646_v17 = vpop.f32.mrb[36].mxu0  ;;  %8209 = vmatmul.mubr.bf16.gmra.mrb[124].mxu1 %v16775_v44 }
 0x667   : > { %v8689_v22 = vmax.f32 %v8688_v52, %v8364_v11  ;;  %v8366_v3 = vmax.f32 %v7947_v19, 0.0  ;;  %v6647_v20 = vadd.f32 %v6646_v17, %v15505_v36  ;;  %v6648_v59 = vpop.f32.mrb[37].mxu0 }
 0x668   : > { %v8621_v30 = vmax.f32 %v8620_v7, %v8365_v25  ;;  %v6649_v4 = vadd.f32 %v6648_v59, %v15510_v13  ;;  %v6650_v45 = vpop.f32.mrb[38].mxu0 }
 0x669   : > { %v8690_v28 = vmax.f32 %v8689_v22, %v8366_v3  ;;  %v7039_v21 = vmax.f32 %v6647_v20, 0.0  ;;  %v6651_v33 = vadd.f32 %v6650_v45, %v15505_v36  ;;  %v6652_v46 = vpop.f32.mrb[39].mxu0  ;;  %v7950_v16 = vpop.f32.mrb[20].mxu1 }
 0x66a   : > { %v7040_v38 = vmax.f32 %v6649_v4, 0.0  ;;  %v6653_v26 = vadd.f32 %v6652_v46, %v15510_v13  ;;  %v7951_v44 = vadd.f32 %v7950_v16, %v15581_v61  ;;  %v7952_v55 = vpop.f32.mrb[21].mxu1 }
 0x66b   : > { %v7286_v34 = vmax.f32 %v7285_v57, %v7039_v21  ;;  %v7041_v60 = vmax.f32 %v6651_v33, 0.0  ;;  %v7953_v35 = vadd.f32 %v7952_v55, %v15586_v9  ;;  %v7954_v10 = vpop.f32.mrb[22].mxu1 }
 0x66c   : > { %v7355_v31 = vmax.f32 %v7354_v2, %v7040_v38  ;;  %v7042_v5 = vmax.f32 %v6653_v26, 0.0  ;;  %v8367_v51 = vmax.f32 %v7951_v44, 0.0  ;;  %v7955_v41 = vadd.f32 %v7954_v10, %v15581_v61  ;;  %v7956_v23 = vpop.f32.mrb[23].mxu1 }
 0x66d   : > { %v7287_v48 = vmax.f32 %v7286_v34, %v7041_v60  ;;  %v8368_v8 = vmax.f32 %v7953_v35, 0.0  ;;  %v7957_v52 = vadd.f32 %v7956_v23, %v15586_v9 }
 0x66e   : > { %v7356_v53 = vmax.f32 %v7355_v31, %v7042_v5  ;;  %v8622_v49 = vmax.f32 %v8621_v30, %v8367_v51  ;;  %v8369_v37 = vmax.f32 %v7955_v41, 0.0  ;;  %v6656_v63 = vpop.f32.mrb[40].mxu0 }
 0x66f   : > { %v8691_v43 = vmax.f32 %v8690_v28, %v8368_v8  ;;  %v8370_v14 = vmax.f32 %v7957_v52, 0.0  ;;  %v6657_v0 = vadd.f32 %v6656_v63, %v15505_v36  ;;  %v6658_v56 = vpop.f32.mrb[41].mxu0 }
 0x670   : > { %v8623_v18 = vmax.f32 %v8622_v49, %v8369_v37  ;;  %v6659_v15 = vadd.f32 %v6658_v56, %v15510_v13  ;;  %v6660_v47 = vpop.f32.mrb[42].mxu0 }
 0x671   : > { %v8692_v24 = vmax.f32 %v8691_v43, %v8370_v14  ;;  %v7043_v12 = vmax.f32 %v6657_v0, 0.0  ;;  %v6661_v62 = vadd.f32 %v6660_v47, %v15505_v36  ;;  %v6662_v6 = vpop.f32.mrb[43].mxu0  ;;  %v7960_v39 = vpop.f32.mrb[24].mxu1 }
 0x672   : > { %v7044_v27 = vmax.f32 %v6659_v15, 0.0  ;;  %v6663_v57 = vadd.f32 %v6662_v6, %v15510_v13  ;;  %v7961_v11 = vadd.f32 %v7960_v39, %v15581_v61  ;;  %v7962_v19 = vpop.f32.mrb[25].mxu1 }
 0x673   : > { %v7288_v2 = vmax.f32 %v7287_v48, %v7043_v12  ;;  %v7045_v7 = vmax.f32 %v6661_v62, 0.0  ;;  %v7963_v25 = vadd.f32 %v7962_v19, %v15586_v9  ;;  %v7964_v17 = vpop.f32.mrb[26].mxu1 }
 0x674   : > { %v7357_v22 = vmax.f32 %v7356_v53, %v7044_v27  ;;  %v7046_v3 = vmax.f32 %v6663_v57, 0.0  ;;  %v8371_v20 = vmax.f32 %v7961_v11, 0.0  ;;  %v7965_v59 = vadd.f32 %v7964_v17, %v15581_v61  ;;  %v7966_v30 = vpop.f32.mrb[27].mxu1 }
 0x675   : > { %v7289_v4 = vmax.f32 %v7288_v2, %v7045_v7  ;;  %v8372_v45 = vmax.f32 %v7963_v25, 0.0  ;;  %v7967_v28 = vadd.f32 %v7966_v30, %v15586_v9 }
 0x676   : > { %v7358_v21 = vmax.f32 %v7357_v22, %v7046_v3  ;;  %v8624_v33 = vmax.f32 %v8623_v18, %v8371_v20  ;;  %v8373_v46 = vmax.f32 %v7965_v59, 0.0  ;;  %v6666_v16 = vpop.f32.mrb[44].mxu0 }
 0x677   : > { %v8693_v38 = vmax.f32 %v8692_v24, %v8372_v45  ;;  %v8374_v26 = vmax.f32 %v7967_v28, 0.0  ;;  %v6667_v44 = vadd.f32 %v6666_v16, %v15505_v36  ;;  %v6668_v55 = vpop.f32.mrb[45].mxu0 }
 0x678   : > { %v8625_v34 = vmax.f32 %v8624_v33, %v8373_v46  ;;  %v6669_v60 = vadd.f32 %v6668_v55, %v15510_v13  ;;  %v6670_v35 = vpop.f32.mrb[46].mxu0 }
 0x679   : > { %v8694_v10 = vmax.f32 %v8693_v38, %v8374_v26  ;;  %v7047_v31 = vmax.f32 %v6667_v44, 0.0  ;;  %v6671_v5 = vadd.f32 %v6670_v35, %v15505_v36  ;;  %v6672_v51 = vpop.f32.mrb[47].mxu0  ;;  %v7970_v41 = vpop.f32.mrb[28].mxu1 }
 0x67a   : > { %v7048_v23 = vmax.f32 %v6669_v60, 0.0  ;;  %v6673_v48 = vadd.f32 %v6672_v51, %v15510_v13  ;;  %v7971_v8 = vadd.f32 %v7970_v41, %v15581_v61  ;;  %v7972_v52 = vpop.f32.mrb[29].mxu1 }
 0x67b   : > { %v7290_v53 = vmax.f32 %v7289_v4, %v7047_v31  ;;  %v7049_v49 = vmax.f32 %v6671_v5, 0.0  ;;  %v7973_v37 = vadd.f32 %v7972_v52, %v15586_v9  ;;  %v7974_v63 = vpop.f32.mrb[30].mxu1 }
 0x67c   : > { %v7359_v43 = vmax.f32 %v7358_v21, %v7048_v23  ;;  %v7050_v14 = vmax.f32 %v6673_v48, 0.0  ;;  %v8375_v0 = vmax.f32 %v7971_v8, 0.0  ;;  %v7975_v56 = vadd.f32 %v7974_v63, %v15581_v61  ;;  %v7976_v18 = vpop.f32.mrb[31].mxu1 }
 0x67d   : > { %v7291_v15 = vmax.f32 %v7290_v53, %v7049_v49  ;;  %v8376_v47 = vmax.f32 %v7973_v37, 0.0  ;;  %v7977_v24 = vadd.f32 %v7976_v18, %v15586_v9 }
 0x67e   : > { %v7360_v12 = vmax.f32 %v7359_v43, %v7050_v14  ;;  %v8626_v62 = vmax.f32 %v8625_v34, %v8375_v0  ;;  %v8377_v6 = vmax.f32 %v7975_v56, 0.0  ;;  %v6676_v39 = vpop.f32.mrb[48].mxu0 }
 0x67f   : > { %v8695_v27 = vmax.f32 %v8694_v10, %v8376_v47  ;;  %v8378_v57 = vmax.f32 %v7977_v24, 0.0  ;;  %v6677_v11 = vadd.f32 %v6676_v39, %v15505_v36  ;;  %v6678_v19 = vpop.f32.mrb[49].mxu0 }
 0x680   : > { %v8627_v2 = vmax.f32 %v8626_v62, %v8377_v6  ;;  %v6679_v7 = vadd.f32 %v6678_v19, %v15510_v13  ;;  %v6680_v25 = vpop.f32.mrb[50].mxu0 }
 0x681   : > { %v8696_v17 = vmax.f32 %v8695_v27, %v8378_v57  ;;  %v7051_v22 = vmax.f32 %v6677_v11, 0.0  ;;  %v6681_v3 = vadd.f32 %v6680_v25, %v15505_v36  ;;  %v6682_v20 = vpop.f32.mrb[51].mxu0  ;;  %v7980_v59 = vpop.f32.mrb[32].mxu1 }
 0x682   : > { %v7052_v30 = vmax.f32 %v6679_v7, 0.0  ;;  %v6683_v4 = vadd.f32 %v6682_v20, %v15510_v13  ;;  %v7981_v45 = vadd.f32 %v7980_v59, %v15581_v61  ;;  %v7982_v28 = vpop.f32.mrb[33].mxu1 }
 0x683   : > { %v7292_v21 = vmax.f32 %v7291_v15, %v7051_v22  ;;  %v7053_v33 = vmax.f32 %v6681_v3, 0.0  ;;  %v7983_v46 = vadd.f32 %v7982_v28, %v15586_v9  ;;  %v7984_v16 = vpop.f32.mrb[34].mxu1 }
 0x684   : > { %v7361_v38 = vmax.f32 %v7360_v12, %v7052_v30  ;;  %v7054_v26 = vmax.f32 %v6683_v4, 0.0  ;;  %v8379_v44 = vmax.f32 %v7981_v45, 0.0  ;;  %v7985_v55 = vadd.f32 %v7984_v16, %v15581_v61  ;;  %v7986_v34 = vpop.f32.mrb[35].mxu1 }
 0x685   : > { %v7293_v60 = vmax.f32 %v7292_v21, %v7053_v33  ;;  %v8380_v35 = vmax.f32 %v7983_v46, 0.0  ;;  %v7987_v10 = vadd.f32 %v7986_v34, %v15586_v9 }
 0x686   : > { %v7362_v31 = vmax.f32 %v7361_v38, %v7054_v26  ;;  %v8628_v5 = vmax.f32 %v8627_v2, %v8379_v44  ;;  %v8381_v51 = vmax.f32 %v7985_v55, 0.0  ;;  %v6686_v41 = vpop.f32.mrb[52].mxu0 }
 0x687   : > { %v8697_v23 = vmax.f32 %v8696_v17, %v8380_v35  ;;  %v8382_v48 = vmax.f32 %v7987_v10, 0.0  ;;  %v6687_v8 = vadd.f32 %v6686_v41, %v15505_v36  ;;  %v6688_v52 = vpop.f32.mrb[53].mxu0 }
 0x688   : > { %v8629_v53 = vmax.f32 %v8628_v5, %v8381_v51  ;;  %v6689_v49 = vadd.f32 %v6688_v52, %v15510_v13  ;;  %v6690_v37 = vpop.f32.mrb[54].mxu0 }
 0x689   : > { %v8698_v63 = vmax.f32 %v8697_v23, %v8382_v48  ;;  %v7055_v43 = vmax.f32 %v6687_v8, 0.0  ;;  %v6691_v14 = vadd.f32 %v6690_v37, %v15505_v36  ;;  %v6692_v0 = vpop.f32.mrb[55].mxu0  ;;  %v7990_v56 = vpop.f32.mrb[36].mxu1 }
 0x68a   : > { %v7056_v18 = vmax.f32 %v6689_v49, 0.0  ;;  %v6693_v15 = vadd.f32 %v6692_v0, %v15510_v13  ;;  %v7991_v47 = vadd.f32 %v7990_v56, %v15581_v61  ;;  %v7992_v24 = vpop.f32.mrb[37].mxu1 }
 0x68b   : > { %v7294_v12 = vmax.f32 %v7293_v60, %v7055_v43  ;;  %v7057_v62 = vmax.f32 %v6691_v14, 0.0  ;;  %v7993_v6 = vadd.f32 %v7992_v24, %v15586_v9  ;;  %v7994_v39 = vpop.f32.mrb[38].mxu1 }
 0x68c   : > { %v7363_v27 = vmax.f32 %v7362_v31, %v7056_v18  ;;  %v7058_v57 = vmax.f32 %v6693_v15, 0.0  ;;  %v8383_v11 = vmax.f32 %v7991_v47, 0.0  ;;  %v7995_v19 = vadd.f32 %v7994_v39, %v15581_v61  ;;  %v7996_v2 = vpop.f32.mrb[39].mxu1 }
 0x68d   : > { %v7295_v7 = vmax.f32 %v7294_v12, %v7057_v62  ;;  %v8384_v25 = vmax.f32 %v7993_v6, 0.0  ;;  %v7997_v17 = vadd.f32 %v7996_v2, %v15586_v9 }
 0x68e   : > { %v7364_v22 = vmax.f32 %v7363_v27, %v7058_v57  ;;  %v8630_v3 = vmax.f32 %v8629_v53, %v8383_v11  ;;  %v8385_v20 = vmax.f32 %v7995_v19, 0.0  ;;  %v6696_v59 = vpop.f32.mrb[56].mxu0 }
 0x68f   : > { %v8699_v30 = vmax.f32 %v8698_v63, %v8384_v25  ;;  %v8386_v4 = vmax.f32 %v7997_v17, 0.0  ;;  %v6697_v45 = vadd.f32 %v6696_v59, %v15505_v36  ;;  %v6698_v28 = vpop.f32.mrb[57].mxu0 }
 0x690   : > { %v8631_v21 = vmax.f32 %v8630_v3, %v8385_v20  ;;  %v6699_v33 = vadd.f32 %v6698_v28, %v15510_v13  ;;  %v6700_v46 = vpop.f32.mrb[58].mxu0 }
 0x691   : > { %v8700_v16 = vmax.f32 %v8699_v30, %v8386_v4  ;;  %v7059_v38 = vmax.f32 %v6697_v45, 0.0  ;;  %v6701_v26 = vadd.f32 %v6700_v46, %v15505_v36  ;;  %v6702_v44 = vpop.f32.mrb[59].mxu0  ;;  %v8000_v55 = vpop.f32.mrb[40].mxu1 }
 0x692   : > { %v7060_v34 = vmax.f32 %v6699_v33, 0.0  ;;  %v6703_v60 = vadd.f32 %v6702_v44, %v15510_v13  ;;  %v8001_v35 = vadd.f32 %v8000_v55, %v15581_v61  ;;  %v8002_v10 = vpop.f32.mrb[41].mxu1 }
 0x693   : > { %v7296_v31 = vmax.f32 %v7295_v7, %v7059_v38  ;;  %v7061_v5 = vmax.f32 %v6701_v26, 0.0  ;;  %v8003_v51 = vadd.f32 %v8002_v10, %v15586_v9  ;;  %v8004_v41 = vpop.f32.mrb[42].mxu1 }
 0x694   : > { %v7365_v23 = vmax.f32 %v7364_v22, %v7060_v34  ;;  %v7062_v48 = vmax.f32 %v6703_v60, 0.0  ;;  %v8387_v8 = vmax.f32 %v8001_v35, 0.0  ;;  %v8005_v52 = vadd.f32 %v8004_v41, %v15581_v61  ;;  %v8006_v53 = vpop.f32.mrb[43].mxu1 }
 0x695   : > { %v7297_v49 = vmax.f32 %v7296_v31, %v7061_v5  ;;  %v8388_v37 = vmax.f32 %v8003_v51, 0.0  ;;  %v8007_v63 = vadd.f32 %v8006_v53, %v15586_v9 }
 0x696   : > { %v7366_v43 = vmax.f32 %v7365_v23, %v7062_v48  ;;  %v8632_v14 = vmax.f32 %v8631_v21, %v8387_v8  ;;  %v8389_v0 = vmax.f32 %v8005_v52, 0.0  ;;  %v6706_v56 = vpop.f32.mrb[60].mxu0 }
 0x697   : > { %v8701_v18 = vmax.f32 %v8700_v16, %v8388_v37  ;;  %v8390_v15 = vmax.f32 %v8007_v63, 0.0  ;;  %v6707_v47 = vadd.f32 %v6706_v56, %v15505_v36  ;;  %v6708_v24 = vpop.f32.mrb[61].mxu0 }
 0x698   : > { %v8633_v12 = vmax.f32 %v8632_v14, %v8389_v0  ;;  %v6709_v62 = vadd.f32 %v6708_v24, %v15510_v13  ;;  %v6710_v6 = vpop.f32.mrb[62].mxu0 }
 0x699   : > { %v8702_v39 = vmax.f32 %v8701_v18, %v8390_v15  ;;  %v7063_v27 = vmax.f32 %v6707_v47, 0.0  ;;  %v6711_v57 = vadd.f32 %v6710_v6, %v15505_v36  ;;  %v6712_v11 = vpop.f32.mrb[63].mxu0  ;;  %v8010_v19 = vpop.f32.mrb[44].mxu1 }
 0x69a   : > { %v7064_v2 = vmax.f32 %v6709_v62, 0.0  ;;  %v6713_v7 = vadd.f32 %v6712_v11, %v15510_v13  ;;  %v8011_v25 = vadd.f32 %v8010_v19, %v15581_v61  ;;  %v8012_v17 = vpop.f32.mrb[45].mxu1 }
 0x69b   : > { %v7298_v22 = vmax.f32 %v7297_v49, %v7063_v27  ;;  %v7065_v3 = vmax.f32 %v6711_v57, 0.0  ;;  %v8013_v20 = vadd.f32 %v8012_v17, %v15586_v9  ;;  %v8014_v59 = vpop.f32.mrb[46].mxu1 }
 0x69c   : > { %v7367_v30 = vmax.f32 %v7366_v43, %v7064_v2  ;;  %v7066_v4 = vmax.f32 %v6713_v7, 0.0  ;;  %v8391_v45 = vmax.f32 %v8011_v25, 0.0  ;;  %v8015_v28 = vadd.f32 %v8014_v59, %v15581_v61  ;;  %v8016_v21 = vpop.f32.mrb[47].mxu1 }
 0x69d   : > { %v7299_v33 = vmax.f32 %v7298_v22, %v7065_v3  ;;  %v8392_v46 = vmax.f32 %v8013_v20, 0.0  ;;  %v8017_v16 = vadd.f32 %v8016_v21, %v15586_v9 }
 0x69e   : > { %v7368_v38 = vmax.f32 %v7367_v30, %v7066_v4  ;;  %v8634_v26 = vmax.f32 %v8633_v12, %v8391_v45  ;;  %v8393_v44 = vmax.f32 %v8015_v28, 0.0  ;;  %v6716_v55 = vpop.f32.mrb[64].mxu0 }
 0x69f   : > { %v8703_v34 = vmax.f32 %v8702_v39, %v8392_v46  ;;  %v8394_v60 = vmax.f32 %v8017_v16, 0.0  ;;  %v6717_v35 = vadd.f32 %v6716_v55, %v15505_v36  ;;  %v6718_v10 = vpop.f32.mrb[65].mxu0 }
 0x6a0   : > { %v8635_v31 = vmax.f32 %v8634_v26, %v8393_v44  ;;  %v6719_v5 = vadd.f32 %v6718_v10, %v15510_v13  ;;  %v6720_v51 = vpop.f32.mrb[66].mxu0 }
 0x6a1   : > { %v8704_v41 = vmax.f32 %v8703_v34, %v8394_v60  ;;  %v7067_v23 = vmax.f32 %v6717_v35, 0.0  ;;  %v6721_v48 = vadd.f32 %v6720_v51, %v15505_v36  ;;  %v6722_v8 = vpop.f32.mrb[67].mxu0  ;;  %v8020_v52 = vpop.f32.mrb[48].mxu1 }
 0x6a2   : > { %v7068_v53 = vmax.f32 %v6719_v5, 0.0  ;;  %v6723_v49 = vadd.f32 %v6722_v8, %v15510_v13  ;;  %v8021_v37 = vadd.f32 %v8020_v52, %v15581_v61  ;;  %v8022_v63 = vpop.f32.mrb[49].mxu1 }
 0x6a3   : > { %v7300_v43 = vmax.f32 %v7299_v33, %v7067_v23  ;;  %v7069_v14 = vmax.f32 %v6721_v48, 0.0  ;;  %v8023_v0 = vadd.f32 %v8022_v63, %v15586_v9  ;;  %v8024_v56 = vpop.f32.mrb[50].mxu1 }
 0x6a4   : > { %v7369_v18 = vmax.f32 %v7368_v38, %v7068_v53  ;;  %v7070_v15 = vmax.f32 %v6723_v49, 0.0  ;;  %v8395_v47 = vmax.f32 %v8021_v37, 0.0  ;;  %v8025_v24 = vadd.f32 %v8024_v56, %v15581_v61  ;;  %v8026_v12 = vpop.f32.mrb[51].mxu1 }
 0x6a5   : > { %v7301_v62 = vmax.f32 %v7300_v43, %v7069_v14  ;;  %v8396_v6 = vmax.f32 %v8023_v0, 0.0  ;;  %v8027_v39 = vadd.f32 %v8026_v12, %v15586_v9 }
 0x6a6   : > { %v7370_v27 = vmax.f32 %v7369_v18, %v7070_v15  ;;  %v8636_v57 = vmax.f32 %v8635_v31, %v8395_v47  ;;  %v8397_v11 = vmax.f32 %v8025_v24, 0.0  ;;  %v6726_v19 = vpop.f32.mrb[68].mxu0 }
 0x6a7   : > { %v8705_v2 = vmax.f32 %v8704_v41, %v8396_v6  ;;  %v8398_v7 = vmax.f32 %v8027_v39, 0.0  ;;  %v6727_v25 = vadd.f32 %v6726_v19, %v15505_v36  ;;  %v6728_v17 = vpop.f32.mrb[69].mxu0 }
 0x6a8   : > { %v8637_v22 = vmax.f32 %v8636_v57, %v8397_v11  ;;  %v6729_v3 = vadd.f32 %v6728_v17, %v15510_v13  ;;  %v6730_v20 = vpop.f32.mrb[70].mxu0 }
 0x6a9   : > { %v8706_v59 = vmax.f32 %v8705_v2, %v8398_v7  ;;  %v7071_v30 = vmax.f32 %v6727_v25, 0.0  ;;  %v6731_v4 = vadd.f32 %v6730_v20, %v15505_v36  ;;  %v6732_v45 = vpop.f32.mrb[71].mxu0  ;;  %v8030_v28 = vpop.f32.mrb[52].mxu1 }
 0x6aa   : > { %v7072_v21 = vmax.f32 %v6729_v3, 0.0  ;;  %v6733_v33 = vadd.f32 %v6732_v45, %v15510_v13  ;;  %v8031_v46 = vadd.f32 %v8030_v28, %v15581_v61  ;;  %v8032_v16 = vpop.f32.mrb[53].mxu1 }
 0x6ab   : > { %v7302_v38 = vmax.f32 %v7301_v62, %v7071_v30  ;;  %v7073_v26 = vmax.f32 %v6731_v4, 0.0  ;;  %v8033_v44 = vadd.f32 %v8032_v16, %v15586_v9  ;;  %v8034_v55 = vpop.f32.mrb[54].mxu1 }
 0x6ac   : > { %v7371_v34 = vmax.f32 %v7370_v27, %v7072_v21  ;;  %v7074_v60 = vmax.f32 %v6733_v33, 0.0  ;;  %v8399_v35 = vmax.f32 %v8031_v46, 0.0  ;;  %v8035_v10 = vadd.f32 %v8034_v55, %v15581_v61  ;;  %v8036_v31 = vpop.f32.mrb[55].mxu1 }
 0x6ad   : > { %v7303_v5 = vmax.f32 %v7302_v38, %v7073_v26  ;;  %v8400_v51 = vmax.f32 %v8033_v44, 0.0  ;;  %v8037_v41 = vadd.f32 %v8036_v31, %v15586_v9 }
 0x6ae   : > { %v7372_v23 = vmax.f32 %v7371_v34, %v7074_v60  ;;  %v8638_v48 = vmax.f32 %v8637_v22, %v8399_v35  ;;  %v8401_v8 = vmax.f32 %v8035_v10, 0.0  ;;  %v6736_v52 = vpop.f32.mrb[72].mxu0 }
 0x6af   : > { %v8707_v53 = vmax.f32 %v8706_v59, %v8400_v51  ;;  %v8402_v49 = vmax.f32 %v8037_v41, 0.0  ;;  %v6737_v37 = vadd.f32 %v6736_v52, %v15505_v36  ;;  %v6738_v63 = vpop.f32.mrb[73].mxu0 }
 0x6b0   : > { %v8639_v43 = vmax.f32 %v8638_v48, %v8401_v8  ;;  %v6739_v14 = vadd.f32 %v6738_v63, %v15510_v13  ;;  %v6740_v0 = vpop.f32.mrb[74].mxu0 }
 0x6b1   : > { %v8708_v56 = vmax.f32 %v8707_v53, %v8402_v49  ;;  %v7075_v18 = vmax.f32 %v6737_v37, 0.0  ;;  %v6741_v15 = vadd.f32 %v6740_v0, %v15505_v36  ;;  %v6742_v47 = vpop.f32.mrb[75].mxu0  ;;  %v8040_v24 = vpop.f32.mrb[56].mxu1 }
 0x6b2   : > { %v7076_v12 = vmax.f32 %v6739_v14, 0.0  ;;  %v6743_v62 = vadd.f32 %v6742_v47, %v15510_v13  ;;  %v8041_v6 = vadd.f32 %v8040_v24, %v15581_v61  ;;  %v8042_v39 = vpop.f32.mrb[57].mxu1 }
 0x6b3   : > { %v7304_v27 = vmax.f32 %v7303_v5, %v7075_v18  ;;  %v7077_v57 = vmax.f32 %v6741_v15, 0.0  ;;  %v8043_v11 = vadd.f32 %v8042_v39, %v15586_v9  ;;  %v8044_v19 = vpop.f32.mrb[58].mxu1 }
 0x6b4   : > { %v7373_v2 = vmax.f32 %v7372_v23, %v7076_v12  ;;  %v7078_v7 = vmax.f32 %v6743_v62, 0.0  ;;  %v8403_v25 = vmax.f32 %v8041_v6, 0.0  ;;  %v8045_v17 = vadd.f32 %v8044_v19, %v15581_v61  ;;  %v8046_v22 = vpop.f32.mrb[59].mxu1 }
 0x6b5   : > { %v7305_v3 = vmax.f32 %v7304_v27, %v7077_v57  ;;  %v8404_v20 = vmax.f32 %v8043_v11, 0.0  ;;  %v8047_v59 = vadd.f32 %v8046_v22, %v15586_v9 }
 0x6b6   : > { %v7374_v30 = vmax.f32 %v7373_v2, %v7078_v7  ;;  %v8640_v4 = vmax.f32 %v8639_v43, %v8403_v25  ;;  %v8405_v45 = vmax.f32 %v8045_v17, 0.0  ;;  %v6746_v28 = vpop.f32.mrb[76].mxu0 }
 0x6b7   : > { %v8709_v21 = vmax.f32 %v8708_v56, %v8404_v20  ;;  %v8406_v33 = vmax.f32 %v8047_v59, 0.0  ;;  %v6747_v46 = vadd.f32 %v6746_v28, %v15505_v36  ;;  %v6748_v16 = vpop.f32.mrb[77].mxu0 }
 0x6b8   : > { %v8641_v38 = vmax.f32 %v8640_v4, %v8405_v45  ;;  %v6749_v26 = vadd.f32 %v6748_v16, %v15510_v13  ;;  %v6750_v44 = vpop.f32.mrb[78].mxu0 }
 0x6b9   : > { %v8710_v55 = vmax.f32 %v8709_v21, %v8406_v33  ;;  %v7079_v34 = vmax.f32 %v6747_v46, 0.0  ;;  %v6751_v60 = vadd.f32 %v6750_v44, %v15505_v36  ;;  %v6752_v35 = vpop.f32.mrb[79].mxu0  ;;  %v8050_v10 = vpop.f32.mrb[60].mxu1 }
 0x6ba   : > { %v7080_v31 = vmax.f32 %v6749_v26, 0.0  ;;  %v6753_v5 = vadd.f32 %v6752_v35, %v15510_v13  ;;  %v8051_v51 = vadd.f32 %v8050_v10, %v15581_v61  ;;  %v8052_v41 = vpop.f32.mrb[61].mxu1 }
 0x6bb   : > { %v7306_v23 = vmax.f32 %v7305_v3, %v7079_v34  ;;  %v7081_v48 = vmax.f32 %v6751_v60, 0.0  ;;  %v8053_v8 = vadd.f32 %v8052_v41, %v15586_v9  ;;  %v8054_v52 = vpop.f32.mrb[62].mxu1 }
 0x6bc   : > { %v7375_v53 = vmax.f32 %v7374_v30, %v7080_v31  ;;  %v7082_v49 = vmax.f32 %v6753_v5, 0.0  ;;  %v8407_v37 = vmax.f32 %v8051_v51, 0.0  ;;  %v8055_v63 = vadd.f32 %v8054_v52, %v15581_v61  ;;  %v8056_v43 = vpop.f32.mrb[63].mxu1 }
 0x6bd   : > { %v7307_v14 = vmax.f32 %v7306_v23, %v7081_v48  ;;  %v8408_v0 = vmax.f32 %v8053_v8, 0.0  ;;  %v8057_v56 = vadd.f32 %v8056_v43, %v15586_v9 }
 0x6be   : > { %v7376_v18 = vmax.f32 %v7375_v53, %v7082_v49  ;;  %v8642_v15 = vmax.f32 %v8641_v38, %v8407_v37  ;;  %v8409_v47 = vmax.f32 %v8055_v63, 0.0  ;;  %v6756_v24 = vpop.f32.mrb[80].mxu0 }
 0x6bf   : > { %v8711_v12 = vmax.f32 %v8710_v55, %v8408_v0  ;;  %v8410_v62 = vmax.f32 %v8057_v56, 0.0  ;;  %v6757_v6 = vadd.f32 %v6756_v24, %v15505_v36  ;;  %v6758_v39 = vpop.f32.mrb[81].mxu0 }
 0x6c0   : > { %v8643_v27 = vmax.f32 %v8642_v15, %v8409_v47  ;;  %v6759_v57 = vadd.f32 %v6758_v39, %v15510_v13  ;;  %v6760_v11 = vpop.f32.mrb[82].mxu0 }
 0x6c1   : > { %v8712_v19 = vmax.f32 %v8711_v12, %v8410_v62  ;;  %v7083_v2 = vmax.f32 %v6757_v6, 0.0  ;;  %v6761_v7 = vadd.f32 %v6760_v11, %v15505_v36  ;;  %v6762_v25 = vpop.f32.mrb[83].mxu0  ;;  %v8060_v17 = vpop.f32.mrb[64].mxu1 }
 0x6c2   : > { %v7084_v22 = vmax.f32 %v6759_v57, 0.0  ;;  %v6763_v3 = vadd.f32 %v6762_v25, %v15510_v13  ;;  %v8061_v20 = vadd.f32 %v8060_v17, %v15581_v61  ;;  %v8062_v59 = vpop.f32.mrb[65].mxu1 }
 0x6c3   : > { %v7308_v30 = vmax.f32 %v7307_v14, %v7083_v2  ;;  %v7085_v4 = vmax.f32 %v6761_v7, 0.0  ;;  %v8063_v45 = vadd.f32 %v8062_v59, %v15586_v9  ;;  %v8064_v28 = vpop.f32.mrb[66].mxu1 }
 0x6c4   : > { %v7377_v21 = vmax.f32 %v7376_v18, %v7084_v22  ;;  %v7086_v33 = vmax.f32 %v6763_v3, 0.0  ;;  %v8411_v46 = vmax.f32 %v8061_v20, 0.0  ;;  %v8065_v16 = vadd.f32 %v8064_v28, %v15581_v61  ;;  %v8066_v38 = vpop.f32.mrb[67].mxu1 }
 0x6c5   : > { %v7309_v26 = vmax.f32 %v7308_v30, %v7085_v4  ;;  %v8412_v44 = vmax.f32 %v8063_v45, 0.0  ;;  %v8067_v55 = vadd.f32 %v8066_v38, %v15586_v9 }
 0x6c6   : > { %v7378_v34 = vmax.f32 %v7377_v21, %v7086_v33  ;;  %v8644_v60 = vmax.f32 %v8643_v27, %v8411_v46  ;;  %v8413_v35 = vmax.f32 %v8065_v16, 0.0  ;;  %v6766_v10 = vpop.f32.mrb[84].mxu0 }
 0x6c7   : > { %v8713_v31 = vmax.f32 %v8712_v19, %v8412_v44  ;;  %v8414_v5 = vmax.f32 %v8067_v55, 0.0  ;;  %v6767_v51 = vadd.f32 %v6766_v10, %v15505_v36  ;;  %v6768_v41 = vpop.f32.mrb[85].mxu0 }
 0x6c8   : > { %v8645_v23 = vmax.f32 %v8644_v60, %v8413_v35  ;;  %v6769_v48 = vadd.f32 %v6768_v41, %v15510_v13  ;;  %v6770_v8 = vpop.f32.mrb[86].mxu0 }
 0x6c9   : > { %v8714_v52 = vmax.f32 %v8713_v31, %v8414_v5  ;;  %v7087_v53 = vmax.f32 %v6767_v51, 0.0  ;;  %v6771_v49 = vadd.f32 %v6770_v8, %v15505_v36  ;;  %v6772_v37 = vpop.f32.mrb[87].mxu0  ;;  %v8070_v63 = vpop.f32.mrb[68].mxu1 }
 0x6ca   : > { %v7088_v43 = vmax.f32 %v6769_v48, 0.0  ;;  %v6773_v14 = vadd.f32 %v6772_v37, %v15510_v13  ;;  %v8071_v0 = vadd.f32 %v8070_v63, %v15581_v61  ;;  %v8072_v56 = vpop.f32.mrb[69].mxu1 }
 0x6cb   : > { %v7310_v18 = vmax.f32 %v7309_v26, %v7087_v53  ;;  %v7089_v15 = vmax.f32 %v6771_v49, 0.0  ;;  %v8073_v47 = vadd.f32 %v8072_v56, %v15586_v9  ;;  %v8074_v24 = vpop.f32.mrb[70].mxu1 }
 0x6cc   : > { %v7379_v12 = vmax.f32 %v7378_v34, %v7088_v43  ;;  %v7090_v62 = vmax.f32 %v6773_v14, 0.0  ;;  %v8415_v6 = vmax.f32 %v8071_v0, 0.0  ;;  %v8075_v39 = vadd.f32 %v8074_v24, %v15581_v61  ;;  %v8076_v27 = vpop.f32.mrb[71].mxu1 }
 0x6cd   : > { %v7311_v57 = vmax.f32 %v7310_v18, %v7089_v15  ;;  %v8416_v11 = vmax.f32 %v8073_v47, 0.0  ;;  %v8077_v19 = vadd.f32 %v8076_v27, %v15586_v9 }
 0x6ce   : > { %v7380_v2 = vmax.f32 %v7379_v12, %v7090_v62  ;;  %v8646_v7 = vmax.f32 %v8645_v23, %v8415_v6  ;;  %v8417_v25 = vmax.f32 %v8075_v39, 0.0  ;;  %v6776_v17 = vpop.f32.mrb[88].mxu0 }
 0x6cf   : > { %v8715_v22 = vmax.f32 %v8714_v52, %v8416_v11  ;;  %v8418_v3 = vmax.f32 %v8077_v19, 0.0  ;;  %v6777_v20 = vadd.f32 %v6776_v17, %v15505_v36  ;;  %v6778_v59 = vpop.f32.mrb[89].mxu0 }
 0x6d0   : > { %v8647_v30 = vmax.f32 %v8646_v7, %v8417_v25  ;;  %v6779_v4 = vadd.f32 %v6778_v59, %v15510_v13  ;;  %v6780_v45 = vpop.f32.mrb[90].mxu0 }
 0x6d1   : > { %v8716_v28 = vmax.f32 %v8715_v22, %v8418_v3  ;;  %v7091_v21 = vmax.f32 %v6777_v20, 0.0  ;;  %v6781_v33 = vadd.f32 %v6780_v45, %v15505_v36  ;;  %v6782_v46 = vpop.f32.mrb[91].mxu0  ;;  %v8080_v16 = vpop.f32.mrb[72].mxu1 }
 0x6d2   : > { %v7092_v38 = vmax.f32 %v6779_v4, 0.0  ;;  %v6783_v26 = vadd.f32 %v6782_v46, %v15510_v13  ;;  %v8081_v44 = vadd.f32 %v8080_v16, %v15581_v61  ;;  %v8082_v55 = vpop.f32.mrb[73].mxu1 }
 0x6d3   : > { %v7312_v34 = vmax.f32 %v7311_v57, %v7091_v21  ;;  %v7093_v60 = vmax.f32 %v6781_v33, 0.0  ;;  %v8083_v35 = vadd.f32 %v8082_v55, %v15586_v9  ;;  %v8084_v10 = vpop.f32.mrb[74].mxu1 }
 0x6d4   : > { %v7381_v31 = vmax.f32 %v7380_v2, %v7092_v38  ;;  %v7094_v5 = vmax.f32 %v6783_v26, 0.0  ;;  %v8419_v51 = vmax.f32 %v8081_v44, 0.0  ;;  %v8085_v41 = vadd.f32 %v8084_v10, %v15581_v61  ;;  %v8086_v23 = vpop.f32.mrb[75].mxu1 }
 0x6d5   : > { %v7313_v48 = vmax.f32 %v7312_v34, %v7093_v60  ;;  %v8420_v8 = vmax.f32 %v8083_v35, 0.0  ;;  %v8087_v52 = vadd.f32 %v8086_v23, %v15586_v9 }
 0x6d6   : > { %v7382_v53 = vmax.f32 %v7381_v31, %v7094_v5  ;;  %v8648_v49 = vmax.f32 %v8647_v30, %v8419_v51  ;;  %v8421_v37 = vmax.f32 %v8085_v41, 0.0  ;;  %v6786_v63 = vpop.f32.mrb[92].mxu0 }
 0x6d7   : > { %v8717_v43 = vmax.f32 %v8716_v28, %v8420_v8  ;;  %v8422_v14 = vmax.f32 %v8087_v52, 0.0  ;;  %v6787_v0 = vadd.f32 %v6786_v63, %v15505_v36  ;;  %v6788_v56 = vpop.f32.mrb[93].mxu0 }
 0x6d8   : > { %v8649_v18 = vmax.f32 %v8648_v49, %v8421_v37  ;;  %v6789_v15 = vadd.f32 %v6788_v56, %v15510_v13  ;;  %v6790_v47 = vpop.f32.mrb[94].mxu0 }
 0x6d9   : > { %v8718_v24 = vmax.f32 %v8717_v43, %v8422_v14  ;;  %v7095_v12 = vmax.f32 %v6787_v0, 0.0  ;;  %v6791_v62 = vadd.f32 %v6790_v47, %v15505_v36  ;;  %v6792_v6 = vpop.f32.mrb[95].mxu0  ;;  %v8090_v39 = vpop.f32.mrb[76].mxu1 }
 0x6da   : > { %v7096_v27 = vmax.f32 %v6789_v15, 0.0  ;;  %v6793_v57 = vadd.f32 %v6792_v6, %v15510_v13  ;;  %v8091_v11 = vadd.f32 %v8090_v39, %v15581_v61  ;;  %v8092_v19 = vpop.f32.mrb[77].mxu1 }
 0x6db   : > { %v7314_v2 = vmax.f32 %v7313_v48, %v7095_v12  ;;  %v7097_v7 = vmax.f32 %v6791_v62, 0.0  ;;  %v8093_v25 = vadd.f32 %v8092_v19, %v15586_v9  ;;  %v8094_v17 = vpop.f32.mrb[78].mxu1 }
 0x6dc   : > { %v7383_v22 = vmax.f32 %v7382_v53, %v7096_v27  ;;  %v7098_v3 = vmax.f32 %v6793_v57, 0.0  ;;  %v8423_v20 = vmax.f32 %v8091_v11, 0.0  ;;  %v8095_v59 = vadd.f32 %v8094_v17, %v15581_v61  ;;  %v8096_v30 = vpop.f32.mrb[79].mxu1 }
 0x6dd   : > { %v7315_v4 = vmax.f32 %v7314_v2, %v7097_v7  ;;  %v8424_v45 = vmax.f32 %v8093_v25, 0.0  ;;  %v8097_v28 = vadd.f32 %v8096_v30, %v15586_v9 }
 0x6de   : > { %v7384_v21 = vmax.f32 %v7383_v22, %v7098_v3  ;;  %v8650_v33 = vmax.f32 %v8649_v18, %v8423_v20  ;;  %v8425_v46 = vmax.f32 %v8095_v59, 0.0  ;;  %v6796_v16 = vpop.f32.mrb[96].mxu0 }
 0x6df   : > { %v8719_v38 = vmax.f32 %v8718_v24, %v8424_v45  ;;  %v8426_v26 = vmax.f32 %v8097_v28, 0.0  ;;  %v6797_v44 = vadd.f32 %v6796_v16, %v15505_v36  ;;  %v6798_v55 = vpop.f32.mrb[97].mxu0 }
 0x6e0   : > { %v8651_v34 = vmax.f32 %v8650_v33, %v8425_v46  ;;  %v6799_v60 = vadd.f32 %v6798_v55, %v15510_v13  ;;  %v6800_v35 = vpop.f32.mrb[98].mxu0 }
 0x6e1   : > { %v8720_v10 = vmax.f32 %v8719_v38, %v8426_v26  ;;  %v7099_v31 = vmax.f32 %v6797_v44, 0.0  ;;  %v6801_v5 = vadd.f32 %v6800_v35, %v15505_v36  ;;  %v6802_v51 = vpop.f32.mrb[99].mxu0  ;;  %v8100_v41 = vpop.f32.mrb[80].mxu1 }
 0x6e2   : > { %v7100_v23 = vmax.f32 %v6799_v60, 0.0  ;;  %v6803_v48 = vadd.f32 %v6802_v51, %v15510_v13  ;;  %v8101_v8 = vadd.f32 %v8100_v41, %v15581_v61  ;;  %v8102_v52 = vpop.f32.mrb[81].mxu1 }
 0x6e3   : > { %v7316_v53 = vmax.f32 %v7315_v4, %v7099_v31  ;;  %v7101_v49 = vmax.f32 %v6801_v5, 0.0  ;;  %v8103_v37 = vadd.f32 %v8102_v52, %v15586_v9  ;;  %v8104_v63 = vpop.f32.mrb[82].mxu1 }
 0x6e4   : > { %v7385_v43 = vmax.f32 %v7384_v21, %v7100_v23  ;;  %v7102_v14 = vmax.f32 %v6803_v48, 0.0  ;;  %v8427_v0 = vmax.f32 %v8101_v8, 0.0  ;;  %v8105_v56 = vadd.f32 %v8104_v63, %v15581_v61  ;;  %v8106_v18 = vpop.f32.mrb[83].mxu1 }
 0x6e5   : > { %v7317_v15 = vmax.f32 %v7316_v53, %v7101_v49  ;;  %v8428_v47 = vmax.f32 %v8103_v37, 0.0  ;;  %v8107_v24 = vadd.f32 %v8106_v18, %v15586_v9 }
 0x6e6   : > { %v7386_v12 = vmax.f32 %v7385_v43, %v7102_v14  ;;  %v8652_v62 = vmax.f32 %v8651_v34, %v8427_v0  ;;  %v8429_v6 = vmax.f32 %v8105_v56, 0.0  ;;  %v6806_v39 = vpop.f32.mrb[100].mxu0 }
 0x6e7   : > { %v8721_v27 = vmax.f32 %v8720_v10, %v8428_v47  ;;  %v8430_v57 = vmax.f32 %v8107_v24, 0.0  ;;  %v6807_v11 = vadd.f32 %v6806_v39, %v15505_v36  ;;  %v6808_v19 = vpop.f32.mrb[101].mxu0 }
 0x6e8   : > { %v8653_v2 = vmax.f32 %v8652_v62, %v8429_v6  ;;  %v6809_v7 = vadd.f32 %v6808_v19, %v15510_v13  ;;  %v6810_v25 = vpop.f32.mrb[102].mxu0 }
 0x6e9   : > { %v8722_v17 = vmax.f32 %v8721_v27, %v8430_v57  ;;  %v7103_v22 = vmax.f32 %v6807_v11, 0.0  ;;  %v6811_v3 = vadd.f32 %v6810_v25, %v15505_v36  ;;  %v6812_v20 = vpop.f32.mrb[103].mxu0  ;;  %v8110_v59 = vpop.f32.mrb[84].mxu1 }
 0x6ea   : > { %v7104_v30 = vmax.f32 %v6809_v7, 0.0  ;;  %v6813_v4 = vadd.f32 %v6812_v20, %v15510_v13  ;;  %v8111_v45 = vadd.f32 %v8110_v59, %v15581_v61  ;;  %v8112_v28 = vpop.f32.mrb[85].mxu1 }
 0x6eb   : > { %v7318_v21 = vmax.f32 %v7317_v15, %v7103_v22  ;;  %v7105_v33 = vmax.f32 %v6811_v3, 0.0  ;;  %v8113_v46 = vadd.f32 %v8112_v28, %v15586_v9  ;;  %v8114_v16 = vpop.f32.mrb[86].mxu1 }
 0x6ec   : > { %v7387_v38 = vmax.f32 %v7386_v12, %v7104_v30  ;;  %v7106_v26 = vmax.f32 %v6813_v4, 0.0  ;;  %v8431_v44 = vmax.f32 %v8111_v45, 0.0  ;;  %v8115_v55 = vadd.f32 %v8114_v16, %v15581_v61  ;;  %v8116_v34 = vpop.f32.mrb[87].mxu1 }
 0x6ed   : > { %v7319_v60 = vmax.f32 %v7318_v21, %v7105_v33  ;;  %v8432_v35 = vmax.f32 %v8113_v46, 0.0  ;;  %v8117_v10 = vadd.f32 %v8116_v34, %v15586_v9 }
 0x6ee   : > { %v7388_v31 = vmax.f32 %v7387_v38, %v7106_v26  ;;  %v8654_v5 = vmax.f32 %v8653_v2, %v8431_v44  ;;  %v8433_v51 = vmax.f32 %v8115_v55, 0.0  ;;  %v6816_v41 = vpop.f32.mrb[104].mxu0 }
 0x6ef   : > { %v8723_v23 = vmax.f32 %v8722_v17, %v8432_v35  ;;  %v8434_v48 = vmax.f32 %v8117_v10, 0.0  ;;  %v6817_v8 = vadd.f32 %v6816_v41, %v15505_v36  ;;  %v6818_v52 = vpop.f32.mrb[105].mxu0 }
 0x6f0   : > { %v8655_v53 = vmax.f32 %v8654_v5, %v8433_v51  ;;  %v6819_v49 = vadd.f32 %v6818_v52, %v15510_v13  ;;  %v6820_v37 = vpop.f32.mrb[106].mxu0 }
 0x6f1   : > { %v8724_v63 = vmax.f32 %v8723_v23, %v8434_v48  ;;  %v7107_v43 = vmax.f32 %v6817_v8, 0.0  ;;  %v6821_v14 = vadd.f32 %v6820_v37, %v15505_v36  ;;  %v6822_v0 = vpop.f32.mrb[107].mxu0  ;;  %v8120_v56 = vpop.f32.mrb[88].mxu1 }
 0x6f2   : > { %v7108_v18 = vmax.f32 %v6819_v49, 0.0  ;;  %v6823_v15 = vadd.f32 %v6822_v0, %v15510_v13  ;;  %v8121_v47 = vadd.f32 %v8120_v56, %v15581_v61  ;;  %v8122_v24 = vpop.f32.mrb[89].mxu1 }
 0x6f3   : > { %v7320_v12 = vmax.f32 %v7319_v60, %v7107_v43  ;;  %v7109_v62 = vmax.f32 %v6821_v14, 0.0  ;;  %v8123_v6 = vadd.f32 %v8122_v24, %v15586_v9  ;;  %v8124_v39 = vpop.f32.mrb[90].mxu1 }
 0x6f4   : > { %v7389_v27 = vmax.f32 %v7388_v31, %v7108_v18  ;;  %v7110_v57 = vmax.f32 %v6823_v15, 0.0  ;;  %v8435_v11 = vmax.f32 %v8121_v47, 0.0  ;;  %v8125_v19 = vadd.f32 %v8124_v39, %v15581_v61  ;;  %v8126_v2 = vpop.f32.mrb[91].mxu1 }
 0x6f5   : > { %v7321_v7 = vmax.f32 %v7320_v12, %v7109_v62  ;;  %v8436_v25 = vmax.f32 %v8123_v6, 0.0  ;;  %v8127_v17 = vadd.f32 %v8126_v2, %v15586_v9 }
 0x6f6   : > { %v7390_v22 = vmax.f32 %v7389_v27, %v7110_v57  ;;  %v8656_v3 = vmax.f32 %v8655_v53, %v8435_v11  ;;  %v8437_v20 = vmax.f32 %v8125_v19, 0.0  ;;  %v6826_v59 = vpop.f32.mrb[108].mxu0 }
 0x6f7   : > { %v8725_v30 = vmax.f32 %v8724_v63, %v8436_v25  ;;  %v8438_v4 = vmax.f32 %v8127_v17, 0.0  ;;  %v6827_v45 = vadd.f32 %v6826_v59, %v15505_v36  ;;  %v6828_v28 = vpop.f32.mrb[109].mxu0 }
 0x6f8   : > { %v8657_v21 = vmax.f32 %v8656_v3, %v8437_v20  ;;  %v6829_v33 = vadd.f32 %v6828_v28, %v15510_v13  ;;  %v6830_v46 = vpop.f32.mrb[110].mxu0 }
 0x6f9   : > { %v8726_v16 = vmax.f32 %v8725_v30, %v8438_v4  ;;  %v7111_v38 = vmax.f32 %v6827_v45, 0.0  ;;  %v6831_v26 = vadd.f32 %v6830_v46, %v15505_v36  ;;  %v6832_v44 = vpop.f32.mrb[111].mxu0  ;;  %v8130_v55 = vpop.f32.mrb[92].mxu1 }
 0x6fa   : > { %v7112_v34 = vmax.f32 %v6829_v33, 0.0  ;;  %v6833_v60 = vadd.f32 %v6832_v44, %v15510_v13  ;;  %v8131_v35 = vadd.f32 %v8130_v55, %v15581_v61  ;;  %v8132_v10 = vpop.f32.mrb[93].mxu1 }
 0x6fb   : > { %v7322_v31 = vmax.f32 %v7321_v7, %v7111_v38  ;;  %v7113_v5 = vmax.f32 %v6831_v26, 0.0  ;;  %v8133_v51 = vadd.f32 %v8132_v10, %v15586_v9  ;;  %v8134_v41 = vpop.f32.mrb[94].mxu1 }
 0x6fc   : > { %v7391_v23 = vmax.f32 %v7390_v22, %v7112_v34  ;;  %v7114_v48 = vmax.f32 %v6833_v60, 0.0  ;;  %v8439_v8 = vmax.f32 %v8131_v35, 0.0  ;;  %v8135_v52 = vadd.f32 %v8134_v41, %v15581_v61  ;;  %v8136_v53 = vpop.f32.mrb[95].mxu1 }
 0x6fd   : > { %v7323_v49 = vmax.f32 %v7322_v31, %v7113_v5  ;;  %v8440_v37 = vmax.f32 %v8133_v51, 0.0  ;;  %v8137_v63 = vadd.f32 %v8136_v53, %v15586_v9 }
 0x6fe   : > { %v7392_v43 = vmax.f32 %v7391_v23, %v7114_v48  ;;  %v8658_v14 = vmax.f32 %v8657_v21, %v8439_v8  ;;  %v8441_v0 = vmax.f32 %v8135_v52, 0.0  ;;  %v6836_v56 = vpop.f32.mrb[112].mxu0 }
 0x6ff   : > { %v8727_v18 = vmax.f32 %v8726_v16, %v8440_v37  ;;  %v8442_v15 = vmax.f32 %v8137_v63, 0.0  ;;  %v6837_v47 = vadd.f32 %v6836_v56, %v15505_v36  ;;  %v6838_v24 = vpop.f32.mrb[113].mxu0 }
 0x700   : > { %v8659_v12 = vmax.f32 %v8658_v14, %v8441_v0  ;;  %v6839_v62 = vadd.f32 %v6838_v24, %v15510_v13  ;;  %v6840_v6 = vpop.f32.mrb[114].mxu0 }
 0x701   : > { %v8728_v39 = vmax.f32 %v8727_v18, %v8442_v15  ;;  %v7115_v27 = vmax.f32 %v6837_v47, 0.0  ;;  %v6841_v57 = vadd.f32 %v6840_v6, %v15505_v36  ;;  %v6842_v11 = vpop.f32.mrb[115].mxu0  ;;  %v8140_v19 = vpop.f32.mrb[96].mxu1 }
 0x702   : > { %v7116_v2 = vmax.f32 %v6839_v62, 0.0  ;;  %v6843_v7 = vadd.f32 %v6842_v11, %v15510_v13  ;;  %v8141_v25 = vadd.f32 %v8140_v19, %v15581_v61  ;;  %v8142_v17 = vpop.f32.mrb[97].mxu1 }
 0x703   : > { %v7324_v22 = vmax.f32 %v7323_v49, %v7115_v27  ;;  %v7117_v3 = vmax.f32 %v6841_v57, 0.0  ;;  %v8143_v20 = vadd.f32 %v8142_v17, %v15586_v9  ;;  %v8144_v59 = vpop.f32.mrb[98].mxu1 }
 0x704   : > { %v7393_v30 = vmax.f32 %v7392_v43, %v7116_v2  ;;  %v7118_v4 = vmax.f32 %v6843_v7, 0.0  ;;  %v8443_v45 = vmax.f32 %v8141_v25, 0.0  ;;  %v8145_v28 = vadd.f32 %v8144_v59, %v15581_v61  ;;  %v8146_v21 = vpop.f32.mrb[99].mxu1 }
 0x705   : > { %v7325_v33 = vmax.f32 %v7324_v22, %v7117_v3  ;;  %v8444_v46 = vmax.f32 %v8143_v20, 0.0  ;;  %v8147_v16 = vadd.f32 %v8146_v21, %v15586_v9 }
 0x706   : > { %v7394_v38 = vmax.f32 %v7393_v30, %v7118_v4  ;;  %v8660_v26 = vmax.f32 %v8659_v12, %v8443_v45  ;;  %v8445_v44 = vmax.f32 %v8145_v28, 0.0  ;;  %v6846_v55 = vpop.f32.mrb[116].mxu0 }
 0x707   : > { %v8729_v34 = vmax.f32 %v8728_v39, %v8444_v46  ;;  %v8446_v60 = vmax.f32 %v8147_v16, 0.0  ;;  %v6847_v35 = vadd.f32 %v6846_v55, %v15505_v36  ;;  %v6848_v10 = vpop.f32.mrb[117].mxu0 }
 0x708   : > { %v8661_v31 = vmax.f32 %v8660_v26, %v8445_v44  ;;  %v6849_v5 = vadd.f32 %v6848_v10, %v15510_v13  ;;  %v6850_v51 = vpop.f32.mrb[118].mxu0 }
 0x709   : > { %v8730_v41 = vmax.f32 %v8729_v34, %v8446_v60  ;;  %v7119_v23 = vmax.f32 %v6847_v35, 0.0  ;;  %v6851_v48 = vadd.f32 %v6850_v51, %v15505_v36  ;;  %v6852_v8 = vpop.f32.mrb[119].mxu0  ;;  %v8150_v52 = vpop.f32.mrb[100].mxu1 }
 0x70a   : > { %v7120_v53 = vmax.f32 %v6849_v5, 0.0  ;;  %v6853_v49 = vadd.f32 %v6852_v8, %v15510_v13  ;;  %v8151_v37 = vadd.f32 %v8150_v52, %v15581_v61  ;;  %v8152_v63 = vpop.f32.mrb[101].mxu1 }
 0x70b   : > { %v7326_v43 = vmax.f32 %v7325_v33, %v7119_v23  ;;  %v7121_v14 = vmax.f32 %v6851_v48, 0.0  ;;  %v8153_v0 = vadd.f32 %v8152_v63, %v15586_v9  ;;  %v8154_v56 = vpop.f32.mrb[102].mxu1 }
 0x70c   : > { %v7395_v18 = vmax.f32 %v7394_v38, %v7120_v53  ;;  %v7122_v15 = vmax.f32 %v6853_v49, 0.0  ;;  %v8447_v47 = vmax.f32 %v8151_v37, 0.0  ;;  %v8155_v24 = vadd.f32 %v8154_v56, %v15581_v61  ;;  %v8156_v12 = vpop.f32.mrb[103].mxu1 }
 0x70d   : > { %v7327_v62 = vmax.f32 %v7326_v43, %v7121_v14  ;;  %v8448_v6 = vmax.f32 %v8153_v0, 0.0  ;;  %v8157_v39 = vadd.f32 %v8156_v12, %v15586_v9 }
 0x70e   : > { %v7396_v27 = vmax.f32 %v7395_v18, %v7122_v15  ;;  %v8662_v57 = vmax.f32 %v8661_v31, %v8447_v47  ;;  %v8449_v11 = vmax.f32 %v8155_v24, 0.0  ;;  %v6856_v19 = vpop.f32.mrb[120].mxu0 }
 0x70f   : > { %v8731_v2 = vmax.f32 %v8730_v41, %v8448_v6  ;;  %v8450_v7 = vmax.f32 %v8157_v39, 0.0  ;;  %v6857_v25 = vadd.f32 %v6856_v19, %v15505_v36  ;;  %v6858_v17 = vpop.f32.mrb[121].mxu0 }
 0x710   : > { %v8663_v22 = vmax.f32 %v8662_v57, %v8449_v11  ;;  %v6859_v3 = vadd.f32 %v6858_v17, %v15510_v13  ;;  %v6860_v20 = vpop.f32.mrb[122].mxu0 }
 0x711   : > { %v8732_v59 = vmax.f32 %v8731_v2, %v8450_v7  ;;  %v7123_v30 = vmax.f32 %v6857_v25, 0.0  ;;  %v6861_v4 = vadd.f32 %v6860_v20, %v15505_v36  ;;  %v6862_v45 = vpop.f32.mrb[123].mxu0  ;;  %v8160_v28 = vpop.f32.mrb[104].mxu1 }
 0x712   : > { %v7124_v21 = vmax.f32 %v6859_v3, 0.0  ;;  %v6863_v33 = vadd.f32 %v6862_v45, %v15510_v13  ;;  %v8161_v46 = vadd.f32 %v8160_v28, %v15581_v61  ;;  %v8162_v16 = vpop.f32.mrb[105].mxu1 }
 0x713   : > { %v7328_v38 = vmax.f32 %v7327_v62, %v7123_v30  ;;  %v7125_v26 = vmax.f32 %v6861_v4, 0.0  ;;  %v8163_v44 = vadd.f32 %v8162_v16, %v15586_v9  ;;  %v8164_v55 = vpop.f32.mrb[106].mxu1 }
 0x714   : > { %v7397_v34 = vmax.f32 %v7396_v27, %v7124_v21  ;;  %v7126_v60 = vmax.f32 %v6863_v33, 0.0  ;;  %v8451_v35 = vmax.f32 %v8161_v46, 0.0  ;;  %v8165_v10 = vadd.f32 %v8164_v55, %v15581_v61  ;;  %v8166_v31 = vpop.f32.mrb[107].mxu1 }
 0x715   : > { %v7329_v5 = vmax.f32 %v7328_v38, %v7125_v26  ;;  %v8452_v51 = vmax.f32 %v8163_v44, 0.0  ;;  %v8167_v41 = vadd.f32 %v8166_v31, %v15586_v9 }
 0x716   : > { %v7398_v23 = vmax.f32 %v7397_v34, %v7126_v60  ;;  %v8664_v48 = vmax.f32 %v8663_v22, %v8451_v35  ;;  %v8453_v8 = vmax.f32 %v8165_v10, 0.0  ;;  %v6866_v52 = vpop.f32.mrb[124].mxu0 }
 0x717   : > { %v8733_v53 = vmax.f32 %v8732_v59, %v8452_v51  ;;  %v8454_v49 = vmax.f32 %v8167_v41, 0.0  ;;  %v6867_v37 = vadd.f32 %v6866_v52, %v15505_v36  ;;  %v6868_v63 = vpop.f32.mrb[125].mxu0 }
 0x718   : > { %v8665_v43 = vmax.f32 %v8664_v48, %v8453_v8  ;;  %v6869_v14 = vadd.f32 %v6868_v63, %v15510_v13  ;;  %v6870_v0 = vpop.f32.mrb[126].mxu0 }
 0x719   : > { %v8734_v56 = vmax.f32 %v8733_v53, %v8454_v49  ;;  %v7127_v18 = vmax.f32 %v6867_v37, 0.0  ;;  %v6871_v15 = vadd.f32 %v6870_v0, %v15505_v36  ;;  %v6872_v47 = vpop.f32.mrb[127].mxu0  ;;  %v8170_v24 = vpop.f32.mrb[108].mxu1 }
 0x71a   : > { %v7128_v12 = vmax.f32 %v6869_v14, 0.0  ;;  %v6873_v62 = vadd.f32 %v6872_v47, %v15510_v13  ;;  %v8171_v6 = vadd.f32 %v8170_v24, %v15581_v61  ;;  %v8172_v39 = vpop.f32.mrb[109].mxu1 }
 0x71b   : > { %v7330_v27 = vmax.f32 %v7329_v5, %v7127_v18  ;;  %v7129_v57 = vmax.f32 %v6871_v15, 0.0  ;;  %v8173_v11 = vadd.f32 %v8172_v39, %v15586_v9  ;;  %v8174_v19 = vpop.f32.mrb[110].mxu1 }
 0x71c   : > { %v7399_v2 = vmax.f32 %v7398_v23, %v7128_v12  ;;  %v7130_v7 = vmax.f32 %v6873_v62, 0.0  ;;  %v8455_v25 = vmax.f32 %v8171_v6, 0.0  ;;  %v8175_v17 = vadd.f32 %v8174_v19, %v15581_v61  ;;  %v8176_v22 = vpop.f32.mrb[111].mxu1 }
 0x71d   : > { %v7331_v36 = vmax.f32 %v7330_v27, %v7129_v57  ;;  %v8456_v3 = vmax.f32 %v8173_v11, 0.0  ;;  %v8177_v20 = vadd.f32 %v8176_v22, %v15586_v9 }
 0x71e   : > { %v7400_v59 = vmax.f32 %v7399_v2, %v7130_v7  ;;  %v8666_v13 = vmax.f32 %v8665_v43, %v8455_v25  ;;  %v8457_v30 = vmax.f32 %v8175_v17, 0.0 }
 0x71f   : > { %v7332_v4 = vrot.slane %v7331_v36, 4  ;;  %v8735_v45 = vmax.f32 %v8734_v56, %v8456_v3  ;;  %v8458_v28 = vmax.f32 %v8177_v20, 0.0 }
 0x720   : > { %v7401_v21 = vrot.slane %v7400_v59, 4  ;;  %v8667_v33 = vmax.f32 %v8666_v13, %v8457_v30 }
 0x721   : > { %v7333_v46 = vmax.f32 %v7331_v36, %v7332_v4  ;;  %v8736_v16 = vmax.f32 %v8735_v45, %v8458_v28  ;;  %v8180_v38 = vpop.f32.mrb[112].mxu1  ;;  %v7419_v36 = vrot.slane %v7412_v32, %v15520_v54  ;;  %v7407_v28 = vld [vmem:[#allocation2 + $0x8] sm:$0xf] }
 0x722   : > { %v7402_v26 = vmax.f32 %v7400_v59, %v7401_v21  ;;  %v8181_v44 = vadd.f32 %v8180_v38, %v15581_v61  ;;  %v8182_v55 = vpop.f32.mrb[113].mxu1 }
 0x723   : > { %v7334_v34 = vrot.slane %v7333_v46, 2  ;;  %v8183_v60 = vadd.f32 %v8182_v55, %v15586_v9  ;;  %v8184_v35 = vpop.f32.mrb[114].mxu1 }
 0x724   : > { %v7403_v10 = vrot.slane %v7402_v26, 2  ;;  %v8459_v31 = vmax.f32 %v8181_v44, 0.0  ;;  %v8185_v5 = vadd.f32 %v8184_v35, %v15581_v61  ;;  %v8186_v51 = vpop.f32.mrb[115].mxu1 }
 0x725   : > { %v7335_v41 = vmax.f32 %v7333_v46, %v7334_v34  ;;  %v8460_v23 = vmax.f32 %v8183_v60, 0.0  ;;  %v8187_v48 = vadd.f32 %v8186_v51, %v15586_v9 }
 0x726   : > { %v7404_v8 = vmax.f32 %v7402_v26, %v7403_v10  ;;  %v8668_v52 = vmax.f32 %v8667_v33, %v8459_v31  ;;  %v8461_v53 = vmax.f32 %v8185_v5, 0.0 }
 0x727   : > { %v7336_v49 = vrot.slane %v7335_v41, 1  ;;  %v8737_v37 = vmax.f32 %v8736_v16, %v8460_v23  ;;  %v8462_v63 = vmax.f32 %v8187_v48, 0.0 }
 0x728   : > { %v7405_v43 = vrot.slane %v7404_v8, 1  ;;  %v8669_v14 = vmax.f32 %v8668_v52, %v8461_v53 }
 0x729   : > { %v7337_v0 = vmax.f32 %v7335_v41, %v7336_v49  ;;  %v8738_v56 = vmax.f32 %v8737_v37, %v8462_v63  ;;  %v8190_v18 = vpop.f32.mrb[116].mxu1 }
 0x72a   : > { %v7406_v15 = vmax.f32 %v7404_v8, %v7405_v43  ;;  %v8191_v47 = vadd.f32 %v8190_v18, %v15581_v61  ;;  %v8192_v24 = vpop.f32.mrb[117].mxu1 }
 0x72b   : > { %v8193_v12 = vadd.f32 %v8192_v24, %v15586_v9  ;;  %v8194_v62 = vpop.f32.mrb[118].mxu1 }
 0x72c   : > { %v7420_v6 = vcombine.low %v7337_v0, %v7406_v15  ;;  %v8463_v39 = vmax.f32 %v8191_v47, 0.0  ;;  %v8195_v27 = vadd.f32 %v8194_v62, %v15581_v61  ;;  %v8196_v57 = vpop.f32.mrb[119].mxu1 }
 0x72d   : > { %v8464_v11 = vmax.f32 %v8193_v12, 0.0  ;;  %v8197_v19 = vadd.f32 %v8196_v57, %v15586_v9 }
 0x72e   : > { %v7427_v2 = vrot.slane %v7420_v6, %v15520_v54  ;;  %v8670_v7 = vmax.f32 %v8669_v14, %v8463_v39  ;;  %v8465_v25 = vmax.f32 %v8195_v27, 0.0 }
 0x72f   : > { %v8739_v17 = vmax.f32 %v8738_v56, %v8464_v11  ;;  %v8466_v22 = vmax.f32 %v8197_v19, 0.0 }
 0x730   : > { %v7430_v3 = vrot.slane %v7427_v2, 7  ;;  %v8671_v20 = vmax.f32 %v8670_v7, %v8465_v25  ;;  %v8763_v25 = vrot.slane %v8756_v1, %v15520_v54  ;;  %v12784_v1 = vld [vmem:[#allocation4 + $0x24] ss:$16 sps:$4 sm:$0xff] (!%p11840_p11)  }
 0x731   : > { %v8740_v59 = vmax.f32 %v8739_v17, %v8466_v22  ;;  %v8200_v13 = vpop.f32.mrb[120].mxu1 }
 0x732   : > { %v7431_v30 = vsel %vm4739_vm2, %v7430_v3, %v7419_v36  ;;  %v8201_v4 = vadd.f32 %v8200_v13, %v15581_v61  ;;  %v8202_v45 = vpop.f32.mrb[121].mxu1  ;;  %v8751_v36 = vld [vmem:[#allocation2 + $0xc] sm:$0xf] }
 0x733   : > { %v7432_v21 = vsel %vm4741_vm3, %v7430_v3, %v7431_v30  ;;  %v8203_v33 = vadd.f32 %v8202_v45, %v15586_v9  ;;  %v8204_v46 = vpop.f32.mrb[122].mxu1  ;;  %v12778_v30 = vld [vmem:[#allocation4 + $0x4] ss:$16 sps:$4 sm:$0xff] (!%p11840_p11)   ;;  %v12786_v45 = vld [vmem:[#allocation4 + $0x2c] ss:$16 sps:$4 sm:$0xff] (!%p11840_p11)  }
 0x734   : > { %v7433_v16 = vsel %vm4743_vm4, %v7430_v3, %v7432_v21  ;;  %v8467_v38 = vmax.f32 %v8201_v4, 0.0  ;;  %v8205_v40 = vadd.f32 %v8204_v46, %v15581_v61  ;;  %v8206_v50 = vpop.f32.mrb[123].mxu1  ;;  %v12780_v4 = vld [vmem:[#allocation4 + $0xc] ss:$16 sps:$4 sm:$0xff] (!%p11840_p11)   ;;  %10398 = vmatprep.subr.bf16.mxu0 (!%p11840_p11), %v12778_v30  ;;  %v12789_v21 = vld [vmem:[#allocation4 + $0x28] ss:$16 sps:$4 sm:$0xff] (!%p11840_p11)  }
 0x735   : > { %v7434_v32 = vsel %vm4745_vm5, %v7430_v3, %v7433_v16  ;;  %v8468_v26 = vmax.f32 %v8203_v33, 0.0  ;;  %v8207_v44 = vadd.f32 %v8206_v50, %v15586_v9  ;;  %10562 = vmatprep.subr.bf16.mxu1 (!%p11840_p11), %v12780_v4  ;;  %10399 = vmatpush1.bf16.msra.mxu0 (!%p11840_p11), %v12782_v29  ;;  %v12790_v33 = vld [vmem:[#allocation4 + $0x44] ss:$16 sps:$4 sm:$0xff] (!%p11840_p11)   ;;  %v12792_v46 = vld [vmem:[#allocation4 + $0x4c] ss:$16 sps:$4 sm:$0xff] (!%p11840_p11)  }
 0x736   : > { %v7436_v55 = vmax.f32 %v7407_v28, %v7434_v32  ;;  %v8672_v34 = vmax.f32 %v8671_v20, %v8467_v38  ;;  %v8469_v60 = vmax.f32 %v8205_v40, 0.0  ;;  %10563 = vmatpush1.bf16.msra.mxu1 (!%p11840_p11), %v12783_v58  ;;  %v12788_v28 = vld [vmem:[#allocation4 + $0x20] ss:$16 sps:$4 sm:$0xff] (!%p11840_p11)   ;;  %10400 = vmatprep.subr.bf16.mxu0 (!%p11840_p11), %v12784_v1  ;;  %v12795_v38 = vld [vmem:[#allocation4 + $0x48] ss:$16 sps:$4 sm:$0xff] (!%p11840_p11)  }
 0x737   : > { %v8741_v35 = vmax.f32 %v8740_v59, %v8468_v26  ;;  %v8470_v10 = vmax.f32 %v8207_v44, 0.0  ;;  %10564 = vmatprep.subr.bf16.mxu1 (!%p11840_p11), %v12786_v45  ;;  %v12794_v16 = vld [vmem:[#allocation4 + $0x40] ss:$16 sps:$4 sm:$0xff] (!%p11840_p11)   ;;  %v12796_v40 = vld [vmem:[#allocation4 + $0x64] ss:$16 sps:$4 sm:$0xff] (!%p11840_p11)  }
 0x738   : > { %7437 = vst [vmem:[#allocation2 + $0x8] sm:$0xf] %v7436_v55  ;;  %v8673_v31 = vmax.f32 %v8672_v34, %v8469_v60  ;;  %v12798_v50 = vld [vmem:[#allocation4 + $0x6c] ss:$16 sps:$4 sm:$0xff] (!%p11840_p11)   ;;  %v12800_v32 = vld [vmem:[#allocation4 + $0x60] ss:$16 sps:$4 sm:$0xff] (!%p11840_p11)  }
 0x739   : > { %v8742_v5 = vmax.f32 %v8741_v35, %v8470_v10  ;;  %v8210_v51 = vpop.f32.mrb[124].mxu1  ;;  %10401 = vmatpush1.bf16.msra.mxu0 (!%p11840_p11), %v12788_v28  ;;  %v12801_v26 = vld [vmem:[#allocation4 + $0x68] ss:$16 sps:$4 sm:$0xff] (!%p11840_p11)   ;;  %v12802_v44 = vld [vmem:[#allocation4 + $0x84] ss:$16 sps:$4 sm:$0xff] (!%p11840_p11)  }
 0x73a   : > { %v8211_v41 = vadd.f32 %v8210_v51, %v15581_v61  ;;  %v8212_v23 = vpop.f32.mrb[125].mxu1  ;;  %10565 = vmatpush1.bf16.msra.mxu1 (!%p11840_p11), %v12789_v21  ;;  %10402 = vmatprep.subr.bf16.mxu0 (!%p11840_p11), %v12790_v33  ;;  %v12804_v55 = vld [vmem:[#allocation4 + $0x8c] ss:$16 sps:$4 sm:$0xff] (!%p11840_p11)   ;;  %v12806_v34 = vld [vmem:[#allocation4 + $0x80] ss:$16 sps:$4 sm:$0xff] (!%p11840_p11)  }
 0x73b   : > { %v8213_v48 = vadd.f32 %v8212_v23, %v15586_v9  ;;  %v8214_v8 = vpop.f32.mrb[126].mxu1  ;;  %10566 = vmatprep.subr.bf16.mxu1 (!%p11840_p11), %v12792_v46  ;;  %v12807_v60 = vld [vmem:[#allocation4 + $0x88] ss:$16 sps:$4 sm:$0xff] (!%p11840_p11)   ;;  %v12808_v35 = vld [vmem:[#allocation4 + $0xa4] ss:$16 sps:$4 sm:$0xff] (!%p11840_p11)  }
 0x73c   : > { %v8471_v52 = vmax.f32 %v8211_v41, 0.0  ;;  %v8215_v53 = vadd.f32 %v8214_v8, %v15581_v61  ;;  %v8216_v49 = vpop.f32.mrb[127].mxu1  ;;  %v12810_v10 = vld [vmem:[#allocation4 + $0xac] ss:$16 sps:$4 sm:$0xff] (!%p11840_p11)   ;;  %v12814_v51 = vld [vmem:[#allocation4 + $0xc4] ss:$16 sps:$4 sm:$0xff] (!%p11840_p11)  }
 0x73d   : > { %v8472_v37 = vmax.f32 %v8213_v48, 0.0  ;;  %v8217_v63 = vadd.f32 %v8216_v49, %v15586_v9  ;;  %10403 = vmatpush1.bf16.msra.mxu0 (!%p11840_p11), %v12794_v16  ;;  %v12816_v41 = vld [vmem:[#allocation4 + $0xcc] ss:$16 sps:$4 sm:$0xff] (!%p11840_p11)   ;;  %v12818_v23 = vld [vmem:[#allocation4 + $0xc0] ss:$16 sps:$4 sm:$0xff] (!%p11840_p11)  }
 0x73e   : > { %v8674_v43 = vmax.f32 %v8673_v31, %v8471_v52  ;;  %v8473_v14 = vmax.f32 %v8215_v53, 0.0  ;;  %10567 = vmatpush1.bf16.msra.mxu1 (!%p11840_p11), %v12795_v38  ;;  %10404 = vmatprep.subr.bf16.mxu0 (!%p11840_p11), %v12796_v40  ;;  %v12812_v31 = vld [vmem:[#allocation4 + $0xa0] ss:$16 sps:$4 sm:$0xff] (!%p11840_p11)   ;;  %v12819_v48 = vld [vmem:[#allocation4 + $0xc8] ss:$16 sps:$4 sm:$0xff] (!%p11840_p11)  }
 0x73f   : > { %v8743_v0 = vmax.f32 %v8742_v5, %v8472_v37  ;;  %v8474_v56 = vmax.f32 %v8217_v63, 0.0  ;;  %10568 = vmatprep.subr.bf16.mxu1 (!%p11840_p11), %v12798_v50  ;;  %v12813_v5 = vld [vmem:[#allocation4 + $0xa8] ss:$16 sps:$4 sm:$0xff] (!%p11840_p11)   ;;  %v12820_v8 = vld [vmem:[#allocation4 + $0xe4] ss:$16 sps:$4 sm:$0xff] (!%p11840_p11)  }
 0x740   : > { %v8675_v18 = vmax.f32 %v8674_v43, %v8473_v14  ;;  %v12822_v52 = vld [vmem:[#allocation4 + $0xec] ss:$16 sps:$4 sm:$0xff] (!%p11840_p11)   ;;  %v12824_v53 = vld [vmem:[#allocation4 + $0xe0] ss:$16 sps:$4 sm:$0xff] (!%p11840_p11)   ;;  %v12825_v49 = vld [vmem:[#allocation4 + $0xe8] ss:$16 sps:$4 sm:$0xff] (!%p11840_p11)  }
 0x741   : > { %v8744_v15 = vmax.f32 %v8743_v0, %v8474_v56  ;;  %10405 = vmatpush1.bf16.msra.mxu0 (!%p11840_p11), %v12800_v32  ;;  %v12826_v37 = vld [vmem:[#allocation4 + $0x104] ss:$16 sps:$4 sm:$0xff] (!%p11840_p11)   ;;  %v12828_v63 = vld [vmem:[#allocation4 + $0x10c] ss:$16 sps:$4 sm:$0xff] (!%p11840_p11)   ;;  %v12830_v43 = vld [vmem:[#allocation4 + $0x100] ss:$16 sps:$4 sm:$0xff] (!%p11840_p11)  }
 0x742   : > { %v8676_v47 = vrot.slane %v8675_v18, 4  ;;  %10569 = vmatpush1.bf16.msra.mxu1 (!%p11840_p11), %v12801_v26  ;;  %10406 = vmatprep.subr.bf16.mxu0 (!%p11840_p11), %v12802_v44  ;;  %v12831_v14 = vld [vmem:[#allocation4 + $0x108] ss:$16 sps:$4 sm:$0xff] (!%p11840_p11)   ;;  %v12832_v0 = vld [vmem:[#allocation4 + $0x124] ss:$16 sps:$4 sm:$0xff] (!%p11840_p11)  }
 0x743   : > { %v8745_v24 = vrot.slane %v8744_v15, 4  ;;  %10570 = vmatprep.subr.bf16.mxu1 (!%p11840_p11), %v12804_v55  ;;  %v12834_v56 = vld [vmem:[#allocation4 + $0x12c] ss:$16 sps:$4 sm:$0xff] (!%p11840_p11)   ;;  %v12866_v4 = vld [vmem:[#allocation4 + $0x1c0] ss:$16 sps:$4 sm:$0xff] (!%p11840_p11)  }
 0x744   : > { %v8677_v12 = vmax.f32 %v8675_v18, %v8676_v47  ;;  %v12836_v18 = vld [vmem:[#allocation4 + $0x120] ss:$16 sps:$4 sm:$0xff] (!%p11840_p11)   ;;  %v12838_v47 = vld [vmem:[#allocation4 + $0x144] ss:$16 sps:$4 sm:$0xff] (!%p11840_p11)   ;;  %v12867_v29 = vld [vmem:[#allocation4 + $0x1c8] ss:$16 sps:$4 sm:$0xff] (!%p11840_p11)  }
 0x745   : > { %v8746_v62 = vmax.f32 %v8744_v15, %v8745_v24  ;;  %10407 = vmatpush1.bf16.msra.mxu0 (!%p11840_p11), %v12806_v34  ;;  %v12837_v15 = vld [vmem:[#allocation4 + $0x128] ss:$16 sps:$4 sm:$0xff] (!%p11840_p11)   ;;  %v12840_v24 = vld [vmem:[#allocation4 + $0x14c] ss:$16 sps:$4 sm:$0xff] (!%p11840_p11)   ;;  %v12868_v58 = vld [vmem:[#allocation4 + $0x1e4] ss:$16 sps:$4 sm:$0xff] (!%p11840_p11)  }
 0x746   : > { %v8678_v6 = vrot.slane %v8677_v12, 2  ;;  %10571 = vmatpush1.bf16.msra.mxu1 (!%p11840_p11), %v12807_v60  ;;  %10408 = vmatprep.subr.bf16.mxu0 (!%p11840_p11), %v12808_v35  ;;  %v12870_v1 = vld [vmem:[#allocation4 + $0x1ec] ss:$16 sps:$4 sm:$0xff] (!%p11840_p11)   ;;  %v12872_v28 = vld [vmem:[#allocation4 + $0x1e0] ss:$16 sps:$4 sm:$0xff] (!%p11840_p11)  }
 0x747   : > { %v8747_v39 = vrot.slane %v8746_v62, 2  ;;  %10572 = vmatprep.subr.bf16.mxu1 (!%p11840_p11), %v12810_v10  ;;  %v12873_v21 = vld [vmem:[#allocation4 + $0x1e8] ss:$16 sps:$4 sm:$0xff] (!%p11840_p11)   ;;  %v12877_v33 = vld [vmem:[#allocation4 + $0x204] ss:$16 sps:$4 sm:$0xff] (!%p11840_p11)  }
 0x748   : > { %v8679_v27 = vmax.f32 %v8677_v12, %v8678_v6  ;;  %v12842_v12 = vld [vmem:[#allocation4 + $0x140] ss:$16 sps:$4 sm:$0xff] (!%p11840_p11)   ;;  %v12844_v6 = vld [vmem:[#allocation4 + $0x164] ss:$16 sps:$4 sm:$0xff] (!%p11840_p11)   ;;  %v12880_v46 = vld [vmem:[#allocation4 + $0x20c] ss:$16 sps:$4 sm:$0xff] (!%p11840_p11)  }
 0x749   : > { %v8748_v57 = vmax.f32 %v8746_v62, %v8747_v39  ;;  %10409 = vmatpush1.bf16.msra.mxu0 (!%p11840_p11), %v12812_v31  ;;  %v12843_v62 = vld [vmem:[#allocation4 + $0x148] ss:$16 sps:$4 sm:$0xff] (!%p11840_p11)   ;;  %v12846_v39 = vld [vmem:[#allocation4 + $0x16c] ss:$16 sps:$4 sm:$0xff] (!%p11840_p11)   ;;  %v12875_v38 = vld [vmem:[#allocation4 + $0x200] ss:$16 sps:$4 sm:$0xff] (!%p11840_p11)  }
 0x74a   : > { %v8680_v11 = vrot.slane %v8679_v27, 1  ;;  %10573 = vmatpush1.bf16.msra.mxu1 (!%p11840_p11), %v12813_v5  ;;  %10410 = vmatprep.subr.bf16.mxu0 (!%p11840_p11), %v12814_v51  ;;  %v12878_v50 = vld [vmem:[#allocation4 + $0x208] ss:$16 sps:$4 sm:$0xff] (!%p11840_p11)   ;;  %v12883_v32 = vld [vmem:[#allocation4 + $0x224] ss:$16 sps:$4 sm:$0xff] (!%p11840_p11)  }
 0x74b   : > { %v8749_v61 = vrot.slane %v8748_v57, 1  ;;  %10574 = vmatprep.subr.bf16.mxu1 (!%p11840_p11), %v12816_v41  ;;  %v12886_v26 = vld [vmem:[#allocation4 + $0x22c] ss:$16 sps:$4 sm:$0xff] (!%p11840_p11)   ;;  %v12881_v55 = vld [vmem:[#allocation4 + $0x220] ss:$16 sps:$4 sm:$0xff] (!%p11840_p11)  }
 0x74c   : > { %v8681_v19 = vmax.f32 %v8679_v27, %v8680_v11  ;;  %v8786_v27 = vld [vmem:[#allocation2] sm:$0xff] (!%p11840_p11)  ;;  %v12884_v34 = vld [vmem:[#allocation4 + $0x228] ss:$16 sps:$4 sm:$0xff] (!%p11840_p11)   ;;  %v12892_v35 = vld [vmem:[#allocation4 + $0x24c] ss:$16 sps:$4 sm:$0xff] (!%p11840_p11)  }
 0x74d   : > { %v8750_v2 = vmax.f32 %v8748_v57, %v8749_v61  ;;  %10411 = vmatpush1.bf16.msra.mxu0 (!%p11840_p11), %v12818_v23  ;;  %v12848_v57 = vld [vmem:[#allocation4 + $0x160] ss:$16 sps:$4 sm:$0xff] (!%p11840_p11)   ;;  %v8797_v11 = vrot.slane (!%p11840_p11), %v8786_v27, %v15520_v54  ;;  %v12849_v61 = vld [vmem:[#allocation4 + $0x168] ss:$16 sps:$4 sm:$0xff] (!%p11840_p11)   ;;  %v8790_v30 = vcombine.high (!%p11840_p11), %v8786_v27, %v8786_v27  ;;  %v12889_v60 = vld [vmem:[#allocation4 + $0x244] ss:$16 sps:$4 sm:$0xff] (!%p11840_p11)  }
 0x74e   : > { %10575 = vmatpush1.bf16.msra.mxu1 (!%p11840_p11), %v12819_v48  ;;  %10412 = vmatprep.subr.bf16.mxu0 (!%p11840_p11), %v12820_v8  ;;  %v12887_v10 = vld [vmem:[#allocation4 + $0x240] ss:$16 sps:$4 sm:$0xff] (!%p11840_p11)   ;;  %v12890_v31 = vld [vmem:[#allocation4 + $0x248] ss:$16 sps:$4 sm:$0xff] (!%p11840_p11)   ;;  %v12895_v5 = vld [vmem:[#allocation4 + $0x264] ss:$16 sps:$4 sm:$0xff] (!%p11840_p11)  }
 0x74f   : > { %v8764_v7 = vcombine.low %v8681_v19, %v8750_v2  ;;  %10576 = vmatprep.subr.bf16.mxu1 (!%p11840_p11), %v12822_v52  ;;  %v12850_v19 = vld [vmem:[#allocation4 + $0x184] ss:$16 sps:$4 sm:$0xff] (!%p11840_p11)   ;;  %v12852_v2 = vld [vmem:[#allocation4 + $0x18c] ss:$16 sps:$4 sm:$0xff] (!%p11840_p11)   ;;  %v16262_v45 = vrot.slane (!%p11840_p11), %v8790_v30, %v15520_v54  ;;  %v8832_v40 = vpack.c.bf16 (!%p11840_p11), %v8797_v11, %v8797_v11  ;;  %v12893_v41 = vld [vmem:[#allocation4 + $0x260] ss:$16 sps:$4 sm:$0xff] (!%p11840_p11)  }
 0x750   : > { %v12898_v51 = vld [vmem:[#allocation4 + $0x26c] ss:$16 sps:$4 sm:$0xff] (!%p11840_p11)   ;;  %v12896_v23 = vld [vmem:[#allocation4 + $0x268] ss:$16 sps:$4 sm:$0xff] (!%p11840_p11)   ;;  %v12901_v48 = vld [vmem:[#allocation4 + $0x284] ss:$16 sps:$4 sm:$0xff] (!%p11840_p11)  }
 0x751   : > { %v8771_v9 = vrot.slane %v8764_v7, %v15520_v54  ;;  %10413 = vmatpush1.bf16.msra.mxu0 (!%p11840_p11), %v12824_v53  ;;  %v8805_v7 = vcombine.high (!%p11840_p11), %v8797_v11, %v8797_v11  ;;  %v8806_v16 = vcombine.high (!%p11840_p11), %v16262_v45, %v16262_v45  ;;  %v12904_v8 = vld [vmem:[#allocation4 + $0x28c] ss:$16 sps:$4 sm:$0xff] (!%p11840_p11)   ;;  %v12899_v52 = vld [vmem:[#allocation4 + $0x280] ss:$16 sps:$4 sm:$0xff] (!%p11840_p11)   ;;  %v12902_v53 = vld [vmem:[#allocation4 + $0x288] ss:$16 sps:$4 sm:$0xff] (!%p11840_p11)  }
 0x752   : > { %10577 = vmatpush1.bf16.msra.mxu1 (!%p11840_p11), %v12825_v49  ;;  %10414 = vmatprep.subr.bf16.mxu0 (!%p11840_p11), %v12826_v37  ;;  %v12907_v49 = vld [vmem:[#allocation4 + $0x2a4] ss:$16 sps:$4 sm:$0xff] (!%p11840_p11)   ;;  %v12910_v37 = vld [vmem:[#allocation4 + $0x2ac] ss:$16 sps:$4 sm:$0xff] (!%p11840_p11)   ;;  %v12926_v27 = vld [vmem:[#allocation4 + $0x308] ss:$16 sps:$4 sm:$0xff] (!%p11840_p11)  }
 0x753   : > { %v8774_v17 = vrot.slane %v8771_v9, 7  ;;  %10578 = vmatprep.subr.bf16.mxu1 (!%p11840_p11), %v12828_v63  ;;  %v12854_v9 = vld [vmem:[#allocation4 + $0x180] ss:$16 sps:$4 sm:$0xff] (!%p11840_p11)   ;;  %v8835_v44 = vpack.c.bf16 (!%p11840_p11), %v8806_v16, %v8806_v16  ;;  %v12934_v11 = vld [vmem:[#allocation4 + $0x32c] ss:$16 sps:$4 sm:$0xff] (!%p11840_p11)  }
 0x754   : > { %v12905_v63 = vld [vmem:[#allocation4 + $0x2a0] ss:$16 sps:$4 sm:$0xff] (!%p11840_p11)   ;;  %v12950_v30 = vld [vmem:[#allocation4 + $0x388] ss:$16 sps:$4 sm:$0xff] (!%p11840_p11)   ;;  %v12967_v16 = vld [vmem:[#allocation4 + $0x3e4] ss:$16 sps:$4 sm:$0xff] (!%p11840_p11)  }
 0x755   : > { %v8775_v22 = vsel %vm4739_vm2, %v8774_v17, %v8763_v25  ;;  %8785 = sbr.rel (%p11840_p11) target bundleno = 2822 (0xb06), region = 129  ;;  %10415 = vmatpush1.bf16.msra.mxu0 (!%p11840_p11), %v12830_v43  ;;  %v8833_v25 = vpack.c.bf16 (!%p11840_p11), %v8805_v7, %v8805_v7  ;;  %v12908_v43 = vld [vmem:[#allocation4 + $0x2a8] ss:$16 sps:$4 sm:$0xff] (!%p11840_p11)   ;;  %v12940_v7 = vld [vmem:[#allocation4 + $0x34c] ss:$16 sps:$4 sm:$0xff] (!%p11840_p11)  }
 0x756   : > { %v8776_v3 = vsel %vm4741_vm3, %v8774_v17, %v8775_v22  ;;  %10579 = vmatpush1.bf16.msra.mxu1 (!%p11840_p11), %v12831_v14  ;;  %10416 = vmatprep.subr.bf16.mxu0 (!%p11840_p11), %v12832_v0  ;;  %v12856_v22 = vld [vmem:[#allocation4 + $0x1a4] ss:$16 sps:$4 sm:$0xff] (!%p11840_p11)   ;;  %v12916_v0 = vld [vmem:[#allocation4 + $0x2cc] ss:$16 sps:$4 sm:$0xff] (!%p11840_p11)  }
 0x757   : > { %v8777_v20 = vsel %vm4743_vm4, %v8774_v17, %v8776_v3  ;;  %10580 = vmatprep.subr.bf16.mxu1 (!%p11840_p11), %v12834_v56  ;;  %10430 = vmatprep.mubr.bf16.mxu0 (!%p11840_p11), %v8833_v25  ;;  %v12860_v3 = vld [vmem:[#allocation4 + $0x1a0] ss:$16 sps:$4 sm:$0xff] (!%p11840_p11)   ;;  %v12913_v14 = vld [vmem:[#allocation4 + $0x2c4] ss:$16 sps:$4 sm:$0xff] (!%p11840_p11)  }
 0x758   : > { %v8778_v59 = vsel %vm4745_vm5, %v8774_v17, %v8777_v20  ;;  %v12855_v17 = vld [vmem:[#allocation4 + $0x188] ss:$16 sps:$4 sm:$0xff] (!%p11840_p11)   ;;  %10594 = vmatprep.mubr.bf16.mxu1 (!%p11840_p11), %v8833_v25  ;;  %v12911_v56 = vld [vmem:[#allocation4 + $0x2c0] ss:$16 sps:$4 sm:$0xff] (!%p11840_p11)  }
 0x759   : > { %v8780_v13 = vmax.f32 %v8751_v36, %v8778_v59  ;;  %10417 = vmatpush1.bf16.msra.mxu0 (!%p11840_p11), %v12836_v18  ;;  %v12858_v36 = vld [vmem:[#allocation4 + $0x1ac] ss:$16 sps:$4 sm:$0xff] (!%p11840_p11)   ;;  %v12861_v20 = vld [vmem:[#allocation4 + $0x1a8] ss:$16 sps:$4 sm:$0xff] (!%p11840_p11)   ;;  %v12862_v59 = vld [vmem:[#allocation4 + $0x1c4] ss:$16 sps:$4 sm:$0xff] (!%p11840_p11)  }
 0x75a   : > { %10581 = vmatpush1.bf16.msra.mxu1 (!%p11840_p11), %v12837_v15  ;;  %10418 = vmatprep.subr.bf16.mxu0 (!%p11840_p11), %v12838_v47  ;;  %v12914_v18 = vld [vmem:[#allocation4 + $0x2c8] ss:$16 sps:$4 sm:$0xff] (!%p11840_p11)   ;;  %v12919_v15 = vld [vmem:[#allocation4 + $0x2e4] ss:$16 sps:$4 sm:$0xff] (!%p11840_p11)   ;;  %v12922_v47 = vld [vmem:[#allocation4 + $0x2ec] ss:$16 sps:$4 sm:$0xff] (!%p11840_p11)  }
 0x75b   : > { %8781 = vst [vmem:[#allocation2 + $0xc] sm:$0xf] %v8780_v13  ;;  %10582 = vmatprep.subr.bf16.mxu1 (!%p11840_p11), %v12840_v24  ;;  %v12864_v13 = vld [vmem:[#allocation4 + $0x1cc] ss:$16 sps:$4 sm:$0xff] (!%p11840_p11)   ;;  %v12917_v24 = vld [vmem:[#allocation4 + $0x2e0] ss:$16 sps:$4 sm:$0xff] (!%p11840_p11)  }
 0x75c   : > { %v12938_v25 = vld [vmem:[#allocation4 + $0x348] ss:$16 sps:$4 sm:$0xff]  }
 0x75d   : > { %10419 = vmatpush1.bf16.msra.mxu0 %v12842_v12  ;;  %v12920_v12 = vld [vmem:[#allocation4 + $0x2e8] ss:$16 sps:$4 sm:$0xff]  }
 0x75e   : > { %10583 = vmatpush1.bf16.msra.mxu1 %v12843_v62  ;;  %10420 = vmatprep.subr.bf16.mxu0 %v12844_v6  ;;  %v12925_v62 = vld [vmem:[#allocation4 + $0x304] ss:$16 sps:$4 sm:$0xff]   ;;  %v12928_v6 = vld [vmem:[#allocation4 + $0x30c] ss:$16 sps:$4 sm:$0xff]  }
 0x75f   : > { %10584 = vmatprep.subr.bf16.mxu1 %v12846_v39  ;;  %v12923_v39 = vld [vmem:[#allocation4 + $0x300] ss:$16 sps:$4 sm:$0xff]  }
 0x761   : > { %10421 = vmatpush1.bf16.msra.mxu0 %v12848_v57  ;;  %v12931_v57 = vld [vmem:[#allocation4 + $0x324] ss:$16 sps:$4 sm:$0xff]  }
 0x762   : > { %10585 = vmatpush1.bf16.msra.mxu1 %v12849_v61  ;;  %10422 = vmatprep.subr.bf16.mxu0 %v12850_v19  ;;  %v12929_v61 = vld [vmem:[#allocation4 + $0x320] ss:$16 sps:$4 sm:$0xff]   ;;  %v12932_v19 = vld [vmem:[#allocation4 + $0x328] ss:$16 sps:$4 sm:$0xff]  }
 0x763   : > { %10586 = vmatprep.subr.bf16.mxu1 %v12852_v2  ;;  %v12937_v2 = vld [vmem:[#allocation4 + $0x344] ss:$16 sps:$4 sm:$0xff]  }
 0x765   : > { %10423 = vmatpush1.bf16.msra.mxu0 %v12854_v9  ;;  %v12935_v9 = vld [vmem:[#allocation4 + $0x340] ss:$16 sps:$4 sm:$0xff]  }
 0x766   : > { %10587 = vmatpush1.bf16.msra.mxu1 %v12855_v17  ;;  %10424 = vmatprep.subr.bf16.mxu0 %v12856_v22  ;;  %v12943_v17 = vld [vmem:[#allocation4 + $0x364] ss:$16 sps:$4 sm:$0xff]   ;;  %v12946_v22 = vld [vmem:[#allocation4 + $0x36c] ss:$16 sps:$4 sm:$0xff]  }
 0x767   : > { %10588 = vmatprep.subr.bf16.mxu1 %v12858_v36  ;;  %v12941_v36 = vld [vmem:[#allocation4 + $0x360] ss:$16 sps:$4 sm:$0xff]  }
 0x769   : > { %10425 = vmatpush1.bf16.msra.mxu0 %v12860_v3  ;;  %v12944_v3 = vld [vmem:[#allocation4 + $0x368] ss:$16 sps:$4 sm:$0xff]  }
 0x76a   : > { %10589 = vmatpush1.bf16.msra.mxu1 %v12861_v20  ;;  %10426 = vmatprep.subr.bf16.mxu0 %v12862_v59  ;;  %v12949_v20 = vld [vmem:[#allocation4 + $0x384] ss:$16 sps:$4 sm:$0xff]   ;;  %v12952_v59 = vld [vmem:[#allocation4 + $0x38c] ss:$16 sps:$4 sm:$0xff]  }
 0x76b   : > { %10590 = vmatprep.subr.bf16.mxu1 %v12864_v13  ;;  %v12947_v13 = vld [vmem:[#allocation4 + $0x380] ss:$16 sps:$4 sm:$0xff]  }
 0x76d   : > { %10427 = vmatpush1.bf16.msra.mxu0 %v12866_v4  ;;  %v12955_v4 = vld [vmem:[#allocation4 + $0x3a4] ss:$16 sps:$4 sm:$0xff]  }
 0x76e   : > { %10591 = vmatpush1.bf16.msra.mxu1 %v12867_v29  ;;  %10428 = vmatprep.subr.bf16.mxu0 %v12868_v58  ;;  %v12958_v29 = vld [vmem:[#allocation4 + $0x3ac] ss:$16 sps:$4 sm:$0xff]   ;;  %v12953_v58 = vld [vmem:[#allocation4 + $0x3a0] ss:$16 sps:$4 sm:$0xff]  }
 0x76f   : > { %10592 = vmatprep.subr.bf16.mxu1 %v12870_v1  ;;  %v12956_v1 = vld [vmem:[#allocation4 + $0x3a8] ss:$16 sps:$4 sm:$0xff]  }
 0x771   : > { %10429 = vmatpush1.bf16.msra.mxu0 %v12872_v28  ;;  %v12961_v28 = vld [vmem:[#allocation4 + $0x3c4] ss:$16 sps:$4 sm:$0xff]  }
 0x772   : > { %10593 = vmatpush1.bf16.msra.mxu1 %v12873_v21  ;;  %10439 = vmatprep.subr.bf16.mxu0 %v12877_v33  ;;  %v12964_v21 = vld [vmem:[#allocation4 + $0x3cc] ss:$16 sps:$4 sm:$0xff]   ;;  %v12959_v33 = vld [vmem:[#allocation4 + $0x3c0] ss:$16 sps:$4 sm:$0xff]  }
 0x773   : > { %10603 = vmatprep.subr.bf16.mxu1 %v12880_v46  ;;  %v12962_v46 = vld [vmem:[#allocation4 + $0x3c8] ss:$16 sps:$4 sm:$0xff]  }
 0x774   : > { %10431 = vmatmul.mubr.bf16.vlgmr.msra.gmra.mrb[0].mxu0 %v8832_v40 }
 0x775   : > { %10595 = vmatmul.mubr.bf16.vlgmr.msra.gmra.mrb[0].mxu1 %v8832_v40  ;;  %10440 = vmatpush1.bf16.msra.mxu0 %v12875_v38  ;;  %v12970_v38 = vld [vmem:[#allocation4 + $0x3ec] ss:$16 sps:$4 sm:$0xff]   ;;  %v12965_v40 = vld [vmem:[#allocation4 + $0x3e0] ss:$16 sps:$4 sm:$0xff]  }
 0x776   : > { %10604 = vmatpush1.bf16.msra.mxu1 %v12878_v50  ;;  %10441 = vmatprep.subr.bf16.mxu0 %v12883_v32  ;;  %v12968_v50 = vld [vmem:[#allocation4 + $0x3e8] ss:$16 sps:$4 sm:$0xff]   ;;  %v12973_v32 = vld [vmem:[#allocation4 + $0x404] ss:$16 sps:$4 sm:$0xff]  }
 0x777   : > { %10605 = vmatprep.subr.bf16.mxu1 %v12886_v26  ;;  %10471 = vmatprep.mubr.bf16.mxu0 %v8835_v44  ;;  %v12976_v26 = vld [vmem:[#allocation4 + $0x40c] ss:$16 sps:$4 sm:$0xff]  }
 0x778   : > { %10635 = vmatprep.mubr.bf16.mxu1 %v8835_v44  ;;  %v12971_v44 = vld [vmem:[#allocation4 + $0x400] ss:$16 sps:$4 sm:$0xff]  }
 0x779   : > { %10442 = vmatpush1.bf16.msra.mxu0 %v12881_v55  ;;  %v8834_v55 = vpack.c.bf16 %v16262_v45, %v16262_v45  ;;  %v12977_v45 = vld [vmem:[#allocation4 + $0x420] ss:$16 sps:$4 sm:$0xff]  }
 0x77a   : > { %10606 = vmatpush1.bf16.msra.mxu1 %v12884_v34  ;;  %10443 = vmatprep.subr.bf16.mxu0 %v12889_v60  ;;  %v12974_v34 = vld [vmem:[#allocation4 + $0x408] ss:$16 sps:$4 sm:$0xff]  }
 0x77b   : > { %10607 = vmatprep.subr.bf16.mxu1 %v12892_v35  ;;  %v16268_v60 = vld [vmem:[#allocation2 + $0x8] sm:$0xff]  ;;  %v12979_v35 = vld [vmem:[#allocation4 + $0x424] ss:$16 sps:$4 sm:$0xff]  }
 0x77d   : > { %10444 = vmatpush1.bf16.msra.mxu0 %v12887_v10  ;;  %v12982_v10 = vld [vmem:[#allocation4 + $0x42c] ss:$16 sps:$4 sm:$0xff]  }
 0x77e   : > { %10608 = vmatpush1.bf16.msra.mxu1 %v12890_v31  ;;  %10445 = vmatprep.subr.bf16.mxu0 %v12895_v5  ;;  %v16272_v31 = vrot.slane %v16268_v60, %v15520_v54 }
 0x77f   : > { %10609 = vmatprep.subr.bf16.mxu1 %v12898_v51  ;;  %v12980_v51 = vld [vmem:[#allocation4 + $0x428] ss:$16 sps:$4 sm:$0xff]  }
 0x780   : > { %v8822_v5 = vcombine.high %v16272_v31, %v16272_v31 }
 0x781   : > { %10446 = vmatpush1.bf16.msra.mxu0 %v12893_v41  ;;  %v12985_v41 = vld [vmem:[#allocation4 + $0x444] ss:$16 sps:$4 sm:$0xff]  }
 0x782   : > { %10610 = vmatpush1.bf16.msra.mxu1 %v12896_v23  ;;  %10447 = vmatprep.subr.bf16.mxu0 %v12901_v48  ;;  %v12988_v23 = vld [vmem:[#allocation4 + $0x44c] ss:$16 sps:$4 sm:$0xff]   ;;  %v8837_v48 = vpack.c.bf16 %v8822_v5, %v8822_v5  ;;  %v13061_v5 = vld [vmem:[#allocation4 + $0x5e0] ss:$16 sps:$4 sm:$0xff]  }
 0x783   : > { %10611 = vmatprep.subr.bf16.mxu1 %v12904_v8  ;;  %v12983_v8 = vld [vmem:[#allocation4 + $0x440] ss:$16 sps:$4 sm:$0xff]  }
 0x785   : > { %10448 = vmatpush1.bf16.msra.mxu0 %v12899_v52  ;;  %v12986_v52 = vld [vmem:[#allocation4 + $0x448] ss:$16 sps:$4 sm:$0xff]  }
 0x786   : > { %10612 = vmatpush1.bf16.msra.mxu1 %v12902_v53  ;;  %10449 = vmatprep.subr.bf16.mxu0 %v12907_v49  ;;  %v12991_v53 = vld [vmem:[#allocation4 + $0x464] ss:$16 sps:$4 sm:$0xff]   ;;  %v12994_v49 = vld [vmem:[#allocation4 + $0x46c] ss:$16 sps:$4 sm:$0xff]  }
 0x787   : > { %10613 = vmatprep.subr.bf16.mxu1 %v12910_v37  ;;  %v12989_v37 = vld [vmem:[#allocation4 + $0x460] ss:$16 sps:$4 sm:$0xff]  }
 0x789   : > { %10450 = vmatpush1.bf16.msra.mxu0 %v12905_v63  ;;  %v12992_v63 = vld [vmem:[#allocation4 + $0x468] ss:$16 sps:$4 sm:$0xff]  }
 0x78a   : > { %10614 = vmatpush1.bf16.msra.mxu1 %v12908_v43  ;;  %10451 = vmatprep.subr.bf16.mxu0 %v12913_v14  ;;  %v12997_v43 = vld [vmem:[#allocation4 + $0x484] ss:$16 sps:$4 sm:$0xff]   ;;  %v13000_v14 = vld [vmem:[#allocation4 + $0x48c] ss:$16 sps:$4 sm:$0xff]  }
 0x78b   : > { %10615 = vmatprep.subr.bf16.mxu1 %v12916_v0  ;;  %v12995_v0 = vld [vmem:[#allocation4 + $0x480] ss:$16 sps:$4 sm:$0xff]  }
 0x78d   : > { %10452 = vmatpush1.bf16.msra.mxu0 %v12911_v56  ;;  %v12998_v56 = vld [vmem:[#allocation4 + $0x488] ss:$16 sps:$4 sm:$0xff]  }
 0x78e   : > { %10616 = vmatpush1.bf16.msra.mxu1 %v12914_v18  ;;  %10453 = vmatprep.subr.bf16.mxu0 %v12919_v15  ;;  %v13003_v18 = vld [vmem:[#allocation4 + $0x4a4] ss:$16 sps:$4 sm:$0xff]   ;;  %v13006_v15 = vld [vmem:[#allocation4 + $0x4ac] ss:$16 sps:$4 sm:$0xff]  }
 0x78f   : > { %10617 = vmatprep.subr.bf16.mxu1 %v12922_v47  ;;  %v13001_v47 = vld [vmem:[#allocation4 + $0x4a0] ss:$16 sps:$4 sm:$0xff]  }
 0x791   : > { %10454 = vmatpush1.bf16.msra.mxu0 %v12917_v24  ;;  %v13004_v24 = vld [vmem:[#allocation4 + $0x4a8] ss:$16 sps:$4 sm:$0xff]  }
 0x792   : > { %10618 = vmatpush1.bf16.msra.mxu1 %v12920_v12  ;;  %10455 = vmatprep.subr.bf16.mxu0 %v12925_v62  ;;  %v13009_v12 = vld [vmem:[#allocation4 + $0x4c4] ss:$16 sps:$4 sm:$0xff]   ;;  %v13012_v62 = vld [vmem:[#allocation4 + $0x4cc] ss:$16 sps:$4 sm:$0xff]  }
 0x793   : > { %10619 = vmatprep.subr.bf16.mxu1 %v12928_v6  ;;  %v13007_v6 = vld [vmem:[#allocation4 + $0x4c0] ss:$16 sps:$4 sm:$0xff]  }
 0x795   : > { %10456 = vmatpush1.bf16.msra.mxu0 %v12923_v39  ;;  %v13010_v39 = vld [vmem:[#allocation4 + $0x4c8] ss:$16 sps:$4 sm:$0xff]  }
 0x796   : > { %10620 = vmatpush1.bf16.msra.mxu1 %v12926_v27  ;;  %10457 = vmatprep.subr.bf16.mxu0 %v12931_v57  ;;  %v13015_v27 = vld [vmem:[#allocation4 + $0x4e4] ss:$16 sps:$4 sm:$0xff]   ;;  %v13018_v57 = vld [vmem:[#allocation4 + $0x4ec] ss:$16 sps:$4 sm:$0xff]  }
 0x797   : > { %10621 = vmatprep.subr.bf16.mxu1 %v12934_v11  ;;  %v13013_v11 = vld [vmem:[#allocation4 + $0x4e0] ss:$16 sps:$4 sm:$0xff]  }
 0x799   : > { %10458 = vmatpush1.bf16.msra.mxu0 %v12929_v61  ;;  %v13016_v61 = vld [vmem:[#allocation4 + $0x4e8] ss:$16 sps:$4 sm:$0xff]  }
 0x79a   : > { %10622 = vmatpush1.bf16.msra.mxu1 %v12932_v19  ;;  %10459 = vmatprep.subr.bf16.mxu0 %v12937_v2  ;;  %v13021_v19 = vld [vmem:[#allocation4 + $0x504] ss:$16 sps:$4 sm:$0xff]   ;;  %v13024_v2 = vld [vmem:[#allocation4 + $0x50c] ss:$16 sps:$4 sm:$0xff]  }
 0x79b   : > { %10623 = vmatprep.subr.bf16.mxu1 %v12940_v7  ;;  %v13019_v7 = vld [vmem:[#allocation4 + $0x500] ss:$16 sps:$4 sm:$0xff]  }
 0x79d   : > { %10460 = vmatpush1.bf16.msra.mxu0 %v12935_v9  ;;  %v13022_v9 = vld [vmem:[#allocation4 + $0x508] ss:$16 sps:$4 sm:$0xff]  }
 0x79e   : > { %10624 = vmatpush1.bf16.msra.mxu1 %v12938_v25  ;;  %10461 = vmatprep.subr.bf16.mxu0 %v12943_v17  ;;  %v13027_v25 = vld [vmem:[#allocation4 + $0x524] ss:$16 sps:$4 sm:$0xff]   ;;  %v13030_v17 = vld [vmem:[#allocation4 + $0x52c] ss:$16 sps:$4 sm:$0xff]  }
 0x79f   : > { %10625 = vmatprep.subr.bf16.mxu1 %v12946_v22  ;;  %v13025_v22 = vld [vmem:[#allocation4 + $0x520] ss:$16 sps:$4 sm:$0xff]  }
 0x7a1   : > { %10462 = vmatpush1.bf16.msra.mxu0 %v12941_v36  ;;  %v13028_v36 = vld [vmem:[#allocation4 + $0x528] ss:$16 sps:$4 sm:$0xff]  }
 0x7a2   : > { %10626 = vmatpush1.bf16.msra.mxu1 %v12944_v3  ;;  %10463 = vmatprep.subr.bf16.mxu0 %v12949_v20  ;;  %v13033_v3 = vld [vmem:[#allocation4 + $0x544] ss:$16 sps:$4 sm:$0xff]   ;;  %v13036_v20 = vld [vmem:[#allocation4 + $0x54c] ss:$16 sps:$4 sm:$0xff]  }
 0x7a3   : > { %10627 = vmatprep.subr.bf16.mxu1 %v12952_v59  ;;  %v13031_v59 = vld [vmem:[#allocation4 + $0x540] ss:$16 sps:$4 sm:$0xff]  }
 0x7a5   : > { %10464 = vmatpush1.bf16.msra.mxu0 %v12947_v13  ;;  %v13034_v13 = vld [vmem:[#allocation4 + $0x548] ss:$16 sps:$4 sm:$0xff]  }
 0x7a6   : > { %10628 = vmatpush1.bf16.msra.mxu1 %v12950_v30  ;;  %10465 = vmatprep.subr.bf16.mxu0 %v12955_v4  ;;  %v13039_v30 = vld [vmem:[#allocation4 + $0x564] ss:$16 sps:$4 sm:$0xff]   ;;  %v13042_v4 = vld [vmem:[#allocation4 + $0x56c] ss:$16 sps:$4 sm:$0xff]  }
 0x7a7   : > { %10629 = vmatprep.subr.bf16.mxu1 %v12958_v29  ;;  %v13037_v29 = vld [vmem:[#allocation4 + $0x560] ss:$16 sps:$4 sm:$0xff]  }
 0x7a9   : > { %10466 = vmatpush1.bf16.msra.mxu0 %v12953_v58  ;;  %v13040_v58 = vld [vmem:[#allocation4 + $0x568] ss:$16 sps:$4 sm:$0xff]  }
 0x7aa   : > { %10630 = vmatpush1.bf16.msra.mxu1 %v12956_v1  ;;  %10467 = vmatprep.subr.bf16.mxu0 %v12961_v28  ;;  %v13045_v1 = vld [vmem:[#allocation4 + $0x584] ss:$16 sps:$4 sm:$0xff]   ;;  %v13048_v28 = vld [vmem:[#allocation4 + $0x58c] ss:$16 sps:$4 sm:$0xff]  }
 0x7ab   : > { %10631 = vmatprep.subr.bf16.mxu1 %v12964_v21  ;;  %v13043_v21 = vld [vmem:[#allocation4 + $0x580] ss:$16 sps:$4 sm:$0xff]  }
 0x7ad   : > { %10468 = vmatpush1.bf16.msra.mxu0 %v12959_v33  ;;  %v13046_v33 = vld [vmem:[#allocation4 + $0x588] ss:$16 sps:$4 sm:$0xff]  }
 0x7ae   : > { %10632 = vmatpush1.bf16.msra.mxu1 %v12962_v46  ;;  %10469 = vmatprep.subr.bf16.mxu0 %v12967_v16  ;;  %v13051_v46 = vld [vmem:[#allocation4 + $0x5a4] ss:$16 sps:$4 sm:$0xff]   ;;  %v13054_v16 = vld [vmem:[#allocation4 + $0x5ac] ss:$16 sps:$4 sm:$0xff]  }
 0x7af   : > { %10633 = vmatprep.subr.bf16.mxu1 %v12970_v38  ;;  %v13049_v38 = vld [vmem:[#allocation4 + $0x5a0] ss:$16 sps:$4 sm:$0xff]  }
 0x7b1   : > { %10470 = vmatpush1.bf16.msra.mxu0 %v12965_v40  ;;  %v13052_v40 = vld [vmem:[#allocation4 + $0x5a8] ss:$16 sps:$4 sm:$0xff]  }
 0x7b2   : > { %10634 = vmatpush1.bf16.msra.mxu1 %v12968_v50  ;;  %10480 = vmatprep.subr.bf16.mxu0 %v12973_v32  ;;  %v13057_v50 = vld [vmem:[#allocation4 + $0x5c4] ss:$16 sps:$4 sm:$0xff]   ;;  %v13060_v32 = vld [vmem:[#allocation4 + $0x5cc] ss:$16 sps:$4 sm:$0xff]  }
 0x7b3   : > { %10644 = vmatprep.subr.bf16.mxu1 %v12976_v26  ;;  %v8807_v26 = vcombine.high %v16268_v60, %v16268_v60  ;;  %v13067_v60 = vld [vmem:[#allocation4 + $0x600] ss:$16 sps:$4 sm:$0xff]  }
 0x7b4   : > { %10472 = vmatmul.mubr.bf16.vlgmr.msra.gmra.mrb[0].mxu0 %v8834_v55 }
 0x7b5   : > { %10636 = vmatmul.mubr.bf16.vlgmr.msra.gmra.mrb[0].mxu1 %v8834_v55  ;;  %10481 = vmatpush1.bf16.msra.mxu0 %v12971_v44  ;;  %v13055_v44 = vld [vmem:[#allocation4 + $0x5c0] ss:$16 sps:$4 sm:$0xff]   ;;  %v13058_v55 = vld [vmem:[#allocation4 + $0x5c8] ss:$16 sps:$4 sm:$0xff]  }
 0x7b6   : > { %10645 = vmatpush1.bf16.msra.mxu1 %v12974_v34  ;;  %10482 = vmatprep.subr.bf16.mxu0 %v12979_v35  ;;  %v13063_v34 = vld [vmem:[#allocation4 + $0x5e4] ss:$16 sps:$4 sm:$0xff]   ;;  %v13066_v35 = vld [vmem:[#allocation4 + $0x5ec] ss:$16 sps:$4 sm:$0xff]  }
 0x7b7   : > { %10646 = vmatprep.subr.bf16.mxu1 %v12982_v10  ;;  %10512 = vmatprep.mubr.bf16.mxu0 %v8837_v48  ;;  %v16279_v10 = vrot.slane %v8807_v26, %v15520_v54  ;;  %v13073_v54 = vld [vmem:[#allocation4 + $0x620] ss:$16 sps:$4 sm:$0xff]   ;;  %v13147_v26 = vld [vmem:[#allocation4 + $0x7a4] ss:$16 sps:$4 sm:$0xff]  }
 0x7b8   : > { %10676 = vmatprep.mubr.bf16.mxu1 %v8837_v48 }
 0x7b9   : > { %10483 = vmatpush1.bf16.msra.mxu0 %v12977_v45  ;;  %v13064_v45 = vld [vmem:[#allocation4 + $0x5e8] ss:$16 sps:$4 sm:$0xff]   ;;  %v8823_v48 = vcombine.high %v16279_v10, %v16279_v10 }
 0x7ba   : > { %10647 = vmatpush1.bf16.msra.mxu1 %v12980_v51  ;;  %10484 = vmatprep.subr.bf16.mxu0 %v12985_v41  ;;  %v13069_v51 = vld [vmem:[#allocation4 + $0x604] ss:$16 sps:$4 sm:$0xff]   ;;  %v13072_v41 = vld [vmem:[#allocation4 + $0x60c] ss:$16 sps:$4 sm:$0xff]  }
 0x7bb   : > { %10648 = vmatprep.subr.bf16.mxu1 %v12988_v23  ;;  %v13070_v23 = vld [vmem:[#allocation4 + $0x608] ss:$16 sps:$4 sm:$0xff]  }
 0x7bd   : > { %10485 = vmatpush1.bf16.msra.mxu0 %v12983_v8  ;;  %v8836_v8 = vpack.c.bf16 %v16272_v31, %v16272_v31  ;;  %v13087_v31 = vld [vmem:[#allocation4 + $0x664] ss:$16 sps:$4 sm:$0xff]  }
 0x7be   : > { %10649 = vmatpush1.bf16.msra.mxu1 %v12986_v52  ;;  %10486 = vmatprep.subr.bf16.mxu0 %v12991_v53  ;;  %v13075_v52 = vld [vmem:[#allocation4 + $0x624] ss:$16 sps:$4 sm:$0xff]   ;;  %v13078_v53 = vld [vmem:[#allocation4 + $0x62c] ss:$16 sps:$4 sm:$0xff]  }
 0x7bf   : > { %10650 = vmatprep.subr.bf16.mxu1 %v12994_v49  ;;  %v13076_v49 = vld [vmem:[#allocation4 + $0x628] ss:$16 sps:$4 sm:$0xff]  }
 0x7c1   : > { %10487 = vmatpush1.bf16.msra.mxu0 %v12989_v37  ;;  %v8839_v37 = vpack.c.bf16 %v8823_v48, %v8823_v48  ;;  %v13160_v48 = vld [vmem:[#allocation4 + $0x7e8] ss:$16 sps:$4 sm:$0xff]  }
 0x7c2   : > { %10651 = vmatpush1.bf16.msra.mxu1 %v12992_v63  ;;  %10488 = vmatprep.subr.bf16.mxu0 %v12997_v43  ;;  %v13081_v63 = vld [vmem:[#allocation4 + $0x644] ss:$16 sps:$4 sm:$0xff]   ;;  %v13084_v43 = vld [vmem:[#allocation4 + $0x64c] ss:$16 sps:$4 sm:$0xff]  }
 0x7c3   : > { %10652 = vmatprep.subr.bf16.mxu1 %v13000_v14  ;;  %v13079_v14 = vld [vmem:[#allocation4 + $0x640] ss:$16 sps:$4 sm:$0xff]  }
 0x7c5   : > { %10489 = vmatpush1.bf16.msra.mxu0 %v12995_v0  ;;  %v13082_v0 = vld [vmem:[#allocation4 + $0x648] ss:$16 sps:$4 sm:$0xff]  }
 0x7c6   : > { %10653 = vmatpush1.bf16.msra.mxu1 %v12998_v56  ;;  %10490 = vmatprep.subr.bf16.mxu0 %v13003_v18  ;;  %v13090_v56 = vld [vmem:[#allocation4 + $0x66c] ss:$16 sps:$4 sm:$0xff]   ;;  %v13085_v18 = vld [vmem:[#allocation4 + $0x660] ss:$16 sps:$4 sm:$0xff]  }
 0x7c7   : > { %10654 = vmatprep.subr.bf16.mxu1 %v13006_v15  ;;  %v13088_v15 = vld [vmem:[#allocation4 + $0x668] ss:$16 sps:$4 sm:$0xff]  }
 0x7c9   : > { %10491 = vmatpush1.bf16.msra.mxu0 %v13001_v47  ;;  %v13093_v47 = vld [vmem:[#allocation4 + $0x684] ss:$16 sps:$4 sm:$0xff]  }
 0x7ca   : > { %10655 = vmatpush1.bf16.msra.mxu1 %v13004_v24  ;;  %10492 = vmatprep.subr.bf16.mxu0 %v13009_v12  ;;  %v13096_v24 = vld [vmem:[#allocation4 + $0x68c] ss:$16 sps:$4 sm:$0xff]   ;;  %v13091_v12 = vld [vmem:[#allocation4 + $0x680] ss:$16 sps:$4 sm:$0xff]  }
 0x7cb   : > { %10656 = vmatprep.subr.bf16.mxu1 %v13012_v62  ;;  %v13094_v62 = vld [vmem:[#allocation4 + $0x688] ss:$16 sps:$4 sm:$0xff]  }
 0x7cd   : > { %10493 = vmatpush1.bf16.msra.mxu0 %v13007_v6  ;;  %v13099_v6 = vld [vmem:[#allocation4 + $0x6a4] ss:$16 sps:$4 sm:$0xff]  }
 0x7ce   : > { %10657 = vmatpush1.bf16.msra.mxu1 %v13010_v39  ;;  %10494 = vmatprep.subr.bf16.mxu0 %v13015_v27  ;;  %v13102_v39 = vld [vmem:[#allocation4 + $0x6ac] ss:$16 sps:$4 sm:$0xff]   ;;  %v13097_v27 = vld [vmem:[#allocation4 + $0x6a0] ss:$16 sps:$4 sm:$0xff]  }
 0x7cf   : > { %10658 = vmatprep.subr.bf16.mxu1 %v13018_v57  ;;  %v13100_v57 = vld [vmem:[#allocation4 + $0x6a8] ss:$16 sps:$4 sm:$0xff]  }
 0x7d1   : > { %10495 = vmatpush1.bf16.msra.mxu0 %v13013_v11  ;;  %v13105_v11 = vld [vmem:[#allocation4 + $0x6c4] ss:$16 sps:$4 sm:$0xff]  }
 0x7d2   : > { %10659 = vmatpush1.bf16.msra.mxu1 %v13016_v61  ;;  %10496 = vmatprep.subr.bf16.mxu0 %v13021_v19  ;;  %v13108_v61 = vld [vmem:[#allocation4 + $0x6cc] ss:$16 sps:$4 sm:$0xff]   ;;  %v13103_v19 = vld [vmem:[#allocation4 + $0x6c0] ss:$16 sps:$4 sm:$0xff]  }
 0x7d3   : > { %10660 = vmatprep.subr.bf16.mxu1 %v13024_v2  ;;  %v13106_v2 = vld [vmem:[#allocation4 + $0x6c8] ss:$16 sps:$4 sm:$0xff]  }
 0x7d5   : > { %10497 = vmatpush1.bf16.msra.mxu0 %v13019_v7  ;;  %v13111_v7 = vld [vmem:[#allocation4 + $0x6e4] ss:$16 sps:$4 sm:$0xff]  }
 0x7d6   : > { %10661 = vmatpush1.bf16.msra.mxu1 %v13022_v9  ;;  %10498 = vmatprep.subr.bf16.mxu0 %v13027_v25  ;;  %v13114_v9 = vld [vmem:[#allocation4 + $0x6ec] ss:$16 sps:$4 sm:$0xff]   ;;  %v13109_v25 = vld [vmem:[#allocation4 + $0x6e0] ss:$16 sps:$4 sm:$0xff]  }
 0x7d7   : > { %10662 = vmatprep.subr.bf16.mxu1 %v13030_v17  ;;  %v13112_v17 = vld [vmem:[#allocation4 + $0x6e8] ss:$16 sps:$4 sm:$0xff]  }
 0x7d9   : > { %10499 = vmatpush1.bf16.msra.mxu0 %v13025_v22  ;;  %v13117_v22 = vld [vmem:[#allocation4 + $0x704] ss:$16 sps:$4 sm:$0xff]  }
 0x7da   : > { %10663 = vmatpush1.bf16.msra.mxu1 %v13028_v36  ;;  %10500 = vmatprep.subr.bf16.mxu0 %v13033_v3  ;;  %v13120_v36 = vld [vmem:[#allocation4 + $0x70c] ss:$16 sps:$4 sm:$0xff]   ;;  %v13115_v3 = vld [vmem:[#allocation4 + $0x700] ss:$16 sps:$4 sm:$0xff]  }
 0x7db   : > { %10664 = vmatprep.subr.bf16.mxu1 %v13036_v20  ;;  %v13118_v20 = vld [vmem:[#allocation4 + $0x708] ss:$16 sps:$4 sm:$0xff]  }
 0x7dd   : > { %10501 = vmatpush1.bf16.msra.mxu0 %v13031_v59  ;;  %v13123_v59 = vld [vmem:[#allocation4 + $0x724] ss:$16 sps:$4 sm:$0xff]  }
 0x7de   : > { %10665 = vmatpush1.bf16.msra.mxu1 %v13034_v13  ;;  %10502 = vmatprep.subr.bf16.mxu0 %v13039_v30  ;;  %v13126_v13 = vld [vmem:[#allocation4 + $0x72c] ss:$16 sps:$4 sm:$0xff]   ;;  %v13121_v30 = vld [vmem:[#allocation4 + $0x720] ss:$16 sps:$4 sm:$0xff]  }
 0x7df   : > { %10666 = vmatprep.subr.bf16.mxu1 %v13042_v4  ;;  %v13124_v4 = vld [vmem:[#allocation4 + $0x728] ss:$16 sps:$4 sm:$0xff]  }
 0x7e1   : > { %10503 = vmatpush1.bf16.msra.mxu0 %v13037_v29  ;;  %v13129_v29 = vld [vmem:[#allocation4 + $0x744] ss:$16 sps:$4 sm:$0xff]  }
 0x7e2   : > { %10667 = vmatpush1.bf16.msra.mxu1 %v13040_v58  ;;  %10504 = vmatprep.subr.bf16.mxu0 %v13045_v1  ;;  %v13132_v58 = vld [vmem:[#allocation4 + $0x74c] ss:$16 sps:$4 sm:$0xff]   ;;  %v13127_v1 = vld [vmem:[#allocation4 + $0x740] ss:$16 sps:$4 sm:$0xff]  }
 0x7e3   : > { %10668 = vmatprep.subr.bf16.mxu1 %v13048_v28  ;;  %v13130_v28 = vld [vmem:[#allocation4 + $0x748] ss:$16 sps:$4 sm:$0xff]  }
 0x7e5   : > { %10505 = vmatpush1.bf16.msra.mxu0 %v13043_v21  ;;  %v13135_v21 = vld [vmem:[#allocation4 + $0x764] ss:$16 sps:$4 sm:$0xff]  }
 0x7e6   : > { %10669 = vmatpush1.bf16.msra.mxu1 %v13046_v33  ;;  %10506 = vmatprep.subr.bf16.mxu0 %v13051_v46  ;;  %v13138_v33 = vld [vmem:[#allocation4 + $0x76c] ss:$16 sps:$4 sm:$0xff]   ;;  %v13133_v46 = vld [vmem:[#allocation4 + $0x760] ss:$16 sps:$4 sm:$0xff]  }
 0x7e7   : > { %10670 = vmatprep.subr.bf16.mxu1 %v13054_v16  ;;  %v13136_v16 = vld [vmem:[#allocation4 + $0x768] ss:$16 sps:$4 sm:$0xff]  }
 0x7e9   : > { %10507 = vmatpush1.bf16.msra.mxu0 %v13049_v38  ;;  %v13141_v38 = vld [vmem:[#allocation4 + $0x784] ss:$16 sps:$4 sm:$0xff]  }
 0x7ea   : > { %10671 = vmatpush1.bf16.msra.mxu1 %v13052_v40  ;;  %10508 = vmatprep.subr.bf16.mxu0 %v13057_v50  ;;  %v13144_v40 = vld [vmem:[#allocation4 + $0x78c] ss:$16 sps:$4 sm:$0xff]   ;;  %v13139_v50 = vld [vmem:[#allocation4 + $0x780] ss:$16 sps:$4 sm:$0xff]  }
 0x7eb   : > { %10672 = vmatprep.subr.bf16.mxu1 %v13060_v32  ;;  %v13142_v32 = vld [vmem:[#allocation4 + $0x788] ss:$16 sps:$4 sm:$0xff]  }
 0x7ed   : > { %10509 = vmatpush1.bf16.msra.mxu0 %v13055_v44  ;;  %v13150_v44 = vld [vmem:[#allocation4 + $0x7ac] ss:$16 sps:$4 sm:$0xff]  }
 0x7ee   : > { %10673 = vmatpush1.bf16.msra.mxu1 %v13058_v55  ;;  %10510 = vmatprep.subr.bf16.mxu0 %v13063_v34  ;;  %v13145_v55 = vld [vmem:[#allocation4 + $0x7a0] ss:$16 sps:$4 sm:$0xff]   ;;  %v13148_v34 = vld [vmem:[#allocation4 + $0x7a8] ss:$16 sps:$4 sm:$0xff]  }
 0x7ef   : > { %10674 = vmatprep.subr.bf16.mxu1 %v13066_v35  ;;  %v13153_v35 = vld [vmem:[#allocation4 + $0x7c4] ss:$16 sps:$4 sm:$0xff]  }
 0x7f1   : > { %10511 = vmatpush1.bf16.msra.mxu0 %v13061_v5  ;;  %v13156_v5 = vld [vmem:[#allocation4 + $0x7cc] ss:$16 sps:$4 sm:$0xff]  }
 0x7f2   : > { %10675 = vmatpush1.bf16.msra.mxu1 %v13064_v45  ;;  %10521 = vmatprep.subr.bf16.mxu0 %v13069_v51  ;;  %v13151_v45 = vld [vmem:[#allocation4 + $0x7c0] ss:$16 sps:$4 sm:$0xff]   ;;  %v13154_v51 = vld [vmem:[#allocation4 + $0x7c8] ss:$16 sps:$4 sm:$0xff]  }
 0x7f3   : > { %10685 = vmatprep.subr.bf16.mxu1 %v13072_v41  ;;  %v13159_v41 = vld [vmem:[#allocation4 + $0x7e4] ss:$16 sps:$4 sm:$0xff]  }
 0x7f4   : > { %10513 = vmatmul.mubr.bf16.vlgmr.msra.gmra.mrb[0].mxu0 %v8836_v8 }
 0x7f5   : > { %10677 = vmatmul.mubr.bf16.vlgmr.msra.gmra.mrb[0].mxu1 %v8836_v8  ;;  %10522 = vmatpush1.bf16.msra.mxu0 %v13067_v60  ;;  %v13162_v60 = vld [vmem:[#allocation4 + $0x7ec] ss:$16 sps:$4 sm:$0xff]  }
 0x7f6   : > { %10686 = vmatpush1.bf16.msra.mxu1 %v13070_v23  ;;  %10523 = vmatprep.subr.bf16.mxu0 %v13075_v52  ;;  %v13157_v23 = vld [vmem:[#allocation4 + $0x7e0] ss:$16 sps:$4 sm:$0xff]   ;;  %v13166_v8 = vld [vmem:[%s16776_s21 + $0x4] ss:$8 sps:$4 sm:$0xff]   ;;  %v8838_v52 = vpack.c.bf16 %v16279_v10, %v16279_v10 }
 0x7f7   : > { %10687 = vmatprep.subr.bf16.mxu1 %v13078_v53  ;;  %10553 = vmatprep.mubr.bf16.mxu0 %v8839_v37  ;;  %v13164_v53 = vld [vmem:[%s16776_s21] ss:$8 sps:$4 sm:$0xff]   ;;  %v13172_v10 = vld [vmem:[%s16776_s21 + $0x24] ss:$8 sps:$4 sm:$0xff]  }
 0x7f8   : > { %10717 = vmatprep.mubr.bf16.mxu1 %v8839_v37  ;;  %v13170_v37 = vld [vmem:[%s16776_s21 + $0x20] ss:$8 sps:$4 sm:$0xff]  }
 0x7f9   : > { %10524 = vmatpush1.bf16.msra.mxu0 %v13073_v54  ;;  %v13169_v54 = vld [vmem:[%s16776_s21 + $0x14] ss:$8 sps:$4 sm:$0xff]  }
 0x7fa   : > { %10688 = vmatpush1.bf16.msra.mxu1 %v13076_v49  ;;  %10525 = vmatprep.subr.bf16.mxu0 %v13081_v63  ;;  %v13167_v49 = vld [vmem:[%s16776_s21 + $0x10] ss:$8 sps:$4 sm:$0xff]   ;;  %v13175_v63 = vld [vmem:[%s16776_s21 + $0x34] ss:$8 sps:$4 sm:$0xff]  }
 0x7fb   : > { %10689 = vmatprep.subr.bf16.mxu1 %v13084_v43  ;;  %v13173_v43 = vld [vmem:[%s16776_s21 + $0x30] ss:$8 sps:$4 sm:$0xff]  }
 0x7fd   : > { %10526 = vmatpush1.bf16.msra.mxu0 %v13079_v14  ;;  %v13178_v14 = vld [vmem:[%s16776_s21 + $0x44] ss:$8 sps:$4 sm:$0xff]  }
 0x7fe   : > { %10690 = vmatpush1.bf16.msra.mxu1 %v13082_v0  ;;  %10527 = vmatprep.subr.bf16.mxu0 %v13087_v31  ;;  %v13176_v0 = vld [vmem:[%s16776_s21 + $0x40] ss:$8 sps:$4 sm:$0xff]   ;;  %v13181_v31 = vld [vmem:[%s16776_s21 + $0x54] ss:$8 sps:$4 sm:$0xff]  }
 0x7ff   : > { %10691 = vmatprep.subr.bf16.mxu1 %v13090_v56  ;;  %v13179_v56 = vld [vmem:[%s16776_s21 + $0x50] ss:$8 sps:$4 sm:$0xff]  }
 0x801   : > { %10528 = vmatpush1.bf16.msra.mxu0 %v13085_v18  ;;  %v13184_v18 = vld [vmem:[%s16776_s21 + $0x64] ss:$8 sps:$4 sm:$0xff]  }
 0x802   : > { %10692 = vmatpush1.bf16.msra.mxu1 %v13088_v15  ;;  %10529 = vmatprep.subr.bf16.mxu0 %v13093_v47  ;;  %v13182_v15 = vld [vmem:[%s16776_s21 + $0x60] ss:$8 sps:$4 sm:$0xff]   ;;  %v13187_v47 = vld [vmem:[%s16776_s21 + $0x74] ss:$8 sps:$4 sm:$0xff]  }
 0x803   : > { %10693 = vmatprep.subr.bf16.mxu1 %v13096_v24  ;;  %v13185_v24 = vld [vmem:[%s16776_s21 + $0x70] ss:$8 sps:$4 sm:$0xff]  }
 0x805   : > { %10530 = vmatpush1.bf16.msra.mxu0 %v13091_v12  ;;  %v13190_v12 = vld [vmem:[%s16776_s21 + $0x84] ss:$8 sps:$4 sm:$0xff]  }
 0x806   : > { %10694 = vmatpush1.bf16.msra.mxu1 %v13094_v62  ;;  %10531 = vmatprep.subr.bf16.mxu0 %v13099_v6  ;;  %v13188_v62 = vld [vmem:[%s16776_s21 + $0x80] ss:$8 sps:$4 sm:$0xff]   ;;  %v13193_v6 = vld [vmem:[%s16776_s21 + $0x94] ss:$8 sps:$4 sm:$0xff]  }
 0x807   : > { %10695 = vmatprep.subr.bf16.mxu1 %v13102_v39  ;;  %v13191_v39 = vld [vmem:[%s16776_s21 + $0x90] ss:$8 sps:$4 sm:$0xff]  }
 0x809   : > { %10532 = vmatpush1.bf16.msra.mxu0 %v13097_v27  ;;  %v13196_v27 = vld [vmem:[%s16776_s21 + $0xa4] ss:$8 sps:$4 sm:$0xff]  }
 0x80a   : > { %10696 = vmatpush1.bf16.msra.mxu1 %v13100_v57  ;;  %10533 = vmatprep.subr.bf16.mxu0 %v13105_v11  ;;  %v13194_v57 = vld [vmem:[%s16776_s21 + $0xa0] ss:$8 sps:$4 sm:$0xff]   ;;  %v13199_v11 = vld [vmem:[%s16776_s21 + $0xb4] ss:$8 sps:$4 sm:$0xff]  }
 0x80b   : > { %10697 = vmatprep.subr.bf16.mxu1 %v13108_v61  ;;  %v13197_v61 = vld [vmem:[%s16776_s21 + $0xb0] ss:$8 sps:$4 sm:$0xff]  }
 0x80d   : > { %10534 = vmatpush1.bf16.msra.mxu0 %v13103_v19  ;;  %v13202_v19 = vld [vmem:[%s16776_s21 + $0xc4] ss:$8 sps:$4 sm:$0xff]  }
 0x80e   : > { %10698 = vmatpush1.bf16.msra.mxu1 %v13106_v2  ;;  %10535 = vmatprep.subr.bf16.mxu0 %v13111_v7  ;;  %v13200_v2 = vld [vmem:[%s16776_s21 + $0xc0] ss:$8 sps:$4 sm:$0xff]   ;;  %v13205_v7 = vld [vmem:[%s16776_s21 + $0xd4] ss:$8 sps:$4 sm:$0xff]  }
 0x80f   : > { %10699 = vmatprep.subr.bf16.mxu1 %v13114_v9  ;;  %v13203_v9 = vld [vmem:[%s16776_s21 + $0xd0] ss:$8 sps:$4 sm:$0xff]  }
 0x811   : > { %10536 = vmatpush1.bf16.msra.mxu0 %v13109_v25  ;;  %v13208_v25 = vld [vmem:[%s16776_s21 + $0xe4] ss:$8 sps:$4 sm:$0xff]  }
 0x812   : > { %10700 = vmatpush1.bf16.msra.mxu1 %v13112_v17  ;;  %10537 = vmatprep.subr.bf16.mxu0 %v13117_v22  ;;  %v13206_v17 = vld [vmem:[%s16776_s21 + $0xe0] ss:$8 sps:$4 sm:$0xff]   ;;  %v13211_v22 = vld [vmem:[%s16776_s21 + $0xf4] ss:$8 sps:$4 sm:$0xff]  }
 0x813   : > { %10701 = vmatprep.subr.bf16.mxu1 %v13120_v36  ;;  %v13209_v36 = vld [vmem:[%s16776_s21 + $0xf0] ss:$8 sps:$4 sm:$0xff]  }
 0x815   : > { %10538 = vmatpush1.bf16.msra.mxu0 %v13115_v3  ;;  %v13214_v3 = vld [vmem:[%s16776_s21 + $0x104] ss:$8 sps:$4 sm:$0xff]  }
 0x816   : > { %10702 = vmatpush1.bf16.msra.mxu1 %v13118_v20  ;;  %10539 = vmatprep.subr.bf16.mxu0 %v13123_v59  ;;  %v13260_v20 = vld [vmem:[#allocation7] ss:$8 sps:$4 sm:$0xff]   ;;  %v13262_v59 = vld [vmem:[#allocation7 + $0x4] ss:$8 sps:$4 sm:$0xff]  }
 0x817   : > { %10703 = vmatprep.subr.bf16.mxu1 %v13126_v13  ;;  %v13265_v13 = vld [vmem:[#allocation7 + $0x14] ss:$8 sps:$4 sm:$0xff]  }
 0x819   : > { %10540 = vmatpush1.bf16.msra.mxu0 %v13121_v30  ;;  %v13263_v30 = vld [vmem:[#allocation7 + $0x10] ss:$8 sps:$4 sm:$0xff]  }
 0x81a   : > { %10704 = vmatpush1.bf16.msra.mxu1 %v13124_v4  ;;  %10541 = vmatprep.subr.bf16.mxu0 %v13129_v29  ;;  %v13268_v4 = vld [vmem:[#allocation7 + $0x24] ss:$8 sps:$4 sm:$0xff]   ;;  %v13266_v29 = vld [vmem:[#allocation7 + $0x20] ss:$8 sps:$4 sm:$0xff]  }
 0x81b   : > { %10705 = vmatprep.subr.bf16.mxu1 %v13132_v58  ;;  %v13271_v58 = vld [vmem:[#allocation7 + $0x34] ss:$8 sps:$4 sm:$0xff]  }
 0x81d   : > { %10542 = vmatpush1.bf16.msra.mxu0 %v13127_v1  ;;  %v13269_v1 = vld [vmem:[#allocation7 + $0x30] ss:$8 sps:$4 sm:$0xff]  }
 0x81e   : > { %10706 = vmatpush1.bf16.msra.mxu1 %v13130_v28  ;;  %10543 = vmatprep.subr.bf16.mxu0 %v13135_v21  ;;  %v13274_v28 = vld [vmem:[#allocation7 + $0x44] ss:$8 sps:$4 sm:$0xff]   ;;  %v13272_v21 = vld [vmem:[#allocation7 + $0x40] ss:$8 sps:$4 sm:$0xff]  }
 0x81f   : > { %10707 = vmatprep.subr.bf16.mxu1 %v13138_v33  ;;  %v13277_v33 = vld [vmem:[#allocation7 + $0x54] ss:$8 sps:$4 sm:$0xff]  }
 0x821   : > { %10544 = vmatpush1.bf16.msra.mxu0 %v13133_v46  ;;  %v13275_v46 = vld [vmem:[#allocation7 + $0x50] ss:$8 sps:$4 sm:$0xff]  }
 0x822   : > { %10708 = vmatpush1.bf16.msra.mxu1 %v13136_v16  ;;  %10545 = vmatprep.subr.bf16.mxu0 %v13141_v38  ;;  %v13280_v16 = vld [vmem:[#allocation7 + $0x64] ss:$8 sps:$4 sm:$0xff]   ;;  %v13278_v38 = vld [vmem:[#allocation7 + $0x60] ss:$8 sps:$4 sm:$0xff]  }
 0x823   : > { %10709 = vmatprep.subr.bf16.mxu1 %v13144_v40  ;;  %v13283_v40 = vld [vmem:[#allocation7 + $0x74] ss:$8 sps:$4 sm:$0xff]  }
 0x825   : > { %10546 = vmatpush1.bf16.msra.mxu0 %v13139_v50  ;;  %v13281_v50 = vld [vmem:[#allocation7 + $0x70] ss:$8 sps:$4 sm:$0xff]  }
 0x826   : > { %10710 = vmatpush1.bf16.msra.mxu1 %v13142_v32  ;;  %10547 = vmatprep.subr.bf16.mxu0 %v13147_v26  ;;  %v13286_v32 = vld [vmem:[#allocation7 + $0x84] ss:$8 sps:$4 sm:$0xff]   ;;  %v13284_v26 = vld [vmem:[#allocation7 + $0x80] ss:$8 sps:$4 sm:$0xff]  }
 0x827   : > { %10711 = vmatprep.subr.bf16.mxu1 %v13150_v44  ;;  %v13289_v44 = vld [vmem:[#allocation7 + $0x94] ss:$8 sps:$4 sm:$0xff]  }
 0x829   : > { %10548 = vmatpush1.bf16.msra.mxu0 %v13145_v55  ;;  %v13287_v55 = vld [vmem:[#allocation7 + $0x90] ss:$8 sps:$4 sm:$0xff]  }
 0x82a   : > { %10712 = vmatpush1.bf16.msra.mxu1 %v13148_v34  ;;  %10549 = vmatprep.subr.bf16.mxu0 %v13153_v35  ;;  %v13292_v34 = vld [vmem:[#allocation7 + $0xa4] ss:$8 sps:$4 sm:$0xff]   ;;  %v13290_v35 = vld [vmem:[#allocation7 + $0xa0] ss:$8 sps:$4 sm:$0xff]  }
 0x82b   : > { %10713 = vmatprep.subr.bf16.mxu1 %v13156_v5  ;;  %v13295_v5 = vld [vmem:[#allocation7 + $0xb4] ss:$8 sps:$4 sm:$0xff]  }
 0x82d   : > { %10550 = vmatpush1.bf16.msra.mxu0 %v13151_v45  ;;  %v13293_v45 = vld [vmem:[#allocation7 + $0xb0] ss:$8 sps:$4 sm:$0xff]  }
 0x82e   : > { %10714 = vmatpush1.bf16.msra.mxu1 %v13154_v51  ;;  %10551 = vmatprep.subr.bf16.mxu0 %v13159_v41  ;;  %v13298_v51 = vld [vmem:[#allocation7 + $0xc4] ss:$8 sps:$4 sm:$0xff]   ;;  %v13296_v41 = vld [vmem:[#allocation7 + $0xc0] ss:$8 sps:$4 sm:$0xff]  }
 0x82f   : > { %10715 = vmatprep.subr.bf16.mxu1 %v13162_v60  ;;  %v13301_v60 = vld [vmem:[#allocation7 + $0xd4] ss:$8 sps:$4 sm:$0xff]  }
 0x831   : > { %10552 = vmatpush1.bf16.msra.mxu0 %v13157_v23  ;;  %v16389_v23 = vld [vmem:[%s16777_s14] sm:$0xf] }
 0x832   : > { %10716 = vmatpush1.bf16.msra.mxu1 %v13160_v48  ;;  %11130 = vmatprep.subr.bf16.mxu0 %v13166_v8  ;;  %v16778_v48 = vld [vmem:[#allocation47_spill] sm:$0xff] }
 0x833   : > { %11420 = vmatprep.subr.bf16.mxu1 %v13262_v59  ;;  %v9112_v8 = vsub.s32 3, %v16778_v48  ;;  %v13230_v59 = vld [vmem:[%s16776_s21 + $0x160] ss:$8 sps:$4 sm:$0xff]  }
 0x834   : > { %10554 = vmatmul.mubr.bf16.vlgmr.msra.gmra.mrb[0].mxu0 %v8838_v52 }
 0x835   : > { %10718 = vmatmul.mubr.bf16.vlgmr.msra.gmra.mrb[0].mxu1 %v8838_v52  ;;  %11131 = vmatpush1.bf16.msra.mxu0 %v13164_v53  ;;  %v13299_v52 = vld [vmem:[#allocation7 + $0xd0] ss:$8 sps:$4 sm:$0xff]   ;;  %v9101_v53 = vrot.slane %v16389_v23, %v14637_v42 }
 0x836   : > { %11132 = vmatprep.subr.bf16.mxu0 %v13169_v54  ;;  %11421 = vmatpush1.bf16.msra.mxu1 %v13260_v20  ;;  %v16779_v54 = vld [vmem:[#allocation49_spill] sm:$0xff] }
 0x837   : > { %11422 = vmatprep.subr.bf16.mxu1 %v13265_v13  ;;  %v13232_v20 = vld [vmem:[%s16776_s21 + $0x164] ss:$8 sps:$4 sm:$0xff]   ;;  %v13235_v13 = vld [vmem:[%s16776_s21 + $0x174] ss:$8 sps:$4 sm:$0xff]  }
 0x839   : > { %11133 = vmatpush1.bf16.msra.mxu0 %v13167_v49  ;;  %v9105_v49 = vrot.slane %v16389_v23, %v16779_v54 }
 0x83a   : > { %11134 = vmatprep.subr.bf16.mxu0 %v13172_v10  ;;  %11423 = vmatpush1.bf16.msra.mxu1 %v13263_v30  ;;  %v9113_v10 = vrot.slane %v16389_v23, %v9112_v8  ;;  %v13233_v30 = vld [vmem:[%s16776_s21 + $0x170] ss:$8 sps:$4 sm:$0xff]   ;;  %v10798_v8 = vld [vmem:[%s16780_s18] sm:$0x3] }
 0x83b   : > { %11424 = vmatprep.subr.bf16.mxu1 %v13268_v4  ;;  %v13238_v4 = vld [vmem:[%s16776_s21 + $0x184] ss:$8 sps:$4 sm:$0xff]  }
 0x83d   : > { %11135 = vmatpush1.bf16.msra.mxu0 %v13170_v37 }
 0x83e   : > { %11136 = vmatprep.subr.bf16.mxu0 %v13175_v63  ;;  %11425 = vmatpush1.bf16.msra.mxu1 %v13266_v29  ;;  %v13236_v29 = vld [vmem:[%s16776_s21 + $0x180] ss:$8 sps:$4 sm:$0xff]  }
 0x83f   : > { %11426 = vmatprep.subr.bf16.mxu1 %v13271_v58  ;;  %v13241_v58 = vld [vmem:[%s16776_s21 + $0x194] ss:$8 sps:$4 sm:$0xff]  }
 0x841   : > { %11137 = vmatpush1.bf16.msra.mxu0 %v13173_v43 }
 0x842   : > { %11138 = vmatprep.subr.bf16.mxu0 %v13178_v14  ;;  %11427 = vmatpush1.bf16.msra.mxu1 %v13269_v1  ;;  %v13239_v1 = vld [vmem:[%s16776_s21 + $0x190] ss:$8 sps:$4 sm:$0xff]  }
 0x843   : > { %11428 = vmatprep.subr.bf16.mxu1 %v13274_v28  ;;  %v13244_v28 = vld [vmem:[%s16776_s21 + $0x1a4] ss:$8 sps:$4 sm:$0xff]  }
 0x845   : > { %11139 = vmatpush1.bf16.msra.mxu0 %v13176_v0 }
 0x846   : > { %11140 = vmatprep.subr.bf16.mxu0 %v13181_v31  ;;  %11429 = vmatpush1.bf16.msra.mxu1 %v13272_v21  ;;  %v13242_v21 = vld [vmem:[%s16776_s21 + $0x1a0] ss:$8 sps:$4 sm:$0xff]  }
 0x847   : > { %11430 = vmatprep.subr.bf16.mxu1 %v13277_v33  ;;  %v13247_v33 = vld [vmem:[%s16776_s21 + $0x1b4] ss:$8 sps:$4 sm:$0xff]  }
 0x849   : > { %11141 = vmatpush1.bf16.msra.mxu0 %v13179_v56 }
 0x84a   : > { %11142 = vmatprep.subr.bf16.mxu0 %v13184_v18  ;;  %11431 = vmatpush1.bf16.msra.mxu1 %v13275_v46  ;;  %v13245_v46 = vld [vmem:[%s16776_s21 + $0x1b0] ss:$8 sps:$4 sm:$0xff]  }
 0x84b   : > { %11432 = vmatprep.subr.bf16.mxu1 %v13280_v16  ;;  %v13250_v16 = vld [vmem:[%s16776_s21 + $0x1c4] ss:$8 sps:$4 sm:$0xff]  }
 0x84d   : > { %11143 = vmatpush1.bf16.msra.mxu0 %v13182_v15 }
 0x84e   : > { %11144 = vmatprep.subr.bf16.mxu0 %v13187_v47  ;;  %11433 = vmatpush1.bf16.msra.mxu1 %v13278_v38  ;;  %v13248_v38 = vld [vmem:[%s16776_s21 + $0x1c0] ss:$8 sps:$4 sm:$0xff]  }
 0x84f   : > { %11434 = vmatprep.subr.bf16.mxu1 %v13283_v40  ;;  %v9108_v40 = vsub.s32 2, %v16778_v48  ;;  %v13305_v48 = vld [vmem:[#allocation7 + $0xf0] ss:$8 sps:$4 sm:$0xff]  }
 0x851   : > { %11145 = vmatpush1.bf16.msra.mxu0 %v13185_v24 }
 0x852   : > { %11146 = vmatprep.subr.bf16.mxu0 %v13190_v12  ;;  %11435 = vmatpush1.bf16.msra.mxu1 %v13281_v50  ;;  %v13253_v50 = vld [vmem:[%s16776_s21 + $0x1d4] ss:$8 sps:$4 sm:$0xff]  }
 0x853   : > { %11436 = vmatprep.subr.bf16.mxu1 %v13286_v32  ;;  %v13251_v32 = vld [vmem:[%s16776_s21 + $0x1d0] ss:$8 sps:$4 sm:$0xff]  }
 0x855   : > { %11147 = vmatpush1.bf16.msra.mxu0 %v13188_v62 }
 0x856   : > { %11148 = vmatprep.subr.bf16.mxu0 %v13193_v6  ;;  %11437 = vmatpush1.bf16.msra.mxu1 %v13284_v26  ;;  %v9109_v26 = vrot.slane %v16389_v23, %v9108_v40  ;;  %v13307_v23 = vld [vmem:[#allocation7 + $0xf4] ss:$8 sps:$4 sm:$0xff]  }
 0x857   : > { %11438 = vmatprep.subr.bf16.mxu1 %v13289_v44  ;;  %v13256_v44 = vld [vmem:[%s16776_s21 + $0x1e4] ss:$8 sps:$4 sm:$0xff]  }
 0x859   : > { %11149 = vmatpush1.bf16.msra.mxu0 %v13191_v39 }
 0x85a   : > { %11150 = vmatprep.subr.bf16.mxu0 %v13196_v27  ;;  %11439 = vmatpush1.bf16.msra.mxu1 %v13287_v55  ;;  %v13212_v27 = vld [vmem:[%s16776_s21 + $0x100] ss:$8 sps:$4 sm:$0xff]  }
 0x85b   : > { %11440 = vmatprep.subr.bf16.mxu1 %v13292_v34  ;;  %v13254_v55 = vld [vmem:[%s16776_s21 + $0x1e0] ss:$8 sps:$4 sm:$0xff]  }
 0x85d   : > { %11151 = vmatpush1.bf16.msra.mxu0 %v13194_v57 }
 0x85e   : > { %11152 = vmatprep.subr.bf16.mxu0 %v13199_v11  ;;  %11441 = vmatpush1.bf16.msra.mxu1 %v13290_v35  ;;  %v13217_v11 = vld [vmem:[%s16776_s21 + $0x114] ss:$8 sps:$4 sm:$0xff]  }
 0x85f   : > { %11442 = vmatprep.subr.bf16.mxu1 %v13295_v5  ;;  %v13259_v35 = vld [vmem:[%s16776_s21 + $0x1f4] ss:$8 sps:$4 sm:$0xff]   ;;  %v13257_v5 = vld [vmem:[%s16776_s21 + $0x1f0] ss:$8 sps:$4 sm:$0xff]  }
 0x861   : > { %11153 = vmatpush1.bf16.msra.mxu0 %v13197_v61 }
 0x862   : > { %11154 = vmatprep.subr.bf16.mxu0 %v13202_v19  ;;  %11443 = vmatpush1.bf16.msra.mxu1 %v13293_v45  ;;  %v13215_v19 = vld [vmem:[%s16776_s21 + $0x110] ss:$8 sps:$4 sm:$0xff]  }
 0x863   : > { %11444 = vmatprep.subr.bf16.mxu1 %v13298_v51 }
 0x865   : > { %11155 = vmatpush1.bf16.msra.mxu0 %v13200_v2  ;;  %v13220_v2 = vld [vmem:[%s16776_s21 + $0x124] ss:$8 sps:$4 sm:$0xff]  }
 0x866   : > { %11156 = vmatprep.subr.bf16.mxu0 %v13205_v7  ;;  %11445 = vmatpush1.bf16.msra.mxu1 %v13296_v41  ;;  %v13218_v7 = vld [vmem:[%s16776_s21 + $0x120] ss:$8 sps:$4 sm:$0xff]   ;;  %v13304_v41 = vld [vmem:[#allocation7 + $0xe4] ss:$8 sps:$4 sm:$0xff]  }
 0x867   : > { %11446 = vmatprep.subr.bf16.mxu1 %v13301_v60  ;;  %v13302_v60 = vld [vmem:[#allocation7 + $0xe0] ss:$8 sps:$4 sm:$0xff]  }
 0x869   : > { %11157 = vmatpush1.bf16.msra.mxu0 %v13203_v9  ;;  %v13223_v9 = vld [vmem:[%s16776_s21 + $0x134] ss:$8 sps:$4 sm:$0xff]  }
 0x86a   : > { %11158 = vmatprep.subr.bf16.mxu0 %v13208_v25  ;;  %11447 = vmatpush1.bf16.msra.mxu1 %v13299_v52  ;;  %v13221_v25 = vld [vmem:[%s16776_s21 + $0x130] ss:$8 sps:$4 sm:$0xff]   ;;  %v10803_v52 = vrot.slane %v10798_v8, %v14637_v42 }
 0x86b   : > { %11448 = vmatprep.subr.bf16.mxu1 %v13304_v41 }
 0x86d   : > { %11159 = vmatpush1.bf16.msra.mxu0 %v13206_v17  ;;  %v13226_v17 = vld [vmem:[%s16776_s21 + $0x144] ss:$8 sps:$4 sm:$0xff]  }
 0x86e   : > { %11160 = vmatprep.subr.bf16.mxu0 %v13211_v22  ;;  %v13224_v22 = vld [vmem:[%s16776_s21 + $0x140] ss:$8 sps:$4 sm:$0xff]   ;;  %11449 = vmatpush1.bf16.msra.mxu1 %v13302_v60 }
 0x86f   : > { %11450 = vmatprep.subr.bf16.mxu1 %v13307_v23 }
 0x871   : > { %11161 = vmatpush1.bf16.msra.mxu0 %v13209_v36  ;;  %v13229_v36 = vld [vmem:[%s16776_s21 + $0x154] ss:$8 sps:$4 sm:$0xff]  }
 0x872   : > { %11171 = vmatprep.subr.bf16.mxu0 %v13214_v3  ;;  %v13227_v3 = vld [vmem:[%s16776_s21 + $0x150] ss:$8 sps:$4 sm:$0xff]   ;;  %11451 = vmatpush1.bf16.msra.mxu1 %v13305_v48 }
 0x907   : > { %v10555_v37 = vpop.f32.mrb[0].mxu0 }
 0x908   : > { %v16397_v63 = vpop.f32.mrb[0].mxu1  ;;  %v12598_v43 = vadd.f32 %v10555_v37, %v9101_v53  ;;  %v10557_v14 = vpop.f32.mrb[1].mxu0  ;;  %v10807_v53 = vrot.slane %v10798_v8, %v16779_v54 }
 0x909   : > { %v10721_v0 = vpop.f32.mrb[1].mxu1  ;;  %v12599_v31 = vadd.f32 %v10557_v14, %v9105_v49  ;;  %v10559_v18 = vpop.f32.mrb[2].mxu0  ;;  %v12600_v34 = vadd.f32 %v16397_v63, %v9109_v26 }
 0x90a   : > { %v12601_v56 = vadd.f32 %v10721_v0, %v9113_v10  ;;  %v10723_v15 = vpop.f32.mrb[2].mxu1  ;;  %v10726_v47 = vmax.f32 %v12598_v43, 0.0  ;;  %v10560_v24 = vpop.f32.mrb[3].mxu0 }
 0x90b   : > { %v10724_v12 = vpop.f32.mrb[3].mxu1  ;;  %v10727_v62 = vmax.f32 %v12599_v31, 0.0  ;;  %v10728_v45 = vmax.f32 %v12600_v34, 0.0  ;;  %v11248_v15 = vld [vmem:[%s16781_s8] sm:$0x3] }
 0x90c   : > { %v10729_v6 = vmax.f32 %v12601_v56, 0.0  ;;  %v10730_v57 = vpack.c.bf16 %v10726_v47, %v10726_v47  ;;  %v11253_v47 = vrot.slane %v11248_v15, %v14637_v42  ;;  %v11257_v24 = vrot.slane %v11248_v15, %v16779_v54 }
 0x90d   : > { %v10731_v39 = vpack.c.bf16 %v10727_v62, %v10727_v62  ;;  %v10732_v51 = vpack.c.bf16 %v10728_v45, %v10728_v45 }
 0x90e   : > { %v10733_v61 = vpack.c.bf16 %v10729_v6, %v10729_v6 }
 0x90f   : > { %11162 = vmatprep.mubr.bf16.mxu0 %v10731_v39 }
 0x910   : > { %11163 = vmatmul.mubr.bf16.vlgmr.msra.gmra.mrb[4].mxu0 %v10730_v57 }
 0x911   : > { %11172 = vmatpush1.bf16.msra.mxu0 %v13212_v27  ;;  %11203 = vmatprep.mubr.bf16.mxu0 %v10733_v61 }
 0x912   : > { %11173 = vmatprep.subr.bf16.mxu0 %v13217_v11 }
 0x915   : > { %11174 = vmatpush1.bf16.msra.mxu0 %v13215_v19 }
 0x916   : > { %11175 = vmatprep.subr.bf16.mxu0 %v13220_v2 }
 0x919   : > { %11176 = vmatpush1.bf16.msra.mxu0 %v13218_v7 }
 0x91a   : > { %11177 = vmatprep.subr.bf16.mxu0 %v13223_v9 }
 0x91d   : > { %11178 = vmatpush1.bf16.msra.mxu0 %v13221_v25 }
 0x91e   : > { %11179 = vmatprep.subr.bf16.mxu0 %v13226_v17 }
 0x921   : > { %11180 = vmatpush1.bf16.msra.mxu0 %v13224_v22 }
 0x922   : > { %11181 = vmatprep.subr.bf16.mxu0 %v13229_v36 }
 0x925   : > { %11182 = vmatpush1.bf16.msra.mxu0 %v13227_v3 }
 0x926   : > { %11183 = vmatprep.subr.bf16.mxu0 %v13232_v20 }
 0x929   : > { %11184 = vmatpush1.bf16.msra.mxu0 %v13230_v59 }
 0x92a   : > { %11185 = vmatprep.subr.bf16.mxu0 %v13235_v13 }
 0x92d   : > { %11186 = vmatpush1.bf16.msra.mxu0 %v13233_v30 }
 0x92e   : > { %11187 = vmatprep.subr.bf16.mxu0 %v13238_v4 }
 0x931   : > { %11188 = vmatpush1.bf16.msra.mxu0 %v13236_v29 }
 0x932   : > { %11189 = vmatprep.subr.bf16.mxu0 %v13241_v58 }
 0x935   : > { %11190 = vmatpush1.bf16.msra.mxu0 %v13239_v1 }
 0x936   : > { %11191 = vmatprep.subr.bf16.mxu0 %v13244_v28 }
 0x939   : > { %11192 = vmatpush1.bf16.msra.mxu0 %v13242_v21 }
 0x93a   : > { %11193 = vmatprep.subr.bf16.mxu0 %v13247_v33 }
 0x93d   : > { %11194 = vmatpush1.bf16.msra.mxu0 %v13245_v46 }
 0x93e   : > { %11195 = vmatprep.subr.bf16.mxu0 %v13250_v16 }
 0x941   : > { %11196 = vmatpush1.bf16.msra.mxu0 %v13248_v38 }
 0x942   : > { %11197 = vmatprep.subr.bf16.mxu0 %v13253_v50 }
 0x945   : > { %11198 = vmatpush1.bf16.msra.mxu0 %v13251_v32 }
 0x946   : > { %11199 = vmatprep.subr.bf16.mxu0 %v13256_v44 }
 0x949   : > { %11200 = vmatpush1.bf16.msra.mxu0 %v13254_v55 }
 0x94a   : > { %11201 = vmatprep.subr.bf16.mxu0 %v13259_v35 }
 0x94d   : > { %11202 = vmatpush1.bf16.msra.mxu0 %v13257_v5 }
 0x950   : > { %11204 = vmatmul.mubr.bf16.vlgmr.msra.gmra.mrb[4].mxu0 %v10732_v51 }
 0xa23   : > { %v11205_v49 = vpop.f32.mrb[4].mxu0 }
 0xa24   : > { %v12602_v10 = vadd.f32 %v11205_v49, %v10803_v52  ;;  %v11207_v37 = vpop.f32.mrb[5].mxu0 }
 0xa25   : > { %v12603_v63 = vadd.f32 %v11207_v37, %v10807_v53  ;;  %v11209_v43 = vpop.f32.mrb[6].mxu0 }
 0xa26   : > { %v11212_v14 = vmax.f32 %v12602_v10, 0.0  ;;  %v11210_v0 = vpop.f32.mrb[7].mxu0 }
 0xa27   : > { %v11213_v31 = vmax.f32 %v12603_v63, 0.0 }
 0xa28   : > { %v11214_v18 = vpack.c.bf16 %v11212_v14, %v11212_v14 }
 0xa29   : > { %v11215_v56 = vpack.c.bf16 %v11213_v31, %v11213_v31 }
 0xa2b   : > { %11452 = vmatprep.mubr.bf16.mxu1 %v11215_v56 }
 0xa2c   : > { %11453 = vmatmul.mubr.bf16.vlgmr.msra.gmra.mrb[4].mxu1 %v11214_v18 }
 0xaff   : > { %v11454_v12 = vpop.f32.mrb[4].mxu1 }
 0xb00   : > { %v11455_v62 = vadd.f32 %v11454_v12, %v11253_v47  ;;  %v11456_v6 = vpop.f32.mrb[5].mxu1 }
 0xb01   : > { %v11457_v39 = vadd.f32 %v11456_v6, %v11257_v24  ;;  %v11458_v27 = vpop.f32.mrb[6].mxu1 }
 0xb02   : > { %v11459_v57 = vpop.f32.mrb[7].mxu1 }
 0xb03   : > { %v11463_v11 = vcombine.low %v11455_v62, %v11457_v39 }
 0xb05   : > { %12193 = vst.sshfl [vmem:[#allocation9] sm:$0x33 pattern:$0x76325410] %v11463_v11 }
 0xb06 PF: > { %s16782_s10 = sadd.s32 4294967295, %s13440_s29   ;;  %s13451_s30 = smov [#allocation9]  }
 0xb07   : > { %p16507_p13 = scmp.eq.s32.totalorder %s16782_s10, 1  ;;  %s11483_s14 = sshll.u32 %s13451_s30, 4  ;;  %s11484_s14 = int_to_ptr.vmem [resolvable:$true] %s11483_s14 }
 0xb08   : > { %s13364_s12 = scalar_lea.vmem %s11484_s14, 64  ;;  %p13371_p4 = scmp.lt.s32.totalorder %s11484_s14, %s11484_s14 }
 0xb09   : > { %p13365_p0 = scmp.ne.s32.totalorder %s11484_s14, %s13364_s12  ;;  %p13372_p5 = scmp.lt.s32.totalorder %s13364_s12, %s13364_s12 }
 0xb0b   : > { %p13366_p1 = pnand %p13365_p0, %p16507_p13  ;;  %p13373_p6 = por %p13372_p5, %p13371_p4 }
 0xb0d   : > { %p13367_p2 = pneg %p13366_p1 }
 0xb0f   : > { %p13374_p9 = pnand %p13373_p6, %p13367_p2 }
 0xb11   : > { %13377 = shalt.err (!%p13374_p9)
}
 0xb12   : > { %s16784_s27 = sld [smem:[#allocation65_spill]] }
 0xb18   : > { %s16785_s15 = smov %s16784_s27  ;;  %s13378_s16 = scalar_lea.hbm %s16784_s27, 64 }
 0xb19   : > { %p13379_p8 = scmp.ne.s32.totalorder %s16785_s15, %s13378_s16  ;;  %p13384_p12 = scmp.lt.u32.totalorder %s13378_s16, %s16785_s15 }
 0xb1b   : > { %p13380_p3 = pnand %p13379_p8, %p16507_p13 }
 0xb1d   : > { %p13381_p10 = pneg %p13380_p3 }
 0xb1f   : > { %p13386_p7 = pnand %p13384_p12, %p13381_p10 }
 0xb21   : > { %13389 = shalt.err (!%p13386_p7)
}
 0xb22   : > { %12641 = dma.vmem_to_hbm [thread:$0]  (%p16507_p13), %s11484_s14, 64, %s16785_s15, [#allocation6]  }
 0xb23   : > { %13419 = dma.done.wait (%p16507_p13), [#allocation6], 64  }
 0xb24   : > { %13421 = vsyncadd (%p16507_p13), [#allocation6], 4294967232 }
 0xb25 PF: > { %s26_s29 = sadd.s32 1, %s13440_s29   ;;  %s16786_s22 = sld [smem:[#allocation14_spill]] }
 0xb26   : > { %p23_p11 = scmp.ge.s32.totalorder %s26_s29, 4   ;;  %s16787_s8 = sld [smem:[#allocation13_spill]] }
 0xb27   : > { %s16788_s25 = smov %s13428_s26  ;;  %s16790_s27 = smov %s13436_s28 }
 0xb28   :  { %25 = sbr.rel (!%p23_p11) target bundleno = 11 (0xb), region = 163 }
 0xb2b   : > { %s16789_s26 = smov %s16786_s22 }
 0xb2c   : > { %s16791_s28 = smov %s16787_s8 }
 0xb2f   :  { %11496 = vsyncpa [#allocation5], 1 }
 0xb30   :  { %11498 = vsyncpa [#allocation5 + $0x1], 1 }
 0xb31   :  { %11499 = vsyncpa [#allocation8], 1 }
 0xb32   :  { %11500 = vsyncpa [#allocation6], 1 }
 0xb33   :  { %11502 = vsyncpa [#allocation6 + $0x1], 1 }

</bundles_post_ra>
